<compile_context>
chip_gen: v6e
topology: v6e:2x2x1
jax: 0.10.0
libtpu: 0.0.40
codegen_flags: <defaults>
</compile_context>

<pallas_src>
import math

import jax
import jax.numpy as jnp
import numpy as np
from jax import lax
from jax.experimental import pallas as pl
from jax.experimental.pallas import tpu as pltpu

LANE = 128
SUBLANE = 8


def _round_up(x, m):
    return ((x + m - 1) // m) * m


# -----------------------------------------------------------------------------
# Pallas kernel
# -----------------------------------------------------------------------------
def _lstm_encoder_kernel(len_ref,    # (Bp, 1)          i32  valid lengths
                         emb_ref,    # (Tt, Bp, Ep)     f32  time-major embedded tokens (tile)
                         h0_ref,     # (L, Bp, Hp)      f32  initial hidden state
                         c0_ref,     # (L, Bp, Hp)      f32  initial cell state
                         win0_ref,   # (Ep, 4Hp)        f32  folded input_dense @ layer-0 W_ih
                         bin0_ref,   # (1, 4Hp)         f32  folded bias (bd@Wih0 + b_ih0 + b_hh0)
                         whh0_ref,   # (Hp, 4Hp)        bf16 layer-0 W_hh (recurrent path)
                         wf_ref,     # (L-1, 2Hp, 4Hp)  bf16 fused [W_ih; W_hh] for layers >= 1
                         bf_ref,     # (L-1, 1, 4Hp)    f32  b_ih + b_hh for layers >= 1
                         out_ref,    # (Tt, Bp, Hp)     f32  top-layer hidden states (tile)
                         hn_ref,     # (L, Bp, Hp)      f32  final hidden state
                         cn_ref,     # (L, Bp, Hp)      f32  final cell state
                         h_state,    # scratch VMEM (L, Bp, Hp)  f32 persistent h across grid
                         c_state,    # scratch VMEM (L, Bp, Hp)  f32 persistent c across grid
                         xg0_ref):   # scratch VMEM (Tt, Bp, 4Hp) f32 hoisted layer-0 input proj
    ti = pl.program_id(0)
    Tt, Bp, Ep = emb_ref.shape
    L, _, Hp = h0_ref.shape
    G = 4 * Hp

    # ---- init persistent state on the first grid step ----
    @pl.when(ti == 0)
    def _init():
        h_state[...] = h0_ref[...]
        c_state[...] = c0_ref[...]

    # ---- hoisted prologue GEMM: all Tt timesteps at once (off the serial chain) ----
    xe = emb_ref[...].reshape(Tt * Bp, Ep)                                   # (Tt*Bp, Ep)
    xg0 = jnp.dot(xe, win0_ref[...], preferred_element_type=jnp.float32) + bin0_ref[...]
    xg0_ref[...] = xg0.reshape(Tt, Bp, G)

    lens = len_ref[...]                                                      # (Bp, 1) i32
    t_base = ti * Tt

    def gate_apply(gates, c_prev):
        # gate order i, f, g, o; each slice is a full 128-lane block (Hp = 128)
        i_g = jax.nn.sigmoid(gates[:, 0 * Hp:1 * Hp])
        f_g = jax.nn.sigmoid(gates[:, 1 * Hp:2 * Hp])
        g_g = jnp.tanh(gates[:, 2 * Hp:3 * Hp])
        o_g = jax.nn.sigmoid(gates[:, 3 * Hp:4 * Hp])
        c_new = f_g * c_prev + i_g * g_g
        h_new = o_g * jnp.tanh(c_new)
        return h_new, c_new

    def step(t, carry):
        hs, cs = carry                                     # tuples of L arrays (Bp, Hp)
        mask = lens > (t_base + t)                         # (Bp, 1) bool
        new_hs, new_cs = [], []

        # ---- layer 0: input projection already precomputed (xg0) ----
        g0 = xg0_ref[t] + jnp.dot(hs[0].astype(jnp.bfloat16), whh0_ref[...],
                                  preferred_element_type=jnp.float32)
        h_new, c_new = gate_apply(g0, cs[0])
        new_hs.append(jnp.where(mask, h_new, hs[0]))
        new_cs.append(jnp.where(mask, c_new, cs[0]))
        inp = h_new

        # ---- layers 1..L-1: single fused (2Hp, 4Hp) matmul per layer ----
        for l in range(1, L):
            xcat = jnp.concatenate([inp, hs[l]], axis=-1).astype(jnp.bfloat16)   # (Bp, 2Hp)
            g = jnp.dot(xcat, wf_ref[l - 1],
                        preferred_element_type=jnp.float32) + bf_ref[l - 1]
            h_new, c_new = gate_apply(g, cs[l])
            new_hs.append(jnp.where(mask, h_new, hs[l]))
            new_cs.append(jnp.where(mask, c_new, cs[l]))
            inp = h_new

        # pad_packed_sequence pads invalid positions with zeros (lane-dense full-vreg store)
        out_ref[t] = jnp.where(mask, inp, jnp.zeros_like(inp))
        return tuple(new_hs), tuple(new_cs)

    hs0 = tuple(h_state[l] for l in range(L))
    cs0 = tuple(c_state[l] for l in range(L))
    hs, cs = lax.fori_loop(0, Tt, step, (hs0, cs0), unroll=True)

    # ---- persist state across grid steps ----
    for l in range(L):
        h_state[l] = hs[l]
        c_state[l] = cs[l]

    # ---- finalize on last grid step ----
    @pl.when(ti == pl.num_programs(0) - 1)
    def _final():
        hn_ref[...] = h_state[...]
        cn_ref[...] = c_state[...]


# -----------------------------------------------------------------------------
# Wrapper
# -----------------------------------------------------------------------------
def lstm_encoder_forward(x_input, x_length, encoder_hidden, packed, *, time_tile=8):
    """x_input: (B, T) int32 ids; x_length: (B,) int32; encoder_hidden: (h0, c0) each (L, B, H)."""
    h0, c0 = encoder_hidden
    B, T = x_input.shape
    L, _, H = h0.shape
    Hp, Ep = packed["Hp"], packed["Ep"]
    G = 4 * Hp

    Bp = _round_up(max(B, SUBLANE), SUBLANE)
    Tt = min(time_tile, T)
    Tp = _round_up(T, Tt)

    # time-major embedding gather (transpose only the tiny (B,T) id matrix, not (B,T,E) data)
    ids = jnp.zeros((Tp, Bp), jnp.int32).at[:T, :B].set(jnp.transpose(x_input).astype(jnp.int32))
    emb = jnp.take(packed["embedding_p"], ids, axis=0)                         # (Tp, Bp, Ep) f32

    lengths = jnp.zeros((Bp, 1), jnp.int32).at[:B, 0].set(x_length.astype(jnp.int32))
    h0p = jnp.zeros((L, Bp, Hp), jnp.float32).at[:, :B, :H].set(h0)
    c0p = jnp.zeros((L, Bp, Hp), jnp.float32).at[:, :B, :H].set(c0)

    out_p, hn_p, cn_p = pl.pallas_call(
        _lstm_encoder_kernel,
        out_shape=(jax.ShapeDtypeStruct((Tp, Bp, Hp), jnp.float32),
                   jax.ShapeDtypeStruct((L, Bp, Hp), jnp.float32),
                   jax.ShapeDtypeStruct((L, Bp, Hp), jnp.float32)),
        grid_spec=pltpu.PrefetchScalarGridSpec(
            num_scalar_prefetch=0,
            grid=(Tp // Tt,),
            in_specs=[
                pl.BlockSpec((Bp, 1), lambda i: (0, 0)),                # lengths
                pl.BlockSpec((Tt, Bp, Ep), lambda i: (i, 0, 0)),        # emb (time-tiled)
                pl.BlockSpec((L, Bp, Hp), lambda i: (0, 0, 0)),         # h0
                pl.BlockSpec((L, Bp, Hp), lambda i: (0, 0, 0)),         # c0
                pl.BlockSpec((Ep, G), lambda i: (0, 0)),                # folded dense+W_ih0 (f32)
                pl.BlockSpec((1, G), lambda i: (0, 0)),                 # folded bias
                pl.BlockSpec((Hp, G), lambda i: (0, 0)),                # layer-0 W_hh (bf16)
                pl.BlockSpec((L - 1, 2 * Hp, G), lambda i: (0, 0, 0)),  # fused W, layers>=1 (bf16)
                pl.BlockSpec((L - 1, 1, G), lambda i: (0, 0, 0)),       # biases, layers>=1
            ],
            out_specs=(
                pl.BlockSpec((Tt, Bp, Hp), lambda i: (i, 0, 0)),        # out (time-tiled)
                pl.BlockSpec((L, Bp, Hp), lambda i: (0, 0, 0)),         # h_n
                pl.BlockSpec((L, Bp, Hp), lambda i: (0, 0, 0)),         # c_n
            ),
            scratch_shapes=[
                pltpu.VMEM((L, Bp, Hp), jnp.float32),                   # persistent h state
                pltpu.VMEM((L, Bp, Hp), jnp.float32),                   # persistent c state
                pltpu.VMEM((Tt, Bp, G), jnp.float32),                   # hoisted layer-0 input proj
            ],
        ),
        compiler_params=pltpu.CompilerParams(
            dimension_semantics=("arbitrary",),      # time recurrence is sequential
            vmem_limit_bytes=32 * 1024 * 1024,       # explicit budget (v7x: 64 MiB physical)
        ),
    )(lengths, emb, h0p, c0p, packed["w_in0"], packed["b_in0"],
      packed["whh0"], packed["wf"], packed["bf_p"])

    lstm_out = jnp.transpose(out_p[:T, :B, :H], (1, 0, 2))    # -> (B, T, H) batch_first
    return lstm_out, (hn_p[:, :B, :H], cn_p[:, :B, :H])


# -----------------------------------------------------------------------------
# Parameter init (matches the PyTorch module's distributions) and kernel packing
# -----------------------------------------------------------------------------
def init_params(key, vocab, embed, hidden, num_layers):
    ks = jax.random.split(key, 7)
    s3 = math.sqrt(3.0)
    emb = -s3 + s3 * jax.random.normal(ks[0], (vocab, embed), jnp.float32)
    wd = -s3 + s3 * jax.random.normal(ks[1], (hidden, embed), jnp.float32)       # (out, in)
    kd = 1.0 / math.sqrt(embed)
    bd = jax.random.uniform(ks[2], (hidden,), jnp.float32, -kd, kd)
    kh = 1.0 / math.sqrt(hidden)
    wih = jax.random.uniform(ks[3], (num_layers, 4 * hidden, hidden), jnp.float32, -kh, kh)
    whh = jax.random.uniform(ks[4], (num_layers, 4 * hidden, hidden), jnp.float32, -kh, kh)
    bih = jax.random.uniform(ks[5], (num_layers, 4 * hidden), jnp.float32, -kh, kh)
    bhh = jax.random.uniform(ks[6], (num_layers, 4 * hidden), jnp.float32, -kh, kh)
    return {"embedding": emb, "w_dense": wd, "b_dense": bd,
            "w_ih": wih, "w_hh": whh, "b_ih": bih, "b_hh": bhh}


def pack_params(raw):
    """Pad to lane/sublane-friendly shapes, transpose for row-major matmuls, fuse & cast."""
    H, E = raw["w_dense"].shape
    L = raw["w_ih"].shape[0]
    assert L >= 2
    V = raw["embedding"].shape[0]
    Hp = _round_up(H, LANE)
    Ep = _round_up(E, LANE)

    emb_p = jnp.zeros((V, Ep), jnp.float32).at[:, :E].set(raw["embedding"])
    wd_p = jnp.zeros((Ep, Hp), jnp.float32).at[:E, :H].set(raw["w_dense"].T)
    bd_p = jnp.zeros((1, Hp), jnp.float32).at[0, :H].set(raw["b_dense"])

    def pad_w(w):            # (4H, H) torch layout -> (Hp, 4Hp) transposed, per-gate padded
        out = jnp.zeros((Hp, 4 * Hp), jnp.float32)
        for k in range(4):
            out = out.at[:H, k * Hp:k * Hp + H].set(w[k * H:(k + 1) * H, :].T)
        return out

    def pad_b(b):            # (4H,) -> (4Hp,)
        out = jnp.zeros((4 * Hp,), jnp.float32)
        for k in range(4):
            out = out.at[k * Hp:k * Hp + H].set(b[k * H:(k + 1) * H])
        return out

    wih_p = jnp.stack([pad_w(raw["w_ih"][l]) for l in range(L)])         # (L, Hp, 4Hp)
    whh_p = jnp.stack([pad_w(raw["w_hh"][l]) for l in range(L)])
    b_p = jnp.stack([pad_b(raw["b_ih"][l] + raw["b_hh"][l])
                     for l in range(L)]).reshape(L, 1, 4 * Hp)

    # ---- fold input_dense into layer-0 W_ih (no nonlinearity between them) ----
    #   (x @ Wd^T + bd) @ Wih0^T + b0  ==  x @ (Wd^T @ Wih0^T) + (bd @ Wih0^T + b0)
    w_in0 = wd_p @ wih_p[0]                                              # (Ep, 4Hp) f32
    b_in0 = bd_p @ wih_p[0] + b_p[0]                                     # (1, 4Hp)  f32

    whh0 = whh_p[0].astype(jnp.bfloat16)                                 # recurrent path, bf16
    wf = jnp.concatenate([wih_p[1:], whh_p[1:]], axis=1).astype(jnp.bfloat16)  # (L-1, 2Hp, 4Hp)
    bf_p = b_p[1:]                                                       # (L-1, 1, 4Hp)

    return {"embedding_p": emb_p, "w_in0": w_in0, "b_in0": b_in0,
            "whh0": whh0, "wf": wf, "bf_p": bf_p,
            "H": H, "Hp": Hp, "E": E, "Ep": Ep, "L": L}


# -----------------------------------------------------------------------------
# Pure-JAX f32 reference (mirrors PyTorch packed-sequence LSTM, eval mode)
# -----------------------------------------------------------------------------
def reference_forward(x_input, x_length, encoder_hidden, raw):
    emb = jnp.take(raw["embedding"], x_input, axis=0)                    # (B, T, E)
    x = emb @ raw["w_dense"].T + raw["b_dense"]                          # (B, T, H)
    h, c = encoder_hidden
    L, B, H = h.shape
    T = x.shape[1]
    outs = []
    for t in range(T):
        mask = (x_length > t).reshape(B, 1)
        inp = x[:, t, :]
        for l in range(L):
            gates = (inp @ raw["w_ih"][l].T + h[l] @ raw["w_hh"][l].T
                     + raw["b_ih"][l] + raw["b_hh"][l])
            i_g = jax.nn.sigmoid(gates[:, :H])
            f_g = jax.nn.sigmoid(gates[:, H:2 * H])
            g_g = jnp.tanh(gates[:, 2 * H:3 * H])
            o_g = jax.nn.sigmoid(gates[:, 3 * H:])
            c_new = f_g * c[l] + i_g * g_g
            h_new = o_g * jnp.tanh(c_new)
            h = h.at[l].set(jnp.where(mask, h_new, h[l]))
            c = c.at[l].set(jnp.where(mask, c_new, c[l]))
            inp = h_new
        outs.append(jnp.where(mask, inp, 0.0))
    return jnp.stack(outs, axis=1), (h, c)


# -----------------------------------------------------------------------------
if __name__ == "__main__":
    vocab, embed, hidden, layers = 50, 200, 32, 3       # input_size, embed_size, hidden_size, L
    B, T = 2, 8

    key = jax.random.PRNGKey(0)
    kp, kx = jax.random.split(key)
    raw = init_params(kp, vocab, embed, hidden, layers)
    packed = pack_params(raw)

    x_input = jax.random.randint(kx, (B, T), 0, vocab, dtype=jnp.int32)
    x_length = jnp.array([T, 5], dtype=jnp.int32)       # max length == T (pad_packed length)
    h0 = jnp.zeros((layers, B, hidden), jnp.float32)    # lstm_encoder.init_hidden
    c0 = jnp.zeros((layers, B, hidden), jnp.float32)

    lstm_out, (h_n, c_n) = lstm_encoder_forward(x_input, x_length, (h0, c0), packed, time_tile=8)
    jax.block_until_ready((lstm_out, h_n, c_n))

    ref_out, (ref_h, ref_c) = reference_forward(x_input, x_length, (h0, c0), raw)

    assert lstm_out.shape == (B, T, hidden)
    assert h_n.shape == (layers, B, hidden) and c_n.shape == (layers, B, hidden)
    # tolerance accounts for bf16 recurrent matmuls (f32 accumulation) vs the f32 reference
    assert np.allclose(np.asarray(lstm_out), np.asarray(ref_out), atol=5e-2, rtol=5e-2)
    assert np.allclose(np.asarray(h_n), np.asarray(ref_h), atol=5e-2, rtol=5e-2)
    assert np.allclose(np.asarray(c_n), np.asarray(ref_c), atol=5e-2, rtol=5e-2)

    print("KERNEL_OK")
</pallas_src>

<mosaic_0001>
module attributes {stable_mosaic.version = 11 : i64} {
  func.func @_lstm_encoder_kernel(%arg0: i32, %arg1: memref<8x1xi32, #tpu.memory_space<vmem>>, %arg2: memref<8x8x256xf32, #tpu.memory_space<vmem>>, %arg3: memref<3x8x128xf32, #tpu.memory_space<vmem>>, %arg4: memref<3x8x128xf32, #tpu.memory_space<vmem>>, %arg5: memref<256x512xf32, #tpu.memory_space<vmem>>, %arg6: memref<1x512xf32, #tpu.memory_space<vmem>>, %arg7: memref<128x512xbf16, #tpu.memory_space<vmem>>, %arg8: memref<2x256x512xbf16, #tpu.memory_space<vmem>>, %arg9: memref<2x1x512xf32, #tpu.memory_space<vmem>>, %arg10: memref<8x8x128xf32, #tpu.memory_space<vmem>>, %arg11: memref<3x8x128xf32, #tpu.memory_space<vmem>>, %arg12: memref<3x8x128xf32, #tpu.memory_space<vmem>>, %arg13: memref<3x8x128xf32, #tpu.memory_space<vmem>>, %arg14: memref<3x8x128xf32, #tpu.memory_space<vmem>>, %arg15: memref<8x8x512xf32, #tpu.memory_space<vmem>>) attributes {dimension_semantics = [#tpu.dimension_semantics<arbitrary>], iteration_bounds = array<i64: 1>, scalar_prefetch = 0 : i64, scratch_operands = 3 : i64, tpu.core_type = #tpu.core_type<tc>, window_params = [{pipeline_mode = #tpu.pipeline_mode<synchronous>, transform_indices = @transform_0, window_bounds = array<i64: 8, 1>}, {transform_indices = @transform_1, window_bounds = array<i64: 8, 8, 256>}, {pipeline_mode = #tpu.pipeline_mode<synchronous>, transform_indices = @transform_2, window_bounds = array<i64: 3, 8, 128>}, {pipeline_mode = #tpu.pipeline_mode<synchronous>, transform_indices = @transform_3, window_bounds = array<i64: 3, 8, 128>}, {pipeline_mode = #tpu.pipeline_mode<synchronous>, transform_indices = @transform_4, window_bounds = array<i64: 256, 512>}, {pipeline_mode = #tpu.pipeline_mode<synchronous>, transform_indices = @transform_5, window_bounds = array<i64: 1, 512>}, {pipeline_mode = #tpu.pipeline_mode<synchronous>, transform_indices = @transform_6, window_bounds = array<i64: 128, 512>}, {pipeline_mode = #tpu.pipeline_mode<synchronous>, transform_indices = @transform_7, window_bounds = array<i64: 2, 256, 512>}, {pipeline_mode = #tpu.pipeline_mode<synchronous>, transform_indices = @transform_8, window_bounds = array<i64: 2, 1, 512>}, {transform_indices = @transform_9, window_bounds = array<i64: 8, 8, 128>}, {pipeline_mode = #tpu.pipeline_mode<synchronous>, transform_indices = @transform_10, window_bounds = array<i64: 3, 8, 128>}, {pipeline_mode = #tpu.pipeline_mode<synchronous>, transform_indices = @transform_11, window_bounds = array<i64: 3, 8, 128>}]} {
    %c0_i32 = arith.constant 0 : i32
    %0 = arith.cmpi eq, %arg0, %c0_i32 : i32
    %1 = arith.extui %0 : i1 to i32
    %c0_i32_0 = arith.constant 0 : i32
    %2 = arith.cmpi ne, %1, %c0_i32_0 : i32
    scf.if %2 {
      %c0_298 = arith.constant 0 : index
      %c0_299 = arith.constant 0 : index
      %c0_300 = arith.constant 0 : index
      %1079 = vector.load %arg3[%c0_298, %c0_299, %c0_300] : memref<3x8x128xf32, #tpu.memory_space<vmem>>, vector<3x8x128xf32>
      %c0_301 = arith.constant 0 : index
      %c0_302 = arith.constant 0 : index
      %c0_303 = arith.constant 0 : index
      %1080 = vector.load %arg13[%c0_301, %c0_302, %c0_303] : memref<3x8x128xf32, #tpu.memory_space<vmem>>, vector<3x8x128xf32>
      tpu.vector_store %arg13[%c0_301, %c0_302, %c0_303], %1079 {strides = array<i32>} : memref<3x8x128xf32, #tpu.memory_space<vmem>>, vector<3x8x128xf32>,
      %c0_304 = arith.constant 0 : index
      %c0_305 = arith.constant 0 : index
      %c0_306 = arith.constant 0 : index
      %1081 = vector.load %arg4[%c0_304, %c0_305, %c0_306] : memref<3x8x128xf32, #tpu.memory_space<vmem>>, vector<3x8x128xf32>
      %c0_307 = arith.constant 0 : index
      %c0_308 = arith.constant 0 : index
      %c0_309 = arith.constant 0 : index
      %1082 = vector.load %arg14[%c0_307, %c0_308, %c0_309] : memref<3x8x128xf32, #tpu.memory_space<vmem>>, vector<3x8x128xf32>
      tpu.vector_store %arg14[%c0_307, %c0_308, %c0_309], %1081 {strides = array<i32>} : memref<3x8x128xf32, #tpu.memory_space<vmem>>, vector<3x8x128xf32>,
    } else {
    }
    %c0 = arith.constant 0 : index
    %c0_1 = arith.constant 0 : index
    %c0_2 = arith.constant 0 : index
    %3 = vector.load %arg2[%c0, %c0_1, %c0_2] : memref<8x8x256xf32, #tpu.memory_space<vmem>>, vector<8x8x256xf32>
    %4 = vector.shape_cast %3 : vector<8x8x256xf32> to vector<64x256xf32>
    %c0_3 = arith.constant 0 : index
    %c0_4 = arith.constant 0 : index
    %5 = vector.load %arg5[%c0_3, %c0_4] : memref<256x512xf32, #tpu.memory_space<vmem>>, vector<256x512xf32>
    %cst = arith.constant dense<0.000000e+00> : vector<64x512xf32>
    %6 = tpu.matmul %4, %5, %cst {dimension_numbers = #tpu.dot_dimension_numbers<[1], [0], [0], [1], [0, 0, 1, 1], [], []>} : vector<64x256xf32>, vector<256x512xf32>, vector<64x512xf32> -> vector<64x512xf32>
    %c0_5 = arith.constant 0 : index
    %c0_6 = arith.constant 0 : index
    %7 = vector.load %arg6[%c0_5, %c0_6] : memref<1x512xf32, #tpu.memory_space<vmem>>, vector<1x512xf32>
    %8 = vector.broadcast %7 : vector<1x512xf32> to vector<64x512xf32>
    %9 = arith.addf %6, %8 : vector<64x512xf32>
    %10 = vector.shape_cast %9 : vector<64x512xf32> to vector<8x8x512xf32>
    %c0_7 = arith.constant 0 : index
    %c0_8 = arith.constant 0 : index
    %c0_9 = arith.constant 0 : index
    %11 = vector.load %arg15[%c0_7, %c0_8, %c0_9] : memref<8x8x512xf32, #tpu.memory_space<vmem>>, vector<8x8x512xf32>
    tpu.vector_store %arg15[%c0_7, %c0_8, %c0_9], %10 {strides = array<i32>} : memref<8x8x512xf32, #tpu.memory_space<vmem>>, vector<8x8x512xf32>,
    %c0_10 = arith.constant 0 : index
    %c0_11 = arith.constant 0 : index
    %12 = vector.load %arg1[%c0_10, %c0_11] : memref<8x1xi32, #tpu.memory_space<vmem>>, vector<8x1xi32>
    %c8_i32 = arith.constant 8 : i32
    %13 = arith.muli %arg0, %c8_i32 : i32
    %c0_12 = arith.constant 0 : index
    %c0_13 = arith.constant 0 : index
    %c0_14 = arith.constant 0 : index
    %14 = vector.load %arg13[%c0_12, %c0_13, %c0_14] : memref<3x8x128xf32, #tpu.memory_space<vmem>>, vector<1x8x128xf32>
    %15 = vector.shape_cast %14 : vector<1x8x128xf32> to vector<8x128xf32>
    %c1 = arith.constant 1 : index
    %c0_15 = arith.constant 0 : index
    %c0_16 = arith.constant 0 : index
    %16 = vector.load %arg13[%c1, %c0_15, %c0_16] : memref<3x8x128xf32, #tpu.memory_space<vmem>>, vector<1x8x128xf32>
    %17 = vector.shape_cast %16 : vector<1x8x128xf32> to vector<8x128xf32>
    %c2 = arith.constant 2 : index
    %c0_17 = arith.constant 0 : index
    %c0_18 = arith.constant 0 : index
    %18 = vector.load %arg13[%c2, %c0_17, %c0_18] : memref<3x8x128xf32, #tpu.memory_space<vmem>>, vector<1x8x128xf32>
    %19 = vector.shape_cast %18 : vector<1x8x128xf32> to vector<8x128xf32>
    %c0_19 = arith.constant 0 : index
    %c0_20 = arith.constant 0 : index
    %c0_21 = arith.constant 0 : index
    %20 = vector.load %arg14[%c0_19, %c0_20, %c0_21] : memref<3x8x128xf32, #tpu.memory_space<vmem>>, vector<1x8x128xf32>
    %21 = vector.shape_cast %20 : vector<1x8x128xf32> to vector<8x128xf32>
    %c1_22 = arith.constant 1 : index
    %c0_23 = arith.constant 0 : index
    %c0_24 = arith.constant 0 : index
    %22 = vector.load %arg14[%c1_22, %c0_23, %c0_24] : memref<3x8x128xf32, #tpu.memory_space<vmem>>, vector<1x8x128xf32>
    %23 = vector.shape_cast %22 : vector<1x8x128xf32> to vector<8x128xf32>
    %c2_25 = arith.constant 2 : index
    %c0_26 = arith.constant 0 : index
    %c0_27 = arith.constant 0 : index
    %24 = vector.load %arg14[%c2_25, %c0_26, %c0_27] : memref<3x8x128xf32, #tpu.memory_space<vmem>>, vector<1x8x128xf32>
    %25 = vector.shape_cast %24 : vector<1x8x128xf32> to vector<8x128xf32>
    %c0_i32_28 = arith.constant 0 : i32
    %26 = arith.addi %13, %c0_i32_28 : i32
    %27 = vector.broadcast %26 : i32 to vector<8x1xi32>
    %28 = arith.cmpi sgt, %12, %27 : vector<8x1xi32>
    %29 = arith.index_cast %c0_i32_28 : i32 to index
    %c0_29 = arith.constant 0 : index
    %c0_30 = arith.constant 0 : index
    %30 = vector.load %arg15[%29, %c0_29, %c0_30] : memref<8x8x512xf32, #tpu.memory_space<vmem>>, vector<1x8x512xf32>
    %31 = vector.shape_cast %30 : vector<1x8x512xf32> to vector<8x512xf32>
    %32 = arith.truncf %15 : vector<8x128xf32> to vector<8x128xbf16>
    %c0_31 = arith.constant 0 : index
    %c0_32 = arith.constant 0 : index
    %33 = vector.load %arg7[%c0_31, %c0_32] : memref<128x512xbf16, #tpu.memory_space<vmem>>, vector<128x512xbf16>
    %cst_33 = arith.constant dense<0.000000e+00> : vector<8x512xf32>
    %34 = tpu.matmul %32, %33, %cst_33 {dimension_numbers = #tpu.dot_dimension_numbers<[1], [0], [0], [1], [0, 0, 1, 1], [], []>} : vector<8x128xbf16>, vector<128x512xbf16>, vector<8x512xf32> -> vector<8x512xf32>
    %35 = arith.addf %31, %34 : vector<8x512xf32>
    %36 = vector.extract_strided_slice %35 {offsets = [0, 0], sizes = [8, 128], strides = [1, 1]} : vector<8x512xf32> to vector<8x128xf32>
    %37 = arith.negf %36 : vector<8x128xf32>
    %38 = math.exp %37 : vector<8x128xf32>
    %cst_34 = arith.constant 1.000000e+00 : f32
    %39 = vector.broadcast %cst_34 : f32 to vector<8x128xf32>
    %40 = arith.addf %39, %38 : vector<8x128xf32>
    %41 = arith.divf %39, %40 : vector<8x128xf32>
    %42 = vector.extract_strided_slice %35 {offsets = [0, 128], sizes = [8, 128], strides = [1, 1]} : vector<8x512xf32> to vector<8x128xf32>
    %43 = arith.negf %42 : vector<8x128xf32>
    %44 = math.exp %43 : vector<8x128xf32>
    %cst_35 = arith.constant 1.000000e+00 : f32
    %45 = vector.broadcast %cst_35 : f32 to vector<8x128xf32>
    %46 = arith.addf %45, %44 : vector<8x128xf32>
    %47 = arith.divf %45, %46 : vector<8x128xf32>
    %48 = vector.extract_strided_slice %35 {offsets = [0, 256], sizes = [8, 128], strides = [1, 1]} : vector<8x512xf32> to vector<8x128xf32>
    %49 = math.tanh %48 : vector<8x128xf32>
    %50 = vector.extract_strided_slice %35 {offsets = [0, 384], sizes = [8, 128], strides = [1, 1]} : vector<8x512xf32> to vector<8x128xf32>
    %51 = arith.negf %50 : vector<8x128xf32>
    %52 = math.exp %51 : vector<8x128xf32>
    %cst_36 = arith.constant 1.000000e+00 : f32
    %53 = vector.broadcast %cst_36 : f32 to vector<8x128xf32>
    %54 = arith.addf %53, %52 : vector<8x128xf32>
    %55 = arith.divf %53, %54 : vector<8x128xf32>
    %56 = arith.mulf %47, %21 : vector<8x128xf32>
    %57 = arith.mulf %41, %49 : vector<8x128xf32>
    %58 = arith.addf %56, %57 : vector<8x128xf32>
    %59 = math.tanh %58 : vector<8x128xf32>
    %60 = arith.mulf %55, %59 : vector<8x128xf32>
    %61 = vector.shape_cast %28 : vector<8x1xi1> to vector<8x1xi1>
    %62 = vector.broadcast %61 : vector<8x1xi1> to vector<8x128xi1>
    %63 = arith.select %62, %60, %15 : vector<8x128xi1>, vector<8x128xf32>
    %64 = vector.shape_cast %28 : vector<8x1xi1> to vector<8x1xi1>
    %65 = vector.broadcast %64 : vector<8x1xi1> to vector<8x128xi1>
    %66 = arith.select %65, %58, %21 : vector<8x128xi1>, vector<8x128xf32>
    %67 = tpu.concatenate %60, %17 in 1 : vector<8x128xf32>, vector<8x128xf32> -> vector<8x256xf32>
    %68 = arith.truncf %67 : vector<8x256xf32> to vector<8x256xbf16>
    %c0_37 = arith.constant 0 : index
    %c0_38 = arith.constant 0 : index
    %c0_39 = arith.constant 0 : index
    %69 = vector.load %arg8[%c0_37, %c0_38, %c0_39] : memref<2x256x512xbf16, #tpu.memory_space<vmem>>, vector<1x256x512xbf16>
    %70 = vector.shape_cast %69 : vector<1x256x512xbf16> to vector<256x512xbf16>
    %cst_40 = arith.constant dense<0.000000e+00> : vector<8x512xf32>
    %71 = tpu.matmul %68, %70, %cst_40 {dimension_numbers = #tpu.dot_dimension_numbers<[1], [0], [0], [1], [0, 0, 1, 1], [], []>} : vector<8x256xbf16>, vector<256x512xbf16>, vector<8x512xf32> -> vector<8x512xf32>
    %c0_41 = arith.constant 0 : index
    %c0_42 = arith.constant 0 : index
    %c0_43 = arith.constant 0 : index
    %72 = vector.load %arg9[%c0_41, %c0_42, %c0_43] : memref<2x1x512xf32, #tpu.memory_space<vmem>>, vector<1x1x512xf32>
    %73 = vector.shape_cast %72 : vector<1x1x512xf32> to vector<1x512xf32>
    %74 = vector.broadcast %73 : vector<1x512xf32> to vector<8x512xf32>
    %75 = arith.addf %71, %74 : vector<8x512xf32>
    %76 = vector.extract_strided_slice %75 {offsets = [0, 0], sizes = [8, 128], strides = [1, 1]} : vector<8x512xf32> to vector<8x128xf32>
    %77 = arith.negf %76 : vector<8x128xf32>
    %78 = math.exp %77 : vector<8x128xf32>
    %cst_44 = arith.constant 1.000000e+00 : f32
    %79 = vector.broadcast %cst_44 : f32 to vector<8x128xf32>
    %80 = arith.addf %79, %78 : vector<8x128xf32>
    %81 = arith.divf %79, %80 : vector<8x128xf32>
    %82 = vector.extract_strided_slice %75 {offsets = [0, 128], sizes = [8, 128], strides = [1, 1]} : vector<8x512xf32> to vector<8x128xf32>
    %83 = arith.negf %82 : vector<8x128xf32>
    %84 = math.exp %83 : vector<8x128xf32>
    %cst_45 = arith.constant 1.000000e+00 : f32
    %85 = vector.broadcast %cst_45 : f32 to vector<8x128xf32>
    %86 = arith.addf %85, %84 : vector<8x128xf32>
    %87 = arith.divf %85, %86 : vector<8x128xf32>
    %88 = vector.extract_strided_slice %75 {offsets = [0, 256], sizes = [8, 128], strides = [1, 1]} : vector<8x512xf32> to vector<8x128xf32>
    %89 = math.tanh %88 : vector<8x128xf32>
    %90 = vector.extract_strided_slice %75 {offsets = [0, 384], sizes = [8, 128], strides = [1, 1]} : vector<8x512xf32> to vector<8x128xf32>
    %91 = arith.negf %90 : vector<8x128xf32>
    %92 = math.exp %91 : vector<8x128xf32>
    %cst_46 = arith.constant 1.000000e+00 : f32
    %93 = vector.broadcast %cst_46 : f32 to vector<8x128xf32>
    %94 = arith.addf %93, %92 : vector<8x128xf32>
    %95 = arith.divf %93, %94 : vector<8x128xf32>
    %96 = arith.mulf %87, %23 : vector<8x128xf32>
    %97 = arith.mulf %81, %89 : vector<8x128xf32>
    %98 = arith.addf %96, %97 : vector<8x128xf32>
    %99 = math.tanh %98 : vector<8x128xf32>
    %100 = arith.mulf %95, %99 : vector<8x128xf32>
    %101 = vector.shape_cast %28 : vector<8x1xi1> to vector<8x1xi1>
    %102 = vector.broadcast %101 : vector<8x1xi1> to vector<8x128xi1>
    %103 = arith.select %102, %100, %17 : vector<8x128xi1>, vector<8x128xf32>
    %104 = vector.shape_cast %28 : vector<8x1xi1> to vector<8x1xi1>
    %105 = vector.broadcast %104 : vector<8x1xi1> to vector<8x128xi1>
    %106 = arith.select %105, %98, %23 : vector<8x128xi1>, vector<8x128xf32>
    %107 = tpu.concatenate %100, %19 in 1 : vector<8x128xf32>, vector<8x128xf32> -> vector<8x256xf32>
    %108 = arith.truncf %107 : vector<8x256xf32> to vector<8x256xbf16>
    %c1_47 = arith.constant 1 : index
    %c0_48 = arith.constant 0 : index
    %c0_49 = arith.constant 0 : index
    %109 = vector.load %arg8[%c1_47, %c0_48, %c0_49] : memref<2x256x512xbf16, #tpu.memory_space<vmem>>, vector<1x256x512xbf16>
    %110 = vector.shape_cast %109 : vector<1x256x512xbf16> to vector<256x512xbf16>
    %cst_50 = arith.constant dense<0.000000e+00> : vector<8x512xf32>
    %111 = tpu.matmul %108, %110, %cst_50 {dimension_numbers = #tpu.dot_dimension_numbers<[1], [0], [0], [1], [0, 0, 1, 1], [], []>} : vector<8x256xbf16>, vector<256x512xbf16>, vector<8x512xf32> -> vector<8x512xf32>
    %c1_51 = arith.constant 1 : index
    %c0_52 = arith.constant 0 : index
    %c0_53 = arith.constant 0 : index
    %112 = vector.load %arg9[%c1_51, %c0_52, %c0_53] : memref<2x1x512xf32, #tpu.memory_space<vmem>>, vector<1x1x512xf32>
    %113 = vector.shape_cast %112 : vector<1x1x512xf32> to vector<1x512xf32>
    %114 = vector.broadcast %113 : vector<1x512xf32> to vector<8x512xf32>
    %115 = arith.addf %111, %114 : vector<8x512xf32>
    %116 = vector.extract_strided_slice %115 {offsets = [0, 0], sizes = [8, 128], strides = [1, 1]} : vector<8x512xf32> to vector<8x128xf32>
    %117 = arith.negf %116 : vector<8x128xf32>
    %118 = math.exp %117 : vector<8x128xf32>
    %cst_54 = arith.constant 1.000000e+00 : f32
    %119 = vector.broadcast %cst_54 : f32 to vector<8x128xf32>
    %120 = arith.addf %119, %118 : vector<8x128xf32>
    %121 = arith.divf %119, %120 : vector<8x128xf32>
    %122 = vector.extract_strided_slice %115 {offsets = [0, 128], sizes = [8, 128], strides = [1, 1]} : vector<8x512xf32> to vector<8x128xf32>
    %123 = arith.negf %122 : vector<8x128xf32>
    %124 = math.exp %123 : vector<8x128xf32>
    %cst_55 = arith.constant 1.000000e+00 : f32
    %125 = vector.broadcast %cst_55 : f32 to vector<8x128xf32>
    %126 = arith.addf %125, %124 : vector<8x128xf32>
    %127 = arith.divf %125, %126 : vector<8x128xf32>
    %128 = vector.extract_strided_slice %115 {offsets = [0, 256], sizes = [8, 128], strides = [1, 1]} : vector<8x512xf32> to vector<8x128xf32>
    %129 = math.tanh %128 : vector<8x128xf32>
    %130 = vector.extract_strided_slice %115 {offsets = [0, 384], sizes = [8, 128], strides = [1, 1]} : vector<8x512xf32> to vector<8x128xf32>
    %131 = arith.negf %130 : vector<8x128xf32>
    %132 = math.exp %131 : vector<8x128xf32>
    %cst_56 = arith.constant 1.000000e+00 : f32
    %133 = vector.broadcast %cst_56 : f32 to vector<8x128xf32>
    %134 = arith.addf %133, %132 : vector<8x128xf32>
    %135 = arith.divf %133, %134 : vector<8x128xf32>
    %136 = arith.mulf %127, %25 : vector<8x128xf32>
    %137 = arith.mulf %121, %129 : vector<8x128xf32>
    %138 = arith.addf %136, %137 : vector<8x128xf32>
    %139 = math.tanh %138 : vector<8x128xf32>
    %140 = arith.mulf %135, %139 : vector<8x128xf32>
    %141 = vector.shape_cast %28 : vector<8x1xi1> to vector<8x1xi1>
    %142 = vector.broadcast %141 : vector<8x1xi1> to vector<8x128xi1>
    %143 = arith.select %142, %140, %19 : vector<8x128xi1>, vector<8x128xf32>
    %144 = vector.shape_cast %28 : vector<8x1xi1> to vector<8x1xi1>
    %145 = vector.broadcast %144 : vector<8x1xi1> to vector<8x128xi1>
    %146 = arith.select %145, %138, %25 : vector<8x128xi1>, vector<8x128xf32>
    %cst_57 = arith.constant 0.000000e+00 : f32
    %147 = vector.broadcast %cst_57 : f32 to vector<8x128xf32>
    %148 = vector.shape_cast %28 : vector<8x1xi1> to vector<8x1xi1>
    %149 = vector.broadcast %148 : vector<8x1xi1> to vector<8x128xi1>
    %150 = arith.select %149, %140, %147 : vector<8x128xi1>, vector<8x128xf32>
    %151 = arith.index_cast %c0_i32_28 : i32 to index
    %c0_58 = arith.constant 0 : index
    %c0_59 = arith.constant 0 : index
    %152 = vector.load %arg10[%151, %c0_58, %c0_59] : memref<8x8x128xf32, #tpu.memory_space<vmem>>, vector<1x8x128xf32>
    %153 = vector.shape_cast %152 : vector<1x8x128xf32> to vector<8x128xf32>
    %154 = vector.shape_cast %150 : vector<8x128xf32> to vector<1x8x128xf32>
    tpu.vector_store %arg10[%151, %c0_58, %c0_59], %154 {strides = array<i32>} : memref<8x8x128xf32, #tpu.memory_space<vmem>>, vector<1x8x128xf32>,
    %c1_i32 = arith.constant 1 : i32
    %155 = arith.addi %13, %c1_i32 : i32
    %156 = vector.broadcast %155 : i32 to vector<8x1xi32>
    %157 = arith.cmpi sgt, %12, %156 : vector<8x1xi32>
    %158 = arith.index_cast %c1_i32 : i32 to index
    %c0_60 = arith.constant 0 : index
    %c0_61 = arith.constant 0 : index
    %159 = vector.load %arg15[%158, %c0_60, %c0_61] : memref<8x8x512xf32, #tpu.memory_space<vmem>>, vector<1x8x512xf32>
    %160 = vector.shape_cast %159 : vector<1x8x512xf32> to vector<8x512xf32>
    %161 = arith.truncf %63 : vector<8x128xf32> to vector<8x128xbf16>
    %c0_62 = arith.constant 0 : index
    %c0_63 = arith.constant 0 : index
    %162 = vector.load %arg7[%c0_62, %c0_63] : memref<128x512xbf16, #tpu.memory_space<vmem>>, vector<128x512xbf16>
    %cst_64 = arith.constant dense<0.000000e+00> : vector<8x512xf32>
    %163 = tpu.matmul %161, %162, %cst_64 {dimension_numbers = #tpu.dot_dimension_numbers<[1], [0], [0], [1], [0, 0, 1, 1], [], []>} : vector<8x128xbf16>, vector<128x512xbf16>, vector<8x512xf32> -> vector<8x512xf32>
    %164 = arith.addf %160, %163 : vector<8x512xf32>
    %165 = vector.extract_strided_slice %164 {offsets = [0, 0], sizes = [8, 128], strides = [1, 1]} : vector<8x512xf32> to vector<8x128xf32>
    %166 = arith.negf %165 : vector<8x128xf32>
    %167 = math.exp %166 : vector<8x128xf32>
    %cst_65 = arith.constant 1.000000e+00 : f32
    %168 = vector.broadcast %cst_65 : f32 to vector<8x128xf32>
    %169 = arith.addf %168, %167 : vector<8x128xf32>
    %170 = arith.divf %168, %169 : vector<8x128xf32>
    %171 = vector.extract_strided_slice %164 {offsets = [0, 128], sizes = [8, 128], strides = [1, 1]} : vector<8x512xf32> to vector<8x128xf32>
    %172 = arith.negf %171 : vector<8x128xf32>
    %173 = math.exp %172 : vector<8x128xf32>
    %cst_66 = arith.constant 1.000000e+00 : f32
    %174 = vector.broadcast %cst_66 : f32 to vector<8x128xf32>
    %175 = arith.addf %174, %173 : vector<8x128xf32>
    %176 = arith.divf %174, %175 : vector<8x128xf32>
    %177 = vector.extract_strided_slice %164 {offsets = [0, 256], sizes = [8, 128], strides = [1, 1]} : vector<8x512xf32> to vector<8x128xf32>
    %178 = math.tanh %177 : vector<8x128xf32>
    %179 = vector.extract_strided_slice %164 {offsets = [0, 384], sizes = [8, 128], strides = [1, 1]} : vector<8x512xf32> to vector<8x128xf32>
    %180 = arith.negf %179 : vector<8x128xf32>
    %181 = math.exp %180 : vector<8x128xf32>
    %cst_67 = arith.constant 1.000000e+00 : f32
    %182 = vector.broadcast %cst_67 : f32 to vector<8x128xf32>
    %183 = arith.addf %182, %181 : vector<8x128xf32>
    %184 = arith.divf %182, %183 : vector<8x128xf32>
    %185 = arith.mulf %176, %66 : vector<8x128xf32>
    %186 = arith.mulf %170, %178 : vector<8x128xf32>
    %187 = arith.addf %185, %186 : vector<8x128xf32>
    %188 = math.tanh %187 : vector<8x128xf32>
    %189 = arith.mulf %184, %188 : vector<8x128xf32>
    %190 = vector.shape_cast %157 : vector<8x1xi1> to vector<8x1xi1>
    %191 = vector.broadcast %190 : vector<8x1xi1> to vector<8x128xi1>
    %192 = arith.select %191, %189, %63 : vector<8x128xi1>, vector<8x128xf32>
    %193 = vector.shape_cast %157 : vector<8x1xi1> to vector<8x1xi1>
    %194 = vector.broadcast %193 : vector<8x1xi1> to vector<8x128xi1>
    %195 = arith.select %194, %187, %66 : vector<8x128xi1>, vector<8x128xf32>
    %196 = tpu.concatenate %189, %103 in 1 : vector<8x128xf32>, vector<8x128xf32> -> vector<8x256xf32>
    %197 = arith.truncf %196 : vector<8x256xf32> to vector<8x256xbf16>
    %c0_68 = arith.constant 0 : index
    %c0_69 = arith.constant 0 : index
    %c0_70 = arith.constant 0 : index
    %198 = vector.load %arg8[%c0_68, %c0_69, %c0_70] : memref<2x256x512xbf16, #tpu.memory_space<vmem>>, vector<1x256x512xbf16>
    %199 = vector.shape_cast %198 : vector<1x256x512xbf16> to vector<256x512xbf16>
    %cst_71 = arith.constant dense<0.000000e+00> : vector<8x512xf32>
    %200 = tpu.matmul %197, %199, %cst_71 {dimension_numbers = #tpu.dot_dimension_numbers<[1], [0], [0], [1], [0, 0, 1, 1], [], []>} : vector<8x256xbf16>, vector<256x512xbf16>, vector<8x512xf32> -> vector<8x512xf32>
    %c0_72 = arith.constant 0 : index
    %c0_73 = arith.constant 0 : index
    %c0_74 = arith.constant 0 : index
    %201 = vector.load %arg9[%c0_72, %c0_73, %c0_74] : memref<2x1x512xf32, #tpu.memory_space<vmem>>, vector<1x1x512xf32>
    %202 = vector.shape_cast %201 : vector<1x1x512xf32> to vector<1x512xf32>
    %203 = vector.broadcast %202 : vector<1x512xf32> to vector<8x512xf32>
    %204 = arith.addf %200, %203 : vector<8x512xf32>
    %205 = vector.extract_strided_slice %204 {offsets = [0, 0], sizes = [8, 128], strides = [1, 1]} : vector<8x512xf32> to vector<8x128xf32>
    %206 = arith.negf %205 : vector<8x128xf32>
    %207 = math.exp %206 : vector<8x128xf32>
    %cst_75 = arith.constant 1.000000e+00 : f32
    %208 = vector.broadcast %cst_75 : f32 to vector<8x128xf32>
    %209 = arith.addf %208, %207 : vector<8x128xf32>
    %210 = arith.divf %208, %209 : vector<8x128xf32>
    %211 = vector.extract_strided_slice %204 {offsets = [0, 128], sizes = [8, 128], strides = [1, 1]} : vector<8x512xf32> to vector<8x128xf32>
    %212 = arith.negf %211 : vector<8x128xf32>
    %213 = math.exp %212 : vector<8x128xf32>
    %cst_76 = arith.constant 1.000000e+00 : f32
    %214 = vector.broadcast %cst_76 : f32 to vector<8x128xf32>
    %215 = arith.addf %214, %213 : vector<8x128xf32>
    %216 = arith.divf %214, %215 : vector<8x128xf32>
    %217 = vector.extract_strided_slice %204 {offsets = [0, 256], sizes = [8, 128], strides = [1, 1]} : vector<8x512xf32> to vector<8x128xf32>
    %218 = math.tanh %217 : vector<8x128xf32>
    %219 = vector.extract_strided_slice %204 {offsets = [0, 384], sizes = [8, 128], strides = [1, 1]} : vector<8x512xf32> to vector<8x128xf32>
    %220 = arith.negf %219 : vector<8x128xf32>
    %221 = math.exp %220 : vector<8x128xf32>
    %cst_77 = arith.constant 1.000000e+00 : f32
    %222 = vector.broadcast %cst_77 : f32 to vector<8x128xf32>
    %223 = arith.addf %222, %221 : vector<8x128xf32>
    %224 = arith.divf %222, %223 : vector<8x128xf32>
    %225 = arith.mulf %216, %106 : vector<8x128xf32>
    %226 = arith.mulf %210, %218 : vector<8x128xf32>
    %227 = arith.addf %225, %226 : vector<8x128xf32>
    %228 = math.tanh %227 : vector<8x128xf32>
    %229 = arith.mulf %224, %228 : vector<8x128xf32>
    %230 = vector.shape_cast %157 : vector<8x1xi1> to vector<8x1xi1>
    %231 = vector.broadcast %230 : vector<8x1xi1> to vector<8x128xi1>
    %232 = arith.select %231, %229, %103 : vector<8x128xi1>, vector<8x128xf32>
    %233 = vector.shape_cast %157 : vector<8x1xi1> to vector<8x1xi1>
    %234 = vector.broadcast %233 : vector<8x1xi1> to vector<8x128xi1>
    %235 = arith.select %234, %227, %106 : vector<8x128xi1>, vector<8x128xf32>
    %236 = tpu.concatenate %229, %143 in 1 : vector<8x128xf32>, vector<8x128xf32> -> vector<8x256xf32>
    %237 = arith.truncf %236 : vector<8x256xf32> to vector<8x256xbf16>
    %c1_78 = arith.constant 1 : index
    %c0_79 = arith.constant 0 : index
    %c0_80 = arith.constant 0 : index
    %238 = vector.load %arg8[%c1_78, %c0_79, %c0_80] : memref<2x256x512xbf16, #tpu.memory_space<vmem>>, vector<1x256x512xbf16>
    %239 = vector.shape_cast %238 : vector<1x256x512xbf16> to vector<256x512xbf16>
    %cst_81 = arith.constant dense<0.000000e+00> : vector<8x512xf32>
    %240 = tpu.matmul %237, %239, %cst_81 {dimension_numbers = #tpu.dot_dimension_numbers<[1], [0], [0], [1], [0, 0, 1, 1], [], []>} : vector<8x256xbf16>, vector<256x512xbf16>, vector<8x512xf32> -> vector<8x512xf32>
    %c1_82 = arith.constant 1 : index
    %c0_83 = arith.constant 0 : index
    %c0_84 = arith.constant 0 : index
    %241 = vector.load %arg9[%c1_82, %c0_83, %c0_84] : memref<2x1x512xf32, #tpu.memory_space<vmem>>, vector<1x1x512xf32>
    %242 = vector.shape_cast %241 : vector<1x1x512xf32> to vector<1x512xf32>
    %243 = vector.broadcast %242 : vector<1x512xf32> to vector<8x512xf32>
    %244 = arith.addf %240, %243 : vector<8x512xf32>
    %245 = vector.extract_strided_slice %244 {offsets = [0, 0], sizes = [8, 128], strides = [1, 1]} : vector<8x512xf32> to vector<8x128xf32>
    %246 = arith.negf %245 : vector<8x128xf32>
    %247 = math.exp %246 : vector<8x128xf32>
    %cst_85 = arith.constant 1.000000e+00 : f32
    %248 = vector.broadcast %cst_85 : f32 to vector<8x128xf32>
    %249 = arith.addf %248, %247 : vector<8x128xf32>
    %250 = arith.divf %248, %249 : vector<8x128xf32>
    %251 = vector.extract_strided_slice %244 {offsets = [0, 128], sizes = [8, 128], strides = [1, 1]} : vector<8x512xf32> to vector<8x128xf32>
    %252 = arith.negf %251 : vector<8x128xf32>
    %253 = math.exp %252 : vector<8x128xf32>
    %cst_86 = arith.constant 1.000000e+00 : f32
    %254 = vector.broadcast %cst_86 : f32 to vector<8x128xf32>
    %255 = arith.addf %254, %253 : vector<8x128xf32>
    %256 = arith.divf %254, %255 : vector<8x128xf32>
    %257 = vector.extract_strided_slice %244 {offsets = [0, 256], sizes = [8, 128], strides = [1, 1]} : vector<8x512xf32> to vector<8x128xf32>
    %258 = math.tanh %257 : vector<8x128xf32>
    %259 = vector.extract_strided_slice %244 {offsets = [0, 384], sizes = [8, 128], strides = [1, 1]} : vector<8x512xf32> to vector<8x128xf32>
    %260 = arith.negf %259 : vector<8x128xf32>
    %261 = math.exp %260 : vector<8x128xf32>
    %cst_87 = arith.constant 1.000000e+00 : f32
    %262 = vector.broadcast %cst_87 : f32 to vector<8x128xf32>
    %263 = arith.addf %262, %261 : vector<8x128xf32>
    %264 = arith.divf %262, %263 : vector<8x128xf32>
    %265 = arith.mulf %256, %146 : vector<8x128xf32>
    %266 = arith.mulf %250, %258 : vector<8x128xf32>
    %267 = arith.addf %265, %266 : vector<8x128xf32>
    %268 = math.tanh %267 : vector<8x128xf32>
    %269 = arith.mulf %264, %268 : vector<8x128xf32>
    %270 = vector.shape_cast %157 : vector<8x1xi1> to vector<8x1xi1>
    %271 = vector.broadcast %270 : vector<8x1xi1> to vector<8x128xi1>
    %272 = arith.select %271, %269, %143 : vector<8x128xi1>, vector<8x128xf32>
    %273 = vector.shape_cast %157 : vector<8x1xi1> to vector<8x1xi1>
    %274 = vector.broadcast %273 : vector<8x1xi1> to vector<8x128xi1>
    %275 = arith.select %274, %267, %146 : vector<8x128xi1>, vector<8x128xf32>
    %cst_88 = arith.constant 0.000000e+00 : f32
    %276 = vector.broadcast %cst_88 : f32 to vector<8x128xf32>
    %277 = vector.shape_cast %157 : vector<8x1xi1> to vector<8x1xi1>
    %278 = vector.broadcast %277 : vector<8x1xi1> to vector<8x128xi1>
    %279 = arith.select %278, %269, %276 : vector<8x128xi1>, vector<8x128xf32>
    %280 = arith.index_cast %c1_i32 : i32 to index
    %c0_89 = arith.constant 0 : index
    %c0_90 = arith.constant 0 : index
    %281 = vector.load %arg10[%280, %c0_89, %c0_90] : memref<8x8x128xf32, #tpu.memory_space<vmem>>, vector<1x8x128xf32>
    %282 = vector.shape_cast %281 : vector<1x8x128xf32> to vector<8x128xf32>
    %283 = vector.shape_cast %279 : vector<8x128xf32> to vector<1x8x128xf32>
    tpu.vector_store %arg10[%280, %c0_89, %c0_90], %283 {strides = array<i32>} : memref<8x8x128xf32, #tpu.memory_space<vmem>>, vector<1x8x128xf32>,
    %c2_i32 = arith.constant 2 : i32
    %284 = arith.addi %13, %c2_i32 : i32
    %285 = vector.broadcast %284 : i32 to vector<8x1xi32>
    %286 = arith.cmpi sgt, %12, %285 : vector<8x1xi32>
    %287 = arith.index_cast %c2_i32 : i32 to index
    %c0_91 = arith.constant 0 : index
    %c0_92 = arith.constant 0 : index
    %288 = vector.load %arg15[%287, %c0_91, %c0_92] : memref<8x8x512xf32, #tpu.memory_space<vmem>>, vector<1x8x512xf32>
    %289 = vector.shape_cast %288 : vector<1x8x512xf32> to vector<8x512xf32>
    %290 = arith.truncf %192 : vector<8x128xf32> to vector<8x128xbf16>
    %c0_93 = arith.constant 0 : index
    %c0_94 = arith.constant 0 : index
    %291 = vector.load %arg7[%c0_93, %c0_94] : memref<128x512xbf16, #tpu.memory_space<vmem>>, vector<128x512xbf16>
    %cst_95 = arith.constant dense<0.000000e+00> : vector<8x512xf32>
    %292 = tpu.matmul %290, %291, %cst_95 {dimension_numbers = #tpu.dot_dimension_numbers<[1], [0], [0], [1], [0, 0, 1, 1], [], []>} : vector<8x128xbf16>, vector<128x512xbf16>, vector<8x512xf32> -> vector<8x512xf32>
    %293 = arith.addf %289, %292 : vector<8x512xf32>
    %294 = vector.extract_strided_slice %293 {offsets = [0, 0], sizes = [8, 128], strides = [1, 1]} : vector<8x512xf32> to vector<8x128xf32>
    %295 = arith.negf %294 : vector<8x128xf32>
    %296 = math.exp %295 : vector<8x128xf32>
    %cst_96 = arith.constant 1.000000e+00 : f32
    %297 = vector.broadcast %cst_96 : f32 to vector<8x128xf32>
    %298 = arith.addf %297, %296 : vector<8x128xf32>
    %299 = arith.divf %297, %298 : vector<8x128xf32>
    %300 = vector.extract_strided_slice %293 {offsets = [0, 128], sizes = [8, 128], strides = [1, 1]} : vector<8x512xf32> to vector<8x128xf32>
    %301 = arith.negf %300 : vector<8x128xf32>
    %302 = math.exp %301 : vector<8x128xf32>
    %cst_97 = arith.constant 1.000000e+00 : f32
    %303 = vector.broadcast %cst_97 : f32 to vector<8x128xf32>
    %304 = arith.addf %303, %302 : vector<8x128xf32>
    %305 = arith.divf %303, %304 : vector<8x128xf32>
    %306 = vector.extract_strided_slice %293 {offsets = [0, 256], sizes = [8, 128], strides = [1, 1]} : vector<8x512xf32> to vector<8x128xf32>
    %307 = math.tanh %306 : vector<8x128xf32>
    %308 = vector.extract_strided_slice %293 {offsets = [0, 384], sizes = [8, 128], strides = [1, 1]} : vector<8x512xf32> to vector<8x128xf32>
    %309 = arith.negf %308 : vector<8x128xf32>
    %310 = math.exp %309 : vector<8x128xf32>
    %cst_98 = arith.constant 1.000000e+00 : f32
    %311 = vector.broadcast %cst_98 : f32 to vector<8x128xf32>
    %312 = arith.addf %311, %310 : vector<8x128xf32>
    %313 = arith.divf %311, %312 : vector<8x128xf32>
    %314 = arith.mulf %305, %195 : vector<8x128xf32>
    %315 = arith.mulf %299, %307 : vector<8x128xf32>
    %316 = arith.addf %314, %315 : vector<8x128xf32>
    %317 = math.tanh %316 : vector<8x128xf32>
    %318 = arith.mulf %313, %317 : vector<8x128xf32>
    %319 = vector.shape_cast %286 : vector<8x1xi1> to vector<8x1xi1>
    %320 = vector.broadcast %319 : vector<8x1xi1> to vector<8x128xi1>
    %321 = arith.select %320, %318, %192 : vector<8x128xi1>, vector<8x128xf32>
    %322 = vector.shape_cast %286 : vector<8x1xi1> to vector<8x1xi1>
    %323 = vector.broadcast %322 : vector<8x1xi1> to vector<8x128xi1>
    %324 = arith.select %323, %316, %195 : vector<8x128xi1>, vector<8x128xf32>
    %325 = tpu.concatenate %318, %232 in 1 : vector<8x128xf32>, vector<8x128xf32> -> vector<8x256xf32>
    %326 = arith.truncf %325 : vector<8x256xf32> to vector<8x256xbf16>
    %c0_99 = arith.constant 0 : index
    %c0_100 = arith.constant 0 : index
    %c0_101 = arith.constant 0 : index
    %327 = vector.load %arg8[%c0_99, %c0_100, %c0_101] : memref<2x256x512xbf16, #tpu.memory_space<vmem>>, vector<1x256x512xbf16>
    %328 = vector.shape_cast %327 : vector<1x256x512xbf16> to vector<256x512xbf16>
    %cst_102 = arith.constant dense<0.000000e+00> : vector<8x512xf32>
    %329 = tpu.matmul %326, %328, %cst_102 {dimension_numbers = #tpu.dot_dimension_numbers<[1], [0], [0], [1], [0, 0, 1, 1], [], []>} : vector<8x256xbf16>, vector<256x512xbf16>, vector<8x512xf32> -> vector<8x512xf32>
    %c0_103 = arith.constant 0 : index
    %c0_104 = arith.constant 0 : index
    %c0_105 = arith.constant 0 : index
    %330 = vector.load %arg9[%c0_103, %c0_104, %c0_105] : memref<2x1x512xf32, #tpu.memory_space<vmem>>, vector<1x1x512xf32>
    %331 = vector.shape_cast %330 : vector<1x1x512xf32> to vector<1x512xf32>
    %332 = vector.broadcast %331 : vector<1x512xf32> to vector<8x512xf32>
    %333 = arith.addf %329, %332 : vector<8x512xf32>
    %334 = vector.extract_strided_slice %333 {offsets = [0, 0], sizes = [8, 128], strides = [1, 1]} : vector<8x512xf32> to vector<8x128xf32>
    %335 = arith.negf %334 : vector<8x128xf32>
    %336 = math.exp %335 : vector<8x128xf32>
    %cst_106 = arith.constant 1.000000e+00 : f32
    %337 = vector.broadcast %cst_106 : f32 to vector<8x128xf32>
    %338 = arith.addf %337, %336 : vector<8x128xf32>
    %339 = arith.divf %337, %338 : vector<8x128xf32>
    %340 = vector.extract_strided_slice %333 {offsets = [0, 128], sizes = [8, 128], strides = [1, 1]} : vector<8x512xf32> to vector<8x128xf32>
    %341 = arith.negf %340 : vector<8x128xf32>
    %342 = math.exp %341 : vector<8x128xf32>
    %cst_107 = arith.constant 1.000000e+00 : f32
    %343 = vector.broadcast %cst_107 : f32 to vector<8x128xf32>
    %344 = arith.addf %343, %342 : vector<8x128xf32>
    %345 = arith.divf %343, %344 : vector<8x128xf32>
    %346 = vector.extract_strided_slice %333 {offsets = [0, 256], sizes = [8, 128], strides = [1, 1]} : vector<8x512xf32> to vector<8x128xf32>
    %347 = math.tanh %346 : vector<8x128xf32>
    %348 = vector.extract_strided_slice %333 {offsets = [0, 384], sizes = [8, 128], strides = [1, 1]} : vector<8x512xf32> to vector<8x128xf32>
    %349 = arith.negf %348 : vector<8x128xf32>
    %350 = math.exp %349 : vector<8x128xf32>
    %cst_108 = arith.constant 1.000000e+00 : f32
    %351 = vector.broadcast %cst_108 : f32 to vector<8x128xf32>
    %352 = arith.addf %351, %350 : vector<8x128xf32>
    %353 = arith.divf %351, %352 : vector<8x128xf32>
    %354 = arith.mulf %345, %235 : vector<8x128xf32>
    %355 = arith.mulf %339, %347 : vector<8x128xf32>
    %356 = arith.addf %354, %355 : vector<8x128xf32>
    %357 = math.tanh %356 : vector<8x128xf32>
    %358 = arith.mulf %353, %357 : vector<8x128xf32>
    %359 = vector.shape_cast %286 : vector<8x1xi1> to vector<8x1xi1>
    %360 = vector.broadcast %359 : vector<8x1xi1> to vector<8x128xi1>
    %361 = arith.select %360, %358, %232 : vector<8x128xi1>, vector<8x128xf32>
    %362 = vector.shape_cast %286 : vector<8x1xi1> to vector<8x1xi1>
    %363 = vector.broadcast %362 : vector<8x1xi1> to vector<8x128xi1>
    %364 = arith.select %363, %356, %235 : vector<8x128xi1>, vector<8x128xf32>
    %365 = tpu.concatenate %358, %272 in 1 : vector<8x128xf32>, vector<8x128xf32> -> vector<8x256xf32>
    %366 = arith.truncf %365 : vector<8x256xf32> to vector<8x256xbf16>
    %c1_109 = arith.constant 1 : index
    %c0_110 = arith.constant 0 : index
    %c0_111 = arith.constant 0 : index
    %367 = vector.load %arg8[%c1_109, %c0_110, %c0_111] : memref<2x256x512xbf16, #tpu.memory_space<vmem>>, vector<1x256x512xbf16>
    %368 = vector.shape_cast %367 : vector<1x256x512xbf16> to vector<256x512xbf16>
    %cst_112 = arith.constant dense<0.000000e+00> : vector<8x512xf32>
    %369 = tpu.matmul %366, %368, %cst_112 {dimension_numbers = #tpu.dot_dimension_numbers<[1], [0], [0], [1], [0, 0, 1, 1], [], []>} : vector<8x256xbf16>, vector<256x512xbf16>, vector<8x512xf32> -> vector<8x512xf32>
    %c1_113 = arith.constant 1 : index
    %c0_114 = arith.constant 0 : index
    %c0_115 = arith.constant 0 : index
    %370 = vector.load %arg9[%c1_113, %c0_114, %c0_115] : memref<2x1x512xf32, #tpu.memory_space<vmem>>, vector<1x1x512xf32>
    %371 = vector.shape_cast %370 : vector<1x1x512xf32> to vector<1x512xf32>
    %372 = vector.broadcast %371 : vector<1x512xf32> to vector<8x512xf32>
    %373 = arith.addf %369, %372 : vector<8x512xf32>
    %374 = vector.extract_strided_slice %373 {offsets = [0, 0], sizes = [8, 128], strides = [1, 1]} : vector<8x512xf32> to vector<8x128xf32>
    %375 = arith.negf %374 : vector<8x128xf32>
    %376 = math.exp %375 : vector<8x128xf32>
    %cst_116 = arith.constant 1.000000e+00 : f32
    %377 = vector.broadcast %cst_116 : f32 to vector<8x128xf32>
    %378 = arith.addf %377, %376 : vector<8x128xf32>
    %379 = arith.divf %377, %378 : vector<8x128xf32>
    %380 = vector.extract_strided_slice %373 {offsets = [0, 128], sizes = [8, 128], strides = [1, 1]} : vector<8x512xf32> to vector<8x128xf32>
    %381 = arith.negf %380 : vector<8x128xf32>
    %382 = math.exp %381 : vector<8x128xf32>
    %cst_117 = arith.constant 1.000000e+00 : f32
    %383 = vector.broadcast %cst_117 : f32 to vector<8x128xf32>
    %384 = arith.addf %383, %382 : vector<8x128xf32>
    %385 = arith.divf %383, %384 : vector<8x128xf32>
    %386 = vector.extract_strided_slice %373 {offsets = [0, 256], sizes = [8, 128], strides = [1, 1]} : vector<8x512xf32> to vector<8x128xf32>
    %387 = math.tanh %386 : vector<8x128xf32>
    %388 = vector.extract_strided_slice %373 {offsets = [0, 384], sizes = [8, 128], strides = [1, 1]} : vector<8x512xf32> to vector<8x128xf32>
    %389 = arith.negf %388 : vector<8x128xf32>
    %390 = math.exp %389 : vector<8x128xf32>
    %cst_118 = arith.constant 1.000000e+00 : f32
    %391 = vector.broadcast %cst_118 : f32 to vector<8x128xf32>
    %392 = arith.addf %391, %390 : vector<8x128xf32>
    %393 = arith.divf %391, %392 : vector<8x128xf32>
    %394 = arith.mulf %385, %275 : vector<8x128xf32>
    %395 = arith.mulf %379, %387 : vector<8x128xf32>
    %396 = arith.addf %394, %395 : vector<8x128xf32>
    %397 = math.tanh %396 : vector<8x128xf32>
    %398 = arith.mulf %393, %397 : vector<8x128xf32>
    %399 = vector.shape_cast %286 : vector<8x1xi1> to vector<8x1xi1>
    %400 = vector.broadcast %399 : vector<8x1xi1> to vector<8x128xi1>
    %401 = arith.select %400, %398, %272 : vector<8x128xi1>, vector<8x128xf32>
    %402 = vector.shape_cast %286 : vector<8x1xi1> to vector<8x1xi1>
    %403 = vector.broadcast %402 : vector<8x1xi1> to vector<8x128xi1>
    %404 = arith.select %403, %396, %275 : vector<8x128xi1>, vector<8x128xf32>
    %cst_119 = arith.constant 0.000000e+00 : f32
    %405 = vector.broadcast %cst_119 : f32 to vector<8x128xf32>
    %406 = vector.shape_cast %286 : vector<8x1xi1> to vector<8x1xi1>
    %407 = vector.broadcast %406 : vector<8x1xi1> to vector<8x128xi1>
    %408 = arith.select %407, %398, %405 : vector<8x128xi1>, vector<8x128xf32>
    %409 = arith.index_cast %c2_i32 : i32 to index
    %c0_120 = arith.constant 0 : index
    %c0_121 = arith.constant 0 : index
    %410 = vector.load %arg10[%409, %c0_120, %c0_121] : memref<8x8x128xf32, #tpu.memory_space<vmem>>, vector<1x8x128xf32>
    %411 = vector.shape_cast %410 : vector<1x8x128xf32> to vector<8x128xf32>
    %412 = vector.shape_cast %408 : vector<8x128xf32> to vector<1x8x128xf32>
    tpu.vector_store %arg10[%409, %c0_120, %c0_121], %412 {strides = array<i32>} : memref<8x8x128xf32, #tpu.memory_space<vmem>>, vector<1x8x128xf32>,
    %c3_i32 = arith.constant 3 : i32
    %413 = arith.addi %13, %c3_i32 : i32
    %414 = vector.broadcast %413 : i32 to vector<8x1xi32>
    %415 = arith.cmpi sgt, %12, %414 : vector<8x1xi32>
    %416 = arith.index_cast %c3_i32 : i32 to index
    %c0_122 = arith.constant 0 : index
    %c0_123 = arith.constant 0 : index
    %417 = vector.load %arg15[%416, %c0_122, %c0_123] : memref<8x8x512xf32, #tpu.memory_space<vmem>>, vector<1x8x512xf32>
    %418 = vector.shape_cast %417 : vector<1x8x512xf32> to vector<8x512xf32>
    %419 = arith.truncf %321 : vector<8x128xf32> to vector<8x128xbf16>
    %c0_124 = arith.constant 0 : index
    %c0_125 = arith.constant 0 : index
    %420 = vector.load %arg7[%c0_124, %c0_125] : memref<128x512xbf16, #tpu.memory_space<vmem>>, vector<128x512xbf16>
    %cst_126 = arith.constant dense<0.000000e+00> : vector<8x512xf32>
    %421 = tpu.matmul %419, %420, %cst_126 {dimension_numbers = #tpu.dot_dimension_numbers<[1], [0], [0], [1], [0, 0, 1, 1], [], []>} : vector<8x128xbf16>, vector<128x512xbf16>, vector<8x512xf32> -> vector<8x512xf32>
    %422 = arith.addf %418, %421 : vector<8x512xf32>
    %423 = vector.extract_strided_slice %422 {offsets = [0, 0], sizes = [8, 128], strides = [1, 1]} : vector<8x512xf32> to vector<8x128xf32>
    %424 = arith.negf %423 : vector<8x128xf32>
    %425 = math.exp %424 : vector<8x128xf32>
    %cst_127 = arith.constant 1.000000e+00 : f32
    %426 = vector.broadcast %cst_127 : f32 to vector<8x128xf32>
    %427 = arith.addf %426, %425 : vector<8x128xf32>
    %428 = arith.divf %426, %427 : vector<8x128xf32>
    %429 = vector.extract_strided_slice %422 {offsets = [0, 128], sizes = [8, 128], strides = [1, 1]} : vector<8x512xf32> to vector<8x128xf32>
    %430 = arith.negf %429 : vector<8x128xf32>
    %431 = math.exp %430 : vector<8x128xf32>
    %cst_128 = arith.constant 1.000000e+00 : f32
    %432 = vector.broadcast %cst_128 : f32 to vector<8x128xf32>
    %433 = arith.addf %432, %431 : vector<8x128xf32>
    %434 = arith.divf %432, %433 : vector<8x128xf32>
    %435 = vector.extract_strided_slice %422 {offsets = [0, 256], sizes = [8, 128], strides = [1, 1]} : vector<8x512xf32> to vector<8x128xf32>
    %436 = math.tanh %435 : vector<8x128xf32>
    %437 = vector.extract_strided_slice %422 {offsets = [0, 384], sizes = [8, 128], strides = [1, 1]} : vector<8x512xf32> to vector<8x128xf32>
    %438 = arith.negf %437 : vector<8x128xf32>
    %439 = math.exp %438 : vector<8x128xf32>
    %cst_129 = arith.constant 1.000000e+00 : f32
    %440 = vector.broadcast %cst_129 : f32 to vector<8x128xf32>
    %441 = arith.addf %440, %439 : vector<8x128xf32>
    %442 = arith.divf %440, %441 : vector<8x128xf32>
    %443 = arith.mulf %434, %324 : vector<8x128xf32>
    %444 = arith.mulf %428, %436 : vector<8x128xf32>
    %445 = arith.addf %443, %444 : vector<8x128xf32>
    %446 = math.tanh %445 : vector<8x128xf32>
    %447 = arith.mulf %442, %446 : vector<8x128xf32>
    %448 = vector.shape_cast %415 : vector<8x1xi1> to vector<8x1xi1>
    %449 = vector.broadcast %448 : vector<8x1xi1> to vector<8x128xi1>
    %450 = arith.select %449, %447, %321 : vector<8x128xi1>, vector<8x128xf32>
    %451 = vector.shape_cast %415 : vector<8x1xi1> to vector<8x1xi1>
    %452 = vector.broadcast %451 : vector<8x1xi1> to vector<8x128xi1>
    %453 = arith.select %452, %445, %324 : vector<8x128xi1>, vector<8x128xf32>
    %454 = tpu.concatenate %447, %361 in 1 : vector<8x128xf32>, vector<8x128xf32> -> vector<8x256xf32>
    %455 = arith.truncf %454 : vector<8x256xf32> to vector<8x256xbf16>
    %c0_130 = arith.constant 0 : index
    %c0_131 = arith.constant 0 : index
    %c0_132 = arith.constant 0 : index
    %456 = vector.load %arg8[%c0_130, %c0_131, %c0_132] : memref<2x256x512xbf16, #tpu.memory_space<vmem>>, vector<1x256x512xbf16>
    %457 = vector.shape_cast %456 : vector<1x256x512xbf16> to vector<256x512xbf16>
    %cst_133 = arith.constant dense<0.000000e+00> : vector<8x512xf32>
    %458 = tpu.matmul %455, %457, %cst_133 {dimension_numbers = #tpu.dot_dimension_numbers<[1], [0], [0], [1], [0, 0, 1, 1], [], []>} : vector<8x256xbf16>, vector<256x512xbf16>, vector<8x512xf32> -> vector<8x512xf32>
    %c0_134 = arith.constant 0 : index
    %c0_135 = arith.constant 0 : index
    %c0_136 = arith.constant 0 : index
    %459 = vector.load %arg9[%c0_134, %c0_135, %c0_136] : memref<2x1x512xf32, #tpu.memory_space<vmem>>, vector<1x1x512xf32>
    %460 = vector.shape_cast %459 : vector<1x1x512xf32> to vector<1x512xf32>
    %461 = vector.broadcast %460 : vector<1x512xf32> to vector<8x512xf32>
    %462 = arith.addf %458, %461 : vector<8x512xf32>
    %463 = vector.extract_strided_slice %462 {offsets = [0, 0], sizes = [8, 128], strides = [1, 1]} : vector<8x512xf32> to vector<8x128xf32>
    %464 = arith.negf %463 : vector<8x128xf32>
    %465 = math.exp %464 : vector<8x128xf32>
    %cst_137 = arith.constant 1.000000e+00 : f32
    %466 = vector.broadcast %cst_137 : f32 to vector<8x128xf32>
    %467 = arith.addf %466, %465 : vector<8x128xf32>
    %468 = arith.divf %466, %467 : vector<8x128xf32>
    %469 = vector.extract_strided_slice %462 {offsets = [0, 128], sizes = [8, 128], strides = [1, 1]} : vector<8x512xf32> to vector<8x128xf32>
    %470 = arith.negf %469 : vector<8x128xf32>
    %471 = math.exp %470 : vector<8x128xf32>
    %cst_138 = arith.constant 1.000000e+00 : f32
    %472 = vector.broadcast %cst_138 : f32 to vector<8x128xf32>
    %473 = arith.addf %472, %471 : vector<8x128xf32>
    %474 = arith.divf %472, %473 : vector<8x128xf32>
    %475 = vector.extract_strided_slice %462 {offsets = [0, 256], sizes = [8, 128], strides = [1, 1]} : vector<8x512xf32> to vector<8x128xf32>
    %476 = math.tanh %475 : vector<8x128xf32>
    %477 = vector.extract_strided_slice %462 {offsets = [0, 384], sizes = [8, 128], strides = [1, 1]} : vector<8x512xf32> to vector<8x128xf32>
    %478 = arith.negf %477 : vector<8x128xf32>
    %479 = math.exp %478 : vector<8x128xf32>
    %cst_139 = arith.constant 1.000000e+00 : f32
    %480 = vector.broadcast %cst_139 : f32 to vector<8x128xf32>
    %481 = arith.addf %480, %479 : vector<8x128xf32>
    %482 = arith.divf %480, %481 : vector<8x128xf32>
    %483 = arith.mulf %474, %364 : vector<8x128xf32>
    %484 = arith.mulf %468, %476 : vector<8x128xf32>
    %485 = arith.addf %483, %484 : vector<8x128xf32>
    %486 = math.tanh %485 : vector<8x128xf32>
    %487 = arith.mulf %482, %486 : vector<8x128xf32>
    %488 = vector.shape_cast %415 : vector<8x1xi1> to vector<8x1xi1>
    %489 = vector.broadcast %488 : vector<8x1xi1> to vector<8x128xi1>
    %490 = arith.select %489, %487, %361 : vector<8x128xi1>, vector<8x128xf32>
    %491 = vector.shape_cast %415 : vector<8x1xi1> to vector<8x1xi1>
    %492 = vector.broadcast %491 : vector<8x1xi1> to vector<8x128xi1>
    %493 = arith.select %492, %485, %364 : vector<8x128xi1>, vector<8x128xf32>
    %494 = tpu.concatenate %487, %401 in 1 : vector<8x128xf32>, vector<8x128xf32> -> vector<8x256xf32>
    %495 = arith.truncf %494 : vector<8x256xf32> to vector<8x256xbf16>
    %c1_140 = arith.constant 1 : index
    %c0_141 = arith.constant 0 : index
    %c0_142 = arith.constant 0 : index
    %496 = vector.load %arg8[%c1_140, %c0_141, %c0_142] : memref<2x256x512xbf16, #tpu.memory_space<vmem>>, vector<1x256x512xbf16>
    %497 = vector.shape_cast %496 : vector<1x256x512xbf16> to vector<256x512xbf16>
    %cst_143 = arith.constant dense<0.000000e+00> : vector<8x512xf32>
    %498 = tpu.matmul %495, %497, %cst_143 {dimension_numbers = #tpu.dot_dimension_numbers<[1], [0], [0], [1], [0, 0, 1, 1], [], []>} : vector<8x256xbf16>, vector<256x512xbf16>, vector<8x512xf32> -> vector<8x512xf32>
    %c1_144 = arith.constant 1 : index
    %c0_145 = arith.constant 0 : index
    %c0_146 = arith.constant 0 : index
    %499 = vector.load %arg9[%c1_144, %c0_145, %c0_146] : memref<2x1x512xf32, #tpu.memory_space<vmem>>, vector<1x1x512xf32>
    %500 = vector.shape_cast %499 : vector<1x1x512xf32> to vector<1x512xf32>
    %501 = vector.broadcast %500 : vector<1x512xf32> to vector<8x512xf32>
    %502 = arith.addf %498, %501 : vector<8x512xf32>
    %503 = vector.extract_strided_slice %502 {offsets = [0, 0], sizes = [8, 128], strides = [1, 1]} : vector<8x512xf32> to vector<8x128xf32>
    %504 = arith.negf %503 : vector<8x128xf32>
    %505 = math.exp %504 : vector<8x128xf32>
    %cst_147 = arith.constant 1.000000e+00 : f32
    %506 = vector.broadcast %cst_147 : f32 to vector<8x128xf32>
    %507 = arith.addf %506, %505 : vector<8x128xf32>
    %508 = arith.divf %506, %507 : vector<8x128xf32>
    %509 = vector.extract_strided_slice %502 {offsets = [0, 128], sizes = [8, 128], strides = [1, 1]} : vector<8x512xf32> to vector<8x128xf32>
    %510 = arith.negf %509 : vector<8x128xf32>
    %511 = math.exp %510 : vector<8x128xf32>
    %cst_148 = arith.constant 1.000000e+00 : f32
    %512 = vector.broadcast %cst_148 : f32 to vector<8x128xf32>
    %513 = arith.addf %512, %511 : vector<8x128xf32>
    %514 = arith.divf %512, %513 : vector<8x128xf32>
    %515 = vector.extract_strided_slice %502 {offsets = [0, 256], sizes = [8, 128], strides = [1, 1]} : vector<8x512xf32> to vector<8x128xf32>
    %516 = math.tanh %515 : vector<8x128xf32>
    %517 = vector.extract_strided_slice %502 {offsets = [0, 384], sizes = [8, 128], strides = [1, 1]} : vector<8x512xf32> to vector<8x128xf32>
    %518 = arith.negf %517 : vector<8x128xf32>
    %519 = math.exp %518 : vector<8x128xf32>
    %cst_149 = arith.constant 1.000000e+00 : f32
    %520 = vector.broadcast %cst_149 : f32 to vector<8x128xf32>
    %521 = arith.addf %520, %519 : vector<8x128xf32>
    %522 = arith.divf %520, %521 : vector<8x128xf32>
    %523 = arith.mulf %514, %404 : vector<8x128xf32>
    %524 = arith.mulf %508, %516 : vector<8x128xf32>
    %525 = arith.addf %523, %524 : vector<8x128xf32>
    %526 = math.tanh %525 : vector<8x128xf32>
    %527 = arith.mulf %522, %526 : vector<8x128xf32>
    %528 = vector.shape_cast %415 : vector<8x1xi1> to vector<8x1xi1>
    %529 = vector.broadcast %528 : vector<8x1xi1> to vector<8x128xi1>
    %530 = arith.select %529, %527, %401 : vector<8x128xi1>, vector<8x128xf32>
    %531 = vector.shape_cast %415 : vector<8x1xi1> to vector<8x1xi1>
    %532 = vector.broadcast %531 : vector<8x1xi1> to vector<8x128xi1>
    %533 = arith.select %532, %525, %404 : vector<8x128xi1>, vector<8x128xf32>
    %cst_150 = arith.constant 0.000000e+00 : f32
    %534 = vector.broadcast %cst_150 : f32 to vector<8x128xf32>
    %535 = vector.shape_cast %415 : vector<8x1xi1> to vector<8x1xi1>
    %536 = vector.broadcast %535 : vector<8x1xi1> to vector<8x128xi1>
    %537 = arith.select %536, %527, %534 : vector<8x128xi1>, vector<8x128xf32>
    %538 = arith.index_cast %c3_i32 : i32 to index
    %c0_151 = arith.constant 0 : index
    %c0_152 = arith.constant 0 : index
    %539 = vector.load %arg10[%538, %c0_151, %c0_152] : memref<8x8x128xf32, #tpu.memory_space<vmem>>, vector<1x8x128xf32>
    %540 = vector.shape_cast %539 : vector<1x8x128xf32> to vector<8x128xf32>
    %541 = vector.shape_cast %537 : vector<8x128xf32> to vector<1x8x128xf32>
    tpu.vector_store %arg10[%538, %c0_151, %c0_152], %541 {strides = array<i32>} : memref<8x8x128xf32, #tpu.memory_space<vmem>>, vector<1x8x128xf32>,
    %c4_i32 = arith.constant 4 : i32
    %542 = arith.addi %13, %c4_i32 : i32
    %543 = vector.broadcast %542 : i32 to vector<8x1xi32>
    %544 = arith.cmpi sgt, %12, %543 : vector<8x1xi32>
    %545 = arith.index_cast %c4_i32 : i32 to index
    %c0_153 = arith.constant 0 : index
    %c0_154 = arith.constant 0 : index
    %546 = vector.load %arg15[%545, %c0_153, %c0_154] : memref<8x8x512xf32, #tpu.memory_space<vmem>>, vector<1x8x512xf32>
    %547 = vector.shape_cast %546 : vector<1x8x512xf32> to vector<8x512xf32>
    %548 = arith.truncf %450 : vector<8x128xf32> to vector<8x128xbf16>
    %c0_155 = arith.constant 0 : index
    %c0_156 = arith.constant 0 : index
    %549 = vector.load %arg7[%c0_155, %c0_156] : memref<128x512xbf16, #tpu.memory_space<vmem>>, vector<128x512xbf16>
    %cst_157 = arith.constant dense<0.000000e+00> : vector<8x512xf32>
    %550 = tpu.matmul %548, %549, %cst_157 {dimension_numbers = #tpu.dot_dimension_numbers<[1], [0], [0], [1], [0, 0, 1, 1], [], []>} : vector<8x128xbf16>, vector<128x512xbf16>, vector<8x512xf32> -> vector<8x512xf32>
    %551 = arith.addf %547, %550 : vector<8x512xf32>
    %552 = vector.extract_strided_slice %551 {offsets = [0, 0], sizes = [8, 128], strides = [1, 1]} : vector<8x512xf32> to vector<8x128xf32>
    %553 = arith.negf %552 : vector<8x128xf32>
    %554 = math.exp %553 : vector<8x128xf32>
    %cst_158 = arith.constant 1.000000e+00 : f32
    %555 = vector.broadcast %cst_158 : f32 to vector<8x128xf32>
    %556 = arith.addf %555, %554 : vector<8x128xf32>
    %557 = arith.divf %555, %556 : vector<8x128xf32>
    %558 = vector.extract_strided_slice %551 {offsets = [0, 128], sizes = [8, 128], strides = [1, 1]} : vector<8x512xf32> to vector<8x128xf32>
    %559 = arith.negf %558 : vector<8x128xf32>
    %560 = math.exp %559 : vector<8x128xf32>
    %cst_159 = arith.constant 1.000000e+00 : f32
    %561 = vector.broadcast %cst_159 : f32 to vector<8x128xf32>
    %562 = arith.addf %561, %560 : vector<8x128xf32>
    %563 = arith.divf %561, %562 : vector<8x128xf32>
    %564 = vector.extract_strided_slice %551 {offsets = [0, 256], sizes = [8, 128], strides = [1, 1]} : vector<8x512xf32> to vector<8x128xf32>
    %565 = math.tanh %564 : vector<8x128xf32>
    %566 = vector.extract_strided_slice %551 {offsets = [0, 384], sizes = [8, 128], strides = [1, 1]} : vector<8x512xf32> to vector<8x128xf32>
    %567 = arith.negf %566 : vector<8x128xf32>
    %568 = math.exp %567 : vector<8x128xf32>
    %cst_160 = arith.constant 1.000000e+00 : f32
    %569 = vector.broadcast %cst_160 : f32 to vector<8x128xf32>
    %570 = arith.addf %569, %568 : vector<8x128xf32>
    %571 = arith.divf %569, %570 : vector<8x128xf32>
    %572 = arith.mulf %563, %453 : vector<8x128xf32>
    %573 = arith.mulf %557, %565 : vector<8x128xf32>
    %574 = arith.addf %572, %573 : vector<8x128xf32>
    %575 = math.tanh %574 : vector<8x128xf32>
    %576 = arith.mulf %571, %575 : vector<8x128xf32>
    %577 = vector.shape_cast %544 : vector<8x1xi1> to vector<8x1xi1>
    %578 = vector.broadcast %577 : vector<8x1xi1> to vector<8x128xi1>
    %579 = arith.select %578, %576, %450 : vector<8x128xi1>, vector<8x128xf32>
    %580 = vector.shape_cast %544 : vector<8x1xi1> to vector<8x1xi1>
    %581 = vector.broadcast %580 : vector<8x1xi1> to vector<8x128xi1>
    %582 = arith.select %581, %574, %453 : vector<8x128xi1>, vector<8x128xf32>
    %583 = tpu.concatenate %576, %490 in 1 : vector<8x128xf32>, vector<8x128xf32> -> vector<8x256xf32>
    %584 = arith.truncf %583 : vector<8x256xf32> to vector<8x256xbf16>
    %c0_161 = arith.constant 0 : index
    %c0_162 = arith.constant 0 : index
    %c0_163 = arith.constant 0 : index
    %585 = vector.load %arg8[%c0_161, %c0_162, %c0_163] : memref<2x256x512xbf16, #tpu.memory_space<vmem>>, vector<1x256x512xbf16>
    %586 = vector.shape_cast %585 : vector<1x256x512xbf16> to vector<256x512xbf16>
    %cst_164 = arith.constant dense<0.000000e+00> : vector<8x512xf32>
    %587 = tpu.matmul %584, %586, %cst_164 {dimension_numbers = #tpu.dot_dimension_numbers<[1], [0], [0], [1], [0, 0, 1, 1], [], []>} : vector<8x256xbf16>, vector<256x512xbf16>, vector<8x512xf32> -> vector<8x512xf32>
    %c0_165 = arith.constant 0 : index
    %c0_166 = arith.constant 0 : index
    %c0_167 = arith.constant 0 : index
    %588 = vector.load %arg9[%c0_165, %c0_166, %c0_167] : memref<2x1x512xf32, #tpu.memory_space<vmem>>, vector<1x1x512xf32>
    %589 = vector.shape_cast %588 : vector<1x1x512xf32> to vector<1x512xf32>
    %590 = vector.broadcast %589 : vector<1x512xf32> to vector<8x512xf32>
    %591 = arith.addf %587, %590 : vector<8x512xf32>
    %592 = vector.extract_strided_slice %591 {offsets = [0, 0], sizes = [8, 128], strides = [1, 1]} : vector<8x512xf32> to vector<8x128xf32>
    %593 = arith.negf %592 : vector<8x128xf32>
    %594 = math.exp %593 : vector<8x128xf32>
    %cst_168 = arith.constant 1.000000e+00 : f32
    %595 = vector.broadcast %cst_168 : f32 to vector<8x128xf32>
    %596 = arith.addf %595, %594 : vector<8x128xf32>
    %597 = arith.divf %595, %596 : vector<8x128xf32>
    %598 = vector.extract_strided_slice %591 {offsets = [0, 128], sizes = [8, 128], strides = [1, 1]} : vector<8x512xf32> to vector<8x128xf32>
    %599 = arith.negf %598 : vector<8x128xf32>
    %600 = math.exp %599 : vector<8x128xf32>
    %cst_169 = arith.constant 1.000000e+00 : f32
    %601 = vector.broadcast %cst_169 : f32 to vector<8x128xf32>
    %602 = arith.addf %601, %600 : vector<8x128xf32>
    %603 = arith.divf %601, %602 : vector<8x128xf32>
    %604 = vector.extract_strided_slice %591 {offsets = [0, 256], sizes = [8, 128], strides = [1, 1]} : vector<8x512xf32> to vector<8x128xf32>
    %605 = math.tanh %604 : vector<8x128xf32>
    %606 = vector.extract_strided_slice %591 {offsets = [0, 384], sizes = [8, 128], strides = [1, 1]} : vector<8x512xf32> to vector<8x128xf32>
    %607 = arith.negf %606 : vector<8x128xf32>
    %608 = math.exp %607 : vector<8x128xf32>
    %cst_170 = arith.constant 1.000000e+00 : f32
    %609 = vector.broadcast %cst_170 : f32 to vector<8x128xf32>
    %610 = arith.addf %609, %608 : vector<8x128xf32>
    %611 = arith.divf %609, %610 : vector<8x128xf32>
    %612 = arith.mulf %603, %493 : vector<8x128xf32>
    %613 = arith.mulf %597, %605 : vector<8x128xf32>
    %614 = arith.addf %612, %613 : vector<8x128xf32>
    %615 = math.tanh %614 : vector<8x128xf32>
    %616 = arith.mulf %611, %615 : vector<8x128xf32>
    %617 = vector.shape_cast %544 : vector<8x1xi1> to vector<8x1xi1>
    %618 = vector.broadcast %617 : vector<8x1xi1> to vector<8x128xi1>
    %619 = arith.select %618, %616, %490 : vector<8x128xi1>, vector<8x128xf32>
    %620 = vector.shape_cast %544 : vector<8x1xi1> to vector<8x1xi1>
    %621 = vector.broadcast %620 : vector<8x1xi1> to vector<8x128xi1>
    %622 = arith.select %621, %614, %493 : vector<8x128xi1>, vector<8x128xf32>
    %623 = tpu.concatenate %616, %530 in 1 : vector<8x128xf32>, vector<8x128xf32> -> vector<8x256xf32>
    %624 = arith.truncf %623 : vector<8x256xf32> to vector<8x256xbf16>
    %c1_171 = arith.constant 1 : index
    %c0_172 = arith.constant 0 : index
    %c0_173 = arith.constant 0 : index
    %625 = vector.load %arg8[%c1_171, %c0_172, %c0_173] : memref<2x256x512xbf16, #tpu.memory_space<vmem>>, vector<1x256x512xbf16>
    %626 = vector.shape_cast %625 : vector<1x256x512xbf16> to vector<256x512xbf16>
    %cst_174 = arith.constant dense<0.000000e+00> : vector<8x512xf32>
    %627 = tpu.matmul %624, %626, %cst_174 {dimension_numbers = #tpu.dot_dimension_numbers<[1], [0], [0], [1], [0, 0, 1, 1], [], []>} : vector<8x256xbf16>, vector<256x512xbf16>, vector<8x512xf32> -> vector<8x512xf32>
    %c1_175 = arith.constant 1 : index
    %c0_176 = arith.constant 0 : index
    %c0_177 = arith.constant 0 : index
    %628 = vector.load %arg9[%c1_175, %c0_176, %c0_177] : memref<2x1x512xf32, #tpu.memory_space<vmem>>, vector<1x1x512xf32>
    %629 = vector.shape_cast %628 : vector<1x1x512xf32> to vector<1x512xf32>
    %630 = vector.broadcast %629 : vector<1x512xf32> to vector<8x512xf32>
    %631 = arith.addf %627, %630 : vector<8x512xf32>
    %632 = vector.extract_strided_slice %631 {offsets = [0, 0], sizes = [8, 128], strides = [1, 1]} : vector<8x512xf32> to vector<8x128xf32>
    %633 = arith.negf %632 : vector<8x128xf32>
    %634 = math.exp %633 : vector<8x128xf32>
    %cst_178 = arith.constant 1.000000e+00 : f32
    %635 = vector.broadcast %cst_178 : f32 to vector<8x128xf32>
    %636 = arith.addf %635, %634 : vector<8x128xf32>
    %637 = arith.divf %635, %636 : vector<8x128xf32>
    %638 = vector.extract_strided_slice %631 {offsets = [0, 128], sizes = [8, 128], strides = [1, 1]} : vector<8x512xf32> to vector<8x128xf32>
    %639 = arith.negf %638 : vector<8x128xf32>
    %640 = math.exp %639 : vector<8x128xf32>
    %cst_179 = arith.constant 1.000000e+00 : f32
    %641 = vector.broadcast %cst_179 : f32 to vector<8x128xf32>
    %642 = arith.addf %641, %640 : vector<8x128xf32>
    %643 = arith.divf %641, %642 : vector<8x128xf32>
    %644 = vector.extract_strided_slice %631 {offsets = [0, 256], sizes = [8, 128], strides = [1, 1]} : vector<8x512xf32> to vector<8x128xf32>
    %645 = math.tanh %644 : vector<8x128xf32>
    %646 = vector.extract_strided_slice %631 {offsets = [0, 384], sizes = [8, 128], strides = [1, 1]} : vector<8x512xf32> to vector<8x128xf32>
    %647 = arith.negf %646 : vector<8x128xf32>
    %648 = math.exp %647 : vector<8x128xf32>
    %cst_180 = arith.constant 1.000000e+00 : f32
    %649 = vector.broadcast %cst_180 : f32 to vector<8x128xf32>
    %650 = arith.addf %649, %648 : vector<8x128xf32>
    %651 = arith.divf %649, %650 : vector<8x128xf32>
    %652 = arith.mulf %643, %533 : vector<8x128xf32>
    %653 = arith.mulf %637, %645 : vector<8x128xf32>
    %654 = arith.addf %652, %653 : vector<8x128xf32>
    %655 = math.tanh %654 : vector<8x128xf32>
    %656 = arith.mulf %651, %655 : vector<8x128xf32>
    %657 = vector.shape_cast %544 : vector<8x1xi1> to vector<8x1xi1>
    %658 = vector.broadcast %657 : vector<8x1xi1> to vector<8x128xi1>
    %659 = arith.select %658, %656, %530 : vector<8x128xi1>, vector<8x128xf32>
    %660 = vector.shape_cast %544 : vector<8x1xi1> to vector<8x1xi1>
    %661 = vector.broadcast %660 : vector<8x1xi1> to vector<8x128xi1>
    %662 = arith.select %661, %654, %533 : vector<8x128xi1>, vector<8x128xf32>
    %cst_181 = arith.constant 0.000000e+00 : f32
    %663 = vector.broadcast %cst_181 : f32 to vector<8x128xf32>
    %664 = vector.shape_cast %544 : vector<8x1xi1> to vector<8x1xi1>
    %665 = vector.broadcast %664 : vector<8x1xi1> to vector<8x128xi1>
    %666 = arith.select %665, %656, %663 : vector<8x128xi1>, vector<8x128xf32>
    %667 = arith.index_cast %c4_i32 : i32 to index
    %c0_182 = arith.constant 0 : index
    %c0_183 = arith.constant 0 : index
    %668 = vector.load %arg10[%667, %c0_182, %c0_183] : memref<8x8x128xf32, #tpu.memory_space<vmem>>, vector<1x8x128xf32>
    %669 = vector.shape_cast %668 : vector<1x8x128xf32> to vector<8x128xf32>
    %670 = vector.shape_cast %666 : vector<8x128xf32> to vector<1x8x128xf32>
    tpu.vector_store %arg10[%667, %c0_182, %c0_183], %670 {strides = array<i32>} : memref<8x8x128xf32, #tpu.memory_space<vmem>>, vector<1x8x128xf32>,
    %c5_i32 = arith.constant 5 : i32
    %671 = arith.addi %13, %c5_i32 : i32
    %672 = vector.broadcast %671 : i32 to vector<8x1xi32>
    %673 = arith.cmpi sgt, %12, %672 : vector<8x1xi32>
    %674 = arith.index_cast %c5_i32 : i32 to index
    %c0_184 = arith.constant 0 : index
    %c0_185 = arith.constant 0 : index
    %675 = vector.load %arg15[%674, %c0_184, %c0_185] : memref<8x8x512xf32, #tpu.memory_space<vmem>>, vector<1x8x512xf32>
    %676 = vector.shape_cast %675 : vector<1x8x512xf32> to vector<8x512xf32>
    %677 = arith.truncf %579 : vector<8x128xf32> to vector<8x128xbf16>
    %c0_186 = arith.constant 0 : index
    %c0_187 = arith.constant 0 : index
    %678 = vector.load %arg7[%c0_186, %c0_187] : memref<128x512xbf16, #tpu.memory_space<vmem>>, vector<128x512xbf16>
    %cst_188 = arith.constant dense<0.000000e+00> : vector<8x512xf32>
    %679 = tpu.matmul %677, %678, %cst_188 {dimension_numbers = #tpu.dot_dimension_numbers<[1], [0], [0], [1], [0, 0, 1, 1], [], []>} : vector<8x128xbf16>, vector<128x512xbf16>, vector<8x512xf32> -> vector<8x512xf32>
    %680 = arith.addf %676, %679 : vector<8x512xf32>
    %681 = vector.extract_strided_slice %680 {offsets = [0, 0], sizes = [8, 128], strides = [1, 1]} : vector<8x512xf32> to vector<8x128xf32>
    %682 = arith.negf %681 : vector<8x128xf32>
    %683 = math.exp %682 : vector<8x128xf32>
    %cst_189 = arith.constant 1.000000e+00 : f32
    %684 = vector.broadcast %cst_189 : f32 to vector<8x128xf32>
    %685 = arith.addf %684, %683 : vector<8x128xf32>
    %686 = arith.divf %684, %685 : vector<8x128xf32>
    %687 = vector.extract_strided_slice %680 {offsets = [0, 128], sizes = [8, 128], strides = [1, 1]} : vector<8x512xf32> to vector<8x128xf32>
    %688 = arith.negf %687 : vector<8x128xf32>
    %689 = math.exp %688 : vector<8x128xf32>
    %cst_190 = arith.constant 1.000000e+00 : f32
    %690 = vector.broadcast %cst_190 : f32 to vector<8x128xf32>
    %691 = arith.addf %690, %689 : vector<8x128xf32>
    %692 = arith.divf %690, %691 : vector<8x128xf32>
    %693 = vector.extract_strided_slice %680 {offsets = [0, 256], sizes = [8, 128], strides = [1, 1]} : vector<8x512xf32> to vector<8x128xf32>
    %694 = math.tanh %693 : vector<8x128xf32>
    %695 = vector.extract_strided_slice %680 {offsets = [0, 384], sizes = [8, 128], strides = [1, 1]} : vector<8x512xf32> to vector<8x128xf32>
    %696 = arith.negf %695 : vector<8x128xf32>
    %697 = math.exp %696 : vector<8x128xf32>
    %cst_191 = arith.constant 1.000000e+00 : f32
    %698 = vector.broadcast %cst_191 : f32 to vector<8x128xf32>
    %699 = arith.addf %698, %697 : vector<8x128xf32>
    %700 = arith.divf %698, %699 : vector<8x128xf32>
    %701 = arith.mulf %692, %582 : vector<8x128xf32>
    %702 = arith.mulf %686, %694 : vector<8x128xf32>
    %703 = arith.addf %701, %702 : vector<8x128xf32>
    %704 = math.tanh %703 : vector<8x128xf32>
    %705 = arith.mulf %700, %704 : vector<8x128xf32>
    %706 = vector.shape_cast %673 : vector<8x1xi1> to vector<8x1xi1>
    %707 = vector.broadcast %706 : vector<8x1xi1> to vector<8x128xi1>
    %708 = arith.select %707, %705, %579 : vector<8x128xi1>, vector<8x128xf32>
    %709 = vector.shape_cast %673 : vector<8x1xi1> to vector<8x1xi1>
    %710 = vector.broadcast %709 : vector<8x1xi1> to vector<8x128xi1>
    %711 = arith.select %710, %703, %582 : vector<8x128xi1>, vector<8x128xf32>
    %712 = tpu.concatenate %705, %619 in 1 : vector<8x128xf32>, vector<8x128xf32> -> vector<8x256xf32>
    %713 = arith.truncf %712 : vector<8x256xf32> to vector<8x256xbf16>
    %c0_192 = arith.constant 0 : index
    %c0_193 = arith.constant 0 : index
    %c0_194 = arith.constant 0 : index
    %714 = vector.load %arg8[%c0_192, %c0_193, %c0_194] : memref<2x256x512xbf16, #tpu.memory_space<vmem>>, vector<1x256x512xbf16>
    %715 = vector.shape_cast %714 : vector<1x256x512xbf16> to vector<256x512xbf16>
    %cst_195 = arith.constant dense<0.000000e+00> : vector<8x512xf32>
    %716 = tpu.matmul %713, %715, %cst_195 {dimension_numbers = #tpu.dot_dimension_numbers<[1], [0], [0], [1], [0, 0, 1, 1], [], []>} : vector<8x256xbf16>, vector<256x512xbf16>, vector<8x512xf32> -> vector<8x512xf32>
    %c0_196 = arith.constant 0 : index
    %c0_197 = arith.constant 0 : index
    %c0_198 = arith.constant 0 : index
    %717 = vector.load %arg9[%c0_196, %c0_197, %c0_198] : memref<2x1x512xf32, #tpu.memory_space<vmem>>, vector<1x1x512xf32>
    %718 = vector.shape_cast %717 : vector<1x1x512xf32> to vector<1x512xf32>
    %719 = vector.broadcast %718 : vector<1x512xf32> to vector<8x512xf32>
    %720 = arith.addf %716, %719 : vector<8x512xf32>
    %721 = vector.extract_strided_slice %720 {offsets = [0, 0], sizes = [8, 128], strides = [1, 1]} : vector<8x512xf32> to vector<8x128xf32>
    %722 = arith.negf %721 : vector<8x128xf32>
    %723 = math.exp %722 : vector<8x128xf32>
    %cst_199 = arith.constant 1.000000e+00 : f32
    %724 = vector.broadcast %cst_199 : f32 to vector<8x128xf32>
    %725 = arith.addf %724, %723 : vector<8x128xf32>
    %726 = arith.divf %724, %725 : vector<8x128xf32>
    %727 = vector.extract_strided_slice %720 {offsets = [0, 128], sizes = [8, 128], strides = [1, 1]} : vector<8x512xf32> to vector<8x128xf32>
    %728 = arith.negf %727 : vector<8x128xf32>
    %729 = math.exp %728 : vector<8x128xf32>
    %cst_200 = arith.constant 1.000000e+00 : f32
    %730 = vector.broadcast %cst_200 : f32 to vector<8x128xf32>
    %731 = arith.addf %730, %729 : vector<8x128xf32>
    %732 = arith.divf %730, %731 : vector<8x128xf32>
    %733 = vector.extract_strided_slice %720 {offsets = [0, 256], sizes = [8, 128], strides = [1, 1]} : vector<8x512xf32> to vector<8x128xf32>
    %734 = math.tanh %733 : vector<8x128xf32>
    %735 = vector.extract_strided_slice %720 {offsets = [0, 384], sizes = [8, 128], strides = [1, 1]} : vector<8x512xf32> to vector<8x128xf32>
    %736 = arith.negf %735 : vector<8x128xf32>
    %737 = math.exp %736 : vector<8x128xf32>
    %cst_201 = arith.constant 1.000000e+00 : f32
    %738 = vector.broadcast %cst_201 : f32 to vector<8x128xf32>
    %739 = arith.addf %738, %737 : vector<8x128xf32>
    %740 = arith.divf %738, %739 : vector<8x128xf32>
    %741 = arith.mulf %732, %622 : vector<8x128xf32>
    %742 = arith.mulf %726, %734 : vector<8x128xf32>
    %743 = arith.addf %741, %742 : vector<8x128xf32>
    %744 = math.tanh %743 : vector<8x128xf32>
    %745 = arith.mulf %740, %744 : vector<8x128xf32>
    %746 = vector.shape_cast %673 : vector<8x1xi1> to vector<8x1xi1>
    %747 = vector.broadcast %746 : vector<8x1xi1> to vector<8x128xi1>
    %748 = arith.select %747, %745, %619 : vector<8x128xi1>, vector<8x128xf32>
    %749 = vector.shape_cast %673 : vector<8x1xi1> to vector<8x1xi1>
    %750 = vector.broadcast %749 : vector<8x1xi1> to vector<8x128xi1>
    %751 = arith.select %750, %743, %622 : vector<8x128xi1>, vector<8x128xf32>
    %752 = tpu.concatenate %745, %659 in 1 : vector<8x128xf32>, vector<8x128xf32> -> vector<8x256xf32>
    %753 = arith.truncf %752 : vector<8x256xf32> to vector<8x256xbf16>
    %c1_202 = arith.constant 1 : index
    %c0_203 = arith.constant 0 : index
    %c0_204 = arith.constant 0 : index
    %754 = vector.load %arg8[%c1_202, %c0_203, %c0_204] : memref<2x256x512xbf16, #tpu.memory_space<vmem>>, vector<1x256x512xbf16>
    %755 = vector.shape_cast %754 : vector<1x256x512xbf16> to vector<256x512xbf16>
    %cst_205 = arith.constant dense<0.000000e+00> : vector<8x512xf32>
    %756 = tpu.matmul %753, %755, %cst_205 {dimension_numbers = #tpu.dot_dimension_numbers<[1], [0], [0], [1], [0, 0, 1, 1], [], []>} : vector<8x256xbf16>, vector<256x512xbf16>, vector<8x512xf32> -> vector<8x512xf32>
    %c1_206 = arith.constant 1 : index
    %c0_207 = arith.constant 0 : index
    %c0_208 = arith.constant 0 : index
    %757 = vector.load %arg9[%c1_206, %c0_207, %c0_208] : memref<2x1x512xf32, #tpu.memory_space<vmem>>, vector<1x1x512xf32>
    %758 = vector.shape_cast %757 : vector<1x1x512xf32> to vector<1x512xf32>
    %759 = vector.broadcast %758 : vector<1x512xf32> to vector<8x512xf32>
    %760 = arith.addf %756, %759 : vector<8x512xf32>
    %761 = vector.extract_strided_slice %760 {offsets = [0, 0], sizes = [8, 128], strides = [1, 1]} : vector<8x512xf32> to vector<8x128xf32>
    %762 = arith.negf %761 : vector<8x128xf32>
    %763 = math.exp %762 : vector<8x128xf32>
    %cst_209 = arith.constant 1.000000e+00 : f32
    %764 = vector.broadcast %cst_209 : f32 to vector<8x128xf32>
    %765 = arith.addf %764, %763 : vector<8x128xf32>
    %766 = arith.divf %764, %765 : vector<8x128xf32>
    %767 = vector.extract_strided_slice %760 {offsets = [0, 128], sizes = [8, 128], strides = [1, 1]} : vector<8x512xf32> to vector<8x128xf32>
    %768 = arith.negf %767 : vector<8x128xf32>
    %769 = math.exp %768 : vector<8x128xf32>
    %cst_210 = arith.constant 1.000000e+00 : f32
    %770 = vector.broadcast %cst_210 : f32 to vector<8x128xf32>
    %771 = arith.addf %770, %769 : vector<8x128xf32>
    %772 = arith.divf %770, %771 : vector<8x128xf32>
    %773 = vector.extract_strided_slice %760 {offsets = [0, 256], sizes = [8, 128], strides = [1, 1]} : vector<8x512xf32> to vector<8x128xf32>
    %774 = math.tanh %773 : vector<8x128xf32>
    %775 = vector.extract_strided_slice %760 {offsets = [0, 384], sizes = [8, 128], strides = [1, 1]} : vector<8x512xf32> to vector<8x128xf32>
    %776 = arith.negf %775 : vector<8x128xf32>
    %777 = math.exp %776 : vector<8x128xf32>
    %cst_211 = arith.constant 1.000000e+00 : f32
    %778 = vector.broadcast %cst_211 : f32 to vector<8x128xf32>
    %779 = arith.addf %778, %777 : vector<8x128xf32>
    %780 = arith.divf %778, %779 : vector<8x128xf32>
    %781 = arith.mulf %772, %662 : vector<8x128xf32>
    %782 = arith.mulf %766, %774 : vector<8x128xf32>
    %783 = arith.addf %781, %782 : vector<8x128xf32>
    %784 = math.tanh %783 : vector<8x128xf32>
    %785 = arith.mulf %780, %784 : vector<8x128xf32>
    %786 = vector.shape_cast %673 : vector<8x1xi1> to vector<8x1xi1>
    %787 = vector.broadcast %786 : vector<8x1xi1> to vector<8x128xi1>
    %788 = arith.select %787, %785, %659 : vector<8x128xi1>, vector<8x128xf32>
    %789 = vector.shape_cast %673 : vector<8x1xi1> to vector<8x1xi1>
    %790 = vector.broadcast %789 : vector<8x1xi1> to vector<8x128xi1>
    %791 = arith.select %790, %783, %662 : vector<8x128xi1>, vector<8x128xf32>
    %cst_212 = arith.constant 0.000000e+00 : f32
    %792 = vector.broadcast %cst_212 : f32 to vector<8x128xf32>
    %793 = vector.shape_cast %673 : vector<8x1xi1> to vector<8x1xi1>
    %794 = vector.broadcast %793 : vector<8x1xi1> to vector<8x128xi1>
    %795 = arith.select %794, %785, %792 : vector<8x128xi1>, vector<8x128xf32>
    %796 = arith.index_cast %c5_i32 : i32 to index
    %c0_213 = arith.constant 0 : index
    %c0_214 = arith.constant 0 : index
    %797 = vector.load %arg10[%796, %c0_213, %c0_214] : memref<8x8x128xf32, #tpu.memory_space<vmem>>, vector<1x8x128xf32>
    %798 = vector.shape_cast %797 : vector<1x8x128xf32> to vector<8x128xf32>
    %799 = vector.shape_cast %795 : vector<8x128xf32> to vector<1x8x128xf32>
    tpu.vector_store %arg10[%796, %c0_213, %c0_214], %799 {strides = array<i32>} : memref<8x8x128xf32, #tpu.memory_space<vmem>>, vector<1x8x128xf32>,
    %c6_i32 = arith.constant 6 : i32
    %800 = arith.addi %13, %c6_i32 : i32
    %801 = vector.broadcast %800 : i32 to vector<8x1xi32>
    %802 = arith.cmpi sgt, %12, %801 : vector<8x1xi32>
    %803 = arith.index_cast %c6_i32 : i32 to index
    %c0_215 = arith.constant 0 : index
    %c0_216 = arith.constant 0 : index
    %804 = vector.load %arg15[%803, %c0_215, %c0_216] : memref<8x8x512xf32, #tpu.memory_space<vmem>>, vector<1x8x512xf32>
    %805 = vector.shape_cast %804 : vector<1x8x512xf32> to vector<8x512xf32>
    %806 = arith.truncf %708 : vector<8x128xf32> to vector<8x128xbf16>
    %c0_217 = arith.constant 0 : index
    %c0_218 = arith.constant 0 : index
    %807 = vector.load %arg7[%c0_217, %c0_218] : memref<128x512xbf16, #tpu.memory_space<vmem>>, vector<128x512xbf16>
    %cst_219 = arith.constant dense<0.000000e+00> : vector<8x512xf32>
    %808 = tpu.matmul %806, %807, %cst_219 {dimension_numbers = #tpu.dot_dimension_numbers<[1], [0], [0], [1], [0, 0, 1, 1], [], []>} : vector<8x128xbf16>, vector<128x512xbf16>, vector<8x512xf32> -> vector<8x512xf32>
    %809 = arith.addf %805, %808 : vector<8x512xf32>
    %810 = vector.extract_strided_slice %809 {offsets = [0, 0], sizes = [8, 128], strides = [1, 1]} : vector<8x512xf32> to vector<8x128xf32>
    %811 = arith.negf %810 : vector<8x128xf32>
    %812 = math.exp %811 : vector<8x128xf32>
    %cst_220 = arith.constant 1.000000e+00 : f32
    %813 = vector.broadcast %cst_220 : f32 to vector<8x128xf32>
    %814 = arith.addf %813, %812 : vector<8x128xf32>
    %815 = arith.divf %813, %814 : vector<8x128xf32>
    %816 = vector.extract_strided_slice %809 {offsets = [0, 128], sizes = [8, 128], strides = [1, 1]} : vector<8x512xf32> to vector<8x128xf32>
    %817 = arith.negf %816 : vector<8x128xf32>
    %818 = math.exp %817 : vector<8x128xf32>
    %cst_221 = arith.constant 1.000000e+00 : f32
    %819 = vector.broadcast %cst_221 : f32 to vector<8x128xf32>
    %820 = arith.addf %819, %818 : vector<8x128xf32>
    %821 = arith.divf %819, %820 : vector<8x128xf32>
    %822 = vector.extract_strided_slice %809 {offsets = [0, 256], sizes = [8, 128], strides = [1, 1]} : vector<8x512xf32> to vector<8x128xf32>
    %823 = math.tanh %822 : vector<8x128xf32>
    %824 = vector.extract_strided_slice %809 {offsets = [0, 384], sizes = [8, 128], strides = [1, 1]} : vector<8x512xf32> to vector<8x128xf32>
    %825 = arith.negf %824 : vector<8x128xf32>
    %826 = math.exp %825 : vector<8x128xf32>
    %cst_222 = arith.constant 1.000000e+00 : f32
    %827 = vector.broadcast %cst_222 : f32 to vector<8x128xf32>
    %828 = arith.addf %827, %826 : vector<8x128xf32>
    %829 = arith.divf %827, %828 : vector<8x128xf32>
    %830 = arith.mulf %821, %711 : vector<8x128xf32>
    %831 = arith.mulf %815, %823 : vector<8x128xf32>
    %832 = arith.addf %830, %831 : vector<8x128xf32>
    %833 = math.tanh %832 : vector<8x128xf32>
    %834 = arith.mulf %829, %833 : vector<8x128xf32>
    %835 = vector.shape_cast %802 : vector<8x1xi1> to vector<8x1xi1>
    %836 = vector.broadcast %835 : vector<8x1xi1> to vector<8x128xi1>
    %837 = arith.select %836, %834, %708 : vector<8x128xi1>, vector<8x128xf32>
    %838 = vector.shape_cast %802 : vector<8x1xi1> to vector<8x1xi1>
    %839 = vector.broadcast %838 : vector<8x1xi1> to vector<8x128xi1>
    %840 = arith.select %839, %832, %711 : vector<8x128xi1>, vector<8x128xf32>
    %841 = tpu.concatenate %834, %748 in 1 : vector<8x128xf32>, vector<8x128xf32> -> vector<8x256xf32>
    %842 = arith.truncf %841 : vector<8x256xf32> to vector<8x256xbf16>
    %c0_223 = arith.constant 0 : index
    %c0_224 = arith.constant 0 : index
    %c0_225 = arith.constant 0 : index
    %843 = vector.load %arg8[%c0_223, %c0_224, %c0_225] : memref<2x256x512xbf16, #tpu.memory_space<vmem>>, vector<1x256x512xbf16>
    %844 = vector.shape_cast %843 : vector<1x256x512xbf16> to vector<256x512xbf16>
    %cst_226 = arith.constant dense<0.000000e+00> : vector<8x512xf32>
    %845 = tpu.matmul %842, %844, %cst_226 {dimension_numbers = #tpu.dot_dimension_numbers<[1], [0], [0], [1], [0, 0, 1, 1], [], []>} : vector<8x256xbf16>, vector<256x512xbf16>, vector<8x512xf32> -> vector<8x512xf32>
    %c0_227 = arith.constant 0 : index
    %c0_228 = arith.constant 0 : index
    %c0_229 = arith.constant 0 : index
    %846 = vector.load %arg9[%c0_227, %c0_228, %c0_229] : memref<2x1x512xf32, #tpu.memory_space<vmem>>, vector<1x1x512xf32>
    %847 = vector.shape_cast %846 : vector<1x1x512xf32> to vector<1x512xf32>
    %848 = vector.broadcast %847 : vector<1x512xf32> to vector<8x512xf32>
    %849 = arith.addf %845, %848 : vector<8x512xf32>
    %850 = vector.extract_strided_slice %849 {offsets = [0, 0], sizes = [8, 128], strides = [1, 1]} : vector<8x512xf32> to vector<8x128xf32>
    %851 = arith.negf %850 : vector<8x128xf32>
    %852 = math.exp %851 : vector<8x128xf32>
    %cst_230 = arith.constant 1.000000e+00 : f32
    %853 = vector.broadcast %cst_230 : f32 to vector<8x128xf32>
    %854 = arith.addf %853, %852 : vector<8x128xf32>
    %855 = arith.divf %853, %854 : vector<8x128xf32>
    %856 = vector.extract_strided_slice %849 {offsets = [0, 128], sizes = [8, 128], strides = [1, 1]} : vector<8x512xf32> to vector<8x128xf32>
    %857 = arith.negf %856 : vector<8x128xf32>
    %858 = math.exp %857 : vector<8x128xf32>
    %cst_231 = arith.constant 1.000000e+00 : f32
    %859 = vector.broadcast %cst_231 : f32 to vector<8x128xf32>
    %860 = arith.addf %859, %858 : vector<8x128xf32>
    %861 = arith.divf %859, %860 : vector<8x128xf32>
    %862 = vector.extract_strided_slice %849 {offsets = [0, 256], sizes = [8, 128], strides = [1, 1]} : vector<8x512xf32> to vector<8x128xf32>
    %863 = math.tanh %862 : vector<8x128xf32>
    %864 = vector.extract_strided_slice %849 {offsets = [0, 384], sizes = [8, 128], strides = [1, 1]} : vector<8x512xf32> to vector<8x128xf32>
    %865 = arith.negf %864 : vector<8x128xf32>
    %866 = math.exp %865 : vector<8x128xf32>
    %cst_232 = arith.constant 1.000000e+00 : f32
    %867 = vector.broadcast %cst_232 : f32 to vector<8x128xf32>
    %868 = arith.addf %867, %866 : vector<8x128xf32>
    %869 = arith.divf %867, %868 : vector<8x128xf32>
    %870 = arith.mulf %861, %751 : vector<8x128xf32>
    %871 = arith.mulf %855, %863 : vector<8x128xf32>
    %872 = arith.addf %870, %871 : vector<8x128xf32>
    %873 = math.tanh %872 : vector<8x128xf32>
    %874 = arith.mulf %869, %873 : vector<8x128xf32>
    %875 = vector.shape_cast %802 : vector<8x1xi1> to vector<8x1xi1>
    %876 = vector.broadcast %875 : vector<8x1xi1> to vector<8x128xi1>
    %877 = arith.select %876, %874, %748 : vector<8x128xi1>, vector<8x128xf32>
    %878 = vector.shape_cast %802 : vector<8x1xi1> to vector<8x1xi1>
    %879 = vector.broadcast %878 : vector<8x1xi1> to vector<8x128xi1>
    %880 = arith.select %879, %872, %751 : vector<8x128xi1>, vector<8x128xf32>
    %881 = tpu.concatenate %874, %788 in 1 : vector<8x128xf32>, vector<8x128xf32> -> vector<8x256xf32>
    %882 = arith.truncf %881 : vector<8x256xf32> to vector<8x256xbf16>
    %c1_233 = arith.constant 1 : index
    %c0_234 = arith.constant 0 : index
    %c0_235 = arith.constant 0 : index
    %883 = vector.load %arg8[%c1_233, %c0_234, %c0_235] : memref<2x256x512xbf16, #tpu.memory_space<vmem>>, vector<1x256x512xbf16>
    %884 = vector.shape_cast %883 : vector<1x256x512xbf16> to vector<256x512xbf16>
    %cst_236 = arith.constant dense<0.000000e+00> : vector<8x512xf32>
    %885 = tpu.matmul %882, %884, %cst_236 {dimension_numbers = #tpu.dot_dimension_numbers<[1], [0], [0], [1], [0, 0, 1, 1], [], []>} : vector<8x256xbf16>, vector<256x512xbf16>, vector<8x512xf32> -> vector<8x512xf32>
    %c1_237 = arith.constant 1 : index
    %c0_238 = arith.constant 0 : index
    %c0_239 = arith.constant 0 : index
    %886 = vector.load %arg9[%c1_237, %c0_238, %c0_239] : memref<2x1x512xf32, #tpu.memory_space<vmem>>, vector<1x1x512xf32>
    %887 = vector.shape_cast %886 : vector<1x1x512xf32> to vector<1x512xf32>
    %888 = vector.broadcast %887 : vector<1x512xf32> to vector<8x512xf32>
    %889 = arith.addf %885, %888 : vector<8x512xf32>
    %890 = vector.extract_strided_slice %889 {offsets = [0, 0], sizes = [8, 128], strides = [1, 1]} : vector<8x512xf32> to vector<8x128xf32>
    %891 = arith.negf %890 : vector<8x128xf32>
    %892 = math.exp %891 : vector<8x128xf32>
    %cst_240 = arith.constant 1.000000e+00 : f32
    %893 = vector.broadcast %cst_240 : f32 to vector<8x128xf32>
    %894 = arith.addf %893, %892 : vector<8x128xf32>
    %895 = arith.divf %893, %894 : vector<8x128xf32>
    %896 = vector.extract_strided_slice %889 {offsets = [0, 128], sizes = [8, 128], strides = [1, 1]} : vector<8x512xf32> to vector<8x128xf32>
    %897 = arith.negf %896 : vector<8x128xf32>
    %898 = math.exp %897 : vector<8x128xf32>
    %cst_241 = arith.constant 1.000000e+00 : f32
    %899 = vector.broadcast %cst_241 : f32 to vector<8x128xf32>
    %900 = arith.addf %899, %898 : vector<8x128xf32>
    %901 = arith.divf %899, %900 : vector<8x128xf32>
    %902 = vector.extract_strided_slice %889 {offsets = [0, 256], sizes = [8, 128], strides = [1, 1]} : vector<8x512xf32> to vector<8x128xf32>
    %903 = math.tanh %902 : vector<8x128xf32>
    %904 = vector.extract_strided_slice %889 {offsets = [0, 384], sizes = [8, 128], strides = [1, 1]} : vector<8x512xf32> to vector<8x128xf32>
    %905 = arith.negf %904 : vector<8x128xf32>
    %906 = math.exp %905 : vector<8x128xf32>
    %cst_242 = arith.constant 1.000000e+00 : f32
    %907 = vector.broadcast %cst_242 : f32 to vector<8x128xf32>
    %908 = arith.addf %907, %906 : vector<8x128xf32>
    %909 = arith.divf %907, %908 : vector<8x128xf32>
    %910 = arith.mulf %901, %791 : vector<8x128xf32>
    %911 = arith.mulf %895, %903 : vector<8x128xf32>
    %912 = arith.addf %910, %911 : vector<8x128xf32>
    %913 = math.tanh %912 : vector<8x128xf32>
    %914 = arith.mulf %909, %913 : vector<8x128xf32>
    %915 = vector.shape_cast %802 : vector<8x1xi1> to vector<8x1xi1>
    %916 = vector.broadcast %915 : vector<8x1xi1> to vector<8x128xi1>
    %917 = arith.select %916, %914, %788 : vector<8x128xi1>, vector<8x128xf32>
    %918 = vector.shape_cast %802 : vector<8x1xi1> to vector<8x1xi1>
    %919 = vector.broadcast %918 : vector<8x1xi1> to vector<8x128xi1>
    %920 = arith.select %919, %912, %791 : vector<8x128xi1>, vector<8x128xf32>
    %cst_243 = arith.constant 0.000000e+00 : f32
    %921 = vector.broadcast %cst_243 : f32 to vector<8x128xf32>
    %922 = vector.shape_cast %802 : vector<8x1xi1> to vector<8x1xi1>
    %923 = vector.broadcast %922 : vector<8x1xi1> to vector<8x128xi1>
    %924 = arith.select %923, %914, %921 : vector<8x128xi1>, vector<8x128xf32>
    %925 = arith.index_cast %c6_i32 : i32 to index
    %c0_244 = arith.constant 0 : index
    %c0_245 = arith.constant 0 : index
    %926 = vector.load %arg10[%925, %c0_244, %c0_245] : memref<8x8x128xf32, #tpu.memory_space<vmem>>, vector<1x8x128xf32>
    %927 = vector.shape_cast %926 : vector<1x8x128xf32> to vector<8x128xf32>
    %928 = vector.shape_cast %924 : vector<8x128xf32> to vector<1x8x128xf32>
    tpu.vector_store %arg10[%925, %c0_244, %c0_245], %928 {strides = array<i32>} : memref<8x8x128xf32, #tpu.memory_space<vmem>>, vector<1x8x128xf32>,
    %c7_i32 = arith.constant 7 : i32
    %929 = arith.addi %13, %c7_i32 : i32
    %930 = vector.broadcast %929 : i32 to vector<8x1xi32>
    %931 = arith.cmpi sgt, %12, %930 : vector<8x1xi32>
    %932 = arith.index_cast %c7_i32 : i32 to index
    %c0_246 = arith.constant 0 : index
    %c0_247 = arith.constant 0 : index
    %933 = vector.load %arg15[%932, %c0_246, %c0_247] : memref<8x8x512xf32, #tpu.memory_space<vmem>>, vector<1x8x512xf32>
    %934 = vector.shape_cast %933 : vector<1x8x512xf32> to vector<8x512xf32>
    %935 = arith.truncf %837 : vector<8x128xf32> to vector<8x128xbf16>
    %c0_248 = arith.constant 0 : index
    %c0_249 = arith.constant 0 : index
    %936 = vector.load %arg7[%c0_248, %c0_249] : memref<128x512xbf16, #tpu.memory_space<vmem>>, vector<128x512xbf16>
    %cst_250 = arith.constant dense<0.000000e+00> : vector<8x512xf32>
    %937 = tpu.matmul %935, %936, %cst_250 {dimension_numbers = #tpu.dot_dimension_numbers<[1], [0], [0], [1], [0, 0, 1, 1], [], []>} : vector<8x128xbf16>, vector<128x512xbf16>, vector<8x512xf32> -> vector<8x512xf32>
    %938 = arith.addf %934, %937 : vector<8x512xf32>
    %939 = vector.extract_strided_slice %938 {offsets = [0, 0], sizes = [8, 128], strides = [1, 1]} : vector<8x512xf32> to vector<8x128xf32>
    %940 = arith.negf %939 : vector<8x128xf32>
    %941 = math.exp %940 : vector<8x128xf32>
    %cst_251 = arith.constant 1.000000e+00 : f32
    %942 = vector.broadcast %cst_251 : f32 to vector<8x128xf32>
    %943 = arith.addf %942, %941 : vector<8x128xf32>
    %944 = arith.divf %942, %943 : vector<8x128xf32>
    %945 = vector.extract_strided_slice %938 {offsets = [0, 128], sizes = [8, 128], strides = [1, 1]} : vector<8x512xf32> to vector<8x128xf32>
    %946 = arith.negf %945 : vector<8x128xf32>
    %947 = math.exp %946 : vector<8x128xf32>
    %cst_252 = arith.constant 1.000000e+00 : f32
    %948 = vector.broadcast %cst_252 : f32 to vector<8x128xf32>
    %949 = arith.addf %948, %947 : vector<8x128xf32>
    %950 = arith.divf %948, %949 : vector<8x128xf32>
    %951 = vector.extract_strided_slice %938 {offsets = [0, 256], sizes = [8, 128], strides = [1, 1]} : vector<8x512xf32> to vector<8x128xf32>
    %952 = math.tanh %951 : vector<8x128xf32>
    %953 = vector.extract_strided_slice %938 {offsets = [0, 384], sizes = [8, 128], strides = [1, 1]} : vector<8x512xf32> to vector<8x128xf32>
    %954 = arith.negf %953 : vector<8x128xf32>
    %955 = math.exp %954 : vector<8x128xf32>
    %cst_253 = arith.constant 1.000000e+00 : f32
    %956 = vector.broadcast %cst_253 : f32 to vector<8x128xf32>
    %957 = arith.addf %956, %955 : vector<8x128xf32>
    %958 = arith.divf %956, %957 : vector<8x128xf32>
    %959 = arith.mulf %950, %840 : vector<8x128xf32>
    %960 = arith.mulf %944, %952 : vector<8x128xf32>
    %961 = arith.addf %959, %960 : vector<8x128xf32>
    %962 = math.tanh %961 : vector<8x128xf32>
    %963 = arith.mulf %958, %962 : vector<8x128xf32>
    %964 = vector.shape_cast %931 : vector<8x1xi1> to vector<8x1xi1>
    %965 = vector.broadcast %964 : vector<8x1xi1> to vector<8x128xi1>
    %966 = arith.select %965, %963, %837 : vector<8x128xi1>, vector<8x128xf32>
    %967 = vector.shape_cast %931 : vector<8x1xi1> to vector<8x1xi1>
    %968 = vector.broadcast %967 : vector<8x1xi1> to vector<8x128xi1>
    %969 = arith.select %968, %961, %840 : vector<8x128xi1>, vector<8x128xf32>
    %970 = tpu.concatenate %963, %877 in 1 : vector<8x128xf32>, vector<8x128xf32> -> vector<8x256xf32>
    %971 = arith.truncf %970 : vector<8x256xf32> to vector<8x256xbf16>
    %c0_254 = arith.constant 0 : index
    %c0_255 = arith.constant 0 : index
    %c0_256 = arith.constant 0 : index
    %972 = vector.load %arg8[%c0_254, %c0_255, %c0_256] : memref<2x256x512xbf16, #tpu.memory_space<vmem>>, vector<1x256x512xbf16>
    %973 = vector.shape_cast %972 : vector<1x256x512xbf16> to vector<256x512xbf16>
    %cst_257 = arith.constant dense<0.000000e+00> : vector<8x512xf32>
    %974 = tpu.matmul %971, %973, %cst_257 {dimension_numbers = #tpu.dot_dimension_numbers<[1], [0], [0], [1], [0, 0, 1, 1], [], []>} : vector<8x256xbf16>, vector<256x512xbf16>, vector<8x512xf32> -> vector<8x512xf32>
    %c0_258 = arith.constant 0 : index
    %c0_259 = arith.constant 0 : index
    %c0_260 = arith.constant 0 : index
    %975 = vector.load %arg9[%c0_258, %c0_259, %c0_260] : memref<2x1x512xf32, #tpu.memory_space<vmem>>, vector<1x1x512xf32>
    %976 = vector.shape_cast %975 : vector<1x1x512xf32> to vector<1x512xf32>
    %977 = vector.broadcast %976 : vector<1x512xf32> to vector<8x512xf32>
    %978 = arith.addf %974, %977 : vector<8x512xf32>
    %979 = vector.extract_strided_slice %978 {offsets = [0, 0], sizes = [8, 128], strides = [1, 1]} : vector<8x512xf32> to vector<8x128xf32>
    %980 = arith.negf %979 : vector<8x128xf32>
    %981 = math.exp %980 : vector<8x128xf32>
    %cst_261 = arith.constant 1.000000e+00 : f32
    %982 = vector.broadcast %cst_261 : f32 to vector<8x128xf32>
    %983 = arith.addf %982, %981 : vector<8x128xf32>
    %984 = arith.divf %982, %983 : vector<8x128xf32>
    %985 = vector.extract_strided_slice %978 {offsets = [0, 128], sizes = [8, 128], strides = [1, 1]} : vector<8x512xf32> to vector<8x128xf32>
    %986 = arith.negf %985 : vector<8x128xf32>
    %987 = math.exp %986 : vector<8x128xf32>
    %cst_262 = arith.constant 1.000000e+00 : f32
    %988 = vector.broadcast %cst_262 : f32 to vector<8x128xf32>
    %989 = arith.addf %988, %987 : vector<8x128xf32>
    %990 = arith.divf %988, %989 : vector<8x128xf32>
    %991 = vector.extract_strided_slice %978 {offsets = [0, 256], sizes = [8, 128], strides = [1, 1]} : vector<8x512xf32> to vector<8x128xf32>
    %992 = math.tanh %991 : vector<8x128xf32>
    %993 = vector.extract_strided_slice %978 {offsets = [0, 384], sizes = [8, 128], strides = [1, 1]} : vector<8x512xf32> to vector<8x128xf32>
    %994 = arith.negf %993 : vector<8x128xf32>
    %995 = math.exp %994 : vector<8x128xf32>
    %cst_263 = arith.constant 1.000000e+00 : f32
    %996 = vector.broadcast %cst_263 : f32 to vector<8x128xf32>
    %997 = arith.addf %996, %995 : vector<8x128xf32>
    %998 = arith.divf %996, %997 : vector<8x128xf32>
    %999 = arith.mulf %990, %880 : vector<8x128xf32>
    %1000 = arith.mulf %984, %992 : vector<8x128xf32>
    %1001 = arith.addf %999, %1000 : vector<8x128xf32>
    %1002 = math.tanh %1001 : vector<8x128xf32>
    %1003 = arith.mulf %998, %1002 : vector<8x128xf32>
    %1004 = vector.shape_cast %931 : vector<8x1xi1> to vector<8x1xi1>
    %1005 = vector.broadcast %1004 : vector<8x1xi1> to vector<8x128xi1>
    %1006 = arith.select %1005, %1003, %877 : vector<8x128xi1>, vector<8x128xf32>
    %1007 = vector.shape_cast %931 : vector<8x1xi1> to vector<8x1xi1>
    %1008 = vector.broadcast %1007 : vector<8x1xi1> to vector<8x128xi1>
    %1009 = arith.select %1008, %1001, %880 : vector<8x128xi1>, vector<8x128xf32>
    %1010 = tpu.concatenate %1003, %917 in 1 : vector<8x128xf32>, vector<8x128xf32> -> vector<8x256xf32>
    %1011 = arith.truncf %1010 : vector<8x256xf32> to vector<8x256xbf16>
    %c1_264 = arith.constant 1 : index
    %c0_265 = arith.constant 0 : index
    %c0_266 = arith.constant 0 : index
    %1012 = vector.load %arg8[%c1_264, %c0_265, %c0_266] : memref<2x256x512xbf16, #tpu.memory_space<vmem>>, vector<1x256x512xbf16>
    %1013 = vector.shape_cast %1012 : vector<1x256x512xbf16> to vector<256x512xbf16>
    %cst_267 = arith.constant dense<0.000000e+00> : vector<8x512xf32>
    %1014 = tpu.matmul %1011, %1013, %cst_267 {dimension_numbers = #tpu.dot_dimension_numbers<[1], [0], [0], [1], [0, 0, 1, 1], [], []>} : vector<8x256xbf16>, vector<256x512xbf16>, vector<8x512xf32> -> vector<8x512xf32>
    %c1_268 = arith.constant 1 : index
    %c0_269 = arith.constant 0 : index
    %c0_270 = arith.constant 0 : index
    %1015 = vector.load %arg9[%c1_268, %c0_269, %c0_270] : memref<2x1x512xf32, #tpu.memory_space<vmem>>, vector<1x1x512xf32>
    %1016 = vector.shape_cast %1015 : vector<1x1x512xf32> to vector<1x512xf32>
    %1017 = vector.broadcast %1016 : vector<1x512xf32> to vector<8x512xf32>
    %1018 = arith.addf %1014, %1017 : vector<8x512xf32>
    %1019 = vector.extract_strided_slice %1018 {offsets = [0, 0], sizes = [8, 128], strides = [1, 1]} : vector<8x512xf32> to vector<8x128xf32>
    %1020 = arith.negf %1019 : vector<8x128xf32>
    %1021 = math.exp %1020 : vector<8x128xf32>
    %cst_271 = arith.constant 1.000000e+00 : f32
    %1022 = vector.broadcast %cst_271 : f32 to vector<8x128xf32>
    %1023 = arith.addf %1022, %1021 : vector<8x128xf32>
    %1024 = arith.divf %1022, %1023 : vector<8x128xf32>
    %1025 = vector.extract_strided_slice %1018 {offsets = [0, 128], sizes = [8, 128], strides = [1, 1]} : vector<8x512xf32> to vector<8x128xf32>
    %1026 = arith.negf %1025 : vector<8x128xf32>
    %1027 = math.exp %1026 : vector<8x128xf32>
    %cst_272 = arith.constant 1.000000e+00 : f32
    %1028 = vector.broadcast %cst_272 : f32 to vector<8x128xf32>
    %1029 = arith.addf %1028, %1027 : vector<8x128xf32>
    %1030 = arith.divf %1028, %1029 : vector<8x128xf32>
    %1031 = vector.extract_strided_slice %1018 {offsets = [0, 256], sizes = [8, 128], strides = [1, 1]} : vector<8x512xf32> to vector<8x128xf32>
    %1032 = math.tanh %1031 : vector<8x128xf32>
    %1033 = vector.extract_strided_slice %1018 {offsets = [0, 384], sizes = [8, 128], strides = [1, 1]} : vector<8x512xf32> to vector<8x128xf32>
    %1034 = arith.negf %1033 : vector<8x128xf32>
    %1035 = math.exp %1034 : vector<8x128xf32>
    %cst_273 = arith.constant 1.000000e+00 : f32
    %1036 = vector.broadcast %cst_273 : f32 to vector<8x128xf32>
    %1037 = arith.addf %1036, %1035 : vector<8x128xf32>
    %1038 = arith.divf %1036, %1037 : vector<8x128xf32>
    %1039 = arith.mulf %1030, %920 : vector<8x128xf32>
    %1040 = arith.mulf %1024, %1032 : vector<8x128xf32>
    %1041 = arith.addf %1039, %1040 : vector<8x128xf32>
    %1042 = math.tanh %1041 : vector<8x128xf32>
    %1043 = arith.mulf %1038, %1042 : vector<8x128xf32>
    %1044 = vector.shape_cast %931 : vector<8x1xi1> to vector<8x1xi1>
    %1045 = vector.broadcast %1044 : vector<8x1xi1> to vector<8x128xi1>
    %1046 = arith.select %1045, %1043, %917 : vector<8x128xi1>, vector<8x128xf32>
    %1047 = vector.shape_cast %931 : vector<8x1xi1> to vector<8x1xi1>
    %1048 = vector.broadcast %1047 : vector<8x1xi1> to vector<8x128xi1>
    %1049 = arith.select %1048, %1041, %920 : vector<8x128xi1>, vector<8x128xf32>
    %cst_274 = arith.constant 0.000000e+00 : f32
    %1050 = vector.broadcast %cst_274 : f32 to vector<8x128xf32>
    %1051 = vector.shape_cast %931 : vector<8x1xi1> to vector<8x1xi1>
    %1052 = vector.broadcast %1051 : vector<8x1xi1> to vector<8x128xi1>
    %1053 = arith.select %1052, %1043, %1050 : vector<8x128xi1>, vector<8x128xf32>
    %1054 = arith.index_cast %c7_i32 : i32 to index
    %c0_275 = arith.constant 0 : index
    %c0_276 = arith.constant 0 : index
    %1055 = vector.load %arg10[%1054, %c0_275, %c0_276] : memref<8x8x128xf32, #tpu.memory_space<vmem>>, vector<1x8x128xf32>
    %1056 = vector.shape_cast %1055 : vector<1x8x128xf32> to vector<8x128xf32>
    %1057 = vector.shape_cast %1053 : vector<8x128xf32> to vector<1x8x128xf32>
    tpu.vector_store %arg10[%1054, %c0_275, %c0_276], %1057 {strides = array<i32>} : memref<8x8x128xf32, #tpu.memory_space<vmem>>, vector<1x8x128xf32>,
    %c8_i32_277 = arith.constant 8 : i32
    %c0_278 = arith.constant 0 : index
    %c0_279 = arith.constant 0 : index
    %c0_280 = arith.constant 0 : index
    %1058 = vector.load %arg13[%c0_278, %c0_279, %c0_280] : memref<3x8x128xf32, #tpu.memory_space<vmem>>, vector<1x8x128xf32>
    %1059 = vector.shape_cast %1058 : vector<1x8x128xf32> to vector<8x128xf32>
    %1060 = vector.shape_cast %966 : vector<8x128xf32> to vector<1x8x128xf32>
    tpu.vector_store %arg13[%c0_278, %c0_279, %c0_280], %1060 {strides = array<i32>} : memref<3x8x128xf32, #tpu.memory_space<vmem>>, vector<1x8x128xf32>,
    %c0_281 = arith.constant 0 : index
    %c0_282 = arith.constant 0 : index
    %c0_283 = arith.constant 0 : index
    %1061 = vector.load %arg14[%c0_281, %c0_282, %c0_283] : memref<3x8x128xf32, #tpu.memory_space<vmem>>, vector<1x8x128xf32>
    %1062 = vector.shape_cast %1061 : vector<1x8x128xf32> to vector<8x128xf32>
    %1063 = vector.shape_cast %969 : vector<8x128xf32> to vector<1x8x128xf32>
    tpu.vector_store %arg14[%c0_281, %c0_282, %c0_283], %1063 {strides = array<i32>} : memref<3x8x128xf32, #tpu.memory_space<vmem>>, vector<1x8x128xf32>,
    %c1_284 = arith.constant 1 : index
    %c0_285 = arith.constant 0 : index
    %c0_286 = arith.constant 0 : index
    %1064 = vector.load %arg13[%c1_284, %c0_285, %c0_286] : memref<3x8x128xf32, #tpu.memory_space<vmem>>, vector<1x8x128xf32>
    %1065 = vector.shape_cast %1064 : vector<1x8x128xf32> to vector<8x128xf32>
    %1066 = vector.shape_cast %1006 : vector<8x128xf32> to vector<1x8x128xf32>
    tpu.vector_store %arg13[%c1_284, %c0_285, %c0_286], %1066 {strides = array<i32>} : memref<3x8x128xf32, #tpu.memory_space<vmem>>, vector<1x8x128xf32>,
    %c1_287 = arith.constant 1 : index
    %c0_288 = arith.constant 0 : index
    %c0_289 = arith.constant 0 : index
    %1067 = vector.load %arg14[%c1_287, %c0_288, %c0_289] : memref<3x8x128xf32, #tpu.memory_space<vmem>>, vector<1x8x128xf32>
    %1068 = vector.shape_cast %1067 : vector<1x8x128xf32> to vector<8x128xf32>
    %1069 = vector.shape_cast %1009 : vector<8x128xf32> to vector<1x8x128xf32>
    tpu.vector_store %arg14[%c1_287, %c0_288, %c0_289], %1069 {strides = array<i32>} : memref<3x8x128xf32, #tpu.memory_space<vmem>>, vector<1x8x128xf32>,
    %c2_290 = arith.constant 2 : index
    %c0_291 = arith.constant 0 : index
    %c0_292 = arith.constant 0 : index
    %1070 = vector.load %arg13[%c2_290, %c0_291, %c0_292] : memref<3x8x128xf32, #tpu.memory_space<vmem>>, vector<1x8x128xf32>
    %1071 = vector.shape_cast %1070 : vector<1x8x128xf32> to vector<8x128xf32>
    %1072 = vector.shape_cast %1046 : vector<8x128xf32> to vector<1x8x128xf32>
    tpu.vector_store %arg13[%c2_290, %c0_291, %c0_292], %1072 {strides = array<i32>} : memref<3x8x128xf32, #tpu.memory_space<vmem>>, vector<1x8x128xf32>,
    %c2_293 = arith.constant 2 : index
    %c0_294 = arith.constant 0 : index
    %c0_295 = arith.constant 0 : index
    %1073 = vector.load %arg14[%c2_293, %c0_294, %c0_295] : memref<3x8x128xf32, #tpu.memory_space<vmem>>, vector<1x8x128xf32>
    %1074 = vector.shape_cast %1073 : vector<1x8x128xf32> to vector<8x128xf32>
    %1075 = vector.shape_cast %1049 : vector<8x128xf32> to vector<1x8x128xf32>
    tpu.vector_store %arg14[%c2_293, %c0_294, %c0_295], %1075 {strides = array<i32>} : memref<3x8x128xf32, #tpu.memory_space<vmem>>, vector<1x8x128xf32>,
    %c0_i32_296 = arith.constant 0 : i32
    %1076 = arith.cmpi eq, %arg0, %c0_i32_296 : i32
    %1077 = arith.extui %1076 : i1 to i32
    %c0_i32_297 = arith.constant 0 : i32
    %1078 = arith.cmpi ne, %1077, %c0_i32_297 : i32
    scf.if %1078 {
      %c0_298 = arith.constant 0 : index
      %c0_299 = arith.constant 0 : index
      %c0_300 = arith.constant 0 : index
      %1079 = vector.load %arg13[%c0_298, %c0_299, %c0_300] : memref<3x8x128xf32, #tpu.memory_space<vmem>>, vector<3x8x128xf32>
      %c0_301 = arith.constant 0 : index
      %c0_302 = arith.constant 0 : index
      %c0_303 = arith.constant 0 : index
      %1080 = vector.load %arg11[%c0_301, %c0_302, %c0_303] : memref<3x8x128xf32, #tpu.memory_space<vmem>>, vector<3x8x128xf32>
      tpu.vector_store %arg11[%c0_301, %c0_302, %c0_303], %1079 {strides = array<i32>} : memref<3x8x128xf32, #tpu.memory_space<vmem>>, vector<3x8x128xf32>,
      %c0_304 = arith.constant 0 : index
      %c0_305 = arith.constant 0 : index
      %c0_306 = arith.constant 0 : index
      %1081 = vector.load %arg14[%c0_304, %c0_305, %c0_306] : memref<3x8x128xf32, #tpu.memory_space<vmem>>, vector<3x8x128xf32>
      %c0_307 = arith.constant 0 : index
      %c0_308 = arith.constant 0 : index
      %c0_309 = arith.constant 0 : index
      %1082 = vector.load %arg12[%c0_307, %c0_308, %c0_309] : memref<3x8x128xf32, #tpu.memory_space<vmem>>, vector<3x8x128xf32>
      tpu.vector_store %arg12[%c0_307, %c0_308, %c0_309], %1081 {strides = array<i32>} : memref<3x8x128xf32, #tpu.memory_space<vmem>>, vector<3x8x128xf32>,
    } else {
    }
    return
  }
  func.func @transform_0(%arg0: i32) -> (i32, i32) {
    %c0_i32 = arith.constant 0 : i32
    %c0_i32_0 = arith.constant 0 : i32
    %c0_i32_1 = arith.constant 0 : i32
    return %c0_i32, %c0_i32_0 : i32, i32
  }
  func.func @transform_1(%arg0: i32) -> (i32, i32, i32) {
    %c0_i32 = arith.constant 0 : i32
    %c0_i32_0 = arith.constant 0 : i32
    %c0_i32_1 = arith.constant 0 : i32
    return %arg0, %c0_i32, %c0_i32_0 : i32, i32, i32
  }
  func.func @transform_2(%arg0: i32) -> (i32, i32, i32) {
    %c0_i32 = arith.constant 0 : i32
    %c0_i32_0 = arith.constant 0 : i32
    %c0_i32_1 = arith.constant 0 : i32
    %c0_i32_2 = arith.constant 0 : i32
    return %c0_i32, %c0_i32_0, %c0_i32_1 : i32, i32, i32
  }
  func.func @transform_3(%arg0: i32) -> (i32, i32, i32) {
    %c0_i32 = arith.constant 0 : i32
    %c0_i32_0 = arith.constant 0 : i32
    %c0_i32_1 = arith.constant 0 : i32
    %c0_i32_2 = arith.constant 0 : i32
    return %c0_i32, %c0_i32_0, %c0_i32_1 : i32, i32, i32
  }
  func.func @transform_4(%arg0: i32) -> (i32, i32) {
    %c0_i32 = arith.constant 0 : i32
    %c0_i32_0 = arith.constant 0 : i32
    %c0_i32_1 = arith.constant 0 : i32
    return %c0_i32, %c0_i32_0 : i32, i32
  }
  func.func @transform_5(%arg0: i32) -> (i32, i32) {
    %c0_i32 = arith.constant 0 : i32
    %c0_i32_0 = arith.constant 0 : i32
    %c0_i32_1 = arith.constant 0 : i32
    return %c0_i32, %c0_i32_0 : i32, i32
  }
  func.func @transform_6(%arg0: i32) -> (i32, i32) {
    %c0_i32 = arith.constant 0 : i32
    %c0_i32_0 = arith.constant 0 : i32
    %c0_i32_1 = arith.constant 0 : i32
    return %c0_i32, %c0_i32_0 : i32, i32
  }
  func.func @transform_7(%arg0: i32) -> (i32, i32, i32) {
    %c0_i32 = arith.constant 0 : i32
    %c0_i32_0 = arith.constant 0 : i32
    %c0_i32_1 = arith.constant 0 : i32
    %c0_i32_2 = arith.constant 0 : i32
    return %c0_i32, %c0_i32_0, %c0_i32_1 : i32, i32, i32
  }
  func.func @transform_8(%arg0: i32) -> (i32, i32, i32) {
    %c0_i32 = arith.constant 0 : i32
    %c0_i32_0 = arith.constant 0 : i32
    %c0_i32_1 = arith.constant 0 : i32
    %c0_i32_2 = arith.constant 0 : i32
    return %c0_i32, %c0_i32_0, %c0_i32_1 : i32, i32, i32
  }
  func.func @transform_9(%arg0: i32) -> (i32, i32, i32) {
    %c0_i32 = arith.constant 0 : i32
    %c0_i32_0 = arith.constant 0 : i32
    %c0_i32_1 = arith.constant 0 : i32
    return %arg0, %c0_i32, %c0_i32_0 : i32, i32, i32
  }
  func.func @transform_10(%arg0: i32) -> (i32, i32, i32) {
    %c0_i32 = arith.constant 0 : i32
    %c0_i32_0 = arith.constant 0 : i32
    %c0_i32_1 = arith.constant 0 : i32
    %c0_i32_2 = arith.constant 0 : i32
    return %c0_i32, %c0_i32_0, %c0_i32_1 : i32, i32, i32
  }
  func.func @transform_11(%arg0: i32) -> (i32, i32, i32) {
    %c0_i32 = arith.constant 0 : i32
    %c0_i32_0 = arith.constant 0 : i32
    %c0_i32_1 = arith.constant 0 : i32
    %c0_i32_2 = arith.constant 0 : i32
    return %c0_i32, %c0_i32_0, %c0_i32_1 : i32, i32, i32
  }
}

</mosaic_0001>

<bundles_post_ra>
// kernel: tpu_custom_call.1
= control target key start
LH: loop header
LB: loop body
LE: loop exit
PB: predicated region body
PF: predicated region fallthrough
CT: control target
= control target key end

     0   :  { %17 = vsyncpa [#allocation6], 0  ;;  %s16157_s0 = inlined_call_operand.vmem [shape: s32[8,1], index: 0, kind: input, shape index: {}]   ;;  %s16158_s1 = inlined_call_operand.hbm [shape: f32[8,8,256], index: 1, kind: input, shape index: {}]   ;;  %s16159_s2 = inlined_call_operand.hbm [shape: f32[3,8,128], index: 2, kind: input, shape index: {}]   ;;  %s16160_s3 = inlined_call_operand.hbm [shape: f32[3,8,128], index: 3, kind: input, shape index: {}]   ;;  %s16161_s4 = inlined_call_operand.hbm [shape: f32[256,512], index: 4, kind: input, shape index: {}]   ;;  %s16162_s5 = inlined_call_operand.vmem [shape: f32[1,512], index: 5, kind: input, shape index: {}]   ;;  %s16163_s6 = inlined_call_operand.hbm [shape: bf16[128,512], index: 6, kind: input, shape index: {}]   ;;  %s16164_s7 = inlined_call_operand.hbm [shape: bf16[2,256,512], index: 7, kind: input, shape index: {}]   ;;  %s16165_s8 = inlined_call_operand.vmem [shape: f32[2,1,512], index: 8, kind: input, shape index: {}]   ;;  %s16166_s9 = inlined_call_operand.hbm [shape: f32[8,8,128], index: 9, kind: output, shape index: {0}]   ;;  %s16167_s10 = inlined_call_operand.hbm [shape: f32[3,8,128], index: 10, kind: output, shape index: {1}]   ;;  %s16168_s11 = inlined_call_operand.hbm [shape: f32[3,8,128], index: 11, kind: output, shape index: {2}]  }
   0x1   :  { %18 = vsyncpa [#allocation9], 0 }
   0x2   :  { %19 = vsyncpa [#allocation12], 0 }
   0x3   :  { %20 = vsyncpa [#allocation15], 0 }
   0x4   :  { %21 = vsyncpa [#allocation7], 0 }
   0x5   :  { %22 = vsyncpa [#allocation18], 0  ;;  %s15346_s17 = smov [#allocation8]  }
   0x6   :  { %s42_s18 = sshll.u32 %s15346_s17, 4  ;;  %s43_s18 = int_to_ptr.vmem [resolvable:$true] %s42_s18 }
   0x7   :  { %s15162_s19 = scalar_lea.vmem %s43_s18, 384  ;;  %p15167_p1 = scmp.lt.s32.totalorder %s43_s18, %s43_s18 }
   0x8   :  { %p15163_p0 = scmp.ne.s32.totalorder %s43_s18, %s15162_s19  ;;  %p15168_p2 = scmp.lt.s32.totalorder %s15162_s19, %s15162_s19 }
   0xa   :  { %p15169_p3 = por %p15168_p2, %p15167_p1 }
   0xc   :  { %p15170_p4 = pnand %p15169_p3, %p15163_p0 }
   0xe   :  { %15173 = shalt.err (!%p15170_p4)
}
   0xf   :  { %s15347_s20 = smov 128   ;;  %s15348_s21 = smov 8  }
  0x10   :  { %48 = dma.hbm_to_vmem [thread:$0]  %s16159_s2, 384, %s43_s18, [#allocation9], %s15347_s20, %s15347_s20, %s15348_s21  }
  0x11   :  { %s15349_s24 = smov [#allocation11]  }
  0x12   :  { %s66_s25 = sshll.u32 %s15349_s24, 4  ;;  %s67_s25 = int_to_ptr.vmem [resolvable:$true] %s66_s25 }
  0x13   :  { %s15182_s26 = scalar_lea.vmem %s67_s25, 16384  ;;  %p15187_p6 = scmp.lt.s32.totalorder %s67_s25, %s67_s25 }
  0x14   :  { %p15183_p5 = scmp.ne.s32.totalorder %s67_s25, %s15182_s26  ;;  %p15188_p7 = scmp.lt.s32.totalorder %s15182_s26, %s15182_s26 }
  0x16   :  { %p15189_p8 = por %p15188_p7, %p15187_p6 }
  0x18   :  { %p15190_p9 = pnand %p15189_p8, %p15183_p5 }
  0x1a   :  { %15193 = shalt.err (!%p15190_p9)
}
  0x1b   :  { %s15350_s27 = smov 512   ;;  %s15351_s28 = smov 32  }
  0x1c   :  { %72 = dma.hbm_to_vmem [thread:$0]  %s16161_s4, 16384, %s67_s25, [#allocation12], %s15350_s27, %s15350_s27, %s15351_s28  }
  0x1d   :  { %s15352_s12 = smov [#allocation5]  }
  0x1e   :  { %s30_s13 = sshll.u32 %s15352_s12, 4  ;;  %s31_s13 = int_to_ptr.vmem [resolvable:$true] %s30_s13 }
  0x1f   :  { %s15202_s2 = scalar_lea.vmem %s31_s13, 2048  ;;  %p15207_p11 = scmp.lt.s32.totalorder %s31_s13, %s31_s13 }
  0x20   :  { %p15203_p10 = scmp.ne.s32.totalorder %s31_s13, %s15202_s2  ;;  %p15208_p12 = scmp.lt.s32.totalorder %s15202_s2, %s15202_s2 }
  0x22   :  { %p15209_p13 = por %p15208_p12, %p15207_p11 }
  0x24   :  { %p15210_p0 = pnand %p15209_p13, %p15203_p10 }
  0x26   :  { %15213 = shalt.err (!%p15210_p0)
}
  0x27   :  { %s15353_s14 = smov 256   ;;  %s15354_s15 = smov 16  }
  0x28   :  { %36 = dma.hbm_to_vmem [thread:$0]  %s16158_s1, 2048, %s31_s13, [#allocation6], %s15353_s14, %s15353_s14, %s15354_s15  }
  0x29   :  { %s15355_s4 = smov [#allocation10]   ;;  %s15356_s19 = smov [#allocation13]  }
  0x2a   :  { %s54_s18 = sshll.u32 %s15355_s4, 4  ;;  %s80_s22 = sshll.u32 %s15356_s19, 4  ;;  %s55_s18 = int_to_ptr.vmem [resolvable:$true] %s54_s18  ;;  %s81_s22 = int_to_ptr.vmem [resolvable:$true] %s80_s22 }
  0x2b   :  { %s15222_s23 = scalar_lea.vmem %s55_s18, 384  ;;  %p15227_p2 = scmp.lt.s32.totalorder %s55_s18, %s55_s18 }
  0x2c   :  { %p15223_p1 = scmp.ne.s32.totalorder %s55_s18, %s15222_s23  ;;  %p15228_p3 = scmp.lt.s32.totalorder %s15222_s23, %s15222_s23 }
  0x2e   :  { %p15229_p4 = por %p15228_p3, %p15227_p2 }
  0x30   :  { %p15230_p5 = pnand %p15229_p4, %p15223_p1 }
  0x32   :  { %15233 = shalt.err (!%p15230_p5)
}
  0x33   :  { %60 = dma.hbm_to_vmem [thread:$0]  %s16160_s3, 384, %s55_s18, [#allocation9], %s15347_s20, %s15347_s20, %s15348_s21  }
  0x34   :  { %s15242_s1 = scalar_lea.vmem %s81_s22, 4096  ;;  %p15247_p7 = scmp.lt.s32.totalorder %s81_s22, %s81_s22 }
  0x35   :  { %p15243_p6 = scmp.ne.s32.totalorder %s81_s22, %s15242_s1  ;;  %p15248_p8 = scmp.lt.s32.totalorder %s15242_s1, %s15242_s1 }
  0x37   :  { %p15249_p9 = por %p15248_p8, %p15247_p7 }
  0x39   :  { %p15250_p10 = pnand %p15249_p9, %p15243_p6 }
  0x3b   :  { %15253 = shalt.err (!%p15250_p10)
}
  0x3c   :  { %86 = dma.hbm_to_vmem [thread:$0]  %s16163_s6, 4096, %s81_s22, [#allocation12], %s15353_s14, %s15353_s14, %s15354_s15  }
  0x3d   :  { %s15357_s28 = smov [#allocation14]  }
  0x3e   :  { %s92_s29 = sshll.u32 %s15357_s28, 4  ;;  %s93_s29 = int_to_ptr.vmem [resolvable:$true] %s92_s29 }
  0x3f   :  { %s15262_s30 = scalar_lea.vmem %s93_s29, 16384  ;;  %p15267_p12 = scmp.lt.s32.totalorder %s93_s29, %s93_s29 }
  0x40   :  { %p15263_p11 = scmp.ne.s32.totalorder %s93_s29, %s15262_s30  ;;  %p15268_p13 = scmp.lt.s32.totalorder %s15262_s30, %s15262_s30 }
  0x42   :  { %p15269_p0 = por %p15268_p13, %p15267_p12 }
  0x44   :  { %p15270_p1 = pnand %p15269_p0, %p15263_p11 }
  0x46   :  { %15273 = shalt.err (!%p15270_p1)
}
  0x47   :  { %98 = dma.hbm_to_vmem [thread:$0]  %s16164_s7, 16384, %s93_s29, [#allocation15], %s15353_s14, %s15353_s14, %s15354_s15  }
  0x48   :  { %15334 = dma.done.wait [#allocation6], 2048  }
  0x49   :  { %15335 = vsyncadd [#allocation6], 4294965248 }
  0x4a   :  { %15336 = dma.done.wait [#allocation9], 768  }
  0x4b   :  { %15337 = vsyncadd [#allocation9], 4294966528 }
  0x4c   :  { %15338 = dma.done.wait [#allocation12], 20480  }
  0x4d   :  { %15339 = vsyncadd [#allocation12], 4294946816 }
  0x4e   :  { %15340 = dma.done.wait [#allocation15], 16384  }
  0x4f   :  { %15341 = vsyncadd [#allocation15], 4294950912  ;;  %v15358_v0 = vmov 0   ;;  %v213_v1 = vld [vmem:[#allocation11 + $0x1e8] sm:$0xff]  ;;  %v215_v2 = vld [vmem:[#allocation11 + $0x1f8] sm:$0xff]  ;;  %s15360_s25 = smov [#allocation16]  }
  0x50   :  { %12843 = vset.pattern.permute.xlu0 %v15358_v0  ;;  %12844 = vset.pattern.permute.xlu1 %v15358_v0  ;;  %v212_v3 = vld [vmem:[#allocation11 + $0x1e0] sm:$0xff]  ;;  %v214_v4 = vld [vmem:[#allocation11 + $0x1f0] sm:$0xff]  ;;  %v209_v5 = vld [vmem:[#allocation11 + $0x1c8] sm:$0xff]  ;;  %s11421_s1 = sshll.u32 %s15360_s25, 4  ;;  %s15361_s26 = smov [#allocation19]   ;;  %s11422_s1 = int_to_ptr.vmem [resolvable:$true] %s11421_s1 }
  0x51   :  { %302 = vmatprep.subr.mxu0 %v213_v1  ;;  %415 = vmatprep.subr.mxu1 %v215_v2  ;;  %v211_v6 = vld [vmem:[#allocation11 + $0x1d8] sm:$0xff]  ;;  %v208_v7 = vld [vmem:[#allocation11 + $0x1c0] sm:$0xff]  ;;  %v210_v8 = vld [vmem:[#allocation11 + $0x1d0] sm:$0xff]  ;;  %s11445_s27 = sshll.u32 %s15361_s26, 4  ;;  %s11446_s27 = int_to_ptr.vmem [resolvable:$true] %s11445_s27 }
  0x52   :  { %303 = vmatpush1.msra.mxu0 %v212_v3  ;;  %416 = vmatpush1.msra.mxu1 %v214_v4  ;;  %v205_v9 = vld [vmem:[#allocation11 + $0x1a8] sm:$0xff]  ;;  %v207_v10 = vld [vmem:[#allocation11 + $0x1b8] sm:$0xff]  ;;  %v204_v11 = vld [vmem:[#allocation11 + $0x1a0] sm:$0xff] }
  0x53   :  { %304 = vmatprep.subr.mxu0 %v209_v5  ;;  %417 = vmatprep.subr.mxu1 %v211_v6  ;;  %v206_v12 = vld [vmem:[#allocation11 + $0x1b0] sm:$0xff]  ;;  %v201_v13 = vld [vmem:[#allocation11 + $0x188] sm:$0xff]  ;;  %v203_v14 = vld [vmem:[#allocation11 + $0x198] sm:$0xff] }
  0x54   :  { %305 = vmatpush1.msra.mxu0 %v208_v7  ;;  %418 = vmatpush1.msra.mxu1 %v210_v8  ;;  %v200_v15 = vld [vmem:[#allocation11 + $0x180] sm:$0xff]  ;;  %v202_v16 = vld [vmem:[#allocation11 + $0x190] sm:$0xff]  ;;  %v197_v17 = vld [vmem:[#allocation11 + $0x168] sm:$0xff] }
  0x55   :  { %306 = vmatprep.subr.mxu0 %v205_v9  ;;  %419 = vmatprep.subr.mxu1 %v207_v10  ;;  %v199_v18 = vld [vmem:[#allocation11 + $0x178] sm:$0xff]  ;;  %v196_v19 = vld [vmem:[#allocation11 + $0x160] sm:$0xff]  ;;  %v198_v20 = vld [vmem:[#allocation11 + $0x170] sm:$0xff] }
  0x56   :  { %307 = vmatpush1.msra.mxu0 %v204_v11  ;;  %420 = vmatpush1.msra.mxu1 %v206_v12  ;;  %v193_v21 = vld [vmem:[#allocation11 + $0x148] sm:$0xff]  ;;  %v195_v22 = vld [vmem:[#allocation11 + $0x158] sm:$0xff]  ;;  %v192_v23 = vld [vmem:[#allocation11 + $0x140] sm:$0xff] }
  0x57   :  { %308 = vmatprep.subr.mxu0 %v201_v13  ;;  %421 = vmatprep.subr.mxu1 %v203_v14  ;;  %v194_v24 = vld [vmem:[#allocation11 + $0x150] sm:$0xff]  ;;  %v189_v25 = vld [vmem:[#allocation11 + $0x128] sm:$0xff]  ;;  %v191_v26 = vld [vmem:[#allocation11 + $0x138] sm:$0xff] }
  0x58   :  { %309 = vmatpush1.msra.mxu0 %v200_v15  ;;  %422 = vmatpush1.msra.mxu1 %v202_v16  ;;  %v188_v27 = vld [vmem:[#allocation11 + $0x120] sm:$0xff]  ;;  %v190_v28 = vld [vmem:[#allocation11 + $0x130] sm:$0xff]  ;;  %v185_v29 = vld [vmem:[#allocation11 + $0x108] sm:$0xff] }
  0x59   :  { %310 = vmatprep.subr.mxu0 %v197_v17  ;;  %423 = vmatprep.subr.mxu1 %v199_v18  ;;  %v187_v30 = vld [vmem:[#allocation11 + $0x118] sm:$0xff]  ;;  %v184_v31 = vld [vmem:[#allocation11 + $0x100] sm:$0xff]  ;;  %v186_v32 = vld [vmem:[#allocation11 + $0x110] sm:$0xff] }
  0x5a   :  { %311 = vmatpush1.msra.mxu0 %v196_v19  ;;  %424 = vmatpush1.msra.mxu1 %v198_v20  ;;  %v181_v33 = vld [vmem:[#allocation11 + $0xe8] sm:$0xff]  ;;  %v183_v34 = vld [vmem:[#allocation11 + $0xf8] sm:$0xff]  ;;  %v180_v35 = vld [vmem:[#allocation11 + $0xe0] sm:$0xff] }
  0x5b   :  { %312 = vmatprep.subr.mxu0 %v193_v21  ;;  %425 = vmatprep.subr.mxu1 %v195_v22  ;;  %v182_v36 = vld [vmem:[#allocation11 + $0xf0] sm:$0xff]  ;;  %v177_v37 = vld [vmem:[#allocation11 + $0xc8] sm:$0xff]  ;;  %v179_v38 = vld [vmem:[#allocation11 + $0xd8] sm:$0xff] }
  0x5c   :  { %313 = vmatpush1.msra.mxu0 %v192_v23  ;;  %426 = vmatpush1.msra.mxu1 %v194_v24  ;;  %v176_v39 = vld [vmem:[#allocation11 + $0xc0] sm:$0xff]  ;;  %v178_v40 = vld [vmem:[#allocation11 + $0xd0] sm:$0xff]  ;;  %v173_v41 = vld [vmem:[#allocation11 + $0xa8] sm:$0xff] }
  0x5d   :  { %314 = vmatprep.subr.mxu0 %v189_v25  ;;  %427 = vmatprep.subr.mxu1 %v191_v26  ;;  %v175_v42 = vld [vmem:[#allocation11 + $0xb8] sm:$0xff]  ;;  %v172_v43 = vld [vmem:[#allocation11 + $0xa0] sm:$0xff]  ;;  %v174_v44 = vld [vmem:[#allocation11 + $0xb0] sm:$0xff] }
  0x5e   :  { %315 = vmatpush1.msra.mxu0 %v188_v27  ;;  %428 = vmatpush1.msra.mxu1 %v190_v28  ;;  %v169_v45 = vld [vmem:[#allocation11 + $0x88] sm:$0xff]  ;;  %v171_v46 = vld [vmem:[#allocation11 + $0x98] sm:$0xff]  ;;  %v168_v47 = vld [vmem:[#allocation11 + $0x80] sm:$0xff] }
  0x5f   :  { %316 = vmatprep.subr.mxu0 %v185_v29  ;;  %429 = vmatprep.subr.mxu1 %v187_v30  ;;  %v170_v48 = vld [vmem:[#allocation11 + $0x90] sm:$0xff]  ;;  %v165_v49 = vld [vmem:[#allocation11 + $0x68] sm:$0xff]  ;;  %v167_v50 = vld [vmem:[#allocation11 + $0x78] sm:$0xff] }
  0x60   :  { %317 = vmatpush1.msra.mxu0 %v184_v31  ;;  %430 = vmatpush1.msra.mxu1 %v186_v32  ;;  %v164_v51 = vld [vmem:[#allocation11 + $0x60] sm:$0xff]  ;;  %v166_v52 = vld [vmem:[#allocation11 + $0x70] sm:$0xff]  ;;  %v161_v53 = vld [vmem:[#allocation11 + $0x48] sm:$0xff] }
  0x61   :  { %318 = vmatprep.subr.mxu0 %v181_v33  ;;  %431 = vmatprep.subr.mxu1 %v183_v34  ;;  %v163_v54 = vld [vmem:[#allocation11 + $0x58] sm:$0xff]  ;;  %v160_v55 = vld [vmem:[#allocation11 + $0x40] sm:$0xff]  ;;  %v162_v56 = vld [vmem:[#allocation11 + $0x50] sm:$0xff] }
  0x62   :  { %319 = vmatpush1.msra.mxu0 %v180_v35  ;;  %432 = vmatpush1.msra.mxu1 %v182_v36  ;;  %v157_v57 = vld [vmem:[#allocation11 + $0x28] sm:$0xff]  ;;  %v159_v58 = vld [vmem:[#allocation11 + $0x38] sm:$0xff]  ;;  %v156_v59 = vld [vmem:[#allocation11 + $0x20] sm:$0xff] }
  0x63   :  { %320 = vmatprep.subr.mxu0 %v177_v37  ;;  %433 = vmatprep.subr.mxu1 %v179_v38  ;;  %v158_v60 = vld [vmem:[#allocation11 + $0x30] sm:$0xff]  ;;  %v153_v61 = vld [vmem:[#allocation11 + $0x8] sm:$0xff]  ;;  %v155_v62 = vld [vmem:[#allocation11 + $0x18] sm:$0xff] }
  0x64   :  { %321 = vmatpush1.msra.mxu0 %v176_v39  ;;  %434 = vmatpush1.msra.mxu1 %v178_v40  ;;  %v152_v63 = vld [vmem:[#allocation11] sm:$0xff]  ;;  %v154_v1 = vld [vmem:[#allocation11 + $0x10] sm:$0xff]  ;;  %v277_v2 = vld [vmem:[#allocation11 + $0x3e8] sm:$0xff] }
  0x65   :  { %322 = vmatprep.subr.mxu0 %v173_v41  ;;  %435 = vmatprep.subr.mxu1 %v175_v42  ;;  %v279_v3 = vld [vmem:[#allocation11 + $0x3f8] sm:$0xff]  ;;  %v276_v4 = vld [vmem:[#allocation11 + $0x3e0] sm:$0xff]  ;;  %v278_v5 = vld [vmem:[#allocation11 + $0x3f0] sm:$0xff] }
  0x66   :  { %323 = vmatpush1.msra.mxu0 %v172_v43  ;;  %436 = vmatpush1.msra.mxu1 %v174_v44  ;;  %v273_v6 = vld [vmem:[#allocation11 + $0x3c8] sm:$0xff]  ;;  %v275_v7 = vld [vmem:[#allocation11 + $0x3d8] sm:$0xff]  ;;  %v272_v8 = vld [vmem:[#allocation11 + $0x3c0] sm:$0xff] }
  0x67   :  { %324 = vmatprep.subr.mxu0 %v169_v45  ;;  %437 = vmatprep.subr.mxu1 %v171_v46  ;;  %v274_v9 = vld [vmem:[#allocation11 + $0x3d0] sm:$0xff]  ;;  %v269_v10 = vld [vmem:[#allocation11 + $0x3a8] sm:$0xff]  ;;  %v271_v11 = vld [vmem:[#allocation11 + $0x3b8] sm:$0xff] }
  0x68   :  { %325 = vmatpush1.msra.mxu0 %v168_v47  ;;  %438 = vmatpush1.msra.mxu1 %v170_v48  ;;  %v268_v12 = vld [vmem:[#allocation11 + $0x3a0] sm:$0xff]  ;;  %v270_v13 = vld [vmem:[#allocation11 + $0x3b0] sm:$0xff]  ;;  %v265_v14 = vld [vmem:[#allocation11 + $0x388] sm:$0xff] }
  0x69   :  { %326 = vmatprep.subr.mxu0 %v165_v49  ;;  %439 = vmatprep.subr.mxu1 %v167_v50  ;;  %v267_v15 = vld [vmem:[#allocation11 + $0x398] sm:$0xff]  ;;  %v264_v16 = vld [vmem:[#allocation11 + $0x380] sm:$0xff]  ;;  %v266_v17 = vld [vmem:[#allocation11 + $0x390] sm:$0xff] }
  0x6a   :  { %327 = vmatpush1.msra.mxu0 %v164_v51  ;;  %440 = vmatpush1.msra.mxu1 %v166_v52  ;;  %v261_v18 = vld [vmem:[#allocation11 + $0x368] sm:$0xff]  ;;  %v263_v19 = vld [vmem:[#allocation11 + $0x378] sm:$0xff]  ;;  %v260_v20 = vld [vmem:[#allocation11 + $0x360] sm:$0xff] }
  0x6b   :  { %328 = vmatprep.subr.mxu0 %v161_v53  ;;  %441 = vmatprep.subr.mxu1 %v163_v54  ;;  %v262_v21 = vld [vmem:[#allocation11 + $0x370] sm:$0xff]  ;;  %v257_v22 = vld [vmem:[#allocation11 + $0x348] sm:$0xff]  ;;  %v259_v23 = vld [vmem:[#allocation11 + $0x358] sm:$0xff] }
  0x6c   :  { %329 = vmatpush1.msra.mxu0 %v160_v55  ;;  %442 = vmatpush1.msra.mxu1 %v162_v56  ;;  %v256_v24 = vld [vmem:[#allocation11 + $0x340] sm:$0xff]  ;;  %v258_v25 = vld [vmem:[#allocation11 + $0x350] sm:$0xff]  ;;  %v253_v26 = vld [vmem:[#allocation11 + $0x328] sm:$0xff] }
  0x6d   :  { %330 = vmatprep.subr.mxu0 %v157_v57  ;;  %443 = vmatprep.subr.mxu1 %v159_v58  ;;  %v255_v27 = vld [vmem:[#allocation11 + $0x338] sm:$0xff]  ;;  %v252_v28 = vld [vmem:[#allocation11 + $0x320] sm:$0xff]  ;;  %v254_v29 = vld [vmem:[#allocation11 + $0x330] sm:$0xff] }
  0x6e   :  { %331 = vmatpush1.msra.mxu0 %v156_v59  ;;  %444 = vmatpush1.msra.mxu1 %v158_v60  ;;  %v249_v30 = vld [vmem:[#allocation11 + $0x308] sm:$0xff]  ;;  %v251_v31 = vld [vmem:[#allocation11 + $0x318] sm:$0xff]  ;;  %v248_v32 = vld [vmem:[#allocation11 + $0x300] sm:$0xff] }
  0x6f   :  { %332 = vmatprep.subr.mxu0 %v153_v61  ;;  %445 = vmatprep.subr.mxu1 %v155_v62  ;;  %v250_v33 = vld [vmem:[#allocation11 + $0x310] sm:$0xff]  ;;  %v245_v34 = vld [vmem:[#allocation11 + $0x2e8] sm:$0xff]  ;;  %v247_v35 = vld [vmem:[#allocation11 + $0x2f8] sm:$0xff] }
  0x70   :  { %333 = vmatpush1.msra.mxu0 %v152_v63  ;;  %446 = vmatpush1.msra.mxu1 %v154_v1  ;;  %v244_v36 = vld [vmem:[#allocation11 + $0x2e0] sm:$0xff]  ;;  %v246_v37 = vld [vmem:[#allocation11 + $0x2f0] sm:$0xff]  ;;  %v241_v38 = vld [vmem:[#allocation11 + $0x2c8] sm:$0xff] }
  0x71   :  { %334 = vmatprep.subr.mxu0 %v277_v2  ;;  %447 = vmatprep.subr.mxu1 %v279_v3  ;;  %v243_v39 = vld [vmem:[#allocation11 + $0x2d8] sm:$0xff]  ;;  %v240_v40 = vld [vmem:[#allocation11 + $0x2c0] sm:$0xff]  ;;  %v242_v41 = vld [vmem:[#allocation11 + $0x2d0] sm:$0xff] }
  0x72   :  { %335 = vmatpush2.msra.mxu0 %v276_v4  ;;  %448 = vmatpush2.msra.mxu1 %v278_v5  ;;  %v237_v42 = vld [vmem:[#allocation11 + $0x2a8] sm:$0xff]  ;;  %v239_v43 = vld [vmem:[#allocation11 + $0x2b8] sm:$0xff]  ;;  %v236_v44 = vld [vmem:[#allocation11 + $0x2a0] sm:$0xff] }
  0x73   :  { %336 = vmatprep.subr.mxu0 %v273_v6  ;;  %449 = vmatprep.subr.mxu1 %v275_v7  ;;  %v238_v45 = vld [vmem:[#allocation11 + $0x2b0] sm:$0xff]  ;;  %v233_v46 = vld [vmem:[#allocation11 + $0x288] sm:$0xff]  ;;  %v235_v47 = vld [vmem:[#allocation11 + $0x298] sm:$0xff] }
  0x74   :  { %337 = vmatpush2.msra.mxu0 %v272_v8  ;;  %450 = vmatpush2.msra.mxu1 %v274_v9  ;;  %v232_v48 = vld [vmem:[#allocation11 + $0x280] sm:$0xff]  ;;  %v234_v49 = vld [vmem:[#allocation11 + $0x290] sm:$0xff]  ;;  %v229_v50 = vld [vmem:[#allocation11 + $0x268] sm:$0xff] }
  0x75   :  { %338 = vmatprep.subr.mxu0 %v269_v10  ;;  %451 = vmatprep.subr.mxu1 %v271_v11  ;;  %v231_v51 = vld [vmem:[#allocation11 + $0x278] sm:$0xff]  ;;  %v228_v52 = vld [vmem:[#allocation11 + $0x260] sm:$0xff]  ;;  %v230_v53 = vld [vmem:[#allocation11 + $0x270] sm:$0xff] }
  0x76   :  { %339 = vmatpush2.msra.mxu0 %v268_v12  ;;  %452 = vmatpush2.msra.mxu1 %v270_v13  ;;  %v225_v54 = vld [vmem:[#allocation11 + $0x248] sm:$0xff]  ;;  %v227_v55 = vld [vmem:[#allocation11 + $0x258] sm:$0xff]  ;;  %v224_v56 = vld [vmem:[#allocation11 + $0x240] sm:$0xff] }
  0x77   :  { %340 = vmatprep.subr.mxu0 %v265_v14  ;;  %453 = vmatprep.subr.mxu1 %v267_v15  ;;  %v226_v57 = vld [vmem:[#allocation11 + $0x250] sm:$0xff]  ;;  %v221_v58 = vld [vmem:[#allocation11 + $0x228] sm:$0xff]  ;;  %v223_v59 = vld [vmem:[#allocation11 + $0x238] sm:$0xff] }
  0x78   :  { %341 = vmatpush2.msra.mxu0 %v264_v16  ;;  %454 = vmatpush2.msra.mxu1 %v266_v17  ;;  %v220_v60 = vld [vmem:[#allocation11 + $0x220] sm:$0xff]  ;;  %v222_v61 = vld [vmem:[#allocation11 + $0x230] sm:$0xff]  ;;  %v217_v62 = vld [vmem:[#allocation11 + $0x208] sm:$0xff] }
  0x79   :  { %342 = vmatprep.subr.mxu0 %v261_v18  ;;  %455 = vmatprep.subr.mxu1 %v263_v19  ;;  %v219_v63 = vld [vmem:[#allocation11 + $0x218] sm:$0xff]  ;;  %v216_v1 = vld [vmem:[#allocation11 + $0x200] sm:$0xff]  ;;  %v218_v3 = vld [vmem:[#allocation11 + $0x210] sm:$0xff] }
  0x7a   :  { %343 = vmatpush2.msra.mxu0 %v260_v20  ;;  %456 = vmatpush2.msra.mxu1 %v262_v21  ;;  %v137_v2 = vld [vmem:[#allocation5 + $0x8] sm:$0xff]  ;;  %v136_v4 = vld [vmem:[#allocation5] sm:$0xff]  ;;  %v139_v9 = vld [vmem:[#allocation5 + $0x18] sm:$0xff] }
  0x7b   :  { %344 = vmatprep.subr.mxu0 %v257_v22  ;;  %457 = vmatprep.subr.mxu1 %v259_v23  ;;  %v12847_v5 = vld [vmem:[#allocation13 + $0xe4] ss:$16 sps:$4 sm:$0xff]   ;;  %v12850_v6 = vld [vmem:[#allocation13 + $0xec] ss:$16 sps:$4 sm:$0xff]   ;;  %v12845_v7 = vld [vmem:[#allocation13 + $0xe0] ss:$16 sps:$4 sm:$0xff]  }
  0x7c   :  { %345 = vmatpush2.msra.mxu0 %v256_v24  ;;  %458 = vmatpush2.msra.mxu1 %v258_v25  ;;  %v12848_v8 = vld [vmem:[#allocation13 + $0xe8] ss:$16 sps:$4 sm:$0xff]   ;;  %v138_v10 = vld [vmem:[#allocation5 + $0x10] sm:$0xff]  ;;  %v12856_v13 = vld [vmem:[#allocation13 + $0xcc] ss:$16 sps:$4 sm:$0xff]  }
  0x7d   :  { %346 = vmatprep.subr.mxu0 %v253_v26  ;;  %459 = vmatprep.subr.mxu1 %v255_v27  ;;  %v12851_v11 = vld [vmem:[#allocation13 + $0xc0] ss:$16 sps:$4 sm:$0xff]   ;;  %v12853_v12 = vld [vmem:[#allocation13 + $0xc4] ss:$16 sps:$4 sm:$0xff]   ;;  %v12854_v14 = vld [vmem:[#allocation13 + $0xc8] ss:$16 sps:$4 sm:$0xff]  }
  0x7e   :  { %347 = vmatpush2.msra.mxu0 %v252_v28  ;;  %460 = vmatpush2.msra.mxu1 %v254_v29  ;;  %v141_v15 = vld [vmem:[#allocation5 + $0x28] sm:$0xff]  ;;  %v140_v16 = vld [vmem:[#allocation5 + $0x20] sm:$0xff]  ;;  %v143_v21 = vld [vmem:[#allocation5 + $0x38] sm:$0xff] }
  0x7f   :  { %348 = vmatprep.subr.mxu0 %v249_v30  ;;  %461 = vmatprep.subr.mxu1 %v251_v31  ;;  %v12859_v17 = vld [vmem:[#allocation13 + $0xa4] ss:$16 sps:$4 sm:$0xff]   ;;  %v12857_v18 = vld [vmem:[#allocation13 + $0xa0] ss:$16 sps:$4 sm:$0xff]   ;;  %v12860_v19 = vld [vmem:[#allocation13 + $0xa8] ss:$16 sps:$4 sm:$0xff]  }
  0x80   :  { %349 = vmatpush2.msra.mxu0 %v248_v32  ;;  %462 = vmatpush2.msra.mxu1 %v250_v33  ;;  %v12862_v20 = vld [vmem:[#allocation13 + $0xac] ss:$16 sps:$4 sm:$0xff]   ;;  %v142_v22 = vld [vmem:[#allocation5 + $0x30] sm:$0xff]  ;;  %v12866_v26 = vld [vmem:[#allocation13 + $0x88] ss:$16 sps:$4 sm:$0xff]  }
  0x81   :  { %350 = vmatprep.subr.mxu0 %v245_v34  ;;  %463 = vmatprep.subr.mxu1 %v247_v35  ;;  %v12865_v23 = vld [vmem:[#allocation13 + $0x84] ss:$16 sps:$4 sm:$0xff]   ;;  %v12868_v24 = vld [vmem:[#allocation13 + $0x8c] ss:$16 sps:$4 sm:$0xff]   ;;  %v12863_v25 = vld [vmem:[#allocation13 + $0x80] ss:$16 sps:$4 sm:$0xff]  }
  0x82   :  { %351 = vmatpush2.msra.mxu0 %v244_v36  ;;  %464 = vmatpush2.msra.mxu1 %v246_v37  ;;  %v145_v27 = vld [vmem:[#allocation5 + $0x48] sm:$0xff]  ;;  %v144_v28 = vld [vmem:[#allocation5 + $0x40] sm:$0xff]  ;;  %v147_v33 = vld [vmem:[#allocation5 + $0x58] sm:$0xff] }
  0x83   :  { %352 = vmatprep.subr.mxu0 %v241_v38  ;;  %465 = vmatprep.subr.mxu1 %v243_v39  ;;  %v12871_v29 = vld [vmem:[#allocation13 + $0x64] ss:$16 sps:$4 sm:$0xff]   ;;  %v12874_v30 = vld [vmem:[#allocation13 + $0x6c] ss:$16 sps:$4 sm:$0xff]   ;;  %v12869_v31 = vld [vmem:[#allocation13 + $0x60] ss:$16 sps:$4 sm:$0xff]  }
  0x84   :  { %353 = vmatpush2.msra.mxu0 %v240_v40  ;;  %466 = vmatpush2.msra.mxu1 %v242_v41  ;;  %v12872_v32 = vld [vmem:[#allocation13 + $0x68] ss:$16 sps:$4 sm:$0xff]   ;;  %v146_v34 = vld [vmem:[#allocation5 + $0x50] sm:$0xff]  ;;  %v12880_v36 = vld [vmem:[#allocation13 + $0x4c] ss:$16 sps:$4 sm:$0xff]  }
  0x85   :  { %354 = vmatprep.subr.mxu0 %v237_v42  ;;  %467 = vmatprep.subr.mxu1 %v239_v43  ;;  %v12877_v35 = vld [vmem:[#allocation13 + $0x44] ss:$16 sps:$4 sm:$0xff]   ;;  %v12875_v37 = vld [vmem:[#allocation13 + $0x40] ss:$16 sps:$4 sm:$0xff]   ;;  %v12878_v38 = vld [vmem:[#allocation13 + $0x48] ss:$16 sps:$4 sm:$0xff]  }
  0x86   :  { %355 = vmatpush2.msra.mxu0 %v236_v44  ;;  %468 = vmatpush2.msra.mxu1 %v238_v45  ;;  %v149_v39 = vld [vmem:[#allocation5 + $0x68] sm:$0xff]  ;;  %v148_v40 = vld [vmem:[#allocation5 + $0x60] sm:$0xff] }
  0x87   :  { %356 = vmatprep.subr.mxu0 %v233_v46  ;;  %469 = vmatprep.subr.mxu1 %v235_v47  ;;  %v12883_v41 = vld [vmem:[#allocation13 + $0x24] ss:$16 sps:$4 sm:$0xff]   ;;  %v12886_v42 = vld [vmem:[#allocation13 + $0x2c] ss:$16 sps:$4 sm:$0xff]   ;;  %v12881_v43 = vld [vmem:[#allocation13 + $0x20] ss:$16 sps:$4 sm:$0xff]  }
  0x88   :  { %357 = vmatpush2.msra.mxu0 %v232_v48  ;;  %470 = vmatpush2.msra.mxu1 %v234_v49  ;;  %v12884_v44 = vld [vmem:[#allocation13 + $0x28] ss:$16 sps:$4 sm:$0xff]   ;;  %v15460_v45 = vld [vmem:[%s16157_s0] sm:$0xff]  ;;  %v150_v47 = vld [vmem:[#allocation5 + $0x70] sm:$0xff] }
  0x89   :  { %358 = vmatprep.subr.mxu0 %v229_v50  ;;  %471 = vmatprep.subr.mxu1 %v231_v51  ;;  %v151_v46 = vld [vmem:[#allocation5 + $0x78] sm:$0xff]  ;;  %v12889_v48 = vld [vmem:[#allocation13 + $0x4] ss:$16 sps:$4 sm:$0xff]   ;;  %v12887_v50 = vld [vmem:[#allocation13] ss:$16 sps:$4 sm:$0xff]   ;;  %vm573_vm0 = vcmp.gt.s32.totalorder %v15460_v45, 0 }
  0x8a   :  { %359 = vmatpush2.msra.mxu0 %v228_v52  ;;  %472 = vmatpush2.msra.mxu1 %v230_v53  ;;  %v12892_v49 = vld [vmem:[#allocation13 + $0xc] ss:$16 sps:$4 sm:$0xff]   ;;  %v12890_v51 = vld [vmem:[#allocation13 + $0x8] ss:$16 sps:$4 sm:$0xff]   ;;  %v124_v52 = vld [vmem:[#allocation8] sm:$0xff]  ;;  %vm1926_vm1 = vcmp.gt.s32.totalorder %v15460_v45, 1 }
  0x8b   :  { %360 = vmatprep.subr.mxu0 %v225_v54  ;;  %473 = vmatprep.subr.mxu1 %v227_v55  ;;  %v578_v53 = vpack.c.bf16 %v124_v52, %v124_v52  ;;  %v881_v54 = vsel %vm573_vm0, 1, %v15358_v0  ;;  %v12895_v55 = vld [vmem:[#allocation14 + $0xe4] ss:$16 sps:$4 sm:$0xff]   ;;  %v12977_v52 = vld [vmem:[#allocation14 + $0x120] ss:$16 sps:$4 sm:$0xff]   ;;  %vm5985_vm2 = vcmp.gt.s32.totalorder %v15460_v45, 4 }
  0x8c   :  { %361 = vmatpush2.msra.mxu0 %v224_v56  ;;  %474 = vmatpush2.msra.mxu1 %v226_v57  ;;  %v12898_v56 = vld [vmem:[#allocation14 + $0xec] ss:$16 sps:$4 sm:$0xff]   ;;  %v12893_v57 = vld [vmem:[#allocation14 + $0xe0] ss:$16 sps:$4 sm:$0xff]  }
  0x8d   :  { %362 = vmatprep.subr.mxu0 %v221_v58  ;;  %475 = vmatprep.subr.mxu1 %v223_v59  ;;  %v12896_v58 = vld [vmem:[#allocation14 + $0xe8] ss:$16 sps:$4 sm:$0xff]   ;;  %v12901_v59 = vld [vmem:[#allocation14 + $0xc4] ss:$16 sps:$4 sm:$0xff]  }
  0x8e   :  { %363 = vmatpush2.msra.mxu0 %v220_v60  ;;  %476 = vmatpush2.msra.mxu1 %v222_v61  ;;  %v12904_v60 = vld [vmem:[#allocation14 + $0xcc] ss:$16 sps:$4 sm:$0xff]   ;;  %v12899_v61 = vld [vmem:[#allocation14 + $0xc0] ss:$16 sps:$4 sm:$0xff]  }
  0x8f   :  { %364 = vmatprep.subr.mxu0 %v217_v62  ;;  %477 = vmatprep.subr.mxu1 %v219_v63  ;;  %v12902_v62 = vld [vmem:[#allocation14 + $0xc8] ss:$16 sps:$4 sm:$0xff]   ;;  %v12907_v63 = vld [vmem:[#allocation14 + $0xa4] ss:$16 sps:$4 sm:$0xff]  }
  0x90   :  { %365 = vmatpush2.msra.mxu0 %v216_v1  ;;  %366 = vmatprep.mubr.f32.mxu0 %v137_v2  ;;  %v12910_v1 = vld [vmem:[#allocation14 + $0xac] ss:$16 sps:$4 sm:$0xff]  }
  0x91   :  { %478 = vmatpush2.msra.mxu1 %v218_v3  ;;  %479 = vmatprep.mubr.f32.mxu1 %v137_v2  ;;  %v12905_v2 = vld [vmem:[#allocation14 + $0xa0] ss:$16 sps:$4 sm:$0xff]   ;;  %v12908_v3 = vld [vmem:[#allocation14 + $0xa8] ss:$16 sps:$4 sm:$0xff]  }
  0x92   :  { %367 = vmatmul.mubr.f32.vlgmr.msra.gmra.mxu0 %v136_v4  ;;  %480 = vmatmul.mubr.f32.vlgmr.msra.gmra.mxu1 %v136_v4  ;;  %v12913_v4 = vld [vmem:[#allocation14 + $0x84] ss:$16 sps:$4 sm:$0xff]  }
  0x93   :  { %771 = vmatprep.subr.bf16.mxu0 %v12847_v5  ;;  %812 = vmatprep.subr.bf16.mxu1 %v12850_v6  ;;  %v12916_v5 = vld [vmem:[#allocation14 + $0x8c] ss:$16 sps:$4 sm:$0xff]   ;;  %v12911_v6 = vld [vmem:[#allocation14 + $0x80] ss:$16 sps:$4 sm:$0xff]  }
  0x94   :  { %772 = vmatpush1.bf16.msra.mxu0 %v12845_v7  ;;  %813 = vmatpush1.bf16.msra.mxu1 %v12848_v8  ;;  %v12914_v7 = vld [vmem:[#allocation14 + $0x88] ss:$16 sps:$4 sm:$0xff]   ;;  %v12919_v8 = vld [vmem:[#allocation14 + $0x64] ss:$16 sps:$4 sm:$0xff]  }
  0x95   :  { %372 = vmatprep.mubr.f32.mxu0 %v139_v9  ;;  %485 = vmatprep.mubr.f32.mxu1 %v139_v9  ;;  %v12922_v9 = vld [vmem:[#allocation14 + $0x6c] ss:$16 sps:$4 sm:$0xff]  }
  0x96   :  { %373 = vmatmul.mubr.f32.gmra.mxu0 %v138_v10  ;;  %486 = vmatmul.mubr.f32.gmra.mxu1 %v138_v10  ;;  %v12917_v10 = vld [vmem:[#allocation14 + $0x60] ss:$16 sps:$4 sm:$0xff]  }
  0x97   :  { %773 = vmatprep.subr.bf16.mxu0 %v12853_v12  ;;  %814 = vmatprep.subr.bf16.mxu1 %v12856_v13  ;;  %v12925_v12 = vld [vmem:[#allocation14 + $0x44] ss:$16 sps:$4 sm:$0xff]   ;;  %v12928_v13 = vld [vmem:[#allocation14 + $0x4c] ss:$16 sps:$4 sm:$0xff]  }
  0x98   :  { %774 = vmatpush1.bf16.msra.mxu0 %v12851_v11  ;;  %815 = vmatpush1.bf16.msra.mxu1 %v12854_v14  ;;  %v12920_v11 = vld [vmem:[#allocation14 + $0x68] ss:$16 sps:$4 sm:$0xff]   ;;  %v12923_v14 = vld [vmem:[#allocation14 + $0x40] ss:$16 sps:$4 sm:$0xff]  }
  0x99   :  { %378 = vmatprep.mubr.f32.mxu0 %v141_v15  ;;  %491 = vmatprep.mubr.f32.mxu1 %v141_v15  ;;  %v12926_v15 = vld [vmem:[#allocation14 + $0x48] ss:$16 sps:$4 sm:$0xff]  }
  0x9a   :  { %379 = vmatmul.mubr.f32.gmra.mxu0 %v140_v16  ;;  %492 = vmatmul.mubr.f32.gmra.mxu1 %v140_v16  ;;  %v12931_v16 = vld [vmem:[#allocation14 + $0x24] ss:$16 sps:$4 sm:$0xff]  }
  0x9b   :  { %775 = vmatprep.subr.bf16.mxu0 %v12859_v17  ;;  %816 = vmatprep.subr.bf16.mxu1 %v12862_v20  ;;  %v12934_v17 = vld [vmem:[#allocation14 + $0x2c] ss:$16 sps:$4 sm:$0xff]   ;;  %v12937_v20 = vld [vmem:[#allocation14 + $0x4] ss:$16 sps:$4 sm:$0xff]  }
  0x9c   :  { %776 = vmatpush1.bf16.msra.mxu0 %v12857_v18  ;;  %817 = vmatpush1.bf16.msra.mxu1 %v12860_v19  ;;  %v12929_v18 = vld [vmem:[#allocation14 + $0x20] ss:$16 sps:$4 sm:$0xff]   ;;  %v12932_v19 = vld [vmem:[#allocation14 + $0x28] ss:$16 sps:$4 sm:$0xff]  }
  0x9d   :  { %384 = vmatprep.mubr.f32.mxu0 %v143_v21  ;;  %497 = vmatprep.mubr.f32.mxu1 %v143_v21  ;;  %v12940_v21 = vld [vmem:[#allocation14 + $0xc] ss:$16 sps:$4 sm:$0xff]  }
  0x9e   :  { %385 = vmatmul.mubr.f32.gmra.mxu0 %v142_v22  ;;  %498 = vmatmul.mubr.f32.gmra.mxu1 %v142_v22  ;;  %v12935_v22 = vld [vmem:[#allocation14] ss:$16 sps:$4 sm:$0xff]  }
  0x9f   :  { %777 = vmatprep.subr.bf16.mxu0 %v12865_v23  ;;  %818 = vmatprep.subr.bf16.mxu1 %v12868_v24  ;;  %v12938_v23 = vld [vmem:[#allocation14 + $0x8] ss:$16 sps:$4 sm:$0xff]   ;;  %v12943_v24 = vld [vmem:[#allocation14 + $0x1e4] ss:$16 sps:$4 sm:$0xff]  }
  0xa0   :  { %778 = vmatpush1.bf16.msra.mxu0 %v12863_v25  ;;  %819 = vmatpush1.bf16.msra.mxu1 %v12866_v26  ;;  %v12946_v25 = vld [vmem:[#allocation14 + $0x1ec] ss:$16 sps:$4 sm:$0xff]   ;;  %v12941_v26 = vld [vmem:[#allocation14 + $0x1e0] ss:$16 sps:$4 sm:$0xff]  }
  0xa1   :  { %390 = vmatprep.mubr.f32.mxu0 %v145_v27  ;;  %503 = vmatprep.mubr.f32.mxu1 %v145_v27  ;;  %v12944_v27 = vld [vmem:[#allocation14 + $0x1e8] ss:$16 sps:$4 sm:$0xff]  }
  0xa2   :  { %391 = vmatmul.mubr.f32.gmra.mxu0 %v144_v28  ;;  %504 = vmatmul.mubr.f32.gmra.mxu1 %v144_v28  ;;  %v12949_v28 = vld [vmem:[#allocation14 + $0x1c4] ss:$16 sps:$4 sm:$0xff]  }
  0xa3   :  { %779 = vmatprep.subr.bf16.mxu0 %v12871_v29  ;;  %820 = vmatprep.subr.bf16.mxu1 %v12874_v30  ;;  %v12952_v29 = vld [vmem:[#allocation14 + $0x1cc] ss:$16 sps:$4 sm:$0xff]   ;;  %v12947_v30 = vld [vmem:[#allocation14 + $0x1c0] ss:$16 sps:$4 sm:$0xff]  }
  0xa4   :  { %780 = vmatpush1.bf16.msra.mxu0 %v12869_v31  ;;  %821 = vmatpush1.bf16.msra.mxu1 %v12872_v32  ;;  %v12950_v31 = vld [vmem:[#allocation14 + $0x1c8] ss:$16 sps:$4 sm:$0xff]   ;;  %v12955_v32 = vld [vmem:[#allocation14 + $0x1a4] ss:$16 sps:$4 sm:$0xff]  }
  0xa5   :  { %396 = vmatprep.mubr.f32.mxu0 %v147_v33  ;;  %509 = vmatprep.mubr.f32.mxu1 %v147_v33  ;;  %v12958_v33 = vld [vmem:[#allocation14 + $0x1ac] ss:$16 sps:$4 sm:$0xff]  }
  0xa6   :  { %397 = vmatmul.mubr.f32.gmra.mxu0 %v146_v34  ;;  %510 = vmatmul.mubr.f32.gmra.mxu1 %v146_v34  ;;  %v12953_v34 = vld [vmem:[#allocation14 + $0x1a0] ss:$16 sps:$4 sm:$0xff]  }
  0xa7   :  { %781 = vmatprep.subr.bf16.mxu0 %v12877_v35  ;;  %822 = vmatprep.subr.bf16.mxu1 %v12880_v36  ;;  %v12956_v35 = vld [vmem:[#allocation14 + $0x1a8] ss:$16 sps:$4 sm:$0xff]   ;;  %v12961_v36 = vld [vmem:[#allocation14 + $0x184] ss:$16 sps:$4 sm:$0xff]  }
  0xa8   :  { %782 = vmatpush1.bf16.msra.mxu0 %v12875_v37  ;;  %823 = vmatpush1.bf16.msra.mxu1 %v12878_v38  ;;  %v12964_v37 = vld [vmem:[#allocation14 + $0x18c] ss:$16 sps:$4 sm:$0xff]   ;;  %v12959_v38 = vld [vmem:[#allocation14 + $0x180] ss:$16 sps:$4 sm:$0xff]  }
  0xa9   :  { %402 = vmatprep.mubr.f32.mxu0 %v149_v39  ;;  %515 = vmatprep.mubr.f32.mxu1 %v149_v39  ;;  %v12962_v39 = vld [vmem:[#allocation14 + $0x188] ss:$16 sps:$4 sm:$0xff]  }
  0xaa   :  { %403 = vmatmul.mubr.f32.gmra.mxu0 %v148_v40  ;;  %516 = vmatmul.mubr.f32.gmra.mxu1 %v148_v40  ;;  %v12965_v40 = vld [vmem:[#allocation14 + $0x160] ss:$16 sps:$4 sm:$0xff]  }
  0xab   :  { %783 = vmatprep.subr.bf16.mxu0 %v12883_v41  ;;  %824 = vmatprep.subr.bf16.mxu1 %v12886_v42  ;;  %v12967_v41 = vld [vmem:[#allocation14 + $0x164] ss:$16 sps:$4 sm:$0xff]   ;;  %v12968_v42 = vld [vmem:[#allocation14 + $0x168] ss:$16 sps:$4 sm:$0xff]  }
  0xac   :  { %784 = vmatpush1.bf16.msra.mxu0 %v12881_v43  ;;  %825 = vmatpush1.bf16.msra.mxu1 %v12884_v44  ;;  %v12970_v43 = vld [vmem:[#allocation14 + $0x16c] ss:$16 sps:$4 sm:$0xff]   ;;  %v12973_v44 = vld [vmem:[#allocation14 + $0x144] ss:$16 sps:$4 sm:$0xff]  }
  0xad   :  { %408 = vmatprep.mubr.f32.mxu0 %v151_v46  ;;  %521 = vmatprep.mubr.f32.mxu1 %v151_v46  ;;  %v12976_v46 = vld [vmem:[#allocation14 + $0x14c] ss:$16 sps:$4 sm:$0xff]  }
  0xae   :  { %409 = vmatmul.mubr.f32.gmra.mxu0 %v150_v47  ;;  %522 = vmatmul.mubr.f32.gmra.mxu1 %v150_v47  ;;  %v12971_v47 = vld [vmem:[#allocation14 + $0x140] ss:$16 sps:$4 sm:$0xff]  }
  0xaf   :  { %785 = vmatprep.subr.bf16.mxu0 %v12889_v48  ;;  %826 = vmatprep.subr.bf16.mxu1 %v12892_v49  ;;  %v12974_v48 = vld [vmem:[#allocation14 + $0x148] ss:$16 sps:$4 sm:$0xff]   ;;  %v12979_v49 = vld [vmem:[#allocation14 + $0x124] ss:$16 sps:$4 sm:$0xff]  }
  0xb0   :  { %786 = vmatpush1.bf16.msra.mxu0 %v12887_v50  ;;  %827 = vmatpush1.bf16.msra.mxu1 %v12890_v51  ;;  %v12982_v50 = vld [vmem:[#allocation14 + $0x12c] ss:$16 sps:$4 sm:$0xff]  }
  0xb1   :  { %803 = vmatprep.mubr.bf16.mxu0 %v15358_v0  ;;  %844 = vmatprep.mubr.bf16.mxu1 %v15358_v0  ;;  %v125_v51 = vld [vmem:[#allocation8 + $0x8] sm:$0xff] }
  0xb2   :  { %883 = vperm.xlu0 %12843, %v881_v54   ;;  %1296 = vmatprep.subr.bf16.mxu0 %v12895_v55  ;;  %v889_v54 = vpack.c.bf16 %v125_v51, %v125_v51  ;;  %v12985_v55 = vld [vmem:[#allocation14 + $0x104] ss:$16 sps:$4 sm:$0xff]  }
  0xb3   :  { %804 = vmatmul.mubr.bf16.vlgmr.msra.gmra.mxu0 %v578_v53  ;;  %845 = vmatmul.mubr.bf16.vlgmr.msra.gmra.mxu1 %v578_v53  ;;  %v12980_v53 = vld [vmem:[#allocation14 + $0x128] ss:$16 sps:$4 sm:$0xff]  }
  0xb4   :  { %1337 = vmatprep.subr.bf16.mxu1 %v12898_v56  ;;  %1297 = vmatpush1.bf16.msra.mxu0 %v12893_v57  ;;  %v12988_v56 = vld [vmem:[#allocation14 + $0x10c] ss:$16 sps:$4 sm:$0xff]   ;;  %v12983_v57 = vld [vmem:[#allocation14 + $0x100] ss:$16 sps:$4 sm:$0xff]  }
  0xb5   :  { %1338 = vmatpush1.bf16.msra.mxu1 %v12896_v58  ;;  %1298 = vmatprep.subr.bf16.mxu0 %v12901_v59  ;;  %v12986_v58 = vld [vmem:[#allocation14 + $0x108] ss:$16 sps:$4 sm:$0xff]   ;;  %v2235_v59 = vsel %vm1926_vm1, 1, %v15358_v0 }
  0xb6   :  { %1339 = vmatprep.subr.bf16.mxu1 %v12904_v60  ;;  %1328 = vmatprep.mubr.bf16.mxu0 %v889_v54  ;;  %v12991_v60 = vld [vmem:[#allocation14 + $0x2e4] ss:$16 sps:$4 sm:$0xff]  }
  0xb7   :  { %1369 = vmatprep.mubr.bf16.mxu1 %v889_v54  ;;  %2237 = vperm.xlu0 %12843, %v2235_v59  }
  0xb8   :  { %1299 = vmatpush1.bf16.msra.mxu0 %v12899_v61  ;;  %v12994_v61 = vld [vmem:[#allocation14 + $0x2ec] ss:$16 sps:$4 sm:$0xff]  }
  0xb9   :  { %1340 = vmatpush1.bf16.msra.mxu1 %v12902_v62  ;;  %1300 = vmatprep.subr.bf16.mxu0 %v12907_v63  ;;  %v6294_v62 = vsel %vm5985_vm2, 1, %v15358_v0  ;;  %v15149_v63 = vld [vmem:[%s16157_s0] sm:$0xff] }
  0xba   :  { %1341 = vmatprep.subr.bf16.mxu1 %v12910_v1  ;;  %vm8691_vm3 = vcmp.gt.s32.totalorder %v15149_v63, 6 }
  0xbb   :  { %6296 = vperm.xlu0 %12843, %v6294_v62   ;;  %v9000_v1 = vsel %vm8691_vm3, 1, %v15358_v0 }
  0xbc   :  { %1301 = vmatpush1.bf16.msra.mxu0 %v12905_v2  ;;  %v282_v2 = vlaneseq }
  0xbd   :  { %1342 = vmatpush1.bf16.msra.mxu1 %v12908_v3  ;;  %1302 = vmatprep.subr.bf16.mxu0 %v12913_v4  ;;  %v280_v3 = vld [vmem:[%s16162_s5] sm:$0xf] }
  0xbe   :  { %1343 = vmatprep.subr.bf16.mxu1 %v12916_v5  ;;  %v283_v45 = vshrl.u32 %v282_v2, 7 }
  0xbf   :  { %9002 = vperm.xlu0 %12843, %v9000_v1  }
  0xc0   :  { %1303 = vmatpush1.bf16.msra.mxu0 %v12911_v6  ;;  %v15477_v4 = vsub.s32 0, %v283_v45  ;;  %v15479_v5 = vsub.s32 2, %v283_v45 }
  0xc1   :  { %1344 = vmatpush1.bf16.msra.mxu1 %v12914_v7  ;;  %1304 = vmatprep.subr.bf16.mxu0 %v12919_v8  ;;  %v15485_v8 = vsub.s32 1, %v283_v45 }
  0xc2   :  { %1345 = vmatprep.subr.bf16.mxu1 %v12922_v9  ;;  %v15487_v9 = vsub.s32 3, %v283_v45 }
  0xc4   :  { %1305 = vmatpush1.bf16.msra.mxu0 %v12917_v10 }
  0xc5   :  { %1346 = vmatpush1.bf16.msra.mxu1 %v12920_v11  ;;  %1306 = vmatprep.subr.bf16.mxu0 %v12925_v12  ;;  %v285_v12 = vrot.slane %v280_v3, %v15477_v4 }
  0xc6   :  { %1347 = vmatprep.subr.bf16.mxu1 %v12928_v13  ;;  %v15495_v13 = vrot.slane %v280_v3, %v15479_v5 }
  0xc8   :  { %1307 = vmatpush1.bf16.msra.mxu0 %v12923_v14 }
  0xc9   :  { %1348 = vmatpush1.bf16.msra.mxu1 %v12926_v15  ;;  %1308 = vmatprep.subr.bf16.mxu0 %v12931_v16  ;;  %v289_v16 = vrot.slane %v280_v3, %v15485_v8 }
  0xca   :  { %1349 = vmatprep.subr.bf16.mxu1 %v12934_v17  ;;  %v15499_v17 = vrot.slane %v280_v3, %v15487_v9 }
  0xcc   :  { %1309 = vmatpush1.bf16.msra.mxu0 %v12929_v18 }
  0xcd   :  { %1350 = vmatpush1.bf16.msra.mxu1 %v12932_v19  ;;  %1310 = vmatprep.subr.bf16.mxu0 %v12937_v20 }
  0xce   :  { %1351 = vmatprep.subr.bf16.mxu1 %v12940_v21 }
  0xd0   :  { %1311 = vmatpush1.bf16.msra.mxu0 %v12935_v22 }
  0xd1   :  { %1352 = vmatpush1.bf16.msra.mxu1 %v12938_v23  ;;  %1312 = vmatprep.subr.bf16.mxu0 %v12943_v24 }
  0xd2   :  { %1353 = vmatprep.subr.bf16.mxu1 %v12946_v25 }
  0xd4   :  { %1313 = vmatpush2.bf16.msra.mxu0 %v12941_v26 }
  0xd5   :  { %1354 = vmatpush2.bf16.msra.mxu1 %v12944_v27  ;;  %1314 = vmatprep.subr.bf16.mxu0 %v12949_v28 }
  0xd6   :  { %1355 = vmatprep.subr.bf16.mxu1 %v12952_v29 }
  0xd8   :  { %1315 = vmatpush2.bf16.msra.mxu0 %v12947_v30 }
  0xd9   :  { %1356 = vmatpush2.bf16.msra.mxu1 %v12950_v31  ;;  %1316 = vmatprep.subr.bf16.mxu0 %v12955_v32 }
  0xda   :  { %1357 = vmatprep.subr.bf16.mxu1 %v12958_v33 }
  0xdc   :  { %1317 = vmatpush2.bf16.msra.mxu0 %v12953_v34 }
  0xdd   :  { %1358 = vmatpush2.bf16.msra.mxu1 %v12956_v35  ;;  %1318 = vmatprep.subr.bf16.mxu0 %v12961_v36 }
  0xde   :  { %1359 = vmatprep.subr.bf16.mxu1 %v12964_v37 }
  0xe0   :  { %1319 = vmatpush2.bf16.msra.mxu0 %v12959_v38 }
  0xe1   :  { %1360 = vmatpush2.bf16.msra.mxu1 %v12962_v39  ;;  %1320 = vmatprep.subr.bf16.mxu0 %v12967_v41 }
  0xe2   :  { %1361 = vmatprep.subr.bf16.mxu1 %v12970_v43 }
  0xe4   :  { %1321 = vmatpush2.bf16.msra.mxu0 %v12965_v40 }
  0xe5   :  { %1362 = vmatpush2.bf16.msra.mxu1 %v12968_v42  ;;  %1322 = vmatprep.subr.bf16.mxu0 %v12973_v44 }
  0xe6   :  { %1363 = vmatprep.subr.bf16.mxu1 %v12976_v46 }
  0xe8   :  { %1323 = vmatpush2.bf16.msra.mxu0 %v12971_v47 }
  0xe9   :  { %1364 = vmatpush2.bf16.msra.mxu1 %v12974_v48  ;;  %1324 = vmatprep.subr.bf16.mxu0 %v12979_v49 }
  0xea   :  { %1365 = vmatprep.subr.bf16.mxu1 %v12982_v50 }
  0xec   :  { %1325 = vmatpush2.bf16.msra.mxu0 %v12977_v52 }
  0xed   :  { %1366 = vmatpush2.bf16.msra.mxu1 %v12980_v53  ;;  %1326 = vmatprep.subr.bf16.mxu0 %v12985_v55 }
  0xee   :  { %1367 = vmatprep.subr.bf16.mxu1 %v12988_v56 }
  0xf0   :  { %1327 = vmatpush2.bf16.msra.mxu0 %v12983_v57 }
  0xf1   :  { %1368 = vmatpush2.bf16.msra.mxu1 %v12986_v58  ;;  %1814 = vmatprep.subr.bf16.mxu0 %v12991_v60 }
  0xf2   :  { %1855 = vmatprep.subr.bf16.mxu1 %v12994_v61 }
 0x152   :  { %v15481_v6 = vpop.f32.mrf.mxu0  ;;  %v15483_v7 = vpop.f32.mrf.mxu1 }
 0x154   :  { %v15489_v10 = vpop.f32.mrf.mxu0  ;;  %v15491_v11 = vpop.f32.mrf.mxu1 }
 0x156   :  { %v374_v14 = vpop.f32.mrf.mxu0  ;;  %v487_v15 = vpop.f32.mrf.mxu1 }
 0x157   :  { %v15501_v18 = vadd.f32 %v374_v14, %v285_v12  ;;  %v15504_v19 = vadd.f32 %v487_v15, %v15495_v13 }
 0x158   :  { %v376_v20 = vpop.f32.mrf.mxu0  ;;  %v489_v21 = vpop.f32.mrf.mxu1 }
 0x159   :  { %v15506_v22 = vadd.f32 %v376_v20, %v289_v16  ;;  %v15509_v23 = vadd.f32 %v489_v21, %v15499_v17 }
 0x15a   :  { %v380_v24 = vpop.f32.mrf.mxu0  ;;  %v493_v25 = vpop.f32.mrf.mxu1 }
 0x15b   :  { %v15511_v26 = vadd.f32 %v380_v24, %v285_v12  ;;  %v15514_v27 = vadd.f32 %v493_v25, %v15495_v13  ;;  %v369_v25 = vadd.f32 %v15481_v6, %v285_v12 }
 0x15c   :  { %v382_v28 = vpop.f32.mrf.mxu0  ;;  %v495_v29 = vpop.f32.mrf.mxu1 }
 0x15d   :  { %v15516_v30 = vadd.f32 %v382_v28, %v289_v16  ;;  %v15519_v31 = vadd.f32 %v495_v29, %v15499_v17 }
 0x15e   :  { %v386_v32 = vpop.f32.mrf.mxu0  ;;  %v499_v33 = vpop.f32.mrf.mxu1 }
 0x15f   :  { %v15521_v34 = vadd.f32 %v386_v32, %v285_v12  ;;  %v15524_v35 = vadd.f32 %v499_v33, %v15495_v13  ;;  %v371_v32 = vadd.f32 %v15489_v10, %v289_v16 }
 0x160   :  { %v388_v36 = vpop.f32.mrf.mxu0  ;;  %v501_v37 = vpop.f32.mrf.mxu1 }
 0x161   :  { %v15526_v38 = vadd.f32 %v388_v36, %v289_v16  ;;  %v15529_v39 = vadd.f32 %v501_v37, %v15499_v17 }
 0x162   :  { %v392_v40 = vpop.f32.mrf.mxu0  ;;  %v505_v41 = vpop.f32.mrf.mxu1 }
 0x163   :  { %v15531_v42 = vadd.f32 %v392_v40, %v285_v12  ;;  %v15534_v43 = vadd.f32 %v505_v41, %v15495_v13 }
 0x164   :  { %v394_v44 = vpop.f32.mrf.mxu0  ;;  %v507_v46 = vpop.f32.mrf.mxu1 }
 0x165   :  { %v15536_v47 = vadd.f32 %v394_v44, %v289_v16  ;;  %v15539_v48 = vadd.f32 %v507_v46, %v15499_v17 }
 0x166   :  { %v398_v49 = vpop.f32.mrf.mxu0  ;;  %v511_v50 = vpop.f32.mrf.mxu1 }
 0x167   :  { %v15541_v51 = vadd.f32 %v398_v49, %v285_v12  ;;  %v15544_v52 = vadd.f32 %v511_v50, %v15495_v13 }
 0x168   :  { %v400_v53 = vpop.f32.mrf.mxu0  ;;  %v513_v54 = vpop.f32.mrf.mxu1 }
 0x169   :  { %v15546_v55 = vadd.f32 %v400_v53, %v289_v16  ;;  %v15549_v56 = vadd.f32 %v513_v54, %v15499_v17  ;;  %v484_v54 = vadd.f32 %v15491_v11, %v15499_v17 }
 0x16a   :  { %v404_v57 = vpop.f32.mrf.mxu0  ;;  %v517_v58 = vpop.f32.mrf.mxu1 }
 0x16b   :  { %v15551_v59 = vadd.f32 %v404_v57, %v285_v12  ;;  %v15554_v60 = vadd.f32 %v517_v58, %v15495_v13 }
 0x16c   :  { %v406_v61 = vpop.f32.mrf.mxu0  ;;  %v519_v62 = vpop.f32.mrf.mxu1 }
 0x16d   :  { %v15556_v63 = vadd.f32 %v406_v61, %v289_v16  ;;  %v15559_v1 = vadd.f32 %v519_v62, %v15499_v17 }
 0x16e   :  { %v410_v2 = vpop.f32.mrf.mxu0  ;;  %v523_v45 = vpop.f32.mrf.mxu1 }
 0x16f   :  { %v15561_v3 = vadd.f32 %v410_v2, %v285_v12  ;;  %v15564_v14 = vadd.f32 %v523_v45, %v15495_v13  ;;  %v482_v12 = vadd.f32 %v15483_v7, %v15495_v13  ;;  %v130_v2 = vld [vmem:[#allocation10] sm:$0xff] }
 0x170   :  { %v412_v15 = vpop.f32.mrf.mxu0  ;;  %v525_v20 = vpop.f32.mrf.mxu1 }
 0x171   :  { %v15566_v21 = vadd.f32 %v412_v15, %v289_v16  ;;  %v15569_v24 = vadd.f32 %v525_v20, %v15499_v17 }
 0x173   :  { %v805_v28 = vpop.f32.mrf.mxu0  ;;  %v846_v29 = vpop.f32.mrf.mxu1 }
 0x174   :  { %v853_v33 = vadd.f32 %v805_v28, %v369_v25  ;;  %v855_v57 = vadd.f32 %v846_v29, %v482_v12  ;;  %v15577_v25 = vpop.permute.xlu0 %883  ;;  %v13004_v12 = vld [vmem:[#allocation14 + $0x2a8] ss:$16 sps:$4 sm:$0xff]  }
 0x175   :  { %v807_v36 = vpop.f32.mrf.mxu0  ;;  %v848_v37 = vpop.f32.mrf.mxu1  ;;  %vm885_vm4 = vcmp.eq.s32.totalorder %v15577_v25, 1  ;;  %v13238_v25 = vld [vmem:[#allocation14 + $0x2c8] ss:$16 sps:$4 sm:$0xff]  }
 0x176   :  { %v11499_v40 = vmul.f32 -1.442695, %v853_v33  ;;  %v854_v41 = vadd.f32 %v807_v36, %v371_v32  ;;  %v856_v6 = vadd.f32 %v848_v37, %v484_v54  ;;  %v12989_v36 = vld [vmem:[#allocation14 + $0x2e0] ss:$16 sps:$4 sm:$0xff]   ;;  %v12992_v37 = vld [vmem:[#allocation14 + $0x2e8] ss:$16 sps:$4 sm:$0xff]  }
 0x177   :  { %v809_v44 = vpop.f32.mrf.mxu0  ;;  %v850_v46 = vpop.f32.mrf.mxu1  ;;  %v13006_v54 = vld [vmem:[#allocation14 + $0x2ac] ss:$16 sps:$4 sm:$0xff]  }
 0x178   :  { %14765 = vpow2.f32 %v11499_v40  ;;  %v11500_v49 = vmul.f32 -1.442695, %v854_v41  ;;  %v11501_v10 = vmul.f32 -1.442695, %v856_v6  ;;  %v12997_v41 = vld [vmem:[#allocation14 + $0x2c4] ss:$16 sps:$4 sm:$0xff]  }
 0x179   :  { %v810_v50 = vpop.f32.mrf.mxu0  ;;  %v851_v53 = vpop.f32.mrf.mxu1  ;;  %v13000_v44 = vld [vmem:[#allocation14 + $0x2cc] ss:$16 sps:$4 sm:$0xff]   ;;  %v13001_v6 = vld [vmem:[#allocation14 + $0x2a0] ss:$16 sps:$4 sm:$0xff]  }
 0x17a   :  { %14767 = vpow2.f32 %v11500_v49  ;;  %v12995_v49 = vld [vmem:[#allocation14 + $0x2c0] ss:$16 sps:$4 sm:$0xff]   ;;  %v12998_v50 = vld [vmem:[#allocation14 + $0x2c8] ss:$16 sps:$4 sm:$0xff]   ;;  %v13003_v53 = vld [vmem:[#allocation14 + $0x2a4] ss:$16 sps:$4 sm:$0xff]  }
 0x17b   :  { %14769 = vpow2.f32 %v11501_v10  ;;  %v13009_v10 = vld [vmem:[#allocation14 + $0x284] ss:$16 sps:$4 sm:$0xff]  }
 0x185   :  { %v14766_v16 = vpop.eup %14765 }
 0x186   :  { %v860_v58 = vadd.f32 1.0, %v14766_v16  ;;  %v13012_v16 = vld [vmem:[#allocation14 + $0x28c] ss:$16 sps:$4 sm:$0xff]  }
 0x187   :  { %v14768_v61 = vpop.eup %14767 }
 0x188   :  { %14771 = vrcp.f32 %v860_v58  ;;  %v866_v62 = vadd.f32 1.0, %v14768_v61  ;;  %v14770_v45 = vpop.eup %14769  ;;  %v13010_v58 = vld [vmem:[#allocation14 + $0x288] ss:$16 sps:$4 sm:$0xff]   ;;  %v13015_v61 = vld [vmem:[#allocation14 + $0x264] ss:$16 sps:$4 sm:$0xff]  }
 0x189   :  { %14773 = vtanh.f32 %v855_v57  ;;  %v873_v17 = vadd.f32 1.0, %v14770_v45  ;;  %v13007_v57 = vld [vmem:[#allocation14 + $0x280] ss:$16 sps:$4 sm:$0xff]   ;;  %v13016_v45 = vld [vmem:[#allocation14 + $0x268] ss:$16 sps:$4 sm:$0xff]  }
 0x18a   :  { %14775 = vrcp.f32 %v866_v62  ;;  %v13018_v62 = vld [vmem:[#allocation14 + $0x26c] ss:$16 sps:$4 sm:$0xff]  }
 0x18b   :  { %14777 = vrcp.f32 %v873_v17  ;;  %v13022_v17 = vld [vmem:[#allocation14 + $0x248] ss:$16 sps:$4 sm:$0xff]  }
 0x195   :  { %v14772_v15 = vpop.eup %14771 }
 0x196   :  { %v14774_v20 = vpop.eup %14773 }
 0x197   :  { %v14776_v11 = vpop.eup %14775  ;;  %v877_v28 = vmul.f32 %v14774_v20, %v14772_v15  ;;  %v13021_v15 = vld [vmem:[#allocation14 + $0x244] ss:$16 sps:$4 sm:$0xff]   ;;  %v13024_v20 = vld [vmem:[#allocation14 + $0x24c] ss:$16 sps:$4 sm:$0xff]  }
 0x198   :  { %v876_v7 = vmul.f32 %v14776_v11, %v130_v2  ;;  %v14778_v32 = vpop.eup %14777  ;;  %v13019_v11 = vld [vmem:[#allocation14 + $0x240] ss:$16 sps:$4 sm:$0xff]  }
 0x19a   :  { %v878_v13 = vadd.f32 %v877_v28, %v876_v7  ;;  %v13027_v28 = vld [vmem:[#allocation14 + $0x224] ss:$16 sps:$4 sm:$0xff]   ;;  %v13030_v7 = vld [vmem:[#allocation14 + $0x22c] ss:$16 sps:$4 sm:$0xff]  }
 0x19c   :  { %14779 = vtanh.f32 %v878_v13  ;;  %v15582_v29 = vsel %vm885_vm4, %v878_v13, %v130_v2  ;;  %v13013_v2 = vld [vmem:[#allocation14 + $0x260] ss:$16 sps:$4 sm:$0xff]  }
 0x19d   :  { %v13025_v13 = vld [vmem:[#allocation14 + $0x220] ss:$16 sps:$4 sm:$0xff]  }
 0x1a9   :  { %v14780_v33 = vpop.eup %14779 }
 0x1aa   :  { %v15584_v40 = vmul.f32 %v14780_v33, %v14778_v32  ;;  %v13028_v32 = vld [vmem:[#allocation14 + $0x228] ss:$16 sps:$4 sm:$0xff]   ;;  %v13033_v33 = vld [vmem:[#allocation14 + $0x204] ss:$16 sps:$4 sm:$0xff]  }
 0x1ac   :  { %v888_v46 = vpack.c.bf16 %v15584_v40, %v15584_v40 }
 0x1ae   :  { %1329 = vmatmul.mubr.bf16.vlgmr.msra.gmra.mxu0 %v888_v46  ;;  %1370 = vmatmul.mubr.bf16.vlgmr.msra.gmra.mxu1 %v888_v46  ;;  %v13042_v46 = vld [vmem:[#allocation14 + $0x3ec] ss:$16 sps:$4 sm:$0xff]  }
 0x1af   :  { %1815 = vmatpush1.bf16.msra.mxu0 %v12989_v36  ;;  %1856 = vmatpush1.bf16.msra.mxu1 %v12992_v37  ;;  %v13036_v36 = vld [vmem:[#allocation14 + $0x20c] ss:$16 sps:$4 sm:$0xff]   ;;  %v13031_v37 = vld [vmem:[#allocation14 + $0x200] ss:$16 sps:$4 sm:$0xff]  }
 0x1b0   :  { %1816 = vmatprep.subr.bf16.mxu0 %v12997_v41  ;;  %1857 = vmatprep.subr.bf16.mxu1 %v13000_v44  ;;  %v13034_v41 = vld [vmem:[#allocation14 + $0x208] ss:$16 sps:$4 sm:$0xff]   ;;  %v13039_v44 = vld [vmem:[#allocation14 + $0x3e4] ss:$16 sps:$4 sm:$0xff]  }
 0x1b3   :  { %1817 = vmatpush1.bf16.msra.mxu0 %v12995_v49  ;;  %1858 = vmatpush1.bf16.msra.mxu1 %v12998_v50  ;;  %v13037_v49 = vld [vmem:[#allocation14 + $0x3e0] ss:$16 sps:$4 sm:$0xff]   ;;  %v13040_v50 = vld [vmem:[#allocation14 + $0x3e8] ss:$16 sps:$4 sm:$0xff]  }
 0x1b4   :  { %1818 = vmatprep.subr.bf16.mxu0 %v13003_v53  ;;  %1859 = vmatprep.subr.bf16.mxu1 %v13006_v54  ;;  %v13045_v53 = vld [vmem:[#allocation14 + $0x3c4] ss:$16 sps:$4 sm:$0xff]   ;;  %v13048_v54 = vld [vmem:[#allocation14 + $0x3cc] ss:$16 sps:$4 sm:$0xff]  }
 0x1b7   :  { %1819 = vmatpush1.bf16.msra.mxu0 %v13001_v6  ;;  %1860 = vmatpush1.bf16.msra.mxu1 %v13004_v12  ;;  %v13043_v6 = vld [vmem:[#allocation14 + $0x3c0] ss:$16 sps:$4 sm:$0xff]   ;;  %v13046_v12 = vld [vmem:[#allocation14 + $0x3c8] ss:$16 sps:$4 sm:$0xff]  }
 0x1b8   :  { %1820 = vmatprep.subr.bf16.mxu0 %v13009_v10  ;;  %1861 = vmatprep.subr.bf16.mxu1 %v13012_v16  ;;  %v13051_v10 = vld [vmem:[#allocation14 + $0x3a4] ss:$16 sps:$4 sm:$0xff]   ;;  %v13054_v16 = vld [vmem:[#allocation14 + $0x3ac] ss:$16 sps:$4 sm:$0xff]  }
 0x1bb   :  { %1821 = vmatpush1.bf16.msra.mxu0 %v13007_v57  ;;  %1862 = vmatpush1.bf16.msra.mxu1 %v13010_v58  ;;  %v13049_v57 = vld [vmem:[#allocation14 + $0x3a0] ss:$16 sps:$4 sm:$0xff]   ;;  %v13052_v58 = vld [vmem:[#allocation14 + $0x3a8] ss:$16 sps:$4 sm:$0xff]  }
 0x1bc   :  { %1822 = vmatprep.subr.bf16.mxu0 %v13015_v61  ;;  %1863 = vmatprep.subr.bf16.mxu1 %v13018_v62  ;;  %v13057_v61 = vld [vmem:[#allocation14 + $0x384] ss:$16 sps:$4 sm:$0xff]   ;;  %v13060_v62 = vld [vmem:[#allocation14 + $0x38c] ss:$16 sps:$4 sm:$0xff]  }
 0x1bf   :  { %1823 = vmatpush1.bf16.msra.mxu0 %v13013_v2  ;;  %1864 = vmatpush1.bf16.msra.mxu1 %v13016_v45  ;;  %v13055_v2 = vld [vmem:[#allocation14 + $0x380] ss:$16 sps:$4 sm:$0xff]   ;;  %v13058_v45 = vld [vmem:[#allocation14 + $0x388] ss:$16 sps:$4 sm:$0xff]  }
 0x1c0   :  { %1824 = vmatprep.subr.bf16.mxu0 %v13021_v15  ;;  %1865 = vmatprep.subr.bf16.mxu1 %v13024_v20  ;;  %v13063_v15 = vld [vmem:[#allocation14 + $0x364] ss:$16 sps:$4 sm:$0xff]   ;;  %v13061_v20 = vld [vmem:[#allocation14 + $0x360] ss:$16 sps:$4 sm:$0xff]  }
 0x1c3   :  { %1825 = vmatpush1.bf16.msra.mxu0 %v13019_v11  ;;  %1866 = vmatpush1.bf16.msra.mxu1 %v13022_v17  ;;  %v13064_v11 = vld [vmem:[#allocation14 + $0x368] ss:$16 sps:$4 sm:$0xff]   ;;  %v13066_v17 = vld [vmem:[#allocation14 + $0x36c] ss:$16 sps:$4 sm:$0xff]  }
 0x1c4   :  { %1826 = vmatprep.subr.bf16.mxu0 %v13027_v28  ;;  %1867 = vmatprep.subr.bf16.mxu1 %v13030_v7  ;;  %v13069_v28 = vld [vmem:[#allocation14 + $0x344] ss:$16 sps:$4 sm:$0xff]   ;;  %v13072_v7 = vld [vmem:[#allocation14 + $0x34c] ss:$16 sps:$4 sm:$0xff]  }
 0x1c7   :  { %1827 = vmatpush1.bf16.msra.mxu0 %v13025_v13  ;;  %1868 = vmatpush1.bf16.msra.mxu1 %v13028_v32  ;;  %v13067_v13 = vld [vmem:[#allocation14 + $0x340] ss:$16 sps:$4 sm:$0xff]   ;;  %v13070_v32 = vld [vmem:[#allocation14 + $0x348] ss:$16 sps:$4 sm:$0xff]  }
 0x1c8   :  { %1828 = vmatprep.subr.bf16.mxu0 %v13033_v33  ;;  %1869 = vmatprep.subr.bf16.mxu1 %v13036_v36  ;;  %v126_v33 = vld [vmem:[#allocation8 + $0x10] sm:$0xff] }
 0x1c9   :  { %v13075_v36 = vld [vmem:[#allocation14 + $0x324] ss:$16 sps:$4 sm:$0xff]  }
 0x1cb   :  { %1829 = vmatpush1.bf16.msra.mxu0 %v13031_v37  ;;  %1870 = vmatpush1.bf16.msra.mxu1 %v13034_v41  ;;  %v13078_v37 = vld [vmem:[#allocation14 + $0x32c] ss:$16 sps:$4 sm:$0xff]   ;;  %v1405_v41 = vpack.c.bf16 %v126_v33, %v126_v33 }
 0x1cc   :  { %1830 = vmatprep.subr.bf16.mxu0 %v13039_v44  ;;  %1871 = vmatprep.subr.bf16.mxu1 %v13042_v46  ;;  %v13073_v44 = vld [vmem:[#allocation14 + $0x320] ss:$16 sps:$4 sm:$0xff]   ;;  %v13076_v46 = vld [vmem:[#allocation14 + $0x328] ss:$16 sps:$4 sm:$0xff]  }
 0x1cd   :  { %1846 = vmatprep.mubr.bf16.mxu0 %v1405_v41  ;;  %1887 = vmatprep.mubr.bf16.mxu1 %v1405_v41 }
 0x1cf   :  { %1831 = vmatpush2.bf16.msra.mxu0 %v13037_v49  ;;  %1872 = vmatpush2.bf16.msra.mxu1 %v13040_v50  ;;  %v13081_v49 = vld [vmem:[#allocation14 + $0x304] ss:$16 sps:$4 sm:$0xff]   ;;  %v13084_v50 = vld [vmem:[#allocation14 + $0x30c] ss:$16 sps:$4 sm:$0xff]  }
 0x1d0   :  { %1832 = vmatprep.subr.bf16.mxu0 %v13045_v53  ;;  %1873 = vmatprep.subr.bf16.mxu1 %v13048_v54  ;;  %v13079_v53 = vld [vmem:[#allocation14 + $0x300] ss:$16 sps:$4 sm:$0xff]   ;;  %v13082_v54 = vld [vmem:[#allocation14 + $0x308] ss:$16 sps:$4 sm:$0xff]  }
 0x1d3   :  { %1833 = vmatpush2.bf16.msra.mxu0 %v13043_v6  ;;  %1874 = vmatpush2.bf16.msra.mxu1 %v13046_v12  ;;  %v13087_v6 = vld [vmem:[#allocation13 + $0xe4] ss:$16 sps:$4 sm:$0xff]   ;;  %v13090_v12 = vld [vmem:[#allocation13 + $0xec] ss:$16 sps:$4 sm:$0xff]  }
 0x1d4   :  { %1834 = vmatprep.subr.bf16.mxu0 %v13051_v10  ;;  %1875 = vmatprep.subr.bf16.mxu1 %v13054_v16  ;;  %v954_v10 = vld [vmem:[%s16165_s8] sm:$0xf] }
 0x1d5   :  { %v959_v16 = vrot.slane %v954_v10, %v15477_v4 }
 0x1d7   :  { %1835 = vmatpush2.bf16.msra.mxu0 %v13049_v57  ;;  %1876 = vmatpush2.bf16.msra.mxu1 %v13052_v58  ;;  %v963_v57 = vrot.slane %v954_v10, %v15485_v8 }
 0x1d8   :  { %1836 = vmatprep.subr.bf16.mxu0 %v13057_v61  ;;  %1877 = vmatprep.subr.bf16.mxu1 %v13060_v62 }
 0x1db   :  { %1837 = vmatpush2.bf16.msra.mxu0 %v13055_v2  ;;  %1878 = vmatpush2.bf16.msra.mxu1 %v13058_v45 }
 0x1dc   :  { %1838 = vmatprep.subr.bf16.mxu0 %v13063_v15  ;;  %1879 = vmatprep.subr.bf16.mxu1 %v13066_v17 }
 0x1df   :  { %1839 = vmatpush2.bf16.msra.mxu0 %v13061_v20  ;;  %1880 = vmatpush2.bf16.msra.mxu1 %v13064_v11 }
 0x1e0   :  { %1840 = vmatprep.subr.bf16.mxu0 %v13069_v28  ;;  %1881 = vmatprep.subr.bf16.mxu1 %v13072_v7 }
 0x1e3   :  { %1841 = vmatpush2.bf16.msra.mxu0 %v13067_v13  ;;  %1882 = vmatpush2.bf16.msra.mxu1 %v13070_v32  ;;  %v971_v32 = vrot.slane %v954_v10, %v15487_v9 }
 0x1e4   :  { %1842 = vmatprep.subr.bf16.mxu0 %v13075_v36  ;;  %1883 = vmatprep.subr.bf16.mxu1 %v13078_v37  ;;  %v967_v36 = vrot.slane %v954_v10, %v15479_v5 }
 0x1e7   :  { %1843 = vmatpush2.bf16.msra.mxu0 %v13073_v44  ;;  %1884 = vmatpush2.bf16.msra.mxu1 %v13076_v46 }
 0x1e8   :  { %1844 = vmatprep.subr.bf16.mxu0 %v13081_v49  ;;  %1885 = vmatprep.subr.bf16.mxu1 %v13084_v50 }
 0x1eb   :  { %1845 = vmatpush2.bf16.msra.mxu0 %v13079_v53  ;;  %1886 = vmatpush2.bf16.msra.mxu1 %v13082_v54 }
 0x1ec   :  { %2125 = vmatprep.subr.bf16.mxu0 %v13087_v6  ;;  %2166 = vmatprep.subr.bf16.mxu1 %v13090_v12  ;;  %v131_v6 = vld [vmem:[#allocation10 + $0x8] sm:$0xff] }
 0x26e   :  { %v1330_v58 = vpop.f32.mrf.mxu0  ;;  %v1371_v61 = vpop.f32.mrf.mxu1 }
 0x26f   :  { %v1331_v62 = vadd.f32 %v1330_v58, %v959_v16  ;;  %v1372_v44 = vadd.f32 %v1371_v61, %v967_v36  ;;  %v13102_v36 = vld [vmem:[#allocation13 + $0xac] ss:$16 sps:$4 sm:$0xff]  }
 0x270   :  { %v1332_v2 = vpop.f32.mrf.mxu0  ;;  %v1373_v45 = vpop.f32.mrf.mxu1 }
 0x271   :  { %v11566_v15 = vmul.f32 -1.442695, %v1331_v62  ;;  %v1333_v20 = vadd.f32 %v1332_v2, %v963_v57  ;;  %v1374_v33 = vadd.f32 %v1373_v45, %v971_v32  ;;  %v13094_v32 = vld [vmem:[#allocation13 + $0xc8] ss:$16 sps:$4 sm:$0xff]  }
 0x272   :  { %v1334_v11 = vpop.f32.mrf.mxu0  ;;  %v1375_v17 = vpop.f32.mrf.mxu1 }
 0x273   :  { %14781 = vpow2.f32 %v11566_v15  ;;  %v11567_v28 = vmul.f32 -1.442695, %v1333_v20  ;;  %v11568_v37 = vmul.f32 -1.442695, %v1374_v33  ;;  %v13085_v20 = vld [vmem:[#allocation13 + $0xe0] ss:$16 sps:$4 sm:$0xff]  }
 0x274   :  { %v1335_v7 = vpop.f32.mrf.mxu0  ;;  %v1376_v13 = vpop.f32.mrf.mxu1  ;;  %v13088_v11 = vld [vmem:[#allocation13 + $0xe8] ss:$16 sps:$4 sm:$0xff]   ;;  %v13099_v33 = vld [vmem:[#allocation13 + $0xa4] ss:$16 sps:$4 sm:$0xff]  }
 0x275   :  { %14783 = vpow2.f32 %v11567_v28  ;;  %v13093_v28 = vld [vmem:[#allocation13 + $0xc4] ss:$16 sps:$4 sm:$0xff]   ;;  %v13096_v7 = vld [vmem:[#allocation13 + $0xcc] ss:$16 sps:$4 sm:$0xff]   ;;  %v13091_v13 = vld [vmem:[#allocation13 + $0xc0] ss:$16 sps:$4 sm:$0xff]  }
 0x276   :  { %14785 = vpow2.f32 %v11568_v37  ;;  %v13097_v37 = vld [vmem:[#allocation13 + $0xa0] ss:$16 sps:$4 sm:$0xff]  }
 0x280   :  { %v14782_v41 = vpop.eup %14781 }
 0x281   :  { %v1381_v46 = vadd.f32 1.0, %v14782_v41  ;;  %v13100_v41 = vld [vmem:[#allocation13 + $0xa8] ss:$16 sps:$4 sm:$0xff]  }
 0x282   :  { %v14784_v49 = vpop.eup %14783 }
 0x283   :  { %14787 = vrcp.f32 %v1381_v46  ;;  %v1387_v50 = vadd.f32 1.0, %v14784_v49  ;;  %v14786_v53 = vpop.eup %14785  ;;  %v13108_v46 = vld [vmem:[#allocation13 + $0x8c] ss:$16 sps:$4 sm:$0xff]   ;;  %v13103_v49 = vld [vmem:[#allocation13 + $0x80] ss:$16 sps:$4 sm:$0xff]  }
 0x284   :  { %14789 = vtanh.f32 %v1372_v44  ;;  %v1394_v57 = vadd.f32 1.0, %v14786_v53  ;;  %v13105_v44 = vld [vmem:[#allocation13 + $0x84] ss:$16 sps:$4 sm:$0xff]  }
 0x285   :  { %14791 = vrcp.f32 %v1387_v50  ;;  %v13106_v50 = vld [vmem:[#allocation13 + $0x88] ss:$16 sps:$4 sm:$0xff]   ;;  %v13111_v53 = vld [vmem:[#allocation13 + $0x64] ss:$16 sps:$4 sm:$0xff]  }
 0x286   :  { %14793 = vrcp.f32 %v1394_v57  ;;  %v13120_v57 = vld [vmem:[#allocation13 + $0x4c] ss:$16 sps:$4 sm:$0xff]  }
 0x290   :  { %v14788_v54 = vpop.eup %14787 }
 0x291   :  { %v14790_v12 = vpop.eup %14789 }
 0x292   :  { %v14792_v16 = vpop.eup %14791  ;;  %v1398_v58 = vmul.f32 %v14790_v12, %v14788_v54  ;;  %v13114_v54 = vld [vmem:[#allocation13 + $0x6c] ss:$16 sps:$4 sm:$0xff]   ;;  %v13112_v12 = vld [vmem:[#allocation13 + $0x68] ss:$16 sps:$4 sm:$0xff]  }
 0x293   :  { %v1397_v62 = vmul.f32 %v14792_v16, %v131_v6  ;;  %v14794_v61 = vpop.eup %14793  ;;  %v13117_v16 = vld [vmem:[#allocation13 + $0x44] ss:$16 sps:$4 sm:$0xff]  }
 0x295   :  { %v1399_v2 = vadd.f32 %v1398_v58, %v1397_v62  ;;  %v13115_v58 = vld [vmem:[#allocation13 + $0x40] ss:$16 sps:$4 sm:$0xff]   ;;  %v13118_v62 = vld [vmem:[#allocation13 + $0x48] ss:$16 sps:$4 sm:$0xff]  }
 0x297   :  { %14795 = vtanh.f32 %v1399_v2  ;;  %v15597_v10 = vsel %vm885_vm4, %v1399_v2, %v131_v6  ;;  %v13109_v6 = vld [vmem:[#allocation13 + $0x60] ss:$16 sps:$4 sm:$0xff]   ;;  %v13123_v2 = vld [vmem:[#allocation13 + $0x24] ss:$16 sps:$4 sm:$0xff]  }
 0x2a4   :  { %v14796_v45 = vpop.eup %14795 }
 0x2a5   :  { %v15599_v15 = vmul.f32 %v14796_v45, %v14794_v61  ;;  %v13126_v61 = vld [vmem:[#allocation13 + $0x2c] ss:$16 sps:$4 sm:$0xff]   ;;  %v13121_v45 = vld [vmem:[#allocation13 + $0x20] ss:$16 sps:$4 sm:$0xff]  }
 0x2a7   :  { %v1404_v17 = vpack.c.bf16 %v15599_v15, %v15599_v15 }
 0x2a9   :  { %1847 = vmatmul.mubr.bf16.vlgmr.msra.gmra.mxu0 %v1404_v17  ;;  %1888 = vmatmul.mubr.bf16.vlgmr.msra.gmra.mxu1 %v1404_v17  ;;  %v13132_v17 = vld [vmem:[#allocation13 + $0xc] ss:$16 sps:$4 sm:$0xff]  }
 0x2aa   :  { %2126 = vmatpush1.bf16.msra.mxu0 %v13085_v20  ;;  %2167 = vmatpush1.bf16.msra.mxu1 %v13088_v11  ;;  %v13124_v20 = vld [vmem:[#allocation13 + $0x28] ss:$16 sps:$4 sm:$0xff]   ;;  %v13129_v11 = vld [vmem:[#allocation13 + $0x4] ss:$16 sps:$4 sm:$0xff]  }
 0x2ab   :  { %2127 = vmatprep.subr.bf16.mxu0 %v13093_v28  ;;  %2168 = vmatprep.subr.bf16.mxu1 %v13096_v7  ;;  %v13127_v28 = vld [vmem:[#allocation13] ss:$16 sps:$4 sm:$0xff]   ;;  %v13130_v7 = vld [vmem:[#allocation13 + $0x8] ss:$16 sps:$4 sm:$0xff]  }
 0x2ac   :  { %2157 = vmatprep.mubr.bf16.mxu0 %v15358_v0  ;;  %2198 = vmatprep.mubr.bf16.mxu1 %v15358_v0 }
 0x2ae   :  { %2128 = vmatpush1.bf16.msra.mxu0 %v13091_v13  ;;  %2169 = vmatpush1.bf16.msra.mxu1 %v13094_v32  ;;  %v15150_v13 = vld [vmem:[#allocation8] sm:$0xff] }
 0x2af   :  { %2129 = vmatprep.subr.bf16.mxu0 %v13099_v33  ;;  %2170 = vmatprep.subr.bf16.mxu1 %v13102_v36  ;;  %v15608_v32 = vsel %vm885_vm4, %v15584_v40, %v15150_v13  ;;  %v15151_v33 = vld [vmem:[#allocation8 + $0x8] sm:$0xff]  ;;  %v13135_v40 = vld [vmem:[#allocation14 + $0xe4] ss:$16 sps:$4 sm:$0xff]   ;;  %v13163_v13 = vld [vmem:[#allocation14 + $0x40] ss:$16 sps:$4 sm:$0xff]  }
 0x2b0   :  { %v15613_v36 = vsel %vm885_vm4, %v15599_v15, %v15151_v33  ;;  %v13141_v15 = vld [vmem:[#allocation14 + $0xc4] ss:$16 sps:$4 sm:$0xff]   ;;  %v13166_v33 = vld [vmem:[#allocation14 + $0x48] ss:$16 sps:$4 sm:$0xff]  }
 0x2b2   :  { %2130 = vmatpush1.bf16.msra.mxu0 %v13097_v37  ;;  %2171 = vmatpush1.bf16.msra.mxu1 %v13100_v41  ;;  %v1932_v37 = vpack.c.bf16 %v15608_v32, %v15608_v32  ;;  %v2243_v41 = vpack.c.bf16 %v15613_v36, %v15613_v36 }
 0x2b3   :  { %2131 = vmatprep.subr.bf16.mxu0 %v13105_v44  ;;  %2172 = vmatprep.subr.bf16.mxu1 %v13108_v46  ;;  %v13138_v44 = vld [vmem:[#allocation14 + $0xec] ss:$16 sps:$4 sm:$0xff]   ;;  %v13133_v46 = vld [vmem:[#allocation14 + $0xe0] ss:$16 sps:$4 sm:$0xff]  }
 0x2b6   :  { %2132 = vmatpush1.bf16.msra.mxu0 %v13103_v49  ;;  %2173 = vmatpush1.bf16.msra.mxu1 %v13106_v50  ;;  %v13136_v49 = vld [vmem:[#allocation14 + $0xe8] ss:$16 sps:$4 sm:$0xff]   ;;  %v13144_v50 = vld [vmem:[#allocation14 + $0xcc] ss:$16 sps:$4 sm:$0xff]  }
 0x2b7   :  { %2133 = vmatprep.subr.bf16.mxu0 %v13111_v53  ;;  %2174 = vmatprep.subr.bf16.mxu1 %v13114_v54  ;;  %v13139_v53 = vld [vmem:[#allocation14 + $0xc0] ss:$16 sps:$4 sm:$0xff]   ;;  %v13142_v54 = vld [vmem:[#allocation14 + $0xc8] ss:$16 sps:$4 sm:$0xff]  }
 0x2ba   :  { %2134 = vmatpush1.bf16.msra.mxu0 %v13109_v6  ;;  %2175 = vmatpush1.bf16.msra.mxu1 %v13112_v12  ;;  %v13147_v6 = vld [vmem:[#allocation14 + $0xa4] ss:$16 sps:$4 sm:$0xff]   ;;  %v13150_v12 = vld [vmem:[#allocation14 + $0xac] ss:$16 sps:$4 sm:$0xff]  }
 0x2bb   :  { %2135 = vmatprep.subr.bf16.mxu0 %v13117_v16  ;;  %2176 = vmatprep.subr.bf16.mxu1 %v13120_v57  ;;  %v13145_v16 = vld [vmem:[#allocation14 + $0xa0] ss:$16 sps:$4 sm:$0xff]   ;;  %v13148_v57 = vld [vmem:[#allocation14 + $0xa8] ss:$16 sps:$4 sm:$0xff]  }
 0x2be   :  { %2136 = vmatpush1.bf16.msra.mxu0 %v13115_v58  ;;  %2177 = vmatpush1.bf16.msra.mxu1 %v13118_v62  ;;  %v13153_v58 = vld [vmem:[#allocation14 + $0x84] ss:$16 sps:$4 sm:$0xff]   ;;  %v13156_v62 = vld [vmem:[#allocation14 + $0x8c] ss:$16 sps:$4 sm:$0xff]  }
 0x2bf   :  { %2137 = vmatprep.subr.bf16.mxu0 %v13123_v2  ;;  %2178 = vmatprep.subr.bf16.mxu1 %v13126_v61  ;;  %v13151_v2 = vld [vmem:[#allocation14 + $0x80] ss:$16 sps:$4 sm:$0xff]   ;;  %v13154_v61 = vld [vmem:[#allocation14 + $0x88] ss:$16 sps:$4 sm:$0xff]  }
 0x2c2   :  { %2138 = vmatpush1.bf16.msra.mxu0 %v13121_v45  ;;  %2179 = vmatpush1.bf16.msra.mxu1 %v13124_v20  ;;  %v13159_v45 = vld [vmem:[#allocation14 + $0x64] ss:$16 sps:$4 sm:$0xff]   ;;  %v13162_v20 = vld [vmem:[#allocation14 + $0x6c] ss:$16 sps:$4 sm:$0xff]  }
 0x2c3   :  { %2139 = vmatprep.subr.bf16.mxu0 %v13129_v11  ;;  %2180 = vmatprep.subr.bf16.mxu1 %v13132_v17  ;;  %v13157_v11 = vld [vmem:[#allocation14 + $0x60] ss:$16 sps:$4 sm:$0xff]   ;;  %v13160_v17 = vld [vmem:[#allocation14 + $0x68] ss:$16 sps:$4 sm:$0xff]  }
 0x2c6   :  { %2140 = vmatpush1.bf16.msra.mxu0 %v13127_v28  ;;  %2181 = vmatpush1.bf16.msra.mxu1 %v13130_v7  ;;  %v13165_v28 = vld [vmem:[#allocation14 + $0x44] ss:$16 sps:$4 sm:$0xff]   ;;  %v13168_v7 = vld [vmem:[#allocation14 + $0x4c] ss:$16 sps:$4 sm:$0xff]  }
 0x2c7   :  { %2650 = vmatprep.subr.bf16.mxu0 %v13135_v40  ;;  %2691 = vmatprep.subr.bf16.mxu1 %v13138_v44  ;;  %v13169_v40 = vld [vmem:[#allocation14 + $0x20] ss:$16 sps:$4 sm:$0xff]   ;;  %v13172_v44 = vld [vmem:[#allocation14 + $0x28] ss:$16 sps:$4 sm:$0xff]  }
 0x2c9   :  { %2158 = vmatmul.mubr.bf16.vlgmr.msra.gmra.mxu0 %v1932_v37  ;;  %2199 = vmatmul.mubr.bf16.vlgmr.msra.gmra.mxu1 %v1932_v37  ;;  %v13171_v37 = vld [vmem:[#allocation14 + $0x24] ss:$16 sps:$4 sm:$0xff]  }
 0x2ca   :  { %2682 = vmatprep.mubr.bf16.mxu0 %v2243_v41  ;;  %2723 = vmatprep.mubr.bf16.mxu1 %v2243_v41  ;;  %v13174_v41 = vld [vmem:[#allocation14 + $0x2c] ss:$16 sps:$4 sm:$0xff]  }
 0x2cb   :  { %2651 = vmatpush1.bf16.msra.mxu0 %v13133_v46  ;;  %2692 = vmatpush1.bf16.msra.mxu1 %v13136_v49  ;;  %v13177_v46 = vld [vmem:[#allocation14 + $0x4] ss:$16 sps:$4 sm:$0xff]   ;;  %v13180_v49 = vld [vmem:[#allocation14 + $0xc] ss:$16 sps:$4 sm:$0xff]  }
 0x2cc   :  { %2652 = vmatprep.subr.bf16.mxu0 %v13141_v15  ;;  %2693 = vmatprep.subr.bf16.mxu1 %v13144_v50  ;;  %v13175_v15 = vld [vmem:[#allocation14] ss:$16 sps:$4 sm:$0xff]   ;;  %v13178_v50 = vld [vmem:[#allocation14 + $0x8] ss:$16 sps:$4 sm:$0xff]  }
 0x2cf   :  { %2653 = vmatpush1.bf16.msra.mxu0 %v13139_v53  ;;  %2694 = vmatpush1.bf16.msra.mxu1 %v13142_v54  ;;  %v13183_v53 = vld [vmem:[#allocation14 + $0x1e4] ss:$16 sps:$4 sm:$0xff]   ;;  %v13186_v54 = vld [vmem:[#allocation14 + $0x1ec] ss:$16 sps:$4 sm:$0xff]  }
 0x2d0   :  { %2654 = vmatprep.subr.bf16.mxu0 %v13147_v6  ;;  %2695 = vmatprep.subr.bf16.mxu1 %v13150_v12  ;;  %v13181_v6 = vld [vmem:[#allocation14 + $0x1e0] ss:$16 sps:$4 sm:$0xff]   ;;  %v13184_v12 = vld [vmem:[#allocation14 + $0x1e8] ss:$16 sps:$4 sm:$0xff]  }
 0x2d3   :  { %2655 = vmatpush1.bf16.msra.mxu0 %v13145_v16  ;;  %2696 = vmatpush1.bf16.msra.mxu1 %v13148_v57  ;;  %v13189_v16 = vld [vmem:[#allocation14 + $0x1c4] ss:$16 sps:$4 sm:$0xff]   ;;  %v13192_v57 = vld [vmem:[#allocation14 + $0x1cc] ss:$16 sps:$4 sm:$0xff]  }
 0x2d4   :  { %2656 = vmatprep.subr.bf16.mxu0 %v13153_v58  ;;  %2697 = vmatprep.subr.bf16.mxu1 %v13156_v62  ;;  %v13187_v58 = vld [vmem:[#allocation14 + $0x1c0] ss:$16 sps:$4 sm:$0xff]   ;;  %v13190_v62 = vld [vmem:[#allocation14 + $0x1c8] ss:$16 sps:$4 sm:$0xff]  }
 0x2d7   :  { %2657 = vmatpush1.bf16.msra.mxu0 %v13151_v2  ;;  %2698 = vmatpush1.bf16.msra.mxu1 %v13154_v61  ;;  %v13195_v2 = vld [vmem:[#allocation14 + $0x1a4] ss:$16 sps:$4 sm:$0xff]   ;;  %v13198_v61 = vld [vmem:[#allocation14 + $0x1ac] ss:$16 sps:$4 sm:$0xff]  }
 0x2d8   :  { %2658 = vmatprep.subr.bf16.mxu0 %v13159_v45  ;;  %2699 = vmatprep.subr.bf16.mxu1 %v13162_v20  ;;  %v13193_v45 = vld [vmem:[#allocation14 + $0x1a0] ss:$16 sps:$4 sm:$0xff]   ;;  %v13196_v20 = vld [vmem:[#allocation14 + $0x1a8] ss:$16 sps:$4 sm:$0xff]  }
 0x2db   :  { %2659 = vmatpush1.bf16.msra.mxu0 %v13157_v11  ;;  %2700 = vmatpush1.bf16.msra.mxu1 %v13160_v17  ;;  %v13201_v11 = vld [vmem:[#allocation14 + $0x184] ss:$16 sps:$4 sm:$0xff]   ;;  %v13204_v17 = vld [vmem:[#allocation14 + $0x18c] ss:$16 sps:$4 sm:$0xff]  }
 0x2dc   :  { %2660 = vmatprep.subr.bf16.mxu0 %v13165_v28  ;;  %2701 = vmatprep.subr.bf16.mxu1 %v13168_v7  ;;  %v13199_v28 = vld [vmem:[#allocation14 + $0x180] ss:$16 sps:$4 sm:$0xff]   ;;  %v13202_v7 = vld [vmem:[#allocation14 + $0x188] ss:$16 sps:$4 sm:$0xff]  }
 0x2df   :  { %2661 = vmatpush1.bf16.msra.mxu0 %v13163_v13  ;;  %2702 = vmatpush1.bf16.msra.mxu1 %v13166_v33  ;;  %v13207_v13 = vld [vmem:[#allocation14 + $0x164] ss:$16 sps:$4 sm:$0xff]   ;;  %v13210_v33 = vld [vmem:[#allocation14 + $0x16c] ss:$16 sps:$4 sm:$0xff]  }
 0x2e0   :  { %2662 = vmatprep.subr.bf16.mxu0 %v13171_v37  ;;  %2703 = vmatprep.subr.bf16.mxu1 %v13174_v41  ;;  %v13205_v37 = vld [vmem:[#allocation14 + $0x160] ss:$16 sps:$4 sm:$0xff]   ;;  %v13208_v41 = vld [vmem:[#allocation14 + $0x168] ss:$16 sps:$4 sm:$0xff]  }
 0x2e3   :  { %2663 = vmatpush1.bf16.msra.mxu0 %v13169_v40  ;;  %2704 = vmatpush1.bf16.msra.mxu1 %v13172_v44  ;;  %v13213_v40 = vld [vmem:[#allocation14 + $0x144] ss:$16 sps:$4 sm:$0xff]   ;;  %v13216_v44 = vld [vmem:[#allocation14 + $0x14c] ss:$16 sps:$4 sm:$0xff]  }
 0x2e4   :  { %2664 = vmatprep.subr.bf16.mxu0 %v13177_v46  ;;  %2705 = vmatprep.subr.bf16.mxu1 %v13180_v49  ;;  %v13211_v46 = vld [vmem:[#allocation14 + $0x140] ss:$16 sps:$4 sm:$0xff]   ;;  %v13214_v49 = vld [vmem:[#allocation14 + $0x148] ss:$16 sps:$4 sm:$0xff]  }
 0x2e7   :  { %2665 = vmatpush1.bf16.msra.mxu0 %v13175_v15  ;;  %2706 = vmatpush1.bf16.msra.mxu1 %v13178_v50  ;;  %v13219_v15 = vld [vmem:[#allocation14 + $0x124] ss:$16 sps:$4 sm:$0xff]   ;;  %v13222_v50 = vld [vmem:[#allocation14 + $0x12c] ss:$16 sps:$4 sm:$0xff]  }
 0x2e8   :  { %2666 = vmatprep.subr.bf16.mxu0 %v13183_v53  ;;  %2707 = vmatprep.subr.bf16.mxu1 %v13186_v54  ;;  %v13217_v53 = vld [vmem:[#allocation14 + $0x120] ss:$16 sps:$4 sm:$0xff]   ;;  %v13220_v54 = vld [vmem:[#allocation14 + $0x128] ss:$16 sps:$4 sm:$0xff]  }
 0x2eb   :  { %2667 = vmatpush2.bf16.msra.mxu0 %v13181_v6  ;;  %2708 = vmatpush2.bf16.msra.mxu1 %v13184_v12  ;;  %v13225_v6 = vld [vmem:[#allocation14 + $0x104] ss:$16 sps:$4 sm:$0xff]   ;;  %v13228_v12 = vld [vmem:[#allocation14 + $0x10c] ss:$16 sps:$4 sm:$0xff]  }
 0x2ec   :  { %2668 = vmatprep.subr.bf16.mxu0 %v13189_v16  ;;  %2709 = vmatprep.subr.bf16.mxu1 %v13192_v57  ;;  %v13223_v16 = vld [vmem:[#allocation14 + $0x100] ss:$16 sps:$4 sm:$0xff]   ;;  %v13226_v57 = vld [vmem:[#allocation14 + $0x108] ss:$16 sps:$4 sm:$0xff]  }
 0x2ef   :  { %2669 = vmatpush2.bf16.msra.mxu0 %v13187_v58  ;;  %2710 = vmatpush2.bf16.msra.mxu1 %v13190_v62  ;;  %v13231_v58 = vld [vmem:[#allocation14 + $0x2e4] ss:$16 sps:$4 sm:$0xff]   ;;  %v13234_v62 = vld [vmem:[#allocation14 + $0x2ec] ss:$16 sps:$4 sm:$0xff]  }
 0x2f0   :  { %2670 = vmatprep.subr.bf16.mxu0 %v13195_v2  ;;  %2711 = vmatprep.subr.bf16.mxu1 %v13198_v61  ;;  %v11569_v2 = vld [vmem:[%s16165_s8 + $0x4] sm:$0xf] }
 0x2f1   :  { %v1477_v61 = vrot.slane %v11569_v2, %v15477_v4 }
 0x2f3   :  { %2671 = vmatpush2.bf16.msra.mxu0 %v13193_v45  ;;  %2712 = vmatpush2.bf16.msra.mxu1 %v13196_v20  ;;  %v1481_v45 = vrot.slane %v11569_v2, %v15485_v8 }
 0x2f4   :  { %2672 = vmatprep.subr.bf16.mxu0 %v13201_v11  ;;  %2713 = vmatprep.subr.bf16.mxu1 %v13204_v17 }
 0x2f7   :  { %2673 = vmatpush2.bf16.msra.mxu0 %v13199_v28  ;;  %2714 = vmatpush2.bf16.msra.mxu1 %v13202_v7 }
 0x2f8   :  { %2674 = vmatprep.subr.bf16.mxu0 %v13207_v13  ;;  %2715 = vmatprep.subr.bf16.mxu1 %v13210_v33 }
 0x2fb   :  { %2675 = vmatpush2.bf16.msra.mxu0 %v13205_v37  ;;  %2716 = vmatpush2.bf16.msra.mxu1 %v13208_v41 }
 0x2fc   :  { %2676 = vmatprep.subr.bf16.mxu0 %v13213_v40  ;;  %2717 = vmatprep.subr.bf16.mxu1 %v13216_v44 }
 0x2ff   :  { %2677 = vmatpush2.bf16.msra.mxu0 %v13211_v46  ;;  %2718 = vmatpush2.bf16.msra.mxu1 %v13214_v49  ;;  %v1489_v49 = vrot.slane %v11569_v2, %v15487_v9 }
 0x300   :  { %2678 = vmatprep.subr.bf16.mxu0 %v13219_v15  ;;  %2719 = vmatprep.subr.bf16.mxu1 %v13222_v50  ;;  %v1485_v50 = vrot.slane %v11569_v2, %v15479_v5 }
 0x303   :  { %2679 = vmatpush2.bf16.msra.mxu0 %v13217_v53  ;;  %2720 = vmatpush2.bf16.msra.mxu1 %v13220_v54 }
 0x304   :  { %2680 = vmatprep.subr.bf16.mxu0 %v13225_v6  ;;  %2721 = vmatprep.subr.bf16.mxu1 %v13228_v12 }
 0x307   :  { %2681 = vmatpush2.bf16.msra.mxu0 %v13223_v16  ;;  %2722 = vmatpush2.bf16.msra.mxu1 %v13226_v57 }
 0x308   :  { %3166 = vmatprep.subr.bf16.mxu0 %v13231_v58  ;;  %3207 = vmatprep.subr.bf16.mxu1 %v13234_v62 }
 0x369   :  { %v1848_v20 = vpop.f32.mrf.mxu0  ;;  %v1889_v11 = vpop.f32.mrf.mxu1 }
 0x36a   :  { %v1849_v17 = vadd.f32 %v1848_v20, %v1477_v61  ;;  %v1890_v6 = vadd.f32 %v1889_v11, %v1485_v50 }
 0x36b   :  { %v1850_v28 = vpop.f32.mrf.mxu0  ;;  %v1891_v7 = vpop.f32.mrf.mxu1 }
 0x36c   :  { %v11634_v13 = vmul.f32 -1.442695, %v1849_v17  ;;  %v1851_v33 = vadd.f32 %v1850_v28, %v1481_v45  ;;  %v1892_v15 = vadd.f32 %v1891_v7, %v1489_v49  ;;  %v132_v17 = vld [vmem:[#allocation10 + $0x10] sm:$0xff] }
 0x36d   :  { %v1852_v37 = vpop.f32.mrf.mxu0  ;;  %v1893_v41 = vpop.f32.mrf.mxu1 }
 0x36e   :  { %14797 = vpow2.f32 %v11634_v13  ;;  %v11635_v40 = vmul.f32 -1.442695, %v1851_v33  ;;  %v11636_v53 = vmul.f32 -1.442695, %v1892_v15 }
 0x36f   :  { %v1853_v44 = vpop.f32.mrf.mxu0  ;;  %v1894_v46 = vpop.f32.mrf.mxu1 }
 0x370   :  { %14799 = vpow2.f32 %v11635_v40 }
 0x371   :  { %14801 = vpow2.f32 %v11636_v53 }
 0x37b   :  { %v14798_v54 = vpop.eup %14797 }
 0x37c   :  { %v1899_v12 = vadd.f32 1.0, %v14798_v54 }
 0x37d   :  { %v14800_v16 = vpop.eup %14799 }
 0x37e   :  { %14803 = vrcp.f32 %v1899_v12  ;;  %v1905_v57 = vadd.f32 1.0, %v14800_v16  ;;  %v14802_v61 = vpop.eup %14801 }
 0x37f   :  { %14805 = vtanh.f32 %v1890_v6  ;;  %v1912_v37 = vadd.f32 1.0, %v14802_v61 }
 0x380   :  { %14807 = vrcp.f32 %v1905_v57 }
 0x389   :  { %v2159_v58 = vpop.f32.mrf.mxu0  ;;  %v2200_v62 = vpop.f32.mrf.mxu1 }
 0x38a   :  { %v2207_v45 = vadd.f32 %v2159_v58, %v15501_v18  ;;  %v2209_v54 = vadd.f32 %v2200_v62, %v15504_v19 }
 0x38b   :  { %v14804_v20 = vpop.eup %14803  ;;  %v2161_v28 = vpop.f32.mrf.mxu0 }
 0x38c   :  { %v2202_v7 = vpop.f32.mrf.mxu1  ;;  %v14806_v2 = vpop.eup %14805  ;;  %v11669_v13 = vmul.f32 -1.442695, %v2207_v45  ;;  %v2208_v11 = vadd.f32 %v2161_v28, %v15506_v22 }
 0x38d   :  { %v14808_v33 = vpop.eup %14807  ;;  %v2163_v41 = vpop.f32.mrf.mxu0  ;;  %v1916_v44 = vmul.f32 %v14806_v2, %v14804_v20  ;;  %v2210_v22 = vadd.f32 %v2202_v7, %v15509_v23 }
 0x38e   :  { %v2204_v40 = vpop.f32.mrf.mxu1  ;;  %v1915_v46 = vmul.f32 %v14808_v33, %v132_v17  ;;  %14809 = vpow2.f32 %v11669_v13  ;;  %v11670_v49 = vmul.f32 -1.442695, %v2208_v11  ;;  %v15637_v11 = vpop.permute.xlu0 %2237 }
 0x38f   :  { %v2164_v15 = vpop.f32.mrf.mxu0  ;;  %v11671_v6 = vmul.f32 -1.442695, %v2210_v22  ;;  %vm2239_vm5 = vcmp.eq.s32.totalorder %v15637_v11, 1  ;;  %v13478_v11 = vld [vmem:[#allocation14 + $0x2c8] ss:$16 sps:$4 sm:$0xff]  }
 0x390   :  { %v2205_v50 = vpop.f32.mrf.mxu1  ;;  %v1917_v53 = vadd.f32 %v1916_v44, %v1915_v46  ;;  %14811 = vpow2.f32 %v11670_v49  ;;  %v15152_v46 = vld [vmem:[#allocation8 + $0x10] sm:$0xff] }
 0x391   :  { %14813 = vrcp.f32 %v1912_v37  ;;  %v13229_v50 = vld [vmem:[#allocation14 + $0x2e0] ss:$16 sps:$4 sm:$0xff]  }
 0x392   :  { %14815 = vtanh.f32 %v1917_v53  ;;  %v15630_v18 = vsel %vm885_vm4, %v1917_v53, %v132_v17  ;;  %v13232_v53 = vld [vmem:[#allocation14 + $0x2e8] ss:$16 sps:$4 sm:$0xff]  }
 0x393   :  { %14817 = vtanh.f32 %v2209_v54  ;;  %v13237_v54 = vld [vmem:[#allocation14 + $0x2c4] ss:$16 sps:$4 sm:$0xff]  }
 0x394   :  { %14819 = vpow2.f32 %v11671_v6  ;;  %v13235_v6 = vld [vmem:[#allocation14 + $0x2c0] ss:$16 sps:$4 sm:$0xff]  }
 0x39b   :  { %v14810_v12 = vpop.eup %14809 }
 0x39c   :  { %v2214_v16 = vadd.f32 1.0, %v14810_v12  ;;  %v13243_v12 = vld [vmem:[#allocation14 + $0x2a4] ss:$16 sps:$4 sm:$0xff]  }
 0x39d   :  { %v14812_v57 = vpop.eup %14811 }
 0x39e   :  { %v14814_v58 = vpop.eup %14813  ;;  %14821 = vrcp.f32 %v2214_v16  ;;  %v2220_v61 = vadd.f32 1.0, %v14812_v57  ;;  %v13246_v16 = vld [vmem:[#allocation14 + $0x2ac] ss:$16 sps:$4 sm:$0xff]   ;;  %v13241_v57 = vld [vmem:[#allocation14 + $0x2a0] ss:$16 sps:$4 sm:$0xff]  }
 0x39f   :  { %v14816_v45 = vpop.eup %14815 }
 0x3a0   :  { %14823 = vrcp.f32 %v2220_v61  ;;  %v1919_v20 = vmul.f32 %v14816_v45, %v14814_v58  ;;  %v14818_v28 = vpop.eup %14817  ;;  %v13244_v58 = vld [vmem:[#allocation14 + $0x2a8] ss:$16 sps:$4 sm:$0xff]   ;;  %v13249_v61 = vld [vmem:[#allocation14 + $0x284] ss:$16 sps:$4 sm:$0xff]   ;;  %v13252_v45 = vld [vmem:[#allocation14 + $0x28c] ss:$16 sps:$4 sm:$0xff]  }
 0x3a1   :  { %v14820_v23 = vpop.eup %14819 }
 0x3a2   :  { %v1922_v17 = vsel %vm885_vm4, %v1919_v20, 0.0  ;;  %v2227_v2 = vadd.f32 1.0, %v14820_v23  ;;  %v15649_v49 = vsel %vm885_vm4, %v1919_v20, %v15152_v46  ;;  %v13247_v20 = vld [vmem:[#allocation14 + $0x280] ss:$16 sps:$4 sm:$0xff]   ;;  %v13258_v23 = vld [vmem:[#allocation14 + $0x26c] ss:$16 sps:$4 sm:$0xff]  }
 0x3a3   :  { %1923 = vst [vmem:[#allocation16] sm:$0xff] %v1922_v17  ;;  %v2759_v22 = vpack.c.bf16 %v15649_v49, %v15649_v49  ;;  %v13250_v17 = vld [vmem:[#allocation14 + $0x288] ss:$16 sps:$4 sm:$0xff]   ;;  %v13265_v46 = vld [vmem:[#allocation14 + $0x220] ss:$16 sps:$4 sm:$0xff]  }
 0x3a4   :  { %14825 = vrcp.f32 %v2227_v2  ;;  %v13264_v2 = vld [vmem:[#allocation14 + $0x24c] ss:$16 sps:$4 sm:$0xff]  }
 0x3ab   :  { %v14822_v7 = vpop.eup %14821 }
 0x3ac   :  { %v2231_v19 = vmul.f32 %v14822_v7, %v14818_v28  ;;  %v13255_v28 = vld [vmem:[#allocation14 + $0x264] ss:$16 sps:$4 sm:$0xff]   ;;  %v13253_v7 = vld [vmem:[#allocation14 + $0x260] ss:$16 sps:$4 sm:$0xff]  }
 0x3ad   :  { %v14824_v62 = vpop.eup %14823 }
 0x3ae   :  { %v2230_v13 = vmul.f32 %v14824_v62, %v15582_v29  ;;  %v13261_v62 = vld [vmem:[#allocation14 + $0x244] ss:$16 sps:$4 sm:$0xff]  }
 0x3b0   :  { %v2232_v33 = vadd.f32 %v2231_v19, %v2230_v13  ;;  %v13256_v19 = vld [vmem:[#allocation14 + $0x268] ss:$16 sps:$4 sm:$0xff]   ;;  %v13259_v13 = vld [vmem:[#allocation14 + $0x240] ss:$16 sps:$4 sm:$0xff]  }
 0x3b1   :  { %v14826_v41 = vpop.eup %14825 }
 0x3b2   :  { %14827 = vtanh.f32 %v2232_v33  ;;  %v15643_v37 = vsel %vm2239_vm5, %v2232_v33, %v15582_v29  ;;  %v13240_v29 = vld [vmem:[#allocation14 + $0x2cc] ss:$16 sps:$4 sm:$0xff]   ;;  %v13262_v33 = vld [vmem:[#allocation14 + $0x248] ss:$16 sps:$4 sm:$0xff]  }
 0x3bf   :  { %v14828_v40 = vpop.eup %14827 }
 0x3c0   :  { %v15645_v44 = vmul.f32 %v14828_v40, %v14826_v41  ;;  %v13267_v41 = vld [vmem:[#allocation14 + $0x224] ss:$16 sps:$4 sm:$0xff]   ;;  %v13270_v40 = vld [vmem:[#allocation14 + $0x22c] ss:$16 sps:$4 sm:$0xff]  }
 0x3c2   :  { %v2242_v15 = vpack.c.bf16 %v15645_v44, %v15645_v44 }
 0x3c4   :  { %2683 = vmatmul.mubr.bf16.vlgmr.msra.gmra.mxu0 %v2242_v15  ;;  %2724 = vmatmul.mubr.bf16.vlgmr.msra.gmra.mxu1 %v2242_v15  ;;  %v13268_v15 = vld [vmem:[#allocation14 + $0x228] ss:$16 sps:$4 sm:$0xff]  }
 0x3c5   :  { %3198 = vmatprep.mubr.bf16.mxu0 %v2759_v22  ;;  %3239 = vmatprep.mubr.bf16.mxu1 %v2759_v22  ;;  %v13271_v22 = vld [vmem:[#allocation14 + $0x200] ss:$16 sps:$4 sm:$0xff]  }
 0x3c6   :  { %3167 = vmatpush1.bf16.msra.mxu0 %v13229_v50  ;;  %3208 = vmatpush1.bf16.msra.mxu1 %v13232_v53  ;;  %v13273_v50 = vld [vmem:[#allocation14 + $0x204] ss:$16 sps:$4 sm:$0xff]   ;;  %v13276_v53 = vld [vmem:[#allocation14 + $0x20c] ss:$16 sps:$4 sm:$0xff]  }
 0x3c7   :  { %3168 = vmatprep.subr.bf16.mxu0 %v13237_v54  ;;  %3209 = vmatprep.subr.bf16.mxu1 %v13240_v29  ;;  %v13274_v54 = vld [vmem:[#allocation14 + $0x208] ss:$16 sps:$4 sm:$0xff]   ;;  %v13279_v29 = vld [vmem:[#allocation14 + $0x3e4] ss:$16 sps:$4 sm:$0xff]  }
 0x3ca   :  { %3169 = vmatpush1.bf16.msra.mxu0 %v13235_v6  ;;  %3210 = vmatpush1.bf16.msra.mxu1 %v13238_v25  ;;  %v13282_v6 = vld [vmem:[#allocation14 + $0x3ec] ss:$16 sps:$4 sm:$0xff]   ;;  %v13277_v25 = vld [vmem:[#allocation14 + $0x3e0] ss:$16 sps:$4 sm:$0xff]  }
 0x3cb   :  { %3170 = vmatprep.subr.bf16.mxu0 %v13243_v12  ;;  %3211 = vmatprep.subr.bf16.mxu1 %v13246_v16  ;;  %v13280_v12 = vld [vmem:[#allocation14 + $0x3e8] ss:$16 sps:$4 sm:$0xff]   ;;  %v13285_v16 = vld [vmem:[#allocation14 + $0x3c4] ss:$16 sps:$4 sm:$0xff]  }
 0x3ce   :  { %3171 = vmatpush1.bf16.msra.mxu0 %v13241_v57  ;;  %3212 = vmatpush1.bf16.msra.mxu1 %v13244_v58  ;;  %v13288_v57 = vld [vmem:[#allocation14 + $0x3cc] ss:$16 sps:$4 sm:$0xff]   ;;  %v13283_v58 = vld [vmem:[#allocation14 + $0x3c0] ss:$16 sps:$4 sm:$0xff]  }
 0x3cf   :  { %3172 = vmatprep.subr.bf16.mxu0 %v13249_v61  ;;  %3213 = vmatprep.subr.bf16.mxu1 %v13252_v45  ;;  %v13286_v61 = vld [vmem:[#allocation14 + $0x3c8] ss:$16 sps:$4 sm:$0xff]   ;;  %v13291_v45 = vld [vmem:[#allocation14 + $0x3a4] ss:$16 sps:$4 sm:$0xff]  }
 0x3d2   :  { %3173 = vmatpush1.bf16.msra.mxu0 %v13247_v20  ;;  %3214 = vmatpush1.bf16.msra.mxu1 %v13250_v17  ;;  %v13294_v20 = vld [vmem:[#allocation14 + $0x3ac] ss:$16 sps:$4 sm:$0xff]   ;;  %v13289_v17 = vld [vmem:[#allocation14 + $0x3a0] ss:$16 sps:$4 sm:$0xff]  }
 0x3d3   :  { %3174 = vmatprep.subr.bf16.mxu0 %v13255_v28  ;;  %3215 = vmatprep.subr.bf16.mxu1 %v13258_v23  ;;  %v13292_v28 = vld [vmem:[#allocation14 + $0x3a8] ss:$16 sps:$4 sm:$0xff]   ;;  %v13297_v23 = vld [vmem:[#allocation14 + $0x384] ss:$16 sps:$4 sm:$0xff]  }
 0x3d6   :  { %3175 = vmatpush1.bf16.msra.mxu0 %v13253_v7  ;;  %3216 = vmatpush1.bf16.msra.mxu1 %v13256_v19  ;;  %v13300_v7 = vld [vmem:[#allocation14 + $0x38c] ss:$16 sps:$4 sm:$0xff]   ;;  %v13295_v19 = vld [vmem:[#allocation14 + $0x380] ss:$16 sps:$4 sm:$0xff]  }
 0x3d7   :  { %3176 = vmatprep.subr.bf16.mxu0 %v13261_v62  ;;  %3217 = vmatprep.subr.bf16.mxu1 %v13264_v2  ;;  %v13298_v62 = vld [vmem:[#allocation14 + $0x388] ss:$16 sps:$4 sm:$0xff]   ;;  %v13303_v2 = vld [vmem:[#allocation14 + $0x364] ss:$16 sps:$4 sm:$0xff]  }
 0x3da   :  { %3177 = vmatpush1.bf16.msra.mxu0 %v13259_v13  ;;  %3218 = vmatpush1.bf16.msra.mxu1 %v13262_v33  ;;  %v13301_v13 = vld [vmem:[#allocation14 + $0x360] ss:$16 sps:$4 sm:$0xff]   ;;  %v13304_v33 = vld [vmem:[#allocation14 + $0x368] ss:$16 sps:$4 sm:$0xff]  }
 0x3db   :  { %3178 = vmatprep.subr.bf16.mxu0 %v13267_v41  ;;  %3219 = vmatprep.subr.bf16.mxu1 %v13270_v40  ;;  %v13306_v41 = vld [vmem:[#allocation14 + $0x36c] ss:$16 sps:$4 sm:$0xff]   ;;  %v13309_v40 = vld [vmem:[#allocation14 + $0x344] ss:$16 sps:$4 sm:$0xff]  }
 0x3de   :  { %3179 = vmatpush1.bf16.msra.mxu0 %v13265_v46  ;;  %3220 = vmatpush1.bf16.msra.mxu1 %v13268_v15  ;;  %v13312_v46 = vld [vmem:[#allocation14 + $0x34c] ss:$16 sps:$4 sm:$0xff]   ;;  %v13307_v15 = vld [vmem:[#allocation14 + $0x340] ss:$16 sps:$4 sm:$0xff]  }
 0x3df   :  { %3180 = vmatprep.subr.bf16.mxu0 %v13273_v50  ;;  %3221 = vmatprep.subr.bf16.mxu1 %v13276_v53  ;;  %v13310_v50 = vld [vmem:[#allocation14 + $0x348] ss:$16 sps:$4 sm:$0xff]   ;;  %v13315_v53 = vld [vmem:[#allocation14 + $0x324] ss:$16 sps:$4 sm:$0xff]  }
 0x3e2   :  { %3181 = vmatpush1.bf16.msra.mxu0 %v13271_v22  ;;  %3222 = vmatpush1.bf16.msra.mxu1 %v13274_v54  ;;  %v13318_v22 = vld [vmem:[#allocation14 + $0x32c] ss:$16 sps:$4 sm:$0xff]   ;;  %v13313_v54 = vld [vmem:[#allocation14 + $0x320] ss:$16 sps:$4 sm:$0xff]  }
 0x3e3   :  { %3182 = vmatprep.subr.bf16.mxu0 %v13279_v29  ;;  %3223 = vmatprep.subr.bf16.mxu1 %v13282_v6  ;;  %v13316_v29 = vld [vmem:[#allocation14 + $0x328] ss:$16 sps:$4 sm:$0xff]   ;;  %v13321_v6 = vld [vmem:[#allocation14 + $0x304] ss:$16 sps:$4 sm:$0xff]  }
 0x3e6   :  { %3183 = vmatpush2.bf16.msra.mxu0 %v13277_v25  ;;  %3224 = vmatpush2.bf16.msra.mxu1 %v13280_v12  ;;  %v13324_v25 = vld [vmem:[#allocation14 + $0x30c] ss:$16 sps:$4 sm:$0xff]   ;;  %v13319_v12 = vld [vmem:[#allocation14 + $0x300] ss:$16 sps:$4 sm:$0xff]  }
 0x3e7   :  { %3184 = vmatprep.subr.bf16.mxu0 %v13285_v16  ;;  %3225 = vmatprep.subr.bf16.mxu1 %v13288_v57  ;;  %v13322_v16 = vld [vmem:[#allocation14 + $0x308] ss:$16 sps:$4 sm:$0xff]   ;;  %v13327_v57 = vld [vmem:[#allocation13 + $0xe4] ss:$16 sps:$4 sm:$0xff]  }
 0x3ea   :  { %3185 = vmatpush2.bf16.msra.mxu0 %v13283_v58  ;;  %3226 = vmatpush2.bf16.msra.mxu1 %v13286_v61  ;;  %v13330_v58 = vld [vmem:[#allocation13 + $0xec] ss:$16 sps:$4 sm:$0xff]   ;;  %v15658_v61 = vld [vmem:[%s16157_s0] sm:$0xff] }
 0x3eb   :  { %3186 = vmatprep.subr.bf16.mxu0 %v13291_v45  ;;  %3227 = vmatprep.subr.bf16.mxu1 %v13294_v20  ;;  %vm3279_vm6 = vcmp.gt.s32.totalorder %v15658_v61, 2  ;;  %v2308_v20 = vld [vmem:[%s16165_s8] sm:$0xf]  ;;  %vm4632_vm7 = vcmp.gt.s32.totalorder %v15658_v61, 3  ;;  %vm7338_vm8 = vcmp.gt.s32.totalorder %v15658_v61, 5  ;;  %vm10044_vm9 = vcmp.gt.s32.totalorder %v15658_v61, 7 }
 0x3ec   :  { %v3588_v45 = vsel %vm3279_vm6, 1, %v15358_v0 }
 0x3ed   :  { %3590 = vperm.xlu1 %12844, %v3588_v45  }
 0x3ee   :  { %3187 = vmatpush2.bf16.msra.mxu0 %v13289_v17  ;;  %3228 = vmatpush2.bf16.msra.mxu1 %v13292_v28  ;;  %v2313_v17 = vrot.slane %v2308_v20, %v15477_v4  ;;  %v2317_v28 = vrot.slane %v2308_v20, %v15485_v8 }
 0x3ef   :  { %3188 = vmatprep.subr.bf16.mxu0 %v13297_v23  ;;  %3229 = vmatprep.subr.bf16.mxu1 %v13300_v7 }
 0x3f2   :  { %3189 = vmatpush2.bf16.msra.mxu0 %v13295_v19  ;;  %3230 = vmatpush2.bf16.msra.mxu1 %v13298_v62 }
 0x3f3   :  { %3190 = vmatprep.subr.bf16.mxu0 %v13303_v2  ;;  %3231 = vmatprep.subr.bf16.mxu1 %v13306_v41 }
 0x3f6   :  { %3191 = vmatpush2.bf16.msra.mxu0 %v13301_v13  ;;  %3232 = vmatpush2.bf16.msra.mxu1 %v13304_v33 }
 0x3f7   :  { %3192 = vmatprep.subr.bf16.mxu0 %v13309_v40  ;;  %3233 = vmatprep.subr.bf16.mxu1 %v13312_v46 }
 0x3fa   :  { %3193 = vmatpush2.bf16.msra.mxu0 %v13307_v15  ;;  %3234 = vmatpush2.bf16.msra.mxu1 %v13310_v50 }
 0x3fb   :  { %3194 = vmatprep.subr.bf16.mxu0 %v13315_v53  ;;  %3235 = vmatprep.subr.bf16.mxu1 %v13318_v22  ;;  %v2325_v53 = vrot.slane %v2308_v20, %v15487_v9 }
 0x3fe   :  { %3195 = vmatpush2.bf16.msra.mxu0 %v13313_v54  ;;  %3236 = vmatpush2.bf16.msra.mxu1 %v13316_v29  ;;  %v2321_v54 = vrot.slane %v2308_v20, %v15479_v5 }
 0x3ff   :  { %3196 = vmatprep.subr.bf16.mxu0 %v13321_v6  ;;  %3237 = vmatprep.subr.bf16.mxu1 %v13324_v25 }
 0x402   :  { %3197 = vmatpush2.bf16.msra.mxu0 %v13319_v12  ;;  %3238 = vmatpush2.bf16.msra.mxu1 %v13322_v16 }
 0x403   :  { %3478 = vmatprep.subr.bf16.mxu0 %v13327_v57  ;;  %3519 = vmatprep.subr.bf16.mxu1 %v13330_v58 }
 0x484   :  { %v2684_v23 = vpop.f32.mrf.mxu0  ;;  %v2725_v7 = vpop.f32.mrf.mxu1 }
 0x485   :  { %v2685_v19 = vadd.f32 %v2684_v23, %v2313_v17  ;;  %v2726_v25 = vadd.f32 %v2725_v7, %v2321_v54  ;;  %v13342_v54 = vld [vmem:[#allocation13 + $0xac] ss:$16 sps:$4 sm:$0xff]  }
 0x486   :  { %v2686_v62 = vpop.f32.mrf.mxu0  ;;  %v2727_v2 = vpop.f32.mrf.mxu1 }
 0x487   :  { %v11736_v13 = vmul.f32 -1.442695, %v2685_v19  ;;  %v2687_v33 = vadd.f32 %v2686_v62, %v2317_v28  ;;  %v2728_v22 = vadd.f32 %v2727_v2, %v2325_v53  ;;  %v13331_v53 = vld [vmem:[#allocation13 + $0xc0] ss:$16 sps:$4 sm:$0xff]  }
 0x488   :  { %v2688_v41 = vpop.f32.mrf.mxu0  ;;  %v2729_v40 = vpop.f32.mrf.mxu1 }
 0x489   :  { %14829 = vpow2.f32 %v11736_v13  ;;  %v11737_v46 = vmul.f32 -1.442695, %v2687_v33  ;;  %v11738_v29 = vmul.f32 -1.442695, %v2728_v22  ;;  %v13325_v41 = vld [vmem:[#allocation13 + $0xe0] ss:$16 sps:$4 sm:$0xff]  }
 0x48a   :  { %v2689_v15 = vpop.f32.mrf.mxu0  ;;  %v2730_v50 = vpop.f32.mrf.mxu1  ;;  %v13328_v40 = vld [vmem:[#allocation13 + $0xe8] ss:$16 sps:$4 sm:$0xff]  }
 0x48b   :  { %14831 = vpow2.f32 %v11737_v46  ;;  %v13333_v15 = vld [vmem:[#allocation13 + $0xc4] ss:$16 sps:$4 sm:$0xff]   ;;  %v13336_v50 = vld [vmem:[#allocation13 + $0xcc] ss:$16 sps:$4 sm:$0xff]   ;;  %v13334_v22 = vld [vmem:[#allocation13 + $0xc8] ss:$16 sps:$4 sm:$0xff]  }
 0x48c   :  { %14833 = vpow2.f32 %v11738_v29  ;;  %v13337_v29 = vld [vmem:[#allocation13 + $0xa0] ss:$16 sps:$4 sm:$0xff]  }
 0x496   :  { %v14830_v6 = vpop.eup %14829 }
 0x497   :  { %v2735_v12 = vadd.f32 1.0, %v14830_v6  ;;  %v13340_v6 = vld [vmem:[#allocation13 + $0xa8] ss:$16 sps:$4 sm:$0xff]  }
 0x498   :  { %v14832_v16 = vpop.eup %14831 }
 0x499   :  { %14835 = vrcp.f32 %v2735_v12  ;;  %v2741_v57 = vadd.f32 1.0, %v14832_v16  ;;  %v14834_v58 = vpop.eup %14833  ;;  %v13348_v12 = vld [vmem:[#allocation13 + $0x8c] ss:$16 sps:$4 sm:$0xff]   ;;  %v13343_v16 = vld [vmem:[#allocation13 + $0x80] ss:$16 sps:$4 sm:$0xff]  }
 0x49a   :  { %14837 = vtanh.f32 %v2726_v25  ;;  %v2748_v23 = vadd.f32 1.0, %v14834_v58  ;;  %v13345_v25 = vld [vmem:[#allocation13 + $0x84] ss:$16 sps:$4 sm:$0xff]  }
 0x49b   :  { %14839 = vrcp.f32 %v2741_v57  ;;  %v13346_v57 = vld [vmem:[#allocation13 + $0x88] ss:$16 sps:$4 sm:$0xff]   ;;  %v13351_v58 = vld [vmem:[#allocation13 + $0x64] ss:$16 sps:$4 sm:$0xff]  }
 0x49c   :  { %14841 = vrcp.f32 %v2748_v23  ;;  %v13357_v23 = vld [vmem:[#allocation13 + $0x44] ss:$16 sps:$4 sm:$0xff]  }
 0x4a6   :  { %v14836_v45 = vpop.eup %14835 }
 0x4a7   :  { %v14838_v17 = vpop.eup %14837 }
 0x4a8   :  { %v14840_v28 = vpop.eup %14839  ;;  %v2752_v19 = vmul.f32 %v14838_v17, %v14836_v45  ;;  %v13354_v45 = vld [vmem:[#allocation13 + $0x6c] ss:$16 sps:$4 sm:$0xff]   ;;  %v13349_v17 = vld [vmem:[#allocation13 + $0x60] ss:$16 sps:$4 sm:$0xff]  }
 0x4a9   :  { %v2751_v62 = vmul.f32 %v14840_v28, %v15597_v10  ;;  %v14842_v7 = vpop.eup %14841  ;;  %v13352_v28 = vld [vmem:[#allocation13 + $0x68] ss:$16 sps:$4 sm:$0xff]  }
 0x4ab   :  { %v2753_v2 = vadd.f32 %v2752_v19, %v2751_v62  ;;  %v13360_v19 = vld [vmem:[#allocation13 + $0x4c] ss:$16 sps:$4 sm:$0xff]   ;;  %v13355_v62 = vld [vmem:[#allocation13 + $0x40] ss:$16 sps:$4 sm:$0xff]  }
 0x4ad   :  { %14843 = vtanh.f32 %v2753_v2  ;;  %v15673_v20 = vsel %vm2239_vm5, %v2753_v2, %v15597_v10  ;;  %v13339_v10 = vld [vmem:[#allocation13 + $0xa4] ss:$16 sps:$4 sm:$0xff]   ;;  %v13358_v2 = vld [vmem:[#allocation13 + $0x48] ss:$16 sps:$4 sm:$0xff]  }
 0x4ba   :  { %v14844_v13 = vpop.eup %14843 }
 0x4bb   :  { %v15675_v33 = vmul.f32 %v14844_v13, %v14842_v7  ;;  %v13363_v7 = vld [vmem:[#allocation13 + $0x24] ss:$16 sps:$4 sm:$0xff]   ;;  %v13366_v13 = vld [vmem:[#allocation13 + $0x2c] ss:$16 sps:$4 sm:$0xff]  }
 0x4bd   :  { %v2758_v46 = vpack.c.bf16 %v15675_v33, %v15675_v33 }
 0x4bf   :  { %3199 = vmatmul.mubr.bf16.vlgmr.msra.gmra.mxu0 %v2758_v46  ;;  %3240 = vmatmul.mubr.bf16.vlgmr.msra.gmra.mxu1 %v2758_v46  ;;  %v13369_v46 = vld [vmem:[#allocation13 + $0x4] ss:$16 sps:$4 sm:$0xff]  }
 0x4c0   :  { %3479 = vmatpush1.bf16.msra.mxu0 %v13325_v41  ;;  %3520 = vmatpush1.bf16.msra.mxu1 %v13328_v40  ;;  %v13361_v41 = vld [vmem:[#allocation13 + $0x20] ss:$16 sps:$4 sm:$0xff]   ;;  %v13364_v40 = vld [vmem:[#allocation13 + $0x28] ss:$16 sps:$4 sm:$0xff]  }
 0x4c1   :  { %3480 = vmatprep.subr.bf16.mxu0 %v13333_v15  ;;  %3521 = vmatprep.subr.bf16.mxu1 %v13336_v50  ;;  %v13372_v15 = vld [vmem:[#allocation13 + $0xc] ss:$16 sps:$4 sm:$0xff]   ;;  %v13367_v50 = vld [vmem:[#allocation13] ss:$16 sps:$4 sm:$0xff]  }
 0x4c2   :  { %3510 = vmatprep.mubr.bf16.mxu0 %v15358_v0  ;;  %3551 = vmatprep.mubr.bf16.mxu1 %v15358_v0 }
 0x4c4   :  { %3481 = vmatpush1.bf16.msra.mxu0 %v13331_v53  ;;  %3522 = vmatpush1.bf16.msra.mxu1 %v13334_v22  ;;  %v13370_v53 = vld [vmem:[#allocation13 + $0x8] ss:$16 sps:$4 sm:$0xff]   ;;  %v15685_v22 = vsel %vm2239_vm5, %v15645_v44, %v15608_v32  ;;  %v13375_v32 = vld [vmem:[#allocation14 + $0xe4] ss:$16 sps:$4 sm:$0xff]   ;;  %v13378_v44 = vld [vmem:[#allocation14 + $0xec] ss:$16 sps:$4 sm:$0xff]  }
 0x4c5   :  { %3482 = vmatprep.subr.bf16.mxu0 %v13339_v10  ;;  %3523 = vmatprep.subr.bf16.mxu1 %v13342_v54  ;;  %v15691_v10 = vsel %vm2239_vm5, %v15675_v33, %v15613_v36  ;;  %v3285_v54 = vpack.c.bf16 %v15685_v22, %v15685_v22  ;;  %v13381_v36 = vld [vmem:[#allocation14 + $0xc4] ss:$16 sps:$4 sm:$0xff]   ;;  %v13384_v33 = vld [vmem:[#allocation14 + $0xcc] ss:$16 sps:$4 sm:$0xff]  }
 0x4c8   :  { %3483 = vmatpush1.bf16.msra.mxu0 %v13337_v29  ;;  %3524 = vmatpush1.bf16.msra.mxu1 %v13340_v6  ;;  %v3596_v29 = vpack.c.bf16 %v15691_v10, %v15691_v10  ;;  %v13373_v6 = vld [vmem:[#allocation14 + $0xe0] ss:$16 sps:$4 sm:$0xff]  }
 0x4c9   :  { %3484 = vmatprep.subr.bf16.mxu0 %v13345_v25  ;;  %3525 = vmatprep.subr.bf16.mxu1 %v13348_v12  ;;  %v13376_v25 = vld [vmem:[#allocation14 + $0xe8] ss:$16 sps:$4 sm:$0xff]   ;;  %v13379_v12 = vld [vmem:[#allocation14 + $0xc0] ss:$16 sps:$4 sm:$0xff]  }
 0x4cc   :  { %3485 = vmatpush1.bf16.msra.mxu0 %v13343_v16  ;;  %3526 = vmatpush1.bf16.msra.mxu1 %v13346_v57  ;;  %v13382_v16 = vld [vmem:[#allocation14 + $0xc8] ss:$16 sps:$4 sm:$0xff]   ;;  %v13387_v57 = vld [vmem:[#allocation14 + $0xa4] ss:$16 sps:$4 sm:$0xff]  }
 0x4cd   :  { %3486 = vmatprep.subr.bf16.mxu0 %v13351_v58  ;;  %3527 = vmatprep.subr.bf16.mxu1 %v13354_v45  ;;  %v13390_v58 = vld [vmem:[#allocation14 + $0xac] ss:$16 sps:$4 sm:$0xff]   ;;  %v13385_v45 = vld [vmem:[#allocation14 + $0xa0] ss:$16 sps:$4 sm:$0xff]  }
 0x4d0   :  { %3487 = vmatpush1.bf16.msra.mxu0 %v13349_v17  ;;  %3528 = vmatpush1.bf16.msra.mxu1 %v13352_v28  ;;  %v13388_v17 = vld [vmem:[#allocation14 + $0xa8] ss:$16 sps:$4 sm:$0xff]   ;;  %v13393_v28 = vld [vmem:[#allocation14 + $0x84] ss:$16 sps:$4 sm:$0xff]  }
 0x4d1   :  { %3488 = vmatprep.subr.bf16.mxu0 %v13357_v23  ;;  %3529 = vmatprep.subr.bf16.mxu1 %v13360_v19  ;;  %v13396_v23 = vld [vmem:[#allocation14 + $0x8c] ss:$16 sps:$4 sm:$0xff]   ;;  %v13391_v19 = vld [vmem:[#allocation14 + $0x80] ss:$16 sps:$4 sm:$0xff]  }
 0x4d4   :  { %3489 = vmatpush1.bf16.msra.mxu0 %v13355_v62  ;;  %3530 = vmatpush1.bf16.msra.mxu1 %v13358_v2  ;;  %v13394_v62 = vld [vmem:[#allocation14 + $0x88] ss:$16 sps:$4 sm:$0xff]   ;;  %v13399_v2 = vld [vmem:[#allocation14 + $0x64] ss:$16 sps:$4 sm:$0xff]  }
 0x4d5   :  { %3490 = vmatprep.subr.bf16.mxu0 %v13363_v7  ;;  %3531 = vmatprep.subr.bf16.mxu1 %v13366_v13  ;;  %v13402_v7 = vld [vmem:[#allocation14 + $0x6c] ss:$16 sps:$4 sm:$0xff]   ;;  %v13397_v13 = vld [vmem:[#allocation14 + $0x60] ss:$16 sps:$4 sm:$0xff]  }
 0x4d8   :  { %3491 = vmatpush1.bf16.msra.mxu0 %v13361_v41  ;;  %3532 = vmatpush1.bf16.msra.mxu1 %v13364_v40  ;;  %v13400_v41 = vld [vmem:[#allocation14 + $0x68] ss:$16 sps:$4 sm:$0xff]   ;;  %v13405_v40 = vld [vmem:[#allocation14 + $0x44] ss:$16 sps:$4 sm:$0xff]  }
 0x4d9   :  { %3492 = vmatprep.subr.bf16.mxu0 %v13369_v46  ;;  %3533 = vmatprep.subr.bf16.mxu1 %v13372_v15  ;;  %v13408_v46 = vld [vmem:[#allocation14 + $0x4c] ss:$16 sps:$4 sm:$0xff]   ;;  %v13403_v15 = vld [vmem:[#allocation14 + $0x40] ss:$16 sps:$4 sm:$0xff]  }
 0x4dc   :  { %3493 = vmatpush1.bf16.msra.mxu0 %v13367_v50  ;;  %3534 = vmatpush1.bf16.msra.mxu1 %v13370_v53  ;;  %v13406_v50 = vld [vmem:[#allocation14 + $0x48] ss:$16 sps:$4 sm:$0xff]   ;;  %v13411_v53 = vld [vmem:[#allocation14 + $0x24] ss:$16 sps:$4 sm:$0xff]  }
 0x4dd   :  { %4003 = vmatprep.subr.bf16.mxu0 %v13375_v32  ;;  %4044 = vmatprep.subr.bf16.mxu1 %v13378_v44  ;;  %v13412_v32 = vld [vmem:[#allocation14 + $0x28] ss:$16 sps:$4 sm:$0xff]   ;;  %v13417_v44 = vld [vmem:[#allocation14 + $0x4] ss:$16 sps:$4 sm:$0xff]  }
 0x4df   :  { %3511 = vmatmul.mubr.bf16.vlgmr.msra.gmra.mxu0 %v3285_v54  ;;  %3552 = vmatmul.mubr.bf16.vlgmr.msra.gmra.mxu1 %v3285_v54  ;;  %v13414_v54 = vld [vmem:[#allocation14 + $0x2c] ss:$16 sps:$4 sm:$0xff]  }
 0x4e0   :  { %4035 = vmatprep.mubr.bf16.mxu0 %v3596_v29  ;;  %4076 = vmatprep.mubr.bf16.mxu1 %v3596_v29  ;;  %v13409_v29 = vld [vmem:[#allocation14 + $0x20] ss:$16 sps:$4 sm:$0xff]  }
 0x4e1   :  { %4004 = vmatpush1.bf16.msra.mxu0 %v13373_v6  ;;  %4045 = vmatpush1.bf16.msra.mxu1 %v13376_v25  ;;  %v13420_v6 = vld [vmem:[#allocation14 + $0xc] ss:$16 sps:$4 sm:$0xff]   ;;  %v13415_v25 = vld [vmem:[#allocation14] ss:$16 sps:$4 sm:$0xff]  }
 0x4e2   :  { %4005 = vmatprep.subr.bf16.mxu0 %v13381_v36  ;;  %4046 = vmatprep.subr.bf16.mxu1 %v13384_v33  ;;  %v13418_v36 = vld [vmem:[#allocation14 + $0x8] ss:$16 sps:$4 sm:$0xff]   ;;  %v13423_v33 = vld [vmem:[#allocation14 + $0x1e4] ss:$16 sps:$4 sm:$0xff]  }
 0x4e5   :  { %4006 = vmatpush1.bf16.msra.mxu0 %v13379_v12  ;;  %4047 = vmatpush1.bf16.msra.mxu1 %v13382_v16  ;;  %v13426_v12 = vld [vmem:[#allocation14 + $0x1ec] ss:$16 sps:$4 sm:$0xff]   ;;  %v13421_v16 = vld [vmem:[#allocation14 + $0x1e0] ss:$16 sps:$4 sm:$0xff]  }
 0x4e6   :  { %4007 = vmatprep.subr.bf16.mxu0 %v13387_v57  ;;  %4048 = vmatprep.subr.bf16.mxu1 %v13390_v58  ;;  %v13424_v57 = vld [vmem:[#allocation14 + $0x1e8] ss:$16 sps:$4 sm:$0xff]   ;;  %v13429_v58 = vld [vmem:[#allocation14 + $0x1c4] ss:$16 sps:$4 sm:$0xff]  }
 0x4e9   :  { %4008 = vmatpush1.bf16.msra.mxu0 %v13385_v45  ;;  %4049 = vmatpush1.bf16.msra.mxu1 %v13388_v17  ;;  %v13432_v45 = vld [vmem:[#allocation14 + $0x1cc] ss:$16 sps:$4 sm:$0xff]   ;;  %v13427_v17 = vld [vmem:[#allocation14 + $0x1c0] ss:$16 sps:$4 sm:$0xff]  }
 0x4ea   :  { %4009 = vmatprep.subr.bf16.mxu0 %v13393_v28  ;;  %4050 = vmatprep.subr.bf16.mxu1 %v13396_v23  ;;  %v13430_v28 = vld [vmem:[#allocation14 + $0x1c8] ss:$16 sps:$4 sm:$0xff]   ;;  %v13435_v23 = vld [vmem:[#allocation14 + $0x1a4] ss:$16 sps:$4 sm:$0xff]  }
 0x4ed   :  { %4010 = vmatpush1.bf16.msra.mxu0 %v13391_v19  ;;  %4051 = vmatpush1.bf16.msra.mxu1 %v13394_v62  ;;  %v13438_v19 = vld [vmem:[#allocation14 + $0x1ac] ss:$16 sps:$4 sm:$0xff]   ;;  %v13433_v62 = vld [vmem:[#allocation14 + $0x1a0] ss:$16 sps:$4 sm:$0xff]  }
 0x4ee   :  { %4011 = vmatprep.subr.bf16.mxu0 %v13399_v2  ;;  %4052 = vmatprep.subr.bf16.mxu1 %v13402_v7  ;;  %v13436_v2 = vld [vmem:[#allocation14 + $0x1a8] ss:$16 sps:$4 sm:$0xff]   ;;  %v13441_v7 = vld [vmem:[#allocation14 + $0x184] ss:$16 sps:$4 sm:$0xff]  }
 0x4f1   :  { %4012 = vmatpush1.bf16.msra.mxu0 %v13397_v13  ;;  %4053 = vmatpush1.bf16.msra.mxu1 %v13400_v41  ;;  %v13444_v13 = vld [vmem:[#allocation14 + $0x18c] ss:$16 sps:$4 sm:$0xff]   ;;  %v13439_v41 = vld [vmem:[#allocation14 + $0x180] ss:$16 sps:$4 sm:$0xff]  }
 0x4f2   :  { %4013 = vmatprep.subr.bf16.mxu0 %v13405_v40  ;;  %4054 = vmatprep.subr.bf16.mxu1 %v13408_v46  ;;  %v13442_v40 = vld [vmem:[#allocation14 + $0x188] ss:$16 sps:$4 sm:$0xff]   ;;  %v13445_v46 = vld [vmem:[#allocation14 + $0x160] ss:$16 sps:$4 sm:$0xff]  }
 0x4f5   :  { %4014 = vmatpush1.bf16.msra.mxu0 %v13403_v15  ;;  %4055 = vmatpush1.bf16.msra.mxu1 %v13406_v50  ;;  %v13447_v15 = vld [vmem:[#allocation14 + $0x164] ss:$16 sps:$4 sm:$0xff]   ;;  %v13448_v50 = vld [vmem:[#allocation14 + $0x168] ss:$16 sps:$4 sm:$0xff]  }
 0x4f6   :  { %4015 = vmatprep.subr.bf16.mxu0 %v13411_v53  ;;  %4056 = vmatprep.subr.bf16.mxu1 %v13414_v54  ;;  %v13450_v53 = vld [vmem:[#allocation14 + $0x16c] ss:$16 sps:$4 sm:$0xff]   ;;  %v13453_v54 = vld [vmem:[#allocation14 + $0x144] ss:$16 sps:$4 sm:$0xff]  }
 0x4f9   :  { %4016 = vmatpush1.bf16.msra.mxu0 %v13409_v29  ;;  %4057 = vmatpush1.bf16.msra.mxu1 %v13412_v32  ;;  %v13456_v29 = vld [vmem:[#allocation14 + $0x14c] ss:$16 sps:$4 sm:$0xff]   ;;  %v13451_v32 = vld [vmem:[#allocation14 + $0x140] ss:$16 sps:$4 sm:$0xff]  }
 0x4fa   :  { %4017 = vmatprep.subr.bf16.mxu0 %v13417_v44  ;;  %4058 = vmatprep.subr.bf16.mxu1 %v13420_v6  ;;  %v13454_v44 = vld [vmem:[#allocation14 + $0x148] ss:$16 sps:$4 sm:$0xff]   ;;  %v13459_v6 = vld [vmem:[#allocation14 + $0x124] ss:$16 sps:$4 sm:$0xff]  }
 0x4fd   :  { %4018 = vmatpush1.bf16.msra.mxu0 %v13415_v25  ;;  %4059 = vmatpush1.bf16.msra.mxu1 %v13418_v36  ;;  %v13462_v25 = vld [vmem:[#allocation14 + $0x12c] ss:$16 sps:$4 sm:$0xff]   ;;  %v13457_v36 = vld [vmem:[#allocation14 + $0x120] ss:$16 sps:$4 sm:$0xff]  }
 0x4fe   :  { %4019 = vmatprep.subr.bf16.mxu0 %v13423_v33  ;;  %4060 = vmatprep.subr.bf16.mxu1 %v13426_v12  ;;  %v13460_v33 = vld [vmem:[#allocation14 + $0x128] ss:$16 sps:$4 sm:$0xff]   ;;  %v13465_v12 = vld [vmem:[#allocation14 + $0x104] ss:$16 sps:$4 sm:$0xff]  }
 0x501   :  { %4020 = vmatpush2.bf16.msra.mxu0 %v13421_v16  ;;  %4061 = vmatpush2.bf16.msra.mxu1 %v13424_v57  ;;  %v13468_v16 = vld [vmem:[#allocation14 + $0x10c] ss:$16 sps:$4 sm:$0xff]   ;;  %v13463_v57 = vld [vmem:[#allocation14 + $0x100] ss:$16 sps:$4 sm:$0xff]  }
 0x502   :  { %4021 = vmatprep.subr.bf16.mxu0 %v13429_v58  ;;  %4062 = vmatprep.subr.bf16.mxu1 %v13432_v45  ;;  %v13466_v58 = vld [vmem:[#allocation14 + $0x108] ss:$16 sps:$4 sm:$0xff]   ;;  %v4941_v45 = vsel %vm4632_vm7, 1, %v15358_v0 }
 0x503   :  { %4943 = vperm.xlu1 %12844, %v4941_v45  }
 0x505   :  { %4022 = vmatpush2.bf16.msra.mxu0 %v13427_v17  ;;  %4063 = vmatpush2.bf16.msra.mxu1 %v13430_v28  ;;  %v13471_v17 = vld [vmem:[#allocation14 + $0x2e4] ss:$16 sps:$4 sm:$0xff]   ;;  %v13474_v28 = vld [vmem:[#allocation14 + $0x2ec] ss:$16 sps:$4 sm:$0xff]  }
 0x506   :  { %4023 = vmatprep.subr.bf16.mxu0 %v13435_v23  ;;  %4064 = vmatprep.subr.bf16.mxu1 %v13438_v19  ;;  %v7647_v23 = vsel %vm7338_vm8, 1, %v15358_v0  ;;  %v10353_v19 = vsel %vm10044_vm9, 1, %v15358_v0 }
 0x507   :  { %7649 = vperm.xlu1 %12844, %v7647_v23  }
 0x509   :  { %4024 = vmatpush2.bf16.msra.mxu0 %v13433_v62  ;;  %4065 = vmatpush2.bf16.msra.mxu1 %v13436_v2  ;;  %v11739_v62 = vld [vmem:[%s16165_s8 + $0x4] sm:$0xf] }
 0x50a   :  { %4025 = vmatprep.subr.bf16.mxu0 %v13441_v7  ;;  %4066 = vmatprep.subr.bf16.mxu1 %v13444_v13  ;;  %v2829_v2 = vrot.slane %v11739_v62, %v15477_v4  ;;  %v2833_v7 = vrot.slane %v11739_v62, %v15485_v8 }
 0x50b   :  { %10355 = vperm.xlu1 %12844, %v10353_v19  }
 0x50d   :  { %4026 = vmatpush2.bf16.msra.mxu0 %v13439_v41  ;;  %4067 = vmatpush2.bf16.msra.mxu1 %v13442_v40 }
 0x50e   :  { %4027 = vmatprep.subr.bf16.mxu0 %v13447_v15  ;;  %4068 = vmatprep.subr.bf16.mxu1 %v13450_v53 }
 0x511   :  { %4028 = vmatpush2.bf16.msra.mxu0 %v13445_v46  ;;  %4069 = vmatpush2.bf16.msra.mxu1 %v13448_v50 }
 0x512   :  { %4029 = vmatprep.subr.bf16.mxu0 %v13453_v54  ;;  %4070 = vmatprep.subr.bf16.mxu1 %v13456_v29 }
 0x515   :  { %4030 = vmatpush2.bf16.msra.mxu0 %v13451_v32  ;;  %4071 = vmatpush2.bf16.msra.mxu1 %v13454_v44 }
 0x516   :  { %4031 = vmatprep.subr.bf16.mxu0 %v13459_v6  ;;  %4072 = vmatprep.subr.bf16.mxu1 %v13462_v25  ;;  %v2841_v6 = vrot.slane %v11739_v62, %v15487_v9 }
 0x519   :  { %4032 = vmatpush2.bf16.msra.mxu0 %v13457_v36  ;;  %4073 = vmatpush2.bf16.msra.mxu1 %v13460_v33  ;;  %v2837_v36 = vrot.slane %v11739_v62, %v15479_v5 }
 0x51a   :  { %4033 = vmatprep.subr.bf16.mxu0 %v13465_v12  ;;  %4074 = vmatprep.subr.bf16.mxu1 %v13468_v16 }
 0x51d   :  { %4034 = vmatpush2.bf16.msra.mxu0 %v13463_v57  ;;  %4075 = vmatpush2.bf16.msra.mxu1 %v13466_v58 }
 0x51e   :  { %4519 = vmatprep.subr.bf16.mxu0 %v13471_v17  ;;  %4560 = vmatprep.subr.bf16.mxu1 %v13474_v28 }
 0x57f   :  { %v3200_v13 = vpop.f32.mrf.mxu0  ;;  %v3241_v41 = vpop.f32.mrf.mxu1 }
 0x580   :  { %v3201_v40 = vadd.f32 %v3200_v13, %v2829_v2  ;;  %v3242_v16 = vadd.f32 %v3241_v41, %v2837_v36 }
 0x581   :  { %v3202_v46 = vpop.f32.mrf.mxu0  ;;  %v3243_v15 = vpop.f32.mrf.mxu1 }
 0x582   :  { %v11804_v50 = vmul.f32 -1.442695, %v3201_v40  ;;  %v3203_v61 = vadd.f32 %v3202_v46, %v2833_v7  ;;  %v3244_v25 = vadd.f32 %v3243_v15, %v2841_v6 }
 0x583   :  { %v3204_v53 = vpop.f32.mrf.mxu0  ;;  %v3245_v54 = vpop.f32.mrf.mxu1 }
 0x584   :  { %14845 = vpow2.f32 %v11804_v50  ;;  %v11805_v29 = vmul.f32 -1.442695, %v3203_v61  ;;  %v11806_v33 = vmul.f32 -1.442695, %v3244_v25 }
 0x585   :  { %v3205_v32 = vpop.f32.mrf.mxu0  ;;  %v3246_v44 = vpop.f32.mrf.mxu1 }
 0x586   :  { %14847 = vpow2.f32 %v11805_v29 }
 0x587   :  { %14849 = vpow2.f32 %v11806_v33 }
 0x591   :  { %v14846_v12 = vpop.eup %14845 }
 0x592   :  { %v3251_v57 = vadd.f32 1.0, %v14846_v12 }
 0x593   :  { %v14848_v58 = vpop.eup %14847 }
 0x594   :  { %14851 = vrcp.f32 %v3251_v57  ;;  %v3257_v45 = vadd.f32 1.0, %v14848_v58  ;;  %v14850_v23 = vpop.eup %14849 }
 0x595   :  { %14853 = vtanh.f32 %v3242_v16  ;;  %v3264_v15 = vadd.f32 1.0, %v14850_v23 }
 0x596   :  { %14855 = vrcp.f32 %v3257_v45 }
 0x59f   :  { %v3512_v17 = vpop.f32.mrf.mxu0  ;;  %v3553_v28 = vpop.f32.mrf.mxu1 }
 0x5a0   :  { %v3560_v19 = vadd.f32 %v3512_v17, %v15511_v26  ;;  %v3562_v25 = vadd.f32 %v3553_v28, %v15514_v27  ;;  %v15722_v28 = vpop.permute.xlu1 %3590 }
 0x5a1   :  { %v14852_v2 = vpop.eup %14851  ;;  %v3514_v7 = vpop.f32.mrf.mxu0  ;;  %vm3592_vm10 = vcmp.eq.s32.totalorder %v15722_v28, 1  ;;  %v13718_v28 = vld [vmem:[#allocation14 + $0x2c8] ss:$16 sps:$4 sm:$0xff]  }
 0x5a2   :  { %v3555_v13 = vpop.f32.mrf.mxu1  ;;  %v14854_v40 = vpop.eup %14853  ;;  %v11839_v62 = vmul.f32 -1.442695, %v3560_v19  ;;  %v3561_v46 = vadd.f32 %v3514_v7, %v15516_v30 }
 0x5a3   :  { %v14856_v41 = vpop.eup %14855  ;;  %v3516_v50 = vpop.f32.mrf.mxu0  ;;  %v3268_v53 = vmul.f32 %v14854_v40, %v14852_v2  ;;  %v3563_v30 = vadd.f32 %v3555_v13, %v15519_v31 }
 0x5a4   :  { %v3557_v61 = vpop.f32.mrf.mxu1  ;;  %v3267_v54 = vmul.f32 %v14856_v41, %v15630_v18  ;;  %14857 = vpow2.f32 %v11839_v62  ;;  %v11840_v29 = vmul.f32 -1.442695, %v3561_v46 }
 0x5a5   :  { %v3517_v32 = vpop.f32.mrf.mxu0  ;;  %v11841_v36 = vmul.f32 -1.442695, %v3563_v30  ;;  %v13481_v30 = vld [vmem:[#allocation14 + $0x2a0] ss:$16 sps:$4 sm:$0xff]  }
 0x5a6   :  { %v3558_v44 = vpop.f32.mrf.mxu1  ;;  %v3269_v6 = vadd.f32 %v3268_v53, %v3267_v54  ;;  %14859 = vpow2.f32 %v11840_v29  ;;  %v13469_v53 = vld [vmem:[#allocation14 + $0x2e0] ss:$16 sps:$4 sm:$0xff]   ;;  %v13472_v54 = vld [vmem:[#allocation14 + $0x2e8] ss:$16 sps:$4 sm:$0xff]   ;;  %v13477_v32 = vld [vmem:[#allocation14 + $0x2c4] ss:$16 sps:$4 sm:$0xff]  }
 0x5a7   :  { %14861 = vrcp.f32 %v3264_v15  ;;  %v13475_v44 = vld [vmem:[#allocation14 + $0x2c0] ss:$16 sps:$4 sm:$0xff]  }
 0x5a8   :  { %14863 = vtanh.f32 %v3269_v6  ;;  %v15716_v26 = vsel %vm2239_vm5, %v3269_v6, %v15630_v18  ;;  %v13486_v6 = vld [vmem:[#allocation14 + $0x2ac] ss:$16 sps:$4 sm:$0xff]  }
 0x5a9   :  { %14865 = vtanh.f32 %v3562_v25  ;;  %v13484_v25 = vld [vmem:[#allocation14 + $0x2a8] ss:$16 sps:$4 sm:$0xff]  }
 0x5aa   :  { %14867 = vpow2.f32 %v11841_v36  ;;  %v13489_v36 = vld [vmem:[#allocation14 + $0x284] ss:$16 sps:$4 sm:$0xff]  }
 0x5b1   :  { %v14858_v33 = vpop.eup %14857 }
 0x5b2   :  { %v3567_v12 = vadd.f32 1.0, %v14858_v33  ;;  %v13492_v33 = vld [vmem:[#allocation14 + $0x28c] ss:$16 sps:$4 sm:$0xff]  }
 0x5b3   :  { %v14860_v16 = vpop.eup %14859 }
 0x5b4   :  { %v14862_v57 = vpop.eup %14861  ;;  %14869 = vrcp.f32 %v3567_v12  ;;  %v3573_v58 = vadd.f32 1.0, %v14860_v16  ;;  %v13487_v12 = vld [vmem:[#allocation14 + $0x280] ss:$16 sps:$4 sm:$0xff]   ;;  %v13490_v16 = vld [vmem:[#allocation14 + $0x288] ss:$16 sps:$4 sm:$0xff]  }
 0x5b5   :  { %v14864_v45 = vpop.eup %14863 }
 0x5b6   :  { %14871 = vrcp.f32 %v3573_v58  ;;  %v3271_v17 = vmul.f32 %v14864_v45, %v14862_v57  ;;  %v14866_v23 = vpop.eup %14865  ;;  %v13495_v57 = vld [vmem:[#allocation14 + $0x264] ss:$16 sps:$4 sm:$0xff]   ;;  %v13498_v58 = vld [vmem:[#allocation14 + $0x26c] ss:$16 sps:$4 sm:$0xff]   ;;  %v13493_v45 = vld [vmem:[#allocation14 + $0x260] ss:$16 sps:$4 sm:$0xff]  }
 0x5b7   :  { %v14868_v31 = vpop.eup %14867 }
 0x5b8   :  { %v3274_v18 = vsel %vm2239_vm5, %v3271_v17, 0.0  ;;  %v3580_v7 = vadd.f32 1.0, %v14868_v31  ;;  %v15736_v50 = vsel %vm2239_vm5, %v3271_v17, %v15649_v49  ;;  %v13483_v49 = vld [vmem:[#allocation14 + $0x2a4] ss:$16 sps:$4 sm:$0xff]   ;;  %v13496_v17 = vld [vmem:[#allocation14 + $0x268] ss:$16 sps:$4 sm:$0xff]  }
 0x5b9   :  { %3276 = vst [vmem:[#allocation16 + $0x8] sm:$0xff] %v3274_v18  ;;  %v4112_v29 = vpack.c.bf16 %v15736_v50, %v15736_v50  ;;  %v13501_v18 = vld [vmem:[#allocation14 + $0x244] ss:$16 sps:$4 sm:$0xff]   ;;  %v13499_v31 = vld [vmem:[#allocation14 + $0x240] ss:$16 sps:$4 sm:$0xff]  }
 0x5ba   :  { %14873 = vrcp.f32 %v3580_v7  ;;  %v13505_v7 = vld [vmem:[#allocation14 + $0x220] ss:$16 sps:$4 sm:$0xff]  }
 0x5c1   :  { %v14870_v19 = vpop.eup %14869 }
 0x5c2   :  { %v3584_v27 = vmul.f32 %v14870_v19, %v14866_v23  ;;  %v13504_v23 = vld [vmem:[#allocation14 + $0x24c] ss:$16 sps:$4 sm:$0xff]   ;;  %v13502_v19 = vld [vmem:[#allocation14 + $0x248] ss:$16 sps:$4 sm:$0xff]  }
 0x5c3   :  { %v14872_v2 = vpop.eup %14871 }
 0x5c4   :  { %v3583_v13 = vmul.f32 %v14872_v2, %v15643_v37  ;;  %v13510_v2 = vld [vmem:[#allocation14 + $0x22c] ss:$16 sps:$4 sm:$0xff]  }
 0x5c6   :  { %v3585_v40 = vadd.f32 %v3584_v27, %v3583_v13  ;;  %v13507_v27 = vld [vmem:[#allocation14 + $0x224] ss:$16 sps:$4 sm:$0xff]   ;;  %v13508_v13 = vld [vmem:[#allocation14 + $0x228] ss:$16 sps:$4 sm:$0xff]  }
 0x5c7   :  { %v14874_v46 = vpop.eup %14873 }
 0x5c8   :  { %14875 = vtanh.f32 %v3585_v40  ;;  %v15729_v62 = vsel %vm3592_vm10, %v3585_v40, %v15643_v37  ;;  %v13480_v37 = vld [vmem:[#allocation14 + $0x2cc] ss:$16 sps:$4 sm:$0xff]   ;;  %v13513_v40 = vld [vmem:[#allocation14 + $0x204] ss:$16 sps:$4 sm:$0xff]  }
 0x5d5   :  { %v14876_v41 = vpop.eup %14875 }
 0x5d6   :  { %v15731_v15 = vmul.f32 %v14876_v41, %v14874_v46  ;;  %v13516_v46 = vld [vmem:[#allocation14 + $0x20c] ss:$16 sps:$4 sm:$0xff]   ;;  %v13511_v41 = vld [vmem:[#allocation14 + $0x200] ss:$16 sps:$4 sm:$0xff]  }
 0x5d8   :  { %v3595_v61 = vpack.c.bf16 %v15731_v15, %v15731_v15 }
 0x5da   :  { %4036 = vmatmul.mubr.bf16.vlgmr.msra.gmra.mxu0 %v3595_v61  ;;  %4077 = vmatmul.mubr.bf16.vlgmr.msra.gmra.mxu1 %v3595_v61  ;;  %v13514_v61 = vld [vmem:[#allocation14 + $0x208] ss:$16 sps:$4 sm:$0xff]  }
 0x5db   :  { %4551 = vmatprep.mubr.bf16.mxu0 %v4112_v29  ;;  %4592 = vmatprep.mubr.bf16.mxu1 %v4112_v29  ;;  %v13517_v29 = vld [vmem:[#allocation14 + $0x3e0] ss:$16 sps:$4 sm:$0xff]  }
 0x5dc   :  { %4520 = vmatpush1.bf16.msra.mxu0 %v13469_v53  ;;  %4561 = vmatpush1.bf16.msra.mxu1 %v13472_v54  ;;  %v13519_v53 = vld [vmem:[#allocation14 + $0x3e4] ss:$16 sps:$4 sm:$0xff]   ;;  %v13522_v54 = vld [vmem:[#allocation14 + $0x3ec] ss:$16 sps:$4 sm:$0xff]  }
 0x5dd   :  { %4521 = vmatprep.subr.bf16.mxu0 %v13477_v32  ;;  %4562 = vmatprep.subr.bf16.mxu1 %v13480_v37  ;;  %v13520_v32 = vld [vmem:[#allocation14 + $0x3e8] ss:$16 sps:$4 sm:$0xff]   ;;  %v13525_v37 = vld [vmem:[#allocation14 + $0x3c4] ss:$16 sps:$4 sm:$0xff]  }
 0x5e0   :  { %4522 = vmatpush1.bf16.msra.mxu0 %v13475_v44  ;;  %4563 = vmatpush1.bf16.msra.mxu1 %v13478_v11  ;;  %v13528_v44 = vld [vmem:[#allocation14 + $0x3cc] ss:$16 sps:$4 sm:$0xff]   ;;  %v13523_v11 = vld [vmem:[#allocation14 + $0x3c0] ss:$16 sps:$4 sm:$0xff]  }
 0x5e1   :  { %4523 = vmatprep.subr.bf16.mxu0 %v13483_v49  ;;  %4564 = vmatprep.subr.bf16.mxu1 %v13486_v6  ;;  %v13526_v49 = vld [vmem:[#allocation14 + $0x3c8] ss:$16 sps:$4 sm:$0xff]   ;;  %v13531_v6 = vld [vmem:[#allocation14 + $0x3a4] ss:$16 sps:$4 sm:$0xff]  }
 0x5e4   :  { %4524 = vmatpush1.bf16.msra.mxu0 %v13481_v30  ;;  %4565 = vmatpush1.bf16.msra.mxu1 %v13484_v25  ;;  %v13534_v30 = vld [vmem:[#allocation14 + $0x3ac] ss:$16 sps:$4 sm:$0xff]   ;;  %v13529_v25 = vld [vmem:[#allocation14 + $0x3a0] ss:$16 sps:$4 sm:$0xff]  }
 0x5e5   :  { %4525 = vmatprep.subr.bf16.mxu0 %v13489_v36  ;;  %4566 = vmatprep.subr.bf16.mxu1 %v13492_v33  ;;  %v13532_v36 = vld [vmem:[#allocation14 + $0x3a8] ss:$16 sps:$4 sm:$0xff]   ;;  %v13537_v33 = vld [vmem:[#allocation14 + $0x384] ss:$16 sps:$4 sm:$0xff]  }
 0x5e8   :  { %4526 = vmatpush1.bf16.msra.mxu0 %v13487_v12  ;;  %4567 = vmatpush1.bf16.msra.mxu1 %v13490_v16  ;;  %v13540_v12 = vld [vmem:[#allocation14 + $0x38c] ss:$16 sps:$4 sm:$0xff]   ;;  %v13535_v16 = vld [vmem:[#allocation14 + $0x380] ss:$16 sps:$4 sm:$0xff]  }
 0x5e9   :  { %4527 = vmatprep.subr.bf16.mxu0 %v13495_v57  ;;  %4568 = vmatprep.subr.bf16.mxu1 %v13498_v58  ;;  %v13538_v57 = vld [vmem:[#allocation14 + $0x388] ss:$16 sps:$4 sm:$0xff]   ;;  %v13543_v58 = vld [vmem:[#allocation14 + $0x364] ss:$16 sps:$4 sm:$0xff]  }
 0x5ec   :  { %4528 = vmatpush1.bf16.msra.mxu0 %v13493_v45  ;;  %4569 = vmatpush1.bf16.msra.mxu1 %v13496_v17  ;;  %v13541_v45 = vld [vmem:[#allocation14 + $0x360] ss:$16 sps:$4 sm:$0xff]   ;;  %v13544_v17 = vld [vmem:[#allocation14 + $0x368] ss:$16 sps:$4 sm:$0xff]  }
 0x5ed   :  { %4529 = vmatprep.subr.bf16.mxu0 %v13501_v18  ;;  %4570 = vmatprep.subr.bf16.mxu1 %v13504_v23  ;;  %v13546_v18 = vld [vmem:[#allocation14 + $0x36c] ss:$16 sps:$4 sm:$0xff]   ;;  %v13549_v23 = vld [vmem:[#allocation14 + $0x344] ss:$16 sps:$4 sm:$0xff]  }
 0x5f0   :  { %4530 = vmatpush1.bf16.msra.mxu0 %v13499_v31  ;;  %4571 = vmatpush1.bf16.msra.mxu1 %v13502_v19  ;;  %v13552_v31 = vld [vmem:[#allocation14 + $0x34c] ss:$16 sps:$4 sm:$0xff]   ;;  %v13547_v19 = vld [vmem:[#allocation14 + $0x340] ss:$16 sps:$4 sm:$0xff]  }
 0x5f1   :  { %4531 = vmatprep.subr.bf16.mxu0 %v13507_v27  ;;  %4572 = vmatprep.subr.bf16.mxu1 %v13510_v2  ;;  %v13550_v27 = vld [vmem:[#allocation14 + $0x348] ss:$16 sps:$4 sm:$0xff]   ;;  %v13555_v2 = vld [vmem:[#allocation14 + $0x324] ss:$16 sps:$4 sm:$0xff]  }
 0x5f4   :  { %4532 = vmatpush1.bf16.msra.mxu0 %v13505_v7  ;;  %4573 = vmatpush1.bf16.msra.mxu1 %v13508_v13  ;;  %v13558_v7 = vld [vmem:[#allocation14 + $0x32c] ss:$16 sps:$4 sm:$0xff]   ;;  %v13553_v13 = vld [vmem:[#allocation14 + $0x320] ss:$16 sps:$4 sm:$0xff]  }
 0x5f5   :  { %4533 = vmatprep.subr.bf16.mxu0 %v13513_v40  ;;  %4574 = vmatprep.subr.bf16.mxu1 %v13516_v46  ;;  %v13556_v40 = vld [vmem:[#allocation14 + $0x328] ss:$16 sps:$4 sm:$0xff]   ;;  %v13561_v46 = vld [vmem:[#allocation14 + $0x304] ss:$16 sps:$4 sm:$0xff]  }
 0x5f8   :  { %4534 = vmatpush1.bf16.msra.mxu0 %v13511_v41  ;;  %4575 = vmatpush1.bf16.msra.mxu1 %v13514_v61  ;;  %v13564_v41 = vld [vmem:[#allocation14 + $0x30c] ss:$16 sps:$4 sm:$0xff]   ;;  %v13559_v61 = vld [vmem:[#allocation14 + $0x300] ss:$16 sps:$4 sm:$0xff]  }
 0x5f9   :  { %4535 = vmatprep.subr.bf16.mxu0 %v13519_v53  ;;  %4576 = vmatprep.subr.bf16.mxu1 %v13522_v54  ;;  %v13562_v53 = vld [vmem:[#allocation14 + $0x308] ss:$16 sps:$4 sm:$0xff]   ;;  %v13567_v54 = vld [vmem:[#allocation13 + $0xe4] ss:$16 sps:$4 sm:$0xff]  }
 0x5fc   :  { %4536 = vmatpush2.bf16.msra.mxu0 %v13517_v29  ;;  %4577 = vmatpush2.bf16.msra.mxu1 %v13520_v32  ;;  %v13570_v29 = vld [vmem:[#allocation13 + $0xec] ss:$16 sps:$4 sm:$0xff]   ;;  %v3661_v32 = vld [vmem:[%s16165_s8] sm:$0xf] }
 0x5fd   :  { %4537 = vmatprep.subr.bf16.mxu0 %v13525_v37  ;;  %4578 = vmatprep.subr.bf16.mxu1 %v13528_v44  ;;  %v3666_v37 = vrot.slane %v3661_v32, %v15477_v4  ;;  %v3670_v44 = vrot.slane %v3661_v32, %v15485_v8 }
 0x600   :  { %4538 = vmatpush2.bf16.msra.mxu0 %v13523_v11  ;;  %4579 = vmatpush2.bf16.msra.mxu1 %v13526_v49 }
 0x601   :  { %4539 = vmatprep.subr.bf16.mxu0 %v13531_v6  ;;  %4580 = vmatprep.subr.bf16.mxu1 %v13534_v30 }
 0x604   :  { %4540 = vmatpush2.bf16.msra.mxu0 %v13529_v25  ;;  %4581 = vmatpush2.bf16.msra.mxu1 %v13532_v36 }
 0x605   :  { %4541 = vmatprep.subr.bf16.mxu0 %v13537_v33  ;;  %4582 = vmatprep.subr.bf16.mxu1 %v13540_v12 }
 0x608   :  { %4542 = vmatpush2.bf16.msra.mxu0 %v13535_v16  ;;  %4583 = vmatpush2.bf16.msra.mxu1 %v13538_v57 }
 0x609   :  { %4543 = vmatprep.subr.bf16.mxu0 %v13543_v58  ;;  %4584 = vmatprep.subr.bf16.mxu1 %v13546_v18 }
 0x60c   :  { %4544 = vmatpush2.bf16.msra.mxu0 %v13541_v45  ;;  %4585 = vmatpush2.bf16.msra.mxu1 %v13544_v17  ;;  %v3678_v17 = vrot.slane %v3661_v32, %v15487_v9 }
 0x60d   :  { %4545 = vmatprep.subr.bf16.mxu0 %v13549_v23  ;;  %4586 = vmatprep.subr.bf16.mxu1 %v13552_v31  ;;  %v3674_v23 = vrot.slane %v3661_v32, %v15479_v5 }
 0x610   :  { %4546 = vmatpush2.bf16.msra.mxu0 %v13547_v19  ;;  %4587 = vmatpush2.bf16.msra.mxu1 %v13550_v27 }
 0x611   :  { %4547 = vmatprep.subr.bf16.mxu0 %v13555_v2  ;;  %4588 = vmatprep.subr.bf16.mxu1 %v13558_v7 }
 0x614   :  { %4548 = vmatpush2.bf16.msra.mxu0 %v13553_v13  ;;  %4589 = vmatpush2.bf16.msra.mxu1 %v13556_v40 }
 0x615   :  { %4549 = vmatprep.subr.bf16.mxu0 %v13561_v46  ;;  %4590 = vmatprep.subr.bf16.mxu1 %v13564_v41 }
 0x618   :  { %4550 = vmatpush2.bf16.msra.mxu0 %v13559_v61  ;;  %4591 = vmatpush2.bf16.msra.mxu1 %v13562_v53 }
 0x619   :  { %4831 = vmatprep.subr.bf16.mxu0 %v13567_v54  ;;  %4872 = vmatprep.subr.bf16.mxu1 %v13570_v29 }
 0x69a   :  { %v4037_v11 = vpop.f32.mrf.mxu0  ;;  %v4078_v49 = vpop.f32.mrf.mxu1 }
 0x69b   :  { %v4038_v6 = vadd.f32 %v4037_v11, %v3666_v37  ;;  %v4079_v27 = vadd.f32 %v4078_v49, %v3674_v23  ;;  %v13583_v23 = vld [vmem:[#allocation13 + $0x80] ss:$16 sps:$4 sm:$0xff]  }
 0x69c   :  { %v4039_v30 = vpop.f32.mrf.mxu0  ;;  %v4080_v25 = vpop.f32.mrf.mxu1 }
 0x69d   :  { %v11906_v36 = vmul.f32 -1.442695, %v4038_v6  ;;  %v4040_v33 = vadd.f32 %v4039_v30, %v3670_v44  ;;  %v4081_v18 = vadd.f32 %v4080_v25, %v3678_v17  ;;  %v13565_v6 = vld [vmem:[#allocation13 + $0xe0] ss:$16 sps:$4 sm:$0xff]   ;;  %v13568_v30 = vld [vmem:[#allocation13 + $0xe8] ss:$16 sps:$4 sm:$0xff]  }
 0x69e   :  { %v4041_v12 = vpop.f32.mrf.mxu0  ;;  %v4082_v16 = vpop.f32.mrf.mxu1  ;;  %v13585_v17 = vld [vmem:[#allocation13 + $0x84] ss:$16 sps:$4 sm:$0xff]  }
 0x69f   :  { %14877 = vpow2.f32 %v11906_v36  ;;  %v11907_v57 = vmul.f32 -1.442695, %v4040_v33  ;;  %v11908_v31 = vmul.f32 -1.442695, %v4081_v18  ;;  %v13573_v36 = vld [vmem:[#allocation13 + $0xc4] ss:$16 sps:$4 sm:$0xff]  }
 0x6a0   :  { %v4042_v58 = vpop.f32.mrf.mxu0  ;;  %v4083_v45 = vpop.f32.mrf.mxu1  ;;  %v13576_v33 = vld [vmem:[#allocation13 + $0xcc] ss:$16 sps:$4 sm:$0xff]   ;;  %v13571_v12 = vld [vmem:[#allocation13 + $0xc0] ss:$16 sps:$4 sm:$0xff]   ;;  %v13574_v16 = vld [vmem:[#allocation13 + $0xc8] ss:$16 sps:$4 sm:$0xff]  }
 0x6a1   :  { %14879 = vpow2.f32 %v11907_v57  ;;  %v13582_v57 = vld [vmem:[#allocation13 + $0xac] ss:$16 sps:$4 sm:$0xff]   ;;  %v13577_v58 = vld [vmem:[#allocation13 + $0xa0] ss:$16 sps:$4 sm:$0xff]   ;;  %v13580_v45 = vld [vmem:[#allocation13 + $0xa8] ss:$16 sps:$4 sm:$0xff]  }
 0x6a2   :  { %14881 = vpow2.f32 %v11908_v31  ;;  %v13588_v18 = vld [vmem:[#allocation13 + $0x8c] ss:$16 sps:$4 sm:$0xff]   ;;  %v13586_v31 = vld [vmem:[#allocation13 + $0x88] ss:$16 sps:$4 sm:$0xff]  }
 0x6ac   :  { %v14878_v19 = vpop.eup %14877 }
 0x6ad   :  { %v4088_v2 = vadd.f32 1.0, %v14878_v19  ;;  %v13591_v19 = vld [vmem:[#allocation13 + $0x64] ss:$16 sps:$4 sm:$0xff]  }
 0x6ae   :  { %v14880_v7 = vpop.eup %14879 }
 0x6af   :  { %14883 = vrcp.f32 %v4088_v2  ;;  %v4094_v13 = vadd.f32 1.0, %v14880_v7  ;;  %v14882_v40 = vpop.eup %14881  ;;  %v13589_v2 = vld [vmem:[#allocation13 + $0x60] ss:$16 sps:$4 sm:$0xff]   ;;  %v13592_v7 = vld [vmem:[#allocation13 + $0x68] ss:$16 sps:$4 sm:$0xff]  }
 0x6b0   :  { %14885 = vtanh.f32 %v4079_v27  ;;  %v4101_v53 = vadd.f32 1.0, %v14882_v40  ;;  %v13594_v27 = vld [vmem:[#allocation13 + $0x6c] ss:$16 sps:$4 sm:$0xff]  }
 0x6b1   :  { %14887 = vrcp.f32 %v4094_v13  ;;  %v13597_v13 = vld [vmem:[#allocation13 + $0x44] ss:$16 sps:$4 sm:$0xff]   ;;  %v13600_v40 = vld [vmem:[#allocation13 + $0x4c] ss:$16 sps:$4 sm:$0xff]  }
 0x6b2   :  { %14889 = vrcp.f32 %v4101_v53  ;;  %v13606_v53 = vld [vmem:[#allocation13 + $0x2c] ss:$16 sps:$4 sm:$0xff]  }
 0x6bc   :  { %v14884_v46 = vpop.eup %14883 }
 0x6bd   :  { %v14886_v41 = vpop.eup %14885 }
 0x6be   :  { %v14888_v61 = vpop.eup %14887  ;;  %v4105_v54 = vmul.f32 %v14886_v41, %v14884_v46  ;;  %v13595_v46 = vld [vmem:[#allocation13 + $0x40] ss:$16 sps:$4 sm:$0xff]   ;;  %v13598_v41 = vld [vmem:[#allocation13 + $0x48] ss:$16 sps:$4 sm:$0xff]  }
 0x6bf   :  { %v4104_v29 = vmul.f32 %v14888_v61, %v15673_v20  ;;  %v14890_v44 = vpop.eup %14889  ;;  %v13603_v61 = vld [vmem:[#allocation13 + $0x24] ss:$16 sps:$4 sm:$0xff]  }
 0x6c1   :  { %v4106_v37 = vadd.f32 %v4105_v54, %v4104_v29  ;;  %v13601_v54 = vld [vmem:[#allocation13 + $0x20] ss:$16 sps:$4 sm:$0xff]   ;;  %v13604_v29 = vld [vmem:[#allocation13 + $0x28] ss:$16 sps:$4 sm:$0xff]  }
 0x6c3   :  { %14891 = vtanh.f32 %v4106_v37  ;;  %v15753_v32 = vsel %vm3592_vm10, %v4106_v37, %v15673_v20  ;;  %v13579_v20 = vld [vmem:[#allocation13 + $0xa4] ss:$16 sps:$4 sm:$0xff]  }
 0x6c4   :  { %v13609_v37 = vld [vmem:[#allocation13 + $0x4] ss:$16 sps:$4 sm:$0xff]  }
 0x6d0   :  { %v14892_v11 = vpop.eup %14891 }
 0x6d1   :  { %v15755_v49 = vmul.f32 %v14892_v11, %v14890_v44  ;;  %v13612_v44 = vld [vmem:[#allocation13 + $0xc] ss:$16 sps:$4 sm:$0xff]   ;;  %v13607_v11 = vld [vmem:[#allocation13] ss:$16 sps:$4 sm:$0xff]  }
 0x6d3   :  { %v4111_v25 = vpack.c.bf16 %v15755_v49, %v15755_v49 }
 0x6d5   :  { %4552 = vmatmul.mubr.bf16.vlgmr.msra.gmra.mxu0 %v4111_v25  ;;  %4593 = vmatmul.mubr.bf16.vlgmr.msra.gmra.mxu1 %v4111_v25  ;;  %v15771_v25 = vsel %vm3592_vm10, %v15755_v49, %v15691_v10  ;;  %v13621_v10 = vld [vmem:[#allocation14 + $0xc4] ss:$16 sps:$4 sm:$0xff]   ;;  %v13624_v49 = vld [vmem:[#allocation14 + $0xcc] ss:$16 sps:$4 sm:$0xff]  }
 0x6d6   :  { %4832 = vmatpush1.bf16.msra.mxu0 %v13565_v6  ;;  %4873 = vmatpush1.bf16.msra.mxu1 %v13568_v30  ;;  %v13610_v6 = vld [vmem:[#allocation13 + $0x8] ss:$16 sps:$4 sm:$0xff]   ;;  %v15765_v30 = vsel %vm3592_vm10, %v15731_v15, %v15685_v22  ;;  %v13615_v22 = vld [vmem:[#allocation14 + $0xe4] ss:$16 sps:$4 sm:$0xff]   ;;  %v13618_v15 = vld [vmem:[#allocation14 + $0xec] ss:$16 sps:$4 sm:$0xff]  }
 0x6d7   :  { %4833 = vmatprep.subr.bf16.mxu0 %v13573_v36  ;;  %4874 = vmatprep.subr.bf16.mxu1 %v13576_v33  ;;  %v4638_v36 = vpack.c.bf16 %v15765_v30, %v15765_v30  ;;  %v4949_v33 = vpack.c.bf16 %v15771_v25, %v15771_v25 }
 0x6d8   :  { %4863 = vmatprep.mubr.bf16.mxu0 %v15358_v0  ;;  %4904 = vmatprep.mubr.bf16.mxu1 %v15358_v0 }
 0x6da   :  { %4834 = vmatpush1.bf16.msra.mxu0 %v13571_v12  ;;  %4875 = vmatpush1.bf16.msra.mxu1 %v13574_v16  ;;  %v13613_v12 = vld [vmem:[#allocation14 + $0xe0] ss:$16 sps:$4 sm:$0xff]   ;;  %v13616_v16 = vld [vmem:[#allocation14 + $0xe8] ss:$16 sps:$4 sm:$0xff]  }
 0x6db   :  { %4835 = vmatprep.subr.bf16.mxu0 %v13579_v20  ;;  %4876 = vmatprep.subr.bf16.mxu1 %v13582_v57  ;;  %v13619_v20 = vld [vmem:[#allocation14 + $0xc0] ss:$16 sps:$4 sm:$0xff]   ;;  %v13622_v57 = vld [vmem:[#allocation14 + $0xc8] ss:$16 sps:$4 sm:$0xff]  }
 0x6de   :  { %4836 = vmatpush1.bf16.msra.mxu0 %v13577_v58  ;;  %4877 = vmatpush1.bf16.msra.mxu1 %v13580_v45  ;;  %v13627_v58 = vld [vmem:[#allocation14 + $0xa4] ss:$16 sps:$4 sm:$0xff]   ;;  %v13630_v45 = vld [vmem:[#allocation14 + $0xac] ss:$16 sps:$4 sm:$0xff]  }
 0x6df   :  { %4837 = vmatprep.subr.bf16.mxu0 %v13585_v17  ;;  %4878 = vmatprep.subr.bf16.mxu1 %v13588_v18  ;;  %v13625_v17 = vld [vmem:[#allocation14 + $0xa0] ss:$16 sps:$4 sm:$0xff]   ;;  %v13628_v18 = vld [vmem:[#allocation14 + $0xa8] ss:$16 sps:$4 sm:$0xff]  }
 0x6e2   :  { %4838 = vmatpush1.bf16.msra.mxu0 %v13583_v23  ;;  %4879 = vmatpush1.bf16.msra.mxu1 %v13586_v31  ;;  %v13633_v23 = vld [vmem:[#allocation14 + $0x84] ss:$16 sps:$4 sm:$0xff]   ;;  %v13636_v31 = vld [vmem:[#allocation14 + $0x8c] ss:$16 sps:$4 sm:$0xff]  }
 0x6e3   :  { %4839 = vmatprep.subr.bf16.mxu0 %v13591_v19  ;;  %4880 = vmatprep.subr.bf16.mxu1 %v13594_v27  ;;  %v13631_v19 = vld [vmem:[#allocation14 + $0x80] ss:$16 sps:$4 sm:$0xff]   ;;  %v13634_v27 = vld [vmem:[#allocation14 + $0x88] ss:$16 sps:$4 sm:$0xff]  }
 0x6e6   :  { %4840 = vmatpush1.bf16.msra.mxu0 %v13589_v2  ;;  %4881 = vmatpush1.bf16.msra.mxu1 %v13592_v7  ;;  %v13639_v2 = vld [vmem:[#allocation14 + $0x64] ss:$16 sps:$4 sm:$0xff]   ;;  %v13642_v7 = vld [vmem:[#allocation14 + $0x6c] ss:$16 sps:$4 sm:$0xff]  }
 0x6e7   :  { %4841 = vmatprep.subr.bf16.mxu0 %v13597_v13  ;;  %4882 = vmatprep.subr.bf16.mxu1 %v13600_v40  ;;  %v13637_v13 = vld [vmem:[#allocation14 + $0x60] ss:$16 sps:$4 sm:$0xff]   ;;  %v13640_v40 = vld [vmem:[#allocation14 + $0x68] ss:$16 sps:$4 sm:$0xff]  }
 0x6ea   :  { %4842 = vmatpush1.bf16.msra.mxu0 %v13595_v46  ;;  %4883 = vmatpush1.bf16.msra.mxu1 %v13598_v41  ;;  %v13645_v46 = vld [vmem:[#allocation14 + $0x44] ss:$16 sps:$4 sm:$0xff]   ;;  %v13648_v41 = vld [vmem:[#allocation14 + $0x4c] ss:$16 sps:$4 sm:$0xff]  }
 0x6eb   :  { %4843 = vmatprep.subr.bf16.mxu0 %v13603_v61  ;;  %4884 = vmatprep.subr.bf16.mxu1 %v13606_v53  ;;  %v13643_v61 = vld [vmem:[#allocation14 + $0x40] ss:$16 sps:$4 sm:$0xff]   ;;  %v13646_v53 = vld [vmem:[#allocation14 + $0x48] ss:$16 sps:$4 sm:$0xff]  }
 0x6ee   :  { %4844 = vmatpush1.bf16.msra.mxu0 %v13601_v54  ;;  %4885 = vmatpush1.bf16.msra.mxu1 %v13604_v29  ;;  %v13651_v54 = vld [vmem:[#allocation14 + $0x24] ss:$16 sps:$4 sm:$0xff]   ;;  %v13654_v29 = vld [vmem:[#allocation14 + $0x2c] ss:$16 sps:$4 sm:$0xff]  }
 0x6ef   :  { %4845 = vmatprep.subr.bf16.mxu0 %v13609_v37  ;;  %4886 = vmatprep.subr.bf16.mxu1 %v13612_v44  ;;  %v13649_v37 = vld [vmem:[#allocation14 + $0x20] ss:$16 sps:$4 sm:$0xff]   ;;  %v13652_v44 = vld [vmem:[#allocation14 + $0x28] ss:$16 sps:$4 sm:$0xff]  }
 0x6f2   :  { %4846 = vmatpush1.bf16.msra.mxu0 %v13607_v11  ;;  %4887 = vmatpush1.bf16.msra.mxu1 %v13610_v6  ;;  %v13657_v11 = vld [vmem:[#allocation14 + $0x4] ss:$16 sps:$4 sm:$0xff]   ;;  %v13660_v6 = vld [vmem:[#allocation14 + $0xc] ss:$16 sps:$4 sm:$0xff]  }
 0x6f3   :  { %5356 = vmatprep.subr.bf16.mxu0 %v13615_v22  ;;  %5397 = vmatprep.subr.bf16.mxu1 %v13618_v15  ;;  %v13663_v22 = vld [vmem:[#allocation14 + $0x1e4] ss:$16 sps:$4 sm:$0xff]   ;;  %v13666_v15 = vld [vmem:[#allocation14 + $0x1ec] ss:$16 sps:$4 sm:$0xff]  }
 0x6f5   :  { %4864 = vmatmul.mubr.bf16.vlgmr.msra.gmra.mxu0 %v4638_v36  ;;  %4905 = vmatmul.mubr.bf16.vlgmr.msra.gmra.mxu1 %v4638_v36  ;;  %v13655_v36 = vld [vmem:[#allocation14] ss:$16 sps:$4 sm:$0xff]  }
 0x6f6   :  { %5388 = vmatprep.mubr.bf16.mxu0 %v4949_v33  ;;  %5429 = vmatprep.mubr.bf16.mxu1 %v4949_v33  ;;  %v13658_v33 = vld [vmem:[#allocation14 + $0x8] ss:$16 sps:$4 sm:$0xff]  }
 0x6f7   :  { %5357 = vmatpush1.bf16.msra.mxu0 %v13613_v12  ;;  %5398 = vmatpush1.bf16.msra.mxu1 %v13616_v16  ;;  %v13661_v12 = vld [vmem:[#allocation14 + $0x1e0] ss:$16 sps:$4 sm:$0xff]   ;;  %v13664_v16 = vld [vmem:[#allocation14 + $0x1e8] ss:$16 sps:$4 sm:$0xff]  }
 0x6f8   :  { %5358 = vmatprep.subr.bf16.mxu0 %v13621_v10  ;;  %5399 = vmatprep.subr.bf16.mxu1 %v13624_v49  ;;  %v13669_v10 = vld [vmem:[#allocation14 + $0x1c4] ss:$16 sps:$4 sm:$0xff]   ;;  %v13672_v49 = vld [vmem:[#allocation14 + $0x1cc] ss:$16 sps:$4 sm:$0xff]  }
 0x6fb   :  { %5359 = vmatpush1.bf16.msra.mxu0 %v13619_v20  ;;  %5400 = vmatpush1.bf16.msra.mxu1 %v13622_v57  ;;  %v13667_v20 = vld [vmem:[#allocation14 + $0x1c0] ss:$16 sps:$4 sm:$0xff]   ;;  %v13670_v57 = vld [vmem:[#allocation14 + $0x1c8] ss:$16 sps:$4 sm:$0xff]  }
 0x6fc   :  { %5360 = vmatprep.subr.bf16.mxu0 %v13627_v58  ;;  %5401 = vmatprep.subr.bf16.mxu1 %v13630_v45  ;;  %v13675_v58 = vld [vmem:[#allocation14 + $0x1a4] ss:$16 sps:$4 sm:$0xff]   ;;  %v13678_v45 = vld [vmem:[#allocation14 + $0x1ac] ss:$16 sps:$4 sm:$0xff]  }
 0x6ff   :  { %5361 = vmatpush1.bf16.msra.mxu0 %v13625_v17  ;;  %5402 = vmatpush1.bf16.msra.mxu1 %v13628_v18  ;;  %v13673_v17 = vld [vmem:[#allocation14 + $0x1a0] ss:$16 sps:$4 sm:$0xff]   ;;  %v13676_v18 = vld [vmem:[#allocation14 + $0x1a8] ss:$16 sps:$4 sm:$0xff]  }
 0x700   :  { %5362 = vmatprep.subr.bf16.mxu0 %v13633_v23  ;;  %5403 = vmatprep.subr.bf16.mxu1 %v13636_v31  ;;  %v13681_v23 = vld [vmem:[#allocation14 + $0x184] ss:$16 sps:$4 sm:$0xff]   ;;  %v13684_v31 = vld [vmem:[#allocation14 + $0x18c] ss:$16 sps:$4 sm:$0xff]  }
 0x703   :  { %5363 = vmatpush1.bf16.msra.mxu0 %v13631_v19  ;;  %5404 = vmatpush1.bf16.msra.mxu1 %v13634_v27  ;;  %v13679_v19 = vld [vmem:[#allocation14 + $0x180] ss:$16 sps:$4 sm:$0xff]   ;;  %v13682_v27 = vld [vmem:[#allocation14 + $0x188] ss:$16 sps:$4 sm:$0xff]  }
 0x704   :  { %5364 = vmatprep.subr.bf16.mxu0 %v13639_v2  ;;  %5405 = vmatprep.subr.bf16.mxu1 %v13642_v7  ;;  %v13687_v2 = vld [vmem:[#allocation14 + $0x164] ss:$16 sps:$4 sm:$0xff]   ;;  %v13690_v7 = vld [vmem:[#allocation14 + $0x16c] ss:$16 sps:$4 sm:$0xff]  }
 0x707   :  { %5365 = vmatpush1.bf16.msra.mxu0 %v13637_v13  ;;  %5406 = vmatpush1.bf16.msra.mxu1 %v13640_v40  ;;  %v13685_v13 = vld [vmem:[#allocation14 + $0x160] ss:$16 sps:$4 sm:$0xff]   ;;  %v13688_v40 = vld [vmem:[#allocation14 + $0x168] ss:$16 sps:$4 sm:$0xff]  }
 0x708   :  { %5366 = vmatprep.subr.bf16.mxu0 %v13645_v46  ;;  %5407 = vmatprep.subr.bf16.mxu1 %v13648_v41  ;;  %v13693_v46 = vld [vmem:[#allocation14 + $0x144] ss:$16 sps:$4 sm:$0xff]   ;;  %v13696_v41 = vld [vmem:[#allocation14 + $0x14c] ss:$16 sps:$4 sm:$0xff]  }
 0x70b   :  { %5367 = vmatpush1.bf16.msra.mxu0 %v13643_v61  ;;  %5408 = vmatpush1.bf16.msra.mxu1 %v13646_v53  ;;  %v13691_v61 = vld [vmem:[#allocation14 + $0x140] ss:$16 sps:$4 sm:$0xff]   ;;  %v13694_v53 = vld [vmem:[#allocation14 + $0x148] ss:$16 sps:$4 sm:$0xff]  }
 0x70c   :  { %5368 = vmatprep.subr.bf16.mxu0 %v13651_v54  ;;  %5409 = vmatprep.subr.bf16.mxu1 %v13654_v29  ;;  %v13699_v54 = vld [vmem:[#allocation14 + $0x124] ss:$16 sps:$4 sm:$0xff]   ;;  %v13702_v29 = vld [vmem:[#allocation14 + $0x12c] ss:$16 sps:$4 sm:$0xff]  }
 0x70f   :  { %5369 = vmatpush1.bf16.msra.mxu0 %v13649_v37  ;;  %5410 = vmatpush1.bf16.msra.mxu1 %v13652_v44  ;;  %v13697_v37 = vld [vmem:[#allocation14 + $0x120] ss:$16 sps:$4 sm:$0xff]   ;;  %v13700_v44 = vld [vmem:[#allocation14 + $0x128] ss:$16 sps:$4 sm:$0xff]  }
 0x710   :  { %5370 = vmatprep.subr.bf16.mxu0 %v13657_v11  ;;  %5411 = vmatprep.subr.bf16.mxu1 %v13660_v6  ;;  %v13705_v11 = vld [vmem:[#allocation14 + $0x104] ss:$16 sps:$4 sm:$0xff]   ;;  %v13708_v6 = vld [vmem:[#allocation14 + $0x10c] ss:$16 sps:$4 sm:$0xff]  }
 0x713   :  { %5371 = vmatpush1.bf16.msra.mxu0 %v13655_v36  ;;  %5412 = vmatpush1.bf16.msra.mxu1 %v13658_v33  ;;  %v13703_v36 = vld [vmem:[#allocation14 + $0x100] ss:$16 sps:$4 sm:$0xff]   ;;  %v13706_v33 = vld [vmem:[#allocation14 + $0x108] ss:$16 sps:$4 sm:$0xff]  }
 0x714   :  { %5372 = vmatprep.subr.bf16.mxu0 %v13663_v22  ;;  %5413 = vmatprep.subr.bf16.mxu1 %v13666_v15  ;;  %v13711_v22 = vld [vmem:[#allocation14 + $0x2e4] ss:$16 sps:$4 sm:$0xff]   ;;  %v13714_v15 = vld [vmem:[#allocation14 + $0x2ec] ss:$16 sps:$4 sm:$0xff]  }
 0x717   :  { %5373 = vmatpush2.bf16.msra.mxu0 %v13661_v12  ;;  %5414 = vmatpush2.bf16.msra.mxu1 %v13664_v16  ;;  %v11909_v12 = vld [vmem:[%s16165_s8 + $0x4] sm:$0xf] }
 0x718   :  { %5374 = vmatprep.subr.bf16.mxu0 %v13669_v10  ;;  %5415 = vmatprep.subr.bf16.mxu1 %v13672_v49  ;;  %v4182_v16 = vrot.slane %v11909_v12, %v15477_v4  ;;  %v4186_v10 = vrot.slane %v11909_v12, %v15485_v8 }
 0x71b   :  { %5375 = vmatpush2.bf16.msra.mxu0 %v13667_v20  ;;  %5416 = vmatpush2.bf16.msra.mxu1 %v13670_v57 }
 0x71c   :  { %5376 = vmatprep.subr.bf16.mxu0 %v13675_v58  ;;  %5417 = vmatprep.subr.bf16.mxu1 %v13678_v45 }
 0x71f   :  { %5377 = vmatpush2.bf16.msra.mxu0 %v13673_v17  ;;  %5418 = vmatpush2.bf16.msra.mxu1 %v13676_v18 }
 0x720   :  { %5378 = vmatprep.subr.bf16.mxu0 %v13681_v23  ;;  %5419 = vmatprep.subr.bf16.mxu1 %v13684_v31 }
 0x723   :  { %5379 = vmatpush2.bf16.msra.mxu0 %v13679_v19  ;;  %5420 = vmatpush2.bf16.msra.mxu1 %v13682_v27 }
 0x724   :  { %5380 = vmatprep.subr.bf16.mxu0 %v13687_v2  ;;  %5421 = vmatprep.subr.bf16.mxu1 %v13690_v7  ;;  %v4194_v7 = vrot.slane %v11909_v12, %v15487_v9 }
 0x727   :  { %5381 = vmatpush2.bf16.msra.mxu0 %v13685_v13  ;;  %5422 = vmatpush2.bf16.msra.mxu1 %v13688_v40  ;;  %v4190_v40 = vrot.slane %v11909_v12, %v15479_v5 }
 0x728   :  { %5382 = vmatprep.subr.bf16.mxu0 %v13693_v46  ;;  %5423 = vmatprep.subr.bf16.mxu1 %v13696_v41 }
 0x72b   :  { %5383 = vmatpush2.bf16.msra.mxu0 %v13691_v61  ;;  %5424 = vmatpush2.bf16.msra.mxu1 %v13694_v53 }
 0x72c   :  { %5384 = vmatprep.subr.bf16.mxu0 %v13699_v54  ;;  %5425 = vmatprep.subr.bf16.mxu1 %v13702_v29 }
 0x72f   :  { %5385 = vmatpush2.bf16.msra.mxu0 %v13697_v37  ;;  %5426 = vmatpush2.bf16.msra.mxu1 %v13700_v44 }
 0x730   :  { %5386 = vmatprep.subr.bf16.mxu0 %v13705_v11  ;;  %5427 = vmatprep.subr.bf16.mxu1 %v13708_v6 }
 0x733   :  { %5387 = vmatpush2.bf16.msra.mxu0 %v13703_v36  ;;  %5428 = vmatpush2.bf16.msra.mxu1 %v13706_v33 }
 0x734   :  { %5872 = vmatprep.subr.bf16.mxu0 %v13711_v22  ;;  %5913 = vmatprep.subr.bf16.mxu1 %v13714_v15 }
 0x795   :  { %v4553_v49 = vpop.f32.mrf.mxu0  ;;  %v4594_v20 = vpop.f32.mrf.mxu1 }
 0x796   :  { %v4554_v57 = vadd.f32 %v4553_v49, %v4182_v16  ;;  %v4595_v61 = vadd.f32 %v4594_v20, %v4190_v40 }
 0x797   :  { %v4555_v58 = vpop.f32.mrf.mxu0  ;;  %v4596_v45 = vpop.f32.mrf.mxu1 }
 0x798   :  { %v11974_v17 = vmul.f32 -1.442695, %v4554_v57  ;;  %v4556_v18 = vadd.f32 %v4555_v58, %v4186_v10  ;;  %v4597_v13 = vadd.f32 %v4596_v45, %v4194_v7 }
 0x799   :  { %v4557_v23 = vpop.f32.mrf.mxu0  ;;  %v4598_v31 = vpop.f32.mrf.mxu1 }
 0x79a   :  { %14893 = vpow2.f32 %v11974_v17  ;;  %v11975_v19 = vmul.f32 -1.442695, %v4556_v18  ;;  %v11976_v46 = vmul.f32 -1.442695, %v4597_v13 }
 0x79b   :  { %v4558_v27 = vpop.f32.mrf.mxu0  ;;  %v4599_v2 = vpop.f32.mrf.mxu1 }
 0x79c   :  { %14895 = vpow2.f32 %v11975_v19 }
 0x79d   :  { %14897 = vpow2.f32 %v11976_v46 }
 0x7a7   :  { %v14894_v41 = vpop.eup %14893 }
 0x7a8   :  { %v4604_v53 = vadd.f32 1.0, %v14894_v41 }
 0x7a9   :  { %v14896_v54 = vpop.eup %14895 }
 0x7aa   :  { %14899 = vrcp.f32 %v4604_v53  ;;  %v4610_v29 = vadd.f32 1.0, %v14896_v54  ;;  %v14898_v11 = vpop.eup %14897 }
 0x7ab   :  { %14901 = vtanh.f32 %v4595_v61  ;;  %v4617_v49 = vadd.f32 1.0, %v14898_v11  ;;  %v15797_v11 = vpop.permute.xlu1 %4943 }
 0x7ac   :  { %14903 = vrcp.f32 %v4610_v29  ;;  %vm4945_vm11 = vcmp.eq.s32.totalorder %v15797_v11, 1  ;;  %v13958_v11 = vld [vmem:[#allocation14 + $0x2c8] ss:$16 sps:$4 sm:$0xff]  }
 0x7b5   :  { %v4865_v37 = vpop.f32.mrf.mxu0  ;;  %v4906_v44 = vpop.f32.mrf.mxu1 }
 0x7b6   :  { %v4913_v6 = vadd.f32 %v4865_v37, %v15521_v34  ;;  %v4915_v19 = vadd.f32 %v4906_v44, %v15524_v35 }
 0x7b7   :  { %v14900_v36 = vpop.eup %14899  ;;  %v4867_v33 = vpop.f32.mrf.mxu0 }
 0x7b8   :  { %v4908_v22 = vpop.f32.mrf.mxu1  ;;  %v14902_v15 = vpop.eup %14901  ;;  %v12009_v12 = vmul.f32 -1.442695, %v4913_v6  ;;  %v4914_v16 = vadd.f32 %v4867_v33, %v15526_v38 }
 0x7b9   :  { %v14904_v10 = vpop.eup %14903  ;;  %v4869_v20 = vpop.f32.mrf.mxu0  ;;  %v4621_v58 = vmul.f32 %v14902_v15, %v14900_v36  ;;  %v4916_v38 = vadd.f32 %v4908_v22, %v15529_v39 }
 0x7ba   :  { %v4910_v57 = vpop.f32.mrf.mxu1  ;;  %v4620_v45 = vmul.f32 %v14904_v10, %v15716_v26  ;;  %14905 = vpow2.f32 %v12009_v12  ;;  %v12010_v17 = vmul.f32 -1.442695, %v4914_v16  ;;  %v13709_v10 = vld [vmem:[#allocation14 + $0x2e0] ss:$16 sps:$4 sm:$0xff]  }
 0x7bb   :  { %v4870_v18 = vpop.f32.mrf.mxu0  ;;  %v12011_v27 = vmul.f32 -1.442695, %v4916_v38  ;;  %v13717_v57 = vld [vmem:[#allocation14 + $0x2c4] ss:$16 sps:$4 sm:$0xff]   ;;  %v13727_v38 = vld [vmem:[#allocation14 + $0x280] ss:$16 sps:$4 sm:$0xff]  }
 0x7bc   :  { %v4911_v23 = vpop.f32.mrf.mxu1  ;;  %v4622_v31 = vadd.f32 %v4621_v58, %v4620_v45  ;;  %14907 = vpow2.f32 %v12010_v17  ;;  %v13715_v58 = vld [vmem:[#allocation14 + $0x2c0] ss:$16 sps:$4 sm:$0xff]   ;;  %v13726_v45 = vld [vmem:[#allocation14 + $0x2ac] ss:$16 sps:$4 sm:$0xff]   ;;  %v13724_v18 = vld [vmem:[#allocation14 + $0x2a8] ss:$16 sps:$4 sm:$0xff]  }
 0x7bd   :  { %14909 = vrcp.f32 %v4617_v49  ;;  %v13712_v49 = vld [vmem:[#allocation14 + $0x2e8] ss:$16 sps:$4 sm:$0xff]   ;;  %v13721_v17 = vld [vmem:[#allocation14 + $0x2a0] ss:$16 sps:$4 sm:$0xff]   ;;  %v13729_v23 = vld [vmem:[#allocation14 + $0x284] ss:$16 sps:$4 sm:$0xff]  }
 0x7be   :  { %14911 = vtanh.f32 %v4622_v31  ;;  %v15790_v34 = vsel %vm3592_vm10, %v4622_v31, %v15716_v26  ;;  %v13732_v31 = vld [vmem:[#allocation14 + $0x28c] ss:$16 sps:$4 sm:$0xff]  }
 0x7bf   :  { %14913 = vtanh.f32 %v4915_v19  ;;  %v13730_v19 = vld [vmem:[#allocation14 + $0x288] ss:$16 sps:$4 sm:$0xff]  }
 0x7c0   :  { %14915 = vpow2.f32 %v12011_v27  ;;  %v13735_v27 = vld [vmem:[#allocation14 + $0x264] ss:$16 sps:$4 sm:$0xff]  }
 0x7c7   :  { %v14906_v2 = vpop.eup %14905 }
 0x7c8   :  { %v4920_v7 = vadd.f32 1.0, %v14906_v2  ;;  %v13738_v2 = vld [vmem:[#allocation14 + $0x26c] ss:$16 sps:$4 sm:$0xff]  }
 0x7c9   :  { %v14908_v13 = vpop.eup %14907 }
 0x7ca   :  { %v14910_v40 = vpop.eup %14909  ;;  %14917 = vrcp.f32 %v4920_v7  ;;  %v4926_v46 = vadd.f32 1.0, %v14908_v13  ;;  %v13733_v7 = vld [vmem:[#allocation14 + $0x260] ss:$16 sps:$4 sm:$0xff]   ;;  %v13736_v13 = vld [vmem:[#allocation14 + $0x268] ss:$16 sps:$4 sm:$0xff]  }
 0x7cb   :  { %v14912_v41 = vpop.eup %14911 }
 0x7cc   :  { %14919 = vrcp.f32 %v4926_v46  ;;  %v4624_v61 = vmul.f32 %v14912_v41, %v14910_v40  ;;  %v14914_v53 = vpop.eup %14913  ;;  %v13741_v40 = vld [vmem:[#allocation14 + $0x244] ss:$16 sps:$4 sm:$0xff]   ;;  %v13744_v46 = vld [vmem:[#allocation14 + $0x24c] ss:$16 sps:$4 sm:$0xff]   ;;  %v13739_v41 = vld [vmem:[#allocation14 + $0x240] ss:$16 sps:$4 sm:$0xff]  }
 0x7cd   :  { %v14916_v39 = vpop.eup %14915 }
 0x7ce   :  { %v4627_v26 = vsel %vm3592_vm10, %v4624_v61, 0.0  ;;  %v4933_v37 = vadd.f32 1.0, %v14916_v39  ;;  %v15810_v12 = vsel %vm3592_vm10, %v4624_v61, %v15736_v50  ;;  %v13723_v50 = vld [vmem:[#allocation14 + $0x2a4] ss:$16 sps:$4 sm:$0xff]   ;;  %v13742_v61 = vld [vmem:[#allocation14 + $0x248] ss:$16 sps:$4 sm:$0xff]  }
 0x7cf   :  { %4629 = vst [vmem:[#allocation16 + $0x10] sm:$0xff] %v4627_v26  ;;  %v5465_v20 = vpack.c.bf16 %v15810_v12, %v15810_v12  ;;  %v13747_v26 = vld [vmem:[#allocation14 + $0x224] ss:$16 sps:$4 sm:$0xff]   ;;  %v13745_v39 = vld [vmem:[#allocation14 + $0x220] ss:$16 sps:$4 sm:$0xff]  }
 0x7d0   :  { %14921 = vrcp.f32 %v4933_v37  ;;  %v13751_v37 = vld [vmem:[#allocation14 + $0x200] ss:$16 sps:$4 sm:$0xff]  }
 0x7d7   :  { %v14918_v54 = vpop.eup %14917 }
 0x7d8   :  { %v4937_v35 = vmul.f32 %v14918_v54, %v14914_v53  ;;  %v13750_v53 = vld [vmem:[#allocation14 + $0x22c] ss:$16 sps:$4 sm:$0xff]   ;;  %v13748_v54 = vld [vmem:[#allocation14 + $0x228] ss:$16 sps:$4 sm:$0xff]  }
 0x7d9   :  { %v14920_v29 = vpop.eup %14919 }
 0x7da   :  { %v4936_v44 = vmul.f32 %v14920_v29, %v15729_v62  ;;  %v13756_v29 = vld [vmem:[#allocation14 + $0x20c] ss:$16 sps:$4 sm:$0xff]  }
 0x7dc   :  { %v4938_v6 = vadd.f32 %v4937_v35, %v4936_v44  ;;  %v13753_v35 = vld [vmem:[#allocation14 + $0x204] ss:$16 sps:$4 sm:$0xff]   ;;  %v13754_v44 = vld [vmem:[#allocation14 + $0x208] ss:$16 sps:$4 sm:$0xff]  }
 0x7dd   :  { %v14922_v33 = vpop.eup %14921 }
 0x7de   :  { %14923 = vtanh.f32 %v4938_v6  ;;  %v15803_v36 = vsel %vm4945_vm11, %v4938_v6, %v15729_v62  ;;  %v13720_v62 = vld [vmem:[#allocation14 + $0x2cc] ss:$16 sps:$4 sm:$0xff]   ;;  %v13759_v6 = vld [vmem:[#allocation14 + $0x3e4] ss:$16 sps:$4 sm:$0xff]  }
 0x7eb   :  { %v14924_v22 = vpop.eup %14923 }
 0x7ec   :  { %v15805_v15 = vmul.f32 %v14924_v22, %v14922_v33  ;;  %v13762_v33 = vld [vmem:[#allocation14 + $0x3ec] ss:$16 sps:$4 sm:$0xff]   ;;  %v13757_v22 = vld [vmem:[#allocation14 + $0x3e0] ss:$16 sps:$4 sm:$0xff]  }
 0x7ee   :  { %v4948_v16 = vpack.c.bf16 %v15805_v15, %v15805_v15 }
 0x7f0   :  { %5389 = vmatmul.mubr.bf16.vlgmr.msra.gmra.mxu0 %v4948_v16  ;;  %5430 = vmatmul.mubr.bf16.vlgmr.msra.gmra.mxu1 %v4948_v16  ;;  %v13760_v16 = vld [vmem:[#allocation14 + $0x3e8] ss:$16 sps:$4 sm:$0xff]  }
 0x7f1   :  { %5904 = vmatprep.mubr.bf16.mxu0 %v5465_v20  ;;  %5945 = vmatprep.mubr.bf16.mxu1 %v5465_v20  ;;  %v13763_v20 = vld [vmem:[#allocation14 + $0x3c0] ss:$16 sps:$4 sm:$0xff]  }
 0x7f2   :  { %5873 = vmatpush1.bf16.msra.mxu0 %v13709_v10  ;;  %5914 = vmatpush1.bf16.msra.mxu1 %v13712_v49  ;;  %v13765_v10 = vld [vmem:[#allocation14 + $0x3c4] ss:$16 sps:$4 sm:$0xff]   ;;  %v13768_v49 = vld [vmem:[#allocation14 + $0x3cc] ss:$16 sps:$4 sm:$0xff]  }
 0x7f3   :  { %5874 = vmatprep.subr.bf16.mxu0 %v13717_v57  ;;  %5915 = vmatprep.subr.bf16.mxu1 %v13720_v62  ;;  %v13766_v57 = vld [vmem:[#allocation14 + $0x3c8] ss:$16 sps:$4 sm:$0xff]   ;;  %v13771_v62 = vld [vmem:[#allocation14 + $0x3a4] ss:$16 sps:$4 sm:$0xff]  }
 0x7f6   :  { %5875 = vmatpush1.bf16.msra.mxu0 %v13715_v58  ;;  %5916 = vmatpush1.bf16.msra.mxu1 %v13718_v28  ;;  %v13774_v58 = vld [vmem:[#allocation14 + $0x3ac] ss:$16 sps:$4 sm:$0xff]   ;;  %v13769_v28 = vld [vmem:[#allocation14 + $0x3a0] ss:$16 sps:$4 sm:$0xff]  }
 0x7f7   :  { %5876 = vmatprep.subr.bf16.mxu0 %v13723_v50  ;;  %5917 = vmatprep.subr.bf16.mxu1 %v13726_v45  ;;  %v13772_v50 = vld [vmem:[#allocation14 + $0x3a8] ss:$16 sps:$4 sm:$0xff]   ;;  %v13777_v45 = vld [vmem:[#allocation14 + $0x384] ss:$16 sps:$4 sm:$0xff]  }
 0x7fa   :  { %5877 = vmatpush1.bf16.msra.mxu0 %v13721_v17  ;;  %5918 = vmatpush1.bf16.msra.mxu1 %v13724_v18  ;;  %v13780_v17 = vld [vmem:[#allocation14 + $0x38c] ss:$16 sps:$4 sm:$0xff]   ;;  %v13775_v18 = vld [vmem:[#allocation14 + $0x380] ss:$16 sps:$4 sm:$0xff]  }
 0x7fb   :  { %5878 = vmatprep.subr.bf16.mxu0 %v13729_v23  ;;  %5919 = vmatprep.subr.bf16.mxu1 %v13732_v31  ;;  %v13778_v23 = vld [vmem:[#allocation14 + $0x388] ss:$16 sps:$4 sm:$0xff]   ;;  %v13783_v31 = vld [vmem:[#allocation14 + $0x364] ss:$16 sps:$4 sm:$0xff]  }
 0x7fe   :  { %5879 = vmatpush1.bf16.msra.mxu0 %v13727_v38  ;;  %5920 = vmatpush1.bf16.msra.mxu1 %v13730_v19  ;;  %v13781_v38 = vld [vmem:[#allocation14 + $0x360] ss:$16 sps:$4 sm:$0xff]   ;;  %v13784_v19 = vld [vmem:[#allocation14 + $0x368] ss:$16 sps:$4 sm:$0xff]  }
 0x7ff   :  { %5880 = vmatprep.subr.bf16.mxu0 %v13735_v27  ;;  %5921 = vmatprep.subr.bf16.mxu1 %v13738_v2  ;;  %v13786_v27 = vld [vmem:[#allocation14 + $0x36c] ss:$16 sps:$4 sm:$0xff]   ;;  %v13789_v2 = vld [vmem:[#allocation14 + $0x344] ss:$16 sps:$4 sm:$0xff]  }
 0x802   :  { %5881 = vmatpush1.bf16.msra.mxu0 %v13733_v7  ;;  %5922 = vmatpush1.bf16.msra.mxu1 %v13736_v13  ;;  %v13792_v7 = vld [vmem:[#allocation14 + $0x34c] ss:$16 sps:$4 sm:$0xff]   ;;  %v13787_v13 = vld [vmem:[#allocation14 + $0x340] ss:$16 sps:$4 sm:$0xff]  }
 0x803   :  { %5882 = vmatprep.subr.bf16.mxu0 %v13741_v40  ;;  %5923 = vmatprep.subr.bf16.mxu1 %v13744_v46  ;;  %v13790_v40 = vld [vmem:[#allocation14 + $0x348] ss:$16 sps:$4 sm:$0xff]   ;;  %v13795_v46 = vld [vmem:[#allocation14 + $0x324] ss:$16 sps:$4 sm:$0xff]  }
 0x806   :  { %5883 = vmatpush1.bf16.msra.mxu0 %v13739_v41  ;;  %5924 = vmatpush1.bf16.msra.mxu1 %v13742_v61  ;;  %v13798_v41 = vld [vmem:[#allocation14 + $0x32c] ss:$16 sps:$4 sm:$0xff]   ;;  %v13793_v61 = vld [vmem:[#allocation14 + $0x320] ss:$16 sps:$4 sm:$0xff]  }
 0x807   :  { %5884 = vmatprep.subr.bf16.mxu0 %v13747_v26  ;;  %5925 = vmatprep.subr.bf16.mxu1 %v13750_v53  ;;  %v13796_v26 = vld [vmem:[#allocation14 + $0x328] ss:$16 sps:$4 sm:$0xff]   ;;  %v13801_v53 = vld [vmem:[#allocation14 + $0x304] ss:$16 sps:$4 sm:$0xff]  }
 0x80a   :  { %5885 = vmatpush1.bf16.msra.mxu0 %v13745_v39  ;;  %5926 = vmatpush1.bf16.msra.mxu1 %v13748_v54  ;;  %v13804_v39 = vld [vmem:[#allocation14 + $0x30c] ss:$16 sps:$4 sm:$0xff]   ;;  %v13799_v54 = vld [vmem:[#allocation14 + $0x300] ss:$16 sps:$4 sm:$0xff]  }
 0x80b   :  { %5886 = vmatprep.subr.bf16.mxu0 %v13753_v35  ;;  %5927 = vmatprep.subr.bf16.mxu1 %v13756_v29  ;;  %v13802_v35 = vld [vmem:[#allocation14 + $0x308] ss:$16 sps:$4 sm:$0xff]   ;;  %v13807_v29 = vld [vmem:[#allocation13 + $0xe4] ss:$16 sps:$4 sm:$0xff]  }
 0x80e   :  { %5887 = vmatpush1.bf16.msra.mxu0 %v13751_v37  ;;  %5928 = vmatpush1.bf16.msra.mxu1 %v13754_v44  ;;  %v13810_v37 = vld [vmem:[#allocation13 + $0xec] ss:$16 sps:$4 sm:$0xff]   ;;  %v5014_v44 = vld [vmem:[%s16165_s8] sm:$0xf] }
 0x80f   :  { %5888 = vmatprep.subr.bf16.mxu0 %v13759_v6  ;;  %5929 = vmatprep.subr.bf16.mxu1 %v13762_v33  ;;  %v5019_v6 = vrot.slane %v5014_v44, %v15477_v4  ;;  %v5023_v33 = vrot.slane %v5014_v44, %v15485_v8 }
 0x812   :  { %5889 = vmatpush2.bf16.msra.mxu0 %v13757_v22  ;;  %5930 = vmatpush2.bf16.msra.mxu1 %v13760_v16 }
 0x813   :  { %5890 = vmatprep.subr.bf16.mxu0 %v13765_v10  ;;  %5931 = vmatprep.subr.bf16.mxu1 %v13768_v49 }
 0x816   :  { %5891 = vmatpush2.bf16.msra.mxu0 %v13763_v20  ;;  %5932 = vmatpush2.bf16.msra.mxu1 %v13766_v57 }
 0x817   :  { %5892 = vmatprep.subr.bf16.mxu0 %v13771_v62  ;;  %5933 = vmatprep.subr.bf16.mxu1 %v13774_v58 }
 0x81a   :  { %5893 = vmatpush2.bf16.msra.mxu0 %v13769_v28  ;;  %5934 = vmatpush2.bf16.msra.mxu1 %v13772_v50 }
 0x81b   :  { %5894 = vmatprep.subr.bf16.mxu0 %v13777_v45  ;;  %5935 = vmatprep.subr.bf16.mxu1 %v13780_v17 }
 0x81e   :  { %5895 = vmatpush2.bf16.msra.mxu0 %v13775_v18  ;;  %5936 = vmatpush2.bf16.msra.mxu1 %v13778_v23  ;;  %v5031_v18 = vrot.slane %v5014_v44, %v15487_v9 }
 0x81f   :  { %5896 = vmatprep.subr.bf16.mxu0 %v13783_v31  ;;  %5937 = vmatprep.subr.bf16.mxu1 %v13786_v27  ;;  %v5027_v31 = vrot.slane %v5014_v44, %v15479_v5 }
 0x822   :  { %5897 = vmatpush2.bf16.msra.mxu0 %v13781_v38  ;;  %5938 = vmatpush2.bf16.msra.mxu1 %v13784_v19 }
 0x823   :  { %5898 = vmatprep.subr.bf16.mxu0 %v13789_v2  ;;  %5939 = vmatprep.subr.bf16.mxu1 %v13792_v7 }
 0x826   :  { %5899 = vmatpush2.bf16.msra.mxu0 %v13787_v13  ;;  %5940 = vmatpush2.bf16.msra.mxu1 %v13790_v40 }
 0x827   :  { %5900 = vmatprep.subr.bf16.mxu0 %v13795_v46  ;;  %5941 = vmatprep.subr.bf16.mxu1 %v13798_v41 }
 0x82a   :  { %5901 = vmatpush2.bf16.msra.mxu0 %v13793_v61  ;;  %5942 = vmatpush2.bf16.msra.mxu1 %v13796_v26 }
 0x82b   :  { %5902 = vmatprep.subr.bf16.mxu0 %v13801_v53  ;;  %5943 = vmatprep.subr.bf16.mxu1 %v13804_v39 }
 0x82e   :  { %5903 = vmatpush2.bf16.msra.mxu0 %v13799_v54  ;;  %5944 = vmatpush2.bf16.msra.mxu1 %v13802_v35 }
 0x82f   :  { %6184 = vmatprep.subr.bf16.mxu0 %v13807_v29  ;;  %6225 = vmatprep.subr.bf16.mxu1 %v13810_v37 }
 0x8b0   :  { %v5390_v22 = vpop.f32.mrf.mxu0  ;;  %v5431_v16 = vpop.f32.mrf.mxu1 }
 0x8b1   :  { %v5391_v10 = vadd.f32 %v5390_v22, %v5019_v6  ;;  %v5432_v27 = vadd.f32 %v5431_v16, %v5027_v31  ;;  %v13805_v6 = vld [vmem:[#allocation13 + $0xe0] ss:$16 sps:$4 sm:$0xff]   ;;  %v13813_v16 = vld [vmem:[#allocation13 + $0xc4] ss:$16 sps:$4 sm:$0xff]  }
 0x8b2   :  { %v5392_v49 = vpop.f32.mrf.mxu0  ;;  %v5433_v20 = vpop.f32.mrf.mxu1  ;;  %v13829_v31 = vld [vmem:[#allocation13 + $0x60] ss:$16 sps:$4 sm:$0xff]  }
 0x8b3   :  { %v12076_v57 = vmul.f32 -1.442695, %v5391_v10  ;;  %v5393_v62 = vadd.f32 %v5392_v49, %v5023_v33  ;;  %v5434_v23 = vadd.f32 %v5433_v20, %v5031_v18  ;;  %v13808_v33 = vld [vmem:[#allocation13 + $0xe8] ss:$16 sps:$4 sm:$0xff]   ;;  %v13816_v10 = vld [vmem:[#allocation13 + $0xcc] ss:$16 sps:$4 sm:$0xff]  }
 0x8b4   :  { %v5394_v58 = vpop.f32.mrf.mxu0  ;;  %v5435_v28 = vpop.f32.mrf.mxu1  ;;  %v13811_v49 = vld [vmem:[#allocation13 + $0xc0] ss:$16 sps:$4 sm:$0xff]   ;;  %v13814_v20 = vld [vmem:[#allocation13 + $0xc8] ss:$16 sps:$4 sm:$0xff]   ;;  %v13831_v18 = vld [vmem:[#allocation13 + $0x64] ss:$16 sps:$4 sm:$0xff]  }
 0x8b5   :  { %14925 = vpow2.f32 %v12076_v57  ;;  %v12077_v50 = vmul.f32 -1.442695, %v5393_v62  ;;  %v12078_v38 = vmul.f32 -1.442695, %v5434_v23  ;;  %v13822_v57 = vld [vmem:[#allocation13 + $0xac] ss:$16 sps:$4 sm:$0xff]  }
 0x8b6   :  { %v5395_v45 = vpop.f32.mrf.mxu0  ;;  %v5436_v17 = vpop.f32.mrf.mxu1  ;;  %v13817_v62 = vld [vmem:[#allocation13 + $0xa0] ss:$16 sps:$4 sm:$0xff]   ;;  %v13820_v58 = vld [vmem:[#allocation13 + $0xa8] ss:$16 sps:$4 sm:$0xff]   ;;  %v13825_v28 = vld [vmem:[#allocation13 + $0x84] ss:$16 sps:$4 sm:$0xff]  }
 0x8b7   :  { %14927 = vpow2.f32 %v12077_v50  ;;  %v13828_v50 = vld [vmem:[#allocation13 + $0x8c] ss:$16 sps:$4 sm:$0xff]   ;;  %v13823_v45 = vld [vmem:[#allocation13 + $0x80] ss:$16 sps:$4 sm:$0xff]   ;;  %v13826_v17 = vld [vmem:[#allocation13 + $0x88] ss:$16 sps:$4 sm:$0xff]  }
 0x8b8   :  { %14929 = vpow2.f32 %v12078_v38  ;;  %v13834_v23 = vld [vmem:[#allocation13 + $0x6c] ss:$16 sps:$4 sm:$0xff]   ;;  %v13832_v38 = vld [vmem:[#allocation13 + $0x68] ss:$16 sps:$4 sm:$0xff]  }
 0x8c2   :  { %v14926_v19 = vpop.eup %14925 }
 0x8c3   :  { %v5441_v2 = vadd.f32 1.0, %v14926_v19  ;;  %v13837_v19 = vld [vmem:[#allocation13 + $0x44] ss:$16 sps:$4 sm:$0xff]  }
 0x8c4   :  { %v14928_v7 = vpop.eup %14927 }
 0x8c5   :  { %14931 = vrcp.f32 %v5441_v2  ;;  %v5447_v13 = vadd.f32 1.0, %v14928_v7  ;;  %v14930_v40 = vpop.eup %14929  ;;  %v13835_v2 = vld [vmem:[#allocation13 + $0x40] ss:$16 sps:$4 sm:$0xff]   ;;  %v13838_v7 = vld [vmem:[#allocation13 + $0x48] ss:$16 sps:$4 sm:$0xff]  }
 0x8c6   :  { %14933 = vtanh.f32 %v5432_v27  ;;  %v5454_v26 = vadd.f32 1.0, %v14930_v40  ;;  %v13840_v27 = vld [vmem:[#allocation13 + $0x4c] ss:$16 sps:$4 sm:$0xff]  }
 0x8c7   :  { %14935 = vrcp.f32 %v5447_v13  ;;  %v13843_v13 = vld [vmem:[#allocation13 + $0x24] ss:$16 sps:$4 sm:$0xff]   ;;  %v13846_v40 = vld [vmem:[#allocation13 + $0x2c] ss:$16 sps:$4 sm:$0xff]  }
 0x8c8   :  { %14937 = vrcp.f32 %v5454_v26  ;;  %v13852_v26 = vld [vmem:[#allocation13 + $0xc] ss:$16 sps:$4 sm:$0xff]  }
 0x8d2   :  { %v14932_v46 = vpop.eup %14931 }
 0x8d3   :  { %v14934_v41 = vpop.eup %14933 }
 0x8d4   :  { %v14936_v61 = vpop.eup %14935  ;;  %v5458_v53 = vmul.f32 %v14934_v41, %v14932_v46  ;;  %v13841_v46 = vld [vmem:[#allocation13 + $0x20] ss:$16 sps:$4 sm:$0xff]   ;;  %v13844_v41 = vld [vmem:[#allocation13 + $0x28] ss:$16 sps:$4 sm:$0xff]  }
 0x8d5   :  { %v5457_v39 = vmul.f32 %v14936_v61, %v15753_v32  ;;  %v14938_v29 = vpop.eup %14937  ;;  %v13849_v61 = vld [vmem:[#allocation13 + $0x4] ss:$16 sps:$4 sm:$0xff]  }
 0x8d7   :  { %v5459_v54 = vadd.f32 %v5458_v53, %v5457_v39  ;;  %v13847_v53 = vld [vmem:[#allocation13] ss:$16 sps:$4 sm:$0xff]   ;;  %v13850_v39 = vld [vmem:[#allocation13 + $0x8] ss:$16 sps:$4 sm:$0xff]  }
 0x8d9   :  { %14939 = vtanh.f32 %v5459_v54  ;;  %v15827_v35 = vsel %vm4945_vm11, %v5459_v54, %v15753_v32  ;;  %v13819_v32 = vld [vmem:[#allocation13 + $0xa4] ss:$16 sps:$4 sm:$0xff]   ;;  %v15839_v54 = vsel %vm4945_vm11, %v15805_v15, %v15765_v30  ;;  %v13858_v15 = vld [vmem:[#allocation14 + $0xec] ss:$16 sps:$4 sm:$0xff]  }
 0x8da   :  { %v13855_v30 = vld [vmem:[#allocation14 + $0xe4] ss:$16 sps:$4 sm:$0xff]  }
 0x8e6   :  { %v14940_v37 = vpop.eup %14939 }
 0x8e7   :  { %v15829_v44 = vmul.f32 %v14940_v37, %v14938_v29  ;;  %v5991_v37 = vpack.c.bf16 %v15839_v54, %v15839_v54 }
 0x8e9   :  { %v5464_v22 = vpack.c.bf16 %v15829_v44, %v15829_v44  ;;  %v15845_v29 = vsel %vm4945_vm11, %v15829_v44, %v15771_v25  ;;  %v13861_v25 = vld [vmem:[#allocation14 + $0xc4] ss:$16 sps:$4 sm:$0xff]   ;;  %v13864_v44 = vld [vmem:[#allocation14 + $0xcc] ss:$16 sps:$4 sm:$0xff]  }
 0x8eb   :  { %5905 = vmatmul.mubr.bf16.vlgmr.msra.gmra.mxu0 %v5464_v22  ;;  %5946 = vmatmul.mubr.bf16.vlgmr.msra.gmra.mxu1 %v5464_v22  ;;  %v13856_v22 = vld [vmem:[#allocation14 + $0xe8] ss:$16 sps:$4 sm:$0xff]  }
 0x8ec   :  { %6185 = vmatpush1.bf16.msra.mxu0 %v13805_v6  ;;  %6226 = vmatpush1.bf16.msra.mxu1 %v13808_v33  ;;  %v6302_v6 = vpack.c.bf16 %v15845_v29, %v15845_v29  ;;  %v13853_v33 = vld [vmem:[#allocation14 + $0xe0] ss:$16 sps:$4 sm:$0xff]  }
 0x8ed   :  { %6186 = vmatprep.subr.bf16.mxu0 %v13813_v16  ;;  %6227 = vmatprep.subr.bf16.mxu1 %v13816_v10  ;;  %v13859_v16 = vld [vmem:[#allocation14 + $0xc0] ss:$16 sps:$4 sm:$0xff]   ;;  %v13862_v10 = vld [vmem:[#allocation14 + $0xc8] ss:$16 sps:$4 sm:$0xff]  }
 0x8ee   :  { %6216 = vmatprep.mubr.bf16.mxu0 %v15358_v0  ;;  %6257 = vmatprep.mubr.bf16.mxu1 %v15358_v0 }
 0x8f0   :  { %6187 = vmatpush1.bf16.msra.mxu0 %v13811_v49  ;;  %6228 = vmatpush1.bf16.msra.mxu1 %v13814_v20  ;;  %v13867_v49 = vld [vmem:[#allocation14 + $0xa4] ss:$16 sps:$4 sm:$0xff]   ;;  %v13870_v20 = vld [vmem:[#allocation14 + $0xac] ss:$16 sps:$4 sm:$0xff]  }
 0x8f1   :  { %6188 = vmatprep.subr.bf16.mxu0 %v13819_v32  ;;  %6229 = vmatprep.subr.bf16.mxu1 %v13822_v57  ;;  %v13865_v32 = vld [vmem:[#allocation14 + $0xa0] ss:$16 sps:$4 sm:$0xff]   ;;  %v13868_v57 = vld [vmem:[#allocation14 + $0xa8] ss:$16 sps:$4 sm:$0xff]  }
 0x8f4   :  { %6189 = vmatpush1.bf16.msra.mxu0 %v13817_v62  ;;  %6230 = vmatpush1.bf16.msra.mxu1 %v13820_v58  ;;  %v13873_v62 = vld [vmem:[#allocation14 + $0x84] ss:$16 sps:$4 sm:$0xff]   ;;  %v13876_v58 = vld [vmem:[#allocation14 + $0x8c] ss:$16 sps:$4 sm:$0xff]  }
 0x8f5   :  { %6190 = vmatprep.subr.bf16.mxu0 %v13825_v28  ;;  %6231 = vmatprep.subr.bf16.mxu1 %v13828_v50  ;;  %v13871_v28 = vld [vmem:[#allocation14 + $0x80] ss:$16 sps:$4 sm:$0xff]   ;;  %v13874_v50 = vld [vmem:[#allocation14 + $0x88] ss:$16 sps:$4 sm:$0xff]  }
 0x8f8   :  { %6191 = vmatpush1.bf16.msra.mxu0 %v13823_v45  ;;  %6232 = vmatpush1.bf16.msra.mxu1 %v13826_v17  ;;  %v13879_v45 = vld [vmem:[#allocation14 + $0x64] ss:$16 sps:$4 sm:$0xff]   ;;  %v13882_v17 = vld [vmem:[#allocation14 + $0x6c] ss:$16 sps:$4 sm:$0xff]  }
 0x8f9   :  { %6192 = vmatprep.subr.bf16.mxu0 %v13831_v18  ;;  %6233 = vmatprep.subr.bf16.mxu1 %v13834_v23  ;;  %v13877_v18 = vld [vmem:[#allocation14 + $0x60] ss:$16 sps:$4 sm:$0xff]   ;;  %v13880_v23 = vld [vmem:[#allocation14 + $0x68] ss:$16 sps:$4 sm:$0xff]  }
 0x8fc   :  { %6193 = vmatpush1.bf16.msra.mxu0 %v13829_v31  ;;  %6234 = vmatpush1.bf16.msra.mxu1 %v13832_v38  ;;  %v13885_v31 = vld [vmem:[#allocation14 + $0x44] ss:$16 sps:$4 sm:$0xff]   ;;  %v13888_v38 = vld [vmem:[#allocation14 + $0x4c] ss:$16 sps:$4 sm:$0xff]  }
 0x8fd   :  { %6194 = vmatprep.subr.bf16.mxu0 %v13837_v19  ;;  %6235 = vmatprep.subr.bf16.mxu1 %v13840_v27  ;;  %v13883_v19 = vld [vmem:[#allocation14 + $0x40] ss:$16 sps:$4 sm:$0xff]   ;;  %v13886_v27 = vld [vmem:[#allocation14 + $0x48] ss:$16 sps:$4 sm:$0xff]  }
 0x900   :  { %6195 = vmatpush1.bf16.msra.mxu0 %v13835_v2  ;;  %6236 = vmatpush1.bf16.msra.mxu1 %v13838_v7  ;;  %v13891_v2 = vld [vmem:[#allocation14 + $0x24] ss:$16 sps:$4 sm:$0xff]   ;;  %v13894_v7 = vld [vmem:[#allocation14 + $0x2c] ss:$16 sps:$4 sm:$0xff]  }
 0x901   :  { %6196 = vmatprep.subr.bf16.mxu0 %v13843_v13  ;;  %6237 = vmatprep.subr.bf16.mxu1 %v13846_v40  ;;  %v13889_v13 = vld [vmem:[#allocation14 + $0x20] ss:$16 sps:$4 sm:$0xff]   ;;  %v13892_v40 = vld [vmem:[#allocation14 + $0x28] ss:$16 sps:$4 sm:$0xff]  }
 0x904   :  { %6197 = vmatpush1.bf16.msra.mxu0 %v13841_v46  ;;  %6238 = vmatpush1.bf16.msra.mxu1 %v13844_v41  ;;  %v13897_v46 = vld [vmem:[#allocation14 + $0x4] ss:$16 sps:$4 sm:$0xff]   ;;  %v13900_v41 = vld [vmem:[#allocation14 + $0xc] ss:$16 sps:$4 sm:$0xff]  }
 0x905   :  { %6198 = vmatprep.subr.bf16.mxu0 %v13849_v61  ;;  %6239 = vmatprep.subr.bf16.mxu1 %v13852_v26  ;;  %v13895_v61 = vld [vmem:[#allocation14] ss:$16 sps:$4 sm:$0xff]   ;;  %v13898_v26 = vld [vmem:[#allocation14 + $0x8] ss:$16 sps:$4 sm:$0xff]  }
 0x908   :  { %6199 = vmatpush1.bf16.msra.mxu0 %v13847_v53  ;;  %6240 = vmatpush1.bf16.msra.mxu1 %v13850_v39  ;;  %v13903_v53 = vld [vmem:[#allocation14 + $0x1e4] ss:$16 sps:$4 sm:$0xff]   ;;  %v13906_v39 = vld [vmem:[#allocation14 + $0x1ec] ss:$16 sps:$4 sm:$0xff]  }
 0x909   :  { %6709 = vmatprep.subr.bf16.mxu0 %v13855_v30  ;;  %6750 = vmatprep.subr.bf16.mxu1 %v13858_v15  ;;  %v13909_v30 = vld [vmem:[#allocation14 + $0x1c4] ss:$16 sps:$4 sm:$0xff]   ;;  %v13912_v15 = vld [vmem:[#allocation14 + $0x1cc] ss:$16 sps:$4 sm:$0xff]  }
 0x90b   :  { %6217 = vmatmul.mubr.bf16.vlgmr.msra.gmra.mxu0 %v5991_v37  ;;  %6258 = vmatmul.mubr.bf16.vlgmr.msra.gmra.mxu1 %v5991_v37  ;;  %v13901_v37 = vld [vmem:[#allocation14 + $0x1e0] ss:$16 sps:$4 sm:$0xff]  }
 0x90c   :  { %6741 = vmatprep.mubr.bf16.mxu0 %v6302_v6  ;;  %6782 = vmatprep.mubr.bf16.mxu1 %v6302_v6  ;;  %v13904_v6 = vld [vmem:[#allocation14 + $0x1e8] ss:$16 sps:$4 sm:$0xff]  }
 0x90d   :  { %6710 = vmatpush1.bf16.msra.mxu0 %v13853_v33  ;;  %6751 = vmatpush1.bf16.msra.mxu1 %v13856_v22  ;;  %v13907_v33 = vld [vmem:[#allocation14 + $0x1c0] ss:$16 sps:$4 sm:$0xff]   ;;  %v13910_v22 = vld [vmem:[#allocation14 + $0x1c8] ss:$16 sps:$4 sm:$0xff]  }
 0x90e   :  { %6711 = vmatprep.subr.bf16.mxu0 %v13861_v25  ;;  %6752 = vmatprep.subr.bf16.mxu1 %v13864_v44  ;;  %v13915_v25 = vld [vmem:[#allocation14 + $0x1a4] ss:$16 sps:$4 sm:$0xff]   ;;  %v13918_v44 = vld [vmem:[#allocation14 + $0x1ac] ss:$16 sps:$4 sm:$0xff]  }
 0x911   :  { %6712 = vmatpush1.bf16.msra.mxu0 %v13859_v16  ;;  %6753 = vmatpush1.bf16.msra.mxu1 %v13862_v10  ;;  %v13913_v16 = vld [vmem:[#allocation14 + $0x1a0] ss:$16 sps:$4 sm:$0xff]   ;;  %v13916_v10 = vld [vmem:[#allocation14 + $0x1a8] ss:$16 sps:$4 sm:$0xff]  }
 0x912   :  { %6713 = vmatprep.subr.bf16.mxu0 %v13867_v49  ;;  %6754 = vmatprep.subr.bf16.mxu1 %v13870_v20  ;;  %v13921_v49 = vld [vmem:[#allocation14 + $0x184] ss:$16 sps:$4 sm:$0xff]   ;;  %v13924_v20 = vld [vmem:[#allocation14 + $0x18c] ss:$16 sps:$4 sm:$0xff]  }
 0x915   :  { %6714 = vmatpush1.bf16.msra.mxu0 %v13865_v32  ;;  %6755 = vmatpush1.bf16.msra.mxu1 %v13868_v57  ;;  %v13919_v32 = vld [vmem:[#allocation14 + $0x180] ss:$16 sps:$4 sm:$0xff]   ;;  %v13922_v57 = vld [vmem:[#allocation14 + $0x188] ss:$16 sps:$4 sm:$0xff]  }
 0x916   :  { %6715 = vmatprep.subr.bf16.mxu0 %v13873_v62  ;;  %6756 = vmatprep.subr.bf16.mxu1 %v13876_v58  ;;  %v13927_v62 = vld [vmem:[#allocation14 + $0x164] ss:$16 sps:$4 sm:$0xff]   ;;  %v13930_v58 = vld [vmem:[#allocation14 + $0x16c] ss:$16 sps:$4 sm:$0xff]  }
 0x919   :  { %6716 = vmatpush1.bf16.msra.mxu0 %v13871_v28  ;;  %6757 = vmatpush1.bf16.msra.mxu1 %v13874_v50  ;;  %v13925_v28 = vld [vmem:[#allocation14 + $0x160] ss:$16 sps:$4 sm:$0xff]   ;;  %v13928_v50 = vld [vmem:[#allocation14 + $0x168] ss:$16 sps:$4 sm:$0xff]  }
 0x91a   :  { %6717 = vmatprep.subr.bf16.mxu0 %v13879_v45  ;;  %6758 = vmatprep.subr.bf16.mxu1 %v13882_v17  ;;  %v13933_v45 = vld [vmem:[#allocation14 + $0x144] ss:$16 sps:$4 sm:$0xff]   ;;  %v13936_v17 = vld [vmem:[#allocation14 + $0x14c] ss:$16 sps:$4 sm:$0xff]  }
 0x91d   :  { %6718 = vmatpush1.bf16.msra.mxu0 %v13877_v18  ;;  %6759 = vmatpush1.bf16.msra.mxu1 %v13880_v23  ;;  %v13931_v18 = vld [vmem:[#allocation14 + $0x140] ss:$16 sps:$4 sm:$0xff]   ;;  %v13934_v23 = vld [vmem:[#allocation14 + $0x148] ss:$16 sps:$4 sm:$0xff]  }
 0x91e   :  { %6719 = vmatprep.subr.bf16.mxu0 %v13885_v31  ;;  %6760 = vmatprep.subr.bf16.mxu1 %v13888_v38  ;;  %v13939_v31 = vld [vmem:[#allocation14 + $0x124] ss:$16 sps:$4 sm:$0xff]   ;;  %v13942_v38 = vld [vmem:[#allocation14 + $0x12c] ss:$16 sps:$4 sm:$0xff]  }
 0x921   :  { %6720 = vmatpush1.bf16.msra.mxu0 %v13883_v19  ;;  %6761 = vmatpush1.bf16.msra.mxu1 %v13886_v27  ;;  %v13937_v19 = vld [vmem:[#allocation14 + $0x120] ss:$16 sps:$4 sm:$0xff]   ;;  %v13940_v27 = vld [vmem:[#allocation14 + $0x128] ss:$16 sps:$4 sm:$0xff]  }
 0x922   :  { %6721 = vmatprep.subr.bf16.mxu0 %v13891_v2  ;;  %6762 = vmatprep.subr.bf16.mxu1 %v13894_v7  ;;  %v13945_v2 = vld [vmem:[#allocation14 + $0x104] ss:$16 sps:$4 sm:$0xff]   ;;  %v13948_v7 = vld [vmem:[#allocation14 + $0x10c] ss:$16 sps:$4 sm:$0xff]  }
 0x925   :  { %6722 = vmatpush1.bf16.msra.mxu0 %v13889_v13  ;;  %6763 = vmatpush1.bf16.msra.mxu1 %v13892_v40  ;;  %v13943_v13 = vld [vmem:[#allocation14 + $0x100] ss:$16 sps:$4 sm:$0xff]   ;;  %v13946_v40 = vld [vmem:[#allocation14 + $0x108] ss:$16 sps:$4 sm:$0xff]  }
 0x926   :  { %6723 = vmatprep.subr.bf16.mxu0 %v13897_v46  ;;  %6764 = vmatprep.subr.bf16.mxu1 %v13900_v41  ;;  %v13951_v46 = vld [vmem:[#allocation14 + $0x2e4] ss:$16 sps:$4 sm:$0xff]   ;;  %v13954_v41 = vld [vmem:[#allocation14 + $0x2ec] ss:$16 sps:$4 sm:$0xff]  }
 0x929   :  { %6724 = vmatpush1.bf16.msra.mxu0 %v13895_v61  ;;  %6765 = vmatpush1.bf16.msra.mxu1 %v13898_v26  ;;  %v12079_v61 = vld [vmem:[%s16165_s8 + $0x4] sm:$0xf] }
 0x92a   :  { %6725 = vmatprep.subr.bf16.mxu0 %v13903_v53  ;;  %6766 = vmatprep.subr.bf16.mxu1 %v13906_v39  ;;  %v5535_v26 = vrot.slane %v12079_v61, %v15477_v4  ;;  %v5539_v53 = vrot.slane %v12079_v61, %v15485_v8 }
 0x92d   :  { %6726 = vmatpush2.bf16.msra.mxu0 %v13901_v37  ;;  %6767 = vmatpush2.bf16.msra.mxu1 %v13904_v6 }
 0x92e   :  { %6727 = vmatprep.subr.bf16.mxu0 %v13909_v30  ;;  %6768 = vmatprep.subr.bf16.mxu1 %v13912_v15 }
 0x931   :  { %6728 = vmatpush2.bf16.msra.mxu0 %v13907_v33  ;;  %6769 = vmatpush2.bf16.msra.mxu1 %v13910_v22 }
 0x932   :  { %6729 = vmatprep.subr.bf16.mxu0 %v13915_v25  ;;  %6770 = vmatprep.subr.bf16.mxu1 %v13918_v44 }
 0x935   :  { %6730 = vmatpush2.bf16.msra.mxu0 %v13913_v16  ;;  %6771 = vmatpush2.bf16.msra.mxu1 %v13916_v10 }
 0x936   :  { %6731 = vmatprep.subr.bf16.mxu0 %v13921_v49  ;;  %6772 = vmatprep.subr.bf16.mxu1 %v13924_v20  ;;  %v5547_v20 = vrot.slane %v12079_v61, %v15487_v9 }
 0x939   :  { %6732 = vmatpush2.bf16.msra.mxu0 %v13919_v32  ;;  %6773 = vmatpush2.bf16.msra.mxu1 %v13922_v57  ;;  %v5543_v57 = vrot.slane %v12079_v61, %v15479_v5 }
 0x93a   :  { %6733 = vmatprep.subr.bf16.mxu0 %v13927_v62  ;;  %6774 = vmatprep.subr.bf16.mxu1 %v13930_v58 }
 0x93d   :  { %6734 = vmatpush2.bf16.msra.mxu0 %v13925_v28  ;;  %6775 = vmatpush2.bf16.msra.mxu1 %v13928_v50 }
 0x93e   :  { %6735 = vmatprep.subr.bf16.mxu0 %v13933_v45  ;;  %6776 = vmatprep.subr.bf16.mxu1 %v13936_v17 }
 0x941   :  { %6736 = vmatpush2.bf16.msra.mxu0 %v13931_v18  ;;  %6777 = vmatpush2.bf16.msra.mxu1 %v13934_v23 }
 0x942   :  { %6737 = vmatprep.subr.bf16.mxu0 %v13939_v31  ;;  %6778 = vmatprep.subr.bf16.mxu1 %v13942_v38 }
 0x945   :  { %6738 = vmatpush2.bf16.msra.mxu0 %v13937_v19  ;;  %6779 = vmatpush2.bf16.msra.mxu1 %v13940_v27 }
 0x946   :  { %6739 = vmatprep.subr.bf16.mxu0 %v13945_v2  ;;  %6780 = vmatprep.subr.bf16.mxu1 %v13948_v7 }
 0x949   :  { %6740 = vmatpush2.bf16.msra.mxu0 %v13943_v13  ;;  %6781 = vmatpush2.bf16.msra.mxu1 %v13946_v40 }
 0x94a   :  { %7225 = vmatprep.subr.bf16.mxu0 %v13951_v46  ;;  %7266 = vmatprep.subr.bf16.mxu1 %v13954_v41 }
 0x9ab   :  { %v5906_v39 = vpop.f32.mrf.mxu0  ;;  %v5947_v37 = vpop.f32.mrf.mxu1 }
 0x9ac   :  { %v5907_v6 = vadd.f32 %v5906_v39, %v5535_v26  ;;  %v5948_v28 = vadd.f32 %v5947_v37, %v5543_v57 }
 0x9ad   :  { %v5908_v30 = vpop.f32.mrf.mxu0  ;;  %v5949_v15 = vpop.f32.mrf.mxu1 }
 0x9ae   :  { %v12144_v33 = vmul.f32 -1.442695, %v5907_v6  ;;  %v5909_v22 = vadd.f32 %v5908_v30, %v5539_v53  ;;  %v5950_v32 = vadd.f32 %v5949_v15, %v5547_v20 }
 0x9af   :  { %v5910_v25 = vpop.f32.mrf.mxu0  ;;  %v5951_v44 = vpop.f32.mrf.mxu1 }
 0x9b0   :  { %14941 = vpow2.f32 %v12144_v33  ;;  %v12145_v16 = vmul.f32 -1.442695, %v5909_v22  ;;  %v12146_v62 = vmul.f32 -1.442695, %v5950_v32 }
 0x9b1   :  { %v5911_v10 = vpop.f32.mrf.mxu0  ;;  %v5952_v49 = vpop.f32.mrf.mxu1 }
 0x9b2   :  { %14943 = vpow2.f32 %v12145_v16 }
 0x9b3   :  { %14945 = vpow2.f32 %v12146_v62 }
 0x9bd   :  { %v14942_v58 = vpop.eup %14941 }
 0x9be   :  { %v5957_v50 = vadd.f32 1.0, %v14942_v58 }
 0x9bf   :  { %v14944_v45 = vpop.eup %14943 }
 0x9c0   :  { %14947 = vrcp.f32 %v5957_v50  ;;  %v5963_v17 = vadd.f32 1.0, %v14944_v45  ;;  %v14946_v31 = vpop.eup %14945  ;;  %v15871_v45 = vpop.permute.xlu0 %6296 }
 0x9c1   :  { %14949 = vtanh.f32 %v5948_v28  ;;  %v5970_v41 = vadd.f32 1.0, %v14946_v31  ;;  %vm6298_vm12 = vcmp.eq.s32.totalorder %v15871_v45, 1  ;;  %v14198_v45 = vld [vmem:[#allocation14 + $0x2c8] ss:$16 sps:$4 sm:$0xff]  }
 0x9c2   :  { %14951 = vrcp.f32 %v5963_v17 }
 0x9cb   :  { %v6218_v18 = vpop.f32.mrf.mxu0  ;;  %v6259_v23 = vpop.f32.mrf.mxu1 }
 0x9cc   :  { %v6266_v38 = vadd.f32 %v6218_v18, %v15531_v42  ;;  %v6268_v33 = vadd.f32 %v6259_v23, %v15534_v43 }
 0x9cd   :  { %v14948_v19 = vpop.eup %14947  ;;  %v6220_v27 = vpop.f32.mrf.mxu0 }
 0x9ce   :  { %v6261_v2 = vpop.f32.mrf.mxu1  ;;  %v14950_v7 = vpop.eup %14949  ;;  %v12179_v13 = vmul.f32 -1.442695, %v6266_v38  ;;  %v6267_v40 = vadd.f32 %v6220_v27, %v15536_v47 }
 0x9cf   :  { %v14952_v46 = vpop.eup %14951  ;;  %v6222_v61 = vpop.f32.mrf.mxu0  ;;  %v5974_v53 = vmul.f32 %v14950_v7, %v14948_v19  ;;  %v6269_v47 = vadd.f32 %v6261_v2, %v15539_v48  ;;  %v13949_v2 = vld [vmem:[#allocation14 + $0x2e0] ss:$16 sps:$4 sm:$0xff]   ;;  %v13952_v7 = vld [vmem:[#allocation14 + $0x2e8] ss:$16 sps:$4 sm:$0xff]  }
 0x9d0   :  { %v6263_v26 = vpop.f32.mrf.mxu1  ;;  %v5973_v39 = vmul.f32 %v14952_v46, %v15790_v34  ;;  %14953 = vpow2.f32 %v12179_v13  ;;  %v12180_v37 = vmul.f32 -1.442695, %v6267_v40  ;;  %v13957_v40 = vld [vmem:[#allocation14 + $0x2c4] ss:$16 sps:$4 sm:$0xff]   ;;  %v13955_v46 = vld [vmem:[#allocation14 + $0x2c0] ss:$16 sps:$4 sm:$0xff]  }
 0x9d1   :  { %v6223_v6 = vpop.f32.mrf.mxu0  ;;  %v12181_v22 = vmul.f32 -1.442695, %v6269_v47  ;;  %v13961_v61 = vld [vmem:[#allocation14 + $0x2a0] ss:$16 sps:$4 sm:$0xff]   ;;  %v13964_v26 = vld [vmem:[#allocation14 + $0x2a8] ss:$16 sps:$4 sm:$0xff]  }
 0x9d2   :  { %v6264_v30 = vpop.f32.mrf.mxu1  ;;  %v5975_v15 = vadd.f32 %v5974_v53, %v5973_v39  ;;  %14955 = vpow2.f32 %v12180_v37  ;;  %v13969_v53 = vld [vmem:[#allocation14 + $0x284] ss:$16 sps:$4 sm:$0xff]   ;;  %v13972_v39 = vld [vmem:[#allocation14 + $0x28c] ss:$16 sps:$4 sm:$0xff]   ;;  %v13967_v37 = vld [vmem:[#allocation14 + $0x280] ss:$16 sps:$4 sm:$0xff]  }
 0x9d3   :  { %14957 = vrcp.f32 %v5970_v41  ;;  %v13966_v41 = vld [vmem:[#allocation14 + $0x2ac] ss:$16 sps:$4 sm:$0xff]   ;;  %v13970_v6 = vld [vmem:[#allocation14 + $0x288] ss:$16 sps:$4 sm:$0xff]   ;;  %v13975_v30 = vld [vmem:[#allocation14 + $0x264] ss:$16 sps:$4 sm:$0xff]  }
 0x9d4   :  { %14959 = vtanh.f32 %v5975_v15  ;;  %v15864_v42 = vsel %vm4945_vm11, %v5975_v15, %v15790_v34  ;;  %v13978_v15 = vld [vmem:[#allocation14 + $0x26c] ss:$16 sps:$4 sm:$0xff]   ;;  %v13973_v47 = vld [vmem:[#allocation14 + $0x260] ss:$16 sps:$4 sm:$0xff]  }
 0x9d5   :  { %14961 = vtanh.f32 %v6268_v33  ;;  %v13976_v33 = vld [vmem:[#allocation14 + $0x268] ss:$16 sps:$4 sm:$0xff]  }
 0x9d6   :  { %14963 = vpow2.f32 %v12181_v22  ;;  %v13981_v22 = vld [vmem:[#allocation14 + $0x244] ss:$16 sps:$4 sm:$0xff]  }
 0x9dd   :  { %v14954_v25 = vpop.eup %14953 }
 0x9de   :  { %v6273_v44 = vadd.f32 1.0, %v14954_v25  ;;  %v13984_v25 = vld [vmem:[#allocation14 + $0x24c] ss:$16 sps:$4 sm:$0xff]  }
 0x9df   :  { %v14956_v16 = vpop.eup %14955 }
 0x9e0   :  { %v14958_v10 = vpop.eup %14957  ;;  %14965 = vrcp.f32 %v6273_v44  ;;  %v6279_v49 = vadd.f32 1.0, %v14956_v16  ;;  %v13979_v44 = vld [vmem:[#allocation14 + $0x240] ss:$16 sps:$4 sm:$0xff]   ;;  %v13982_v16 = vld [vmem:[#allocation14 + $0x248] ss:$16 sps:$4 sm:$0xff]  }
 0x9e1   :  { %v14960_v20 = vpop.eup %14959 }
 0x9e2   :  { %14967 = vrcp.f32 %v6279_v49  ;;  %v5977_v32 = vmul.f32 %v14960_v20, %v14958_v10  ;;  %v14962_v57 = vpop.eup %14961  ;;  %v13987_v10 = vld [vmem:[#allocation14 + $0x224] ss:$16 sps:$4 sm:$0xff]   ;;  %v13990_v49 = vld [vmem:[#allocation14 + $0x22c] ss:$16 sps:$4 sm:$0xff]   ;;  %v13985_v20 = vld [vmem:[#allocation14 + $0x220] ss:$16 sps:$4 sm:$0xff]  }
 0x9e3   :  { %v14964_v48 = vpop.eup %14963 }
 0x9e4   :  { %v5980_v34 = vsel %vm4945_vm11, %v5977_v32, 0.0  ;;  %v6286_v28 = vadd.f32 1.0, %v14964_v48  ;;  %v15884_v19 = vsel %vm4945_vm11, %v5977_v32, %v15810_v12  ;;  %v13963_v12 = vld [vmem:[#allocation14 + $0x2a4] ss:$16 sps:$4 sm:$0xff]   ;;  %v13988_v32 = vld [vmem:[#allocation14 + $0x228] ss:$16 sps:$4 sm:$0xff]  }
 0x9e5   :  { %5982 = vst [vmem:[#allocation16 + $0x18] sm:$0xff] %v5980_v34  ;;  %v6818_v13 = vpack.c.bf16 %v15884_v19, %v15884_v19  ;;  %v13993_v34 = vld [vmem:[#allocation14 + $0x204] ss:$16 sps:$4 sm:$0xff]   ;;  %v13991_v48 = vld [vmem:[#allocation14 + $0x200] ss:$16 sps:$4 sm:$0xff]  }
 0x9e6   :  { %14969 = vrcp.f32 %v6286_v28  ;;  %v13997_v28 = vld [vmem:[#allocation14 + $0x3e0] ss:$16 sps:$4 sm:$0xff]  }
 0x9ed   :  { %v14966_v62 = vpop.eup %14965 }
 0x9ee   :  { %v6290_v43 = vmul.f32 %v14966_v62, %v14962_v57  ;;  %v13996_v57 = vld [vmem:[#allocation14 + $0x20c] ss:$16 sps:$4 sm:$0xff]   ;;  %v13994_v62 = vld [vmem:[#allocation14 + $0x208] ss:$16 sps:$4 sm:$0xff]  }
 0x9ef   :  { %v14968_v58 = vpop.eup %14967 }
 0x9f0   :  { %v6289_v50 = vmul.f32 %v14968_v58, %v15803_v36  ;;  %v14002_v58 = vld [vmem:[#allocation14 + $0x3ec] ss:$16 sps:$4 sm:$0xff]  }
 0x9f2   :  { %v6291_v17 = vadd.f32 %v6290_v43, %v6289_v50  ;;  %v13999_v43 = vld [vmem:[#allocation14 + $0x3e4] ss:$16 sps:$4 sm:$0xff]   ;;  %v14000_v50 = vld [vmem:[#allocation14 + $0x3e8] ss:$16 sps:$4 sm:$0xff]  }
 0x9f3   :  { %v14970_v23 = vpop.eup %14969 }
 0x9f4   :  { %14971 = vtanh.f32 %v6291_v17  ;;  %v15877_v18 = vsel %vm6298_vm12, %v6291_v17, %v15803_v36  ;;  %v13960_v36 = vld [vmem:[#allocation14 + $0x2cc] ss:$16 sps:$4 sm:$0xff]   ;;  %v14005_v17 = vld [vmem:[#allocation14 + $0x3c4] ss:$16 sps:$4 sm:$0xff]  }
 0xa01   :  { %v14972_v31 = vpop.eup %14971 }
 0xa02   :  { %v15879_v38 = vmul.f32 %v14972_v31, %v14970_v23  ;;  %v14008_v23 = vld [vmem:[#allocation14 + $0x3cc] ss:$16 sps:$4 sm:$0xff]   ;;  %v14003_v31 = vld [vmem:[#allocation14 + $0x3c0] ss:$16 sps:$4 sm:$0xff]  }
 0xa04   :  { %v6301_v27 = vpack.c.bf16 %v15879_v38, %v15879_v38 }
 0xa06   :  { %6742 = vmatmul.mubr.bf16.vlgmr.msra.gmra.mxu0 %v6301_v27  ;;  %6783 = vmatmul.mubr.bf16.vlgmr.msra.gmra.mxu1 %v6301_v27  ;;  %v14006_v27 = vld [vmem:[#allocation14 + $0x3c8] ss:$16 sps:$4 sm:$0xff]  }
 0xa07   :  { %7257 = vmatprep.mubr.bf16.mxu0 %v6818_v13  ;;  %7298 = vmatprep.mubr.bf16.mxu1 %v6818_v13  ;;  %v14009_v13 = vld [vmem:[#allocation14 + $0x3a0] ss:$16 sps:$4 sm:$0xff]  }
 0xa08   :  { %7226 = vmatpush1.bf16.msra.mxu0 %v13949_v2  ;;  %7267 = vmatpush1.bf16.msra.mxu1 %v13952_v7  ;;  %v14011_v2 = vld [vmem:[#allocation14 + $0x3a4] ss:$16 sps:$4 sm:$0xff]   ;;  %v14014_v7 = vld [vmem:[#allocation14 + $0x3ac] ss:$16 sps:$4 sm:$0xff]  }
 0xa09   :  { %7227 = vmatprep.subr.bf16.mxu0 %v13957_v40  ;;  %7268 = vmatprep.subr.bf16.mxu1 %v13960_v36  ;;  %v14012_v40 = vld [vmem:[#allocation14 + $0x3a8] ss:$16 sps:$4 sm:$0xff]   ;;  %v14017_v36 = vld [vmem:[#allocation14 + $0x384] ss:$16 sps:$4 sm:$0xff]  }
 0xa0c   :  { %7228 = vmatpush1.bf16.msra.mxu0 %v13955_v46  ;;  %7269 = vmatpush1.bf16.msra.mxu1 %v13958_v11  ;;  %v14020_v46 = vld [vmem:[#allocation14 + $0x38c] ss:$16 sps:$4 sm:$0xff]   ;;  %v14015_v11 = vld [vmem:[#allocation14 + $0x380] ss:$16 sps:$4 sm:$0xff]  }
 0xa0d   :  { %7229 = vmatprep.subr.bf16.mxu0 %v13963_v12  ;;  %7270 = vmatprep.subr.bf16.mxu1 %v13966_v41  ;;  %v14018_v12 = vld [vmem:[#allocation14 + $0x388] ss:$16 sps:$4 sm:$0xff]   ;;  %v14023_v41 = vld [vmem:[#allocation14 + $0x364] ss:$16 sps:$4 sm:$0xff]  }
 0xa10   :  { %7230 = vmatpush1.bf16.msra.mxu0 %v13961_v61  ;;  %7271 = vmatpush1.bf16.msra.mxu1 %v13964_v26  ;;  %v14021_v61 = vld [vmem:[#allocation14 + $0x360] ss:$16 sps:$4 sm:$0xff]   ;;  %v14024_v26 = vld [vmem:[#allocation14 + $0x368] ss:$16 sps:$4 sm:$0xff]  }
 0xa11   :  { %7231 = vmatprep.subr.bf16.mxu0 %v13969_v53  ;;  %7272 = vmatprep.subr.bf16.mxu1 %v13972_v39  ;;  %v14026_v53 = vld [vmem:[#allocation14 + $0x36c] ss:$16 sps:$4 sm:$0xff]   ;;  %v14029_v39 = vld [vmem:[#allocation14 + $0x344] ss:$16 sps:$4 sm:$0xff]  }
 0xa14   :  { %7232 = vmatpush1.bf16.msra.mxu0 %v13967_v37  ;;  %7273 = vmatpush1.bf16.msra.mxu1 %v13970_v6  ;;  %v14032_v37 = vld [vmem:[#allocation14 + $0x34c] ss:$16 sps:$4 sm:$0xff]   ;;  %v14027_v6 = vld [vmem:[#allocation14 + $0x340] ss:$16 sps:$4 sm:$0xff]  }
 0xa15   :  { %7233 = vmatprep.subr.bf16.mxu0 %v13975_v30  ;;  %7274 = vmatprep.subr.bf16.mxu1 %v13978_v15  ;;  %v14030_v30 = vld [vmem:[#allocation14 + $0x348] ss:$16 sps:$4 sm:$0xff]   ;;  %v14035_v15 = vld [vmem:[#allocation14 + $0x324] ss:$16 sps:$4 sm:$0xff]  }
 0xa18   :  { %7234 = vmatpush1.bf16.msra.mxu0 %v13973_v47  ;;  %7275 = vmatpush1.bf16.msra.mxu1 %v13976_v33  ;;  %v14038_v47 = vld [vmem:[#allocation14 + $0x32c] ss:$16 sps:$4 sm:$0xff]   ;;  %v14033_v33 = vld [vmem:[#allocation14 + $0x320] ss:$16 sps:$4 sm:$0xff]  }
 0xa19   :  { %7235 = vmatprep.subr.bf16.mxu0 %v13981_v22  ;;  %7276 = vmatprep.subr.bf16.mxu1 %v13984_v25  ;;  %v14036_v22 = vld [vmem:[#allocation14 + $0x328] ss:$16 sps:$4 sm:$0xff]   ;;  %v14041_v25 = vld [vmem:[#allocation14 + $0x304] ss:$16 sps:$4 sm:$0xff]  }
 0xa1c   :  { %7236 = vmatpush1.bf16.msra.mxu0 %v13979_v44  ;;  %7277 = vmatpush1.bf16.msra.mxu1 %v13982_v16  ;;  %v14044_v44 = vld [vmem:[#allocation14 + $0x30c] ss:$16 sps:$4 sm:$0xff]   ;;  %v14039_v16 = vld [vmem:[#allocation14 + $0x300] ss:$16 sps:$4 sm:$0xff]  }
 0xa1d   :  { %7237 = vmatprep.subr.bf16.mxu0 %v13987_v10  ;;  %7278 = vmatprep.subr.bf16.mxu1 %v13990_v49  ;;  %v14042_v10 = vld [vmem:[#allocation14 + $0x308] ss:$16 sps:$4 sm:$0xff]   ;;  %v14047_v49 = vld [vmem:[#allocation13 + $0xe4] ss:$16 sps:$4 sm:$0xff]  }
 0xa20   :  { %7238 = vmatpush1.bf16.msra.mxu0 %v13985_v20  ;;  %7279 = vmatpush1.bf16.msra.mxu1 %v13988_v32  ;;  %v14050_v20 = vld [vmem:[#allocation13 + $0xec] ss:$16 sps:$4 sm:$0xff]   ;;  %v6367_v32 = vld [vmem:[%s16165_s8] sm:$0xf] }
 0xa21   :  { %7239 = vmatprep.subr.bf16.mxu0 %v13993_v34  ;;  %7280 = vmatprep.subr.bf16.mxu1 %v13996_v57  ;;  %v6372_v34 = vrot.slane %v6367_v32, %v15477_v4  ;;  %v6376_v57 = vrot.slane %v6367_v32, %v15485_v8 }
 0xa24   :  { %7240 = vmatpush1.bf16.msra.mxu0 %v13991_v48  ;;  %7281 = vmatpush1.bf16.msra.mxu1 %v13994_v62 }
 0xa25   :  { %7241 = vmatprep.subr.bf16.mxu0 %v13999_v43  ;;  %7282 = vmatprep.subr.bf16.mxu1 %v14002_v58 }
 0xa28   :  { %7242 = vmatpush2.bf16.msra.mxu0 %v13997_v28  ;;  %7283 = vmatpush2.bf16.msra.mxu1 %v14000_v50 }
 0xa29   :  { %7243 = vmatprep.subr.bf16.mxu0 %v14005_v17  ;;  %7284 = vmatprep.subr.bf16.mxu1 %v14008_v23 }
 0xa2c   :  { %7244 = vmatpush2.bf16.msra.mxu0 %v14003_v31  ;;  %7285 = vmatpush2.bf16.msra.mxu1 %v14006_v27 }
 0xa2d   :  { %7245 = vmatprep.subr.bf16.mxu0 %v14011_v2  ;;  %7286 = vmatprep.subr.bf16.mxu1 %v14014_v7 }
 0xa30   :  { %7246 = vmatpush2.bf16.msra.mxu0 %v14009_v13  ;;  %7287 = vmatpush2.bf16.msra.mxu1 %v14012_v40  ;;  %v6384_v13 = vrot.slane %v6367_v32, %v15487_v9 }
 0xa31   :  { %7247 = vmatprep.subr.bf16.mxu0 %v14017_v36  ;;  %7288 = vmatprep.subr.bf16.mxu1 %v14020_v46  ;;  %v6380_v36 = vrot.slane %v6367_v32, %v15479_v5  ;;  %v14053_v32 = vld [vmem:[#allocation13 + $0xc4] ss:$16 sps:$4 sm:$0xff]  }
 0xa34   :  { %7248 = vmatpush2.bf16.msra.mxu0 %v14015_v11  ;;  %7289 = vmatpush2.bf16.msra.mxu1 %v14018_v12 }
 0xa35   :  { %7249 = vmatprep.subr.bf16.mxu0 %v14023_v41  ;;  %7290 = vmatprep.subr.bf16.mxu1 %v14026_v53 }
 0xa38   :  { %7250 = vmatpush2.bf16.msra.mxu0 %v14021_v61  ;;  %7291 = vmatpush2.bf16.msra.mxu1 %v14024_v26 }
 0xa39   :  { %7251 = vmatprep.subr.bf16.mxu0 %v14029_v39  ;;  %7292 = vmatprep.subr.bf16.mxu1 %v14032_v37 }
 0xa3c   :  { %7252 = vmatpush2.bf16.msra.mxu0 %v14027_v6  ;;  %7293 = vmatpush2.bf16.msra.mxu1 %v14030_v30 }
 0xa3d   :  { %7253 = vmatprep.subr.bf16.mxu0 %v14035_v15  ;;  %7294 = vmatprep.subr.bf16.mxu1 %v14038_v47 }
 0xa40   :  { %7254 = vmatpush2.bf16.msra.mxu0 %v14033_v33  ;;  %7295 = vmatpush2.bf16.msra.mxu1 %v14036_v22 }
 0xa41   :  { %7255 = vmatprep.subr.bf16.mxu0 %v14041_v25  ;;  %7296 = vmatprep.subr.bf16.mxu1 %v14044_v44 }
 0xa44   :  { %7256 = vmatpush2.bf16.msra.mxu0 %v14039_v16  ;;  %7297 = vmatpush2.bf16.msra.mxu1 %v14042_v10  ;;  %v14045_v10 = vld [vmem:[#allocation13 + $0xe0] ss:$16 sps:$4 sm:$0xff]  }
 0xa45   :  { %7537 = vmatprep.subr.bf16.mxu0 %v14047_v49  ;;  %7578 = vmatprep.subr.bf16.mxu1 %v14050_v20  ;;  %v14048_v49 = vld [vmem:[#allocation13 + $0xe8] ss:$16 sps:$4 sm:$0xff]  }
 0xac6   :  { %v6743_v48 = vpop.f32.mrf.mxu0  ;;  %v6784_v62 = vpop.f32.mrf.mxu1 }
 0xac7   :  { %v6744_v43 = vadd.f32 %v6743_v48, %v6372_v34  ;;  %v6785_v12 = vadd.f32 %v6784_v62, %v6380_v36  ;;  %v14056_v34 = vld [vmem:[#allocation13 + $0xcc] ss:$16 sps:$4 sm:$0xff]   ;;  %v14054_v48 = vld [vmem:[#allocation13 + $0xc8] ss:$16 sps:$4 sm:$0xff]   ;;  %v14075_v36 = vld [vmem:[#allocation13 + $0x40] ss:$16 sps:$4 sm:$0xff]  }
 0xac8   :  { %v6745_v58 = vpop.f32.mrf.mxu0  ;;  %v6786_v28 = vpop.f32.mrf.mxu1  ;;  %v14062_v62 = vld [vmem:[#allocation13 + $0xac] ss:$16 sps:$4 sm:$0xff]  }
 0xac9   :  { %v12246_v50 = vmul.f32 -1.442695, %v6744_v43  ;;  %v6746_v17 = vadd.f32 %v6745_v58, %v6376_v57  ;;  %v6787_v40 = vadd.f32 %v6786_v28, %v6384_v13  ;;  %v14051_v57 = vld [vmem:[#allocation13 + $0xc0] ss:$16 sps:$4 sm:$0xff]   ;;  %v14060_v58 = vld [vmem:[#allocation13 + $0xa8] ss:$16 sps:$4 sm:$0xff]  }
 0xaca   :  { %v6747_v23 = vpop.f32.mrf.mxu0  ;;  %v6788_v31 = vpop.f32.mrf.mxu1  ;;  %v14057_v43 = vld [vmem:[#allocation13 + $0xa0] ss:$16 sps:$4 sm:$0xff]   ;;  %v14065_v28 = vld [vmem:[#allocation13 + $0x84] ss:$16 sps:$4 sm:$0xff]  }
 0xacb   :  { %14973 = vpow2.f32 %v12246_v50  ;;  %v12247_v27 = vmul.f32 -1.442695, %v6746_v17  ;;  %v12248_v46 = vmul.f32 -1.442695, %v6787_v40  ;;  %v14068_v50 = vld [vmem:[#allocation13 + $0x8c] ss:$16 sps:$4 sm:$0xff]  }
 0xacc   :  { %v6748_v2 = vpop.f32.mrf.mxu0  ;;  %v6789_v7 = vpop.f32.mrf.mxu1  ;;  %v14063_v17 = vld [vmem:[#allocation13 + $0x80] ss:$16 sps:$4 sm:$0xff]   ;;  %v14066_v23 = vld [vmem:[#allocation13 + $0x88] ss:$16 sps:$4 sm:$0xff]   ;;  %v14071_v31 = vld [vmem:[#allocation13 + $0x64] ss:$16 sps:$4 sm:$0xff]  }
 0xacd   :  { %14975 = vpow2.f32 %v12247_v27  ;;  %v14074_v27 = vld [vmem:[#allocation13 + $0x6c] ss:$16 sps:$4 sm:$0xff]   ;;  %v14069_v2 = vld [vmem:[#allocation13 + $0x60] ss:$16 sps:$4 sm:$0xff]   ;;  %v14072_v7 = vld [vmem:[#allocation13 + $0x68] ss:$16 sps:$4 sm:$0xff]  }
 0xace   :  { %14977 = vpow2.f32 %v12248_v46  ;;  %v14077_v13 = vld [vmem:[#allocation13 + $0x44] ss:$16 sps:$4 sm:$0xff]   ;;  %v14080_v40 = vld [vmem:[#allocation13 + $0x4c] ss:$16 sps:$4 sm:$0xff]   ;;  %v14078_v46 = vld [vmem:[#allocation13 + $0x48] ss:$16 sps:$4 sm:$0xff]  }
 0xad8   :  { %v14974_v11 = vpop.eup %14973 }
 0xad9   :  { %v6794_v41 = vadd.f32 1.0, %v14974_v11  ;;  %v14083_v11 = vld [vmem:[#allocation13 + $0x24] ss:$16 sps:$4 sm:$0xff]  }
 0xada   :  { %v14976_v61 = vpop.eup %14975 }
 0xadb   :  { %14979 = vrcp.f32 %v6794_v41  ;;  %v6800_v26 = vadd.f32 1.0, %v14976_v61  ;;  %v14978_v53 = vpop.eup %14977  ;;  %v14081_v41 = vld [vmem:[#allocation13 + $0x20] ss:$16 sps:$4 sm:$0xff]   ;;  %v14084_v61 = vld [vmem:[#allocation13 + $0x28] ss:$16 sps:$4 sm:$0xff]  }
 0xadc   :  { %14981 = vtanh.f32 %v6785_v12  ;;  %v6807_v30 = vadd.f32 1.0, %v14978_v53  ;;  %v14086_v12 = vld [vmem:[#allocation13 + $0x2c] ss:$16 sps:$4 sm:$0xff]  }
 0xadd   :  { %14983 = vrcp.f32 %v6800_v26  ;;  %v14089_v26 = vld [vmem:[#allocation13 + $0x4] ss:$16 sps:$4 sm:$0xff]   ;;  %v14092_v53 = vld [vmem:[#allocation13 + $0xc] ss:$16 sps:$4 sm:$0xff]  }
 0xade   :  { %14985 = vrcp.f32 %v6807_v30 }
 0xae8   :  { %v14980_v39 = vpop.eup %14979 }
 0xae9   :  { %v14982_v37 = vpop.eup %14981 }
 0xaea   :  { %v14984_v6 = vpop.eup %14983  ;;  %v6811_v15 = vmul.f32 %v14982_v37, %v14980_v39  ;;  %v14087_v39 = vld [vmem:[#allocation13] ss:$16 sps:$4 sm:$0xff]   ;;  %v14090_v37 = vld [vmem:[#allocation13 + $0x8] ss:$16 sps:$4 sm:$0xff]  }
 0xaeb   :  { %v6810_v47 = vmul.f32 %v14984_v6, %v15827_v35  ;;  %v14986_v25 = vpop.eup %14985  ;;  %v15913_v6 = vsel %vm6298_vm12, %v15879_v38, %v15839_v54  ;;  %v14095_v54 = vld [vmem:[#allocation14 + $0xe4] ss:$16 sps:$4 sm:$0xff]   ;;  %v14098_v38 = vld [vmem:[#allocation14 + $0xec] ss:$16 sps:$4 sm:$0xff]  }
 0xaed   :  { %v6812_v33 = vadd.f32 %v6811_v15, %v6810_v47  ;;  %v7344_v15 = vpack.c.bf16 %v15913_v6, %v15913_v6 }
 0xaef   :  { %14987 = vtanh.f32 %v6812_v33  ;;  %v15901_v22 = vsel %vm6298_vm12, %v6812_v33, %v15827_v35  ;;  %v14059_v35 = vld [vmem:[#allocation13 + $0xa4] ss:$16 sps:$4 sm:$0xff]   ;;  %v14093_v33 = vld [vmem:[#allocation14 + $0xe0] ss:$16 sps:$4 sm:$0xff]  }
 0xafc   :  { %v14988_v44 = vpop.eup %14987 }
 0xafd   :  { %v15903_v16 = vmul.f32 %v14988_v44, %v14986_v25  ;;  %v14096_v25 = vld [vmem:[#allocation14 + $0xe8] ss:$16 sps:$4 sm:$0xff]   ;;  %v14104_v44 = vld [vmem:[#allocation14 + $0xcc] ss:$16 sps:$4 sm:$0xff]  }
 0xaff   :  { %v6817_v20 = vpack.c.bf16 %v15903_v16, %v15903_v16  ;;  %v15919_v30 = vsel %vm6298_vm12, %v15903_v16, %v15845_v29  ;;  %v14101_v29 = vld [vmem:[#allocation14 + $0xc4] ss:$16 sps:$4 sm:$0xff]   ;;  %v14099_v16 = vld [vmem:[#allocation14 + $0xc0] ss:$16 sps:$4 sm:$0xff]  }
 0xb00   :  { %v7655_v47 = vpack.c.bf16 %v15919_v30, %v15919_v30 }
 0xb01   :  { %7258 = vmatmul.mubr.bf16.vlgmr.msra.gmra.mxu0 %v6817_v20  ;;  %7299 = vmatmul.mubr.bf16.vlgmr.msra.gmra.mxu1 %v6817_v20  ;;  %v14110_v20 = vld [vmem:[#allocation14 + $0xac] ss:$16 sps:$4 sm:$0xff]  }
 0xb02   :  { %7538 = vmatpush1.bf16.msra.mxu0 %v14045_v10  ;;  %7579 = vmatpush1.bf16.msra.mxu1 %v14048_v49  ;;  %v14102_v10 = vld [vmem:[#allocation14 + $0xc8] ss:$16 sps:$4 sm:$0xff]   ;;  %v14107_v49 = vld [vmem:[#allocation14 + $0xa4] ss:$16 sps:$4 sm:$0xff]  }
 0xb03   :  { %7539 = vmatprep.subr.bf16.mxu0 %v14053_v32  ;;  %7580 = vmatprep.subr.bf16.mxu1 %v14056_v34  ;;  %v14105_v32 = vld [vmem:[#allocation14 + $0xa0] ss:$16 sps:$4 sm:$0xff]   ;;  %v14108_v34 = vld [vmem:[#allocation14 + $0xa8] ss:$16 sps:$4 sm:$0xff]  }
 0xb04   :  { %7569 = vmatprep.mubr.bf16.mxu0 %v15358_v0  ;;  %7610 = vmatprep.mubr.bf16.mxu1 %v15358_v0 }
 0xb06   :  { %7540 = vmatpush1.bf16.msra.mxu0 %v14051_v57  ;;  %7581 = vmatpush1.bf16.msra.mxu1 %v14054_v48  ;;  %v14113_v57 = vld [vmem:[#allocation14 + $0x84] ss:$16 sps:$4 sm:$0xff]   ;;  %v14116_v48 = vld [vmem:[#allocation14 + $0x8c] ss:$16 sps:$4 sm:$0xff]  }
 0xb07   :  { %7541 = vmatprep.subr.bf16.mxu0 %v14059_v35  ;;  %7582 = vmatprep.subr.bf16.mxu1 %v14062_v62  ;;  %v14111_v35 = vld [vmem:[#allocation14 + $0x80] ss:$16 sps:$4 sm:$0xff]   ;;  %v14114_v62 = vld [vmem:[#allocation14 + $0x88] ss:$16 sps:$4 sm:$0xff]  }
 0xb0a   :  { %7542 = vmatpush1.bf16.msra.mxu0 %v14057_v43  ;;  %7583 = vmatpush1.bf16.msra.mxu1 %v14060_v58  ;;  %v14119_v43 = vld [vmem:[#allocation14 + $0x64] ss:$16 sps:$4 sm:$0xff]   ;;  %v14122_v58 = vld [vmem:[#allocation14 + $0x6c] ss:$16 sps:$4 sm:$0xff]  }
 0xb0b   :  { %7543 = vmatprep.subr.bf16.mxu0 %v14065_v28  ;;  %7584 = vmatprep.subr.bf16.mxu1 %v14068_v50  ;;  %v14117_v28 = vld [vmem:[#allocation14 + $0x60] ss:$16 sps:$4 sm:$0xff]   ;;  %v14120_v50 = vld [vmem:[#allocation14 + $0x68] ss:$16 sps:$4 sm:$0xff]  }
 0xb0e   :  { %7544 = vmatpush1.bf16.msra.mxu0 %v14063_v17  ;;  %7585 = vmatpush1.bf16.msra.mxu1 %v14066_v23  ;;  %v14125_v17 = vld [vmem:[#allocation14 + $0x44] ss:$16 sps:$4 sm:$0xff]   ;;  %v14128_v23 = vld [vmem:[#allocation14 + $0x4c] ss:$16 sps:$4 sm:$0xff]  }
 0xb0f   :  { %7545 = vmatprep.subr.bf16.mxu0 %v14071_v31  ;;  %7586 = vmatprep.subr.bf16.mxu1 %v14074_v27  ;;  %v14123_v31 = vld [vmem:[#allocation14 + $0x40] ss:$16 sps:$4 sm:$0xff]   ;;  %v14126_v27 = vld [vmem:[#allocation14 + $0x48] ss:$16 sps:$4 sm:$0xff]  }
 0xb12   :  { %7546 = vmatpush1.bf16.msra.mxu0 %v14069_v2  ;;  %7587 = vmatpush1.bf16.msra.mxu1 %v14072_v7  ;;  %v14131_v2 = vld [vmem:[#allocation14 + $0x24] ss:$16 sps:$4 sm:$0xff]   ;;  %v14134_v7 = vld [vmem:[#allocation14 + $0x2c] ss:$16 sps:$4 sm:$0xff]  }
 0xb13   :  { %7547 = vmatprep.subr.bf16.mxu0 %v14077_v13  ;;  %7588 = vmatprep.subr.bf16.mxu1 %v14080_v40  ;;  %v14129_v13 = vld [vmem:[#allocation14 + $0x20] ss:$16 sps:$4 sm:$0xff]   ;;  %v14132_v40 = vld [vmem:[#allocation14 + $0x28] ss:$16 sps:$4 sm:$0xff]  }
 0xb16   :  { %7548 = vmatpush1.bf16.msra.mxu0 %v14075_v36  ;;  %7589 = vmatpush1.bf16.msra.mxu1 %v14078_v46  ;;  %v14137_v36 = vld [vmem:[#allocation14 + $0x4] ss:$16 sps:$4 sm:$0xff]   ;;  %v14140_v46 = vld [vmem:[#allocation14 + $0xc] ss:$16 sps:$4 sm:$0xff]  }
 0xb17   :  { %7549 = vmatprep.subr.bf16.mxu0 %v14083_v11  ;;  %7590 = vmatprep.subr.bf16.mxu1 %v14086_v12  ;;  %v14135_v11 = vld [vmem:[#allocation14] ss:$16 sps:$4 sm:$0xff]   ;;  %v14138_v12 = vld [vmem:[#allocation14 + $0x8] ss:$16 sps:$4 sm:$0xff]  }
 0xb1a   :  { %7550 = vmatpush1.bf16.msra.mxu0 %v14081_v41  ;;  %7591 = vmatpush1.bf16.msra.mxu1 %v14084_v61  ;;  %v14143_v41 = vld [vmem:[#allocation14 + $0x1e4] ss:$16 sps:$4 sm:$0xff]   ;;  %v14146_v61 = vld [vmem:[#allocation14 + $0x1ec] ss:$16 sps:$4 sm:$0xff]  }
 0xb1b   :  { %7551 = vmatprep.subr.bf16.mxu0 %v14089_v26  ;;  %7592 = vmatprep.subr.bf16.mxu1 %v14092_v53  ;;  %v14141_v26 = vld [vmem:[#allocation14 + $0x1e0] ss:$16 sps:$4 sm:$0xff]   ;;  %v14144_v53 = vld [vmem:[#allocation14 + $0x1e8] ss:$16 sps:$4 sm:$0xff]  }
 0xb1e   :  { %7552 = vmatpush1.bf16.msra.mxu0 %v14087_v39  ;;  %7593 = vmatpush1.bf16.msra.mxu1 %v14090_v37  ;;  %v14149_v39 = vld [vmem:[#allocation14 + $0x1c4] ss:$16 sps:$4 sm:$0xff]   ;;  %v14152_v37 = vld [vmem:[#allocation14 + $0x1cc] ss:$16 sps:$4 sm:$0xff]  }
 0xb1f   :  { %8062 = vmatprep.subr.bf16.mxu0 %v14095_v54  ;;  %8103 = vmatprep.subr.bf16.mxu1 %v14098_v38  ;;  %v14155_v54 = vld [vmem:[#allocation14 + $0x1a4] ss:$16 sps:$4 sm:$0xff]   ;;  %v14158_v38 = vld [vmem:[#allocation14 + $0x1ac] ss:$16 sps:$4 sm:$0xff]  }
 0xb21   :  { %7570 = vmatmul.mubr.bf16.vlgmr.msra.gmra.mxu0 %v7344_v15  ;;  %7611 = vmatmul.mubr.bf16.vlgmr.msra.gmra.mxu1 %v7344_v15  ;;  %v14147_v15 = vld [vmem:[#allocation14 + $0x1c0] ss:$16 sps:$4 sm:$0xff]  }
 0xb22   :  { %8094 = vmatprep.mubr.bf16.mxu0 %v7655_v47  ;;  %8135 = vmatprep.mubr.bf16.mxu1 %v7655_v47  ;;  %v14150_v47 = vld [vmem:[#allocation14 + $0x1c8] ss:$16 sps:$4 sm:$0xff]  }
 0xb23   :  { %8063 = vmatpush1.bf16.msra.mxu0 %v14093_v33  ;;  %8104 = vmatpush1.bf16.msra.mxu1 %v14096_v25  ;;  %v14153_v33 = vld [vmem:[#allocation14 + $0x1a0] ss:$16 sps:$4 sm:$0xff]   ;;  %v14156_v25 = vld [vmem:[#allocation14 + $0x1a8] ss:$16 sps:$4 sm:$0xff]  }
 0xb24   :  { %8064 = vmatprep.subr.bf16.mxu0 %v14101_v29  ;;  %8105 = vmatprep.subr.bf16.mxu1 %v14104_v44  ;;  %v14161_v29 = vld [vmem:[#allocation14 + $0x184] ss:$16 sps:$4 sm:$0xff]   ;;  %v14164_v44 = vld [vmem:[#allocation14 + $0x18c] ss:$16 sps:$4 sm:$0xff]  }
 0xb27   :  { %8065 = vmatpush1.bf16.msra.mxu0 %v14099_v16  ;;  %8106 = vmatpush1.bf16.msra.mxu1 %v14102_v10  ;;  %v14159_v16 = vld [vmem:[#allocation14 + $0x180] ss:$16 sps:$4 sm:$0xff]   ;;  %v14162_v10 = vld [vmem:[#allocation14 + $0x188] ss:$16 sps:$4 sm:$0xff]  }
 0xb28   :  { %8066 = vmatprep.subr.bf16.mxu0 %v14107_v49  ;;  %8107 = vmatprep.subr.bf16.mxu1 %v14110_v20  ;;  %v14167_v49 = vld [vmem:[#allocation14 + $0x164] ss:$16 sps:$4 sm:$0xff]   ;;  %v14170_v20 = vld [vmem:[#allocation14 + $0x16c] ss:$16 sps:$4 sm:$0xff]  }
 0xb2b   :  { %8067 = vmatpush1.bf16.msra.mxu0 %v14105_v32  ;;  %8108 = vmatpush1.bf16.msra.mxu1 %v14108_v34  ;;  %v14165_v32 = vld [vmem:[#allocation14 + $0x160] ss:$16 sps:$4 sm:$0xff]   ;;  %v14168_v34 = vld [vmem:[#allocation14 + $0x168] ss:$16 sps:$4 sm:$0xff]  }
 0xb2c   :  { %8068 = vmatprep.subr.bf16.mxu0 %v14113_v57  ;;  %8109 = vmatprep.subr.bf16.mxu1 %v14116_v48  ;;  %v14173_v57 = vld [vmem:[#allocation14 + $0x144] ss:$16 sps:$4 sm:$0xff]   ;;  %v14176_v48 = vld [vmem:[#allocation14 + $0x14c] ss:$16 sps:$4 sm:$0xff]  }
 0xb2f   :  { %8069 = vmatpush1.bf16.msra.mxu0 %v14111_v35  ;;  %8110 = vmatpush1.bf16.msra.mxu1 %v14114_v62  ;;  %v14171_v35 = vld [vmem:[#allocation14 + $0x140] ss:$16 sps:$4 sm:$0xff]   ;;  %v14174_v62 = vld [vmem:[#allocation14 + $0x148] ss:$16 sps:$4 sm:$0xff]  }
 0xb30   :  { %8070 = vmatprep.subr.bf16.mxu0 %v14119_v43  ;;  %8111 = vmatprep.subr.bf16.mxu1 %v14122_v58  ;;  %v14179_v43 = vld [vmem:[#allocation14 + $0x124] ss:$16 sps:$4 sm:$0xff]   ;;  %v14182_v58 = vld [vmem:[#allocation14 + $0x12c] ss:$16 sps:$4 sm:$0xff]  }
 0xb33   :  { %8071 = vmatpush1.bf16.msra.mxu0 %v14117_v28  ;;  %8112 = vmatpush1.bf16.msra.mxu1 %v14120_v50  ;;  %v14177_v28 = vld [vmem:[#allocation14 + $0x120] ss:$16 sps:$4 sm:$0xff]   ;;  %v14180_v50 = vld [vmem:[#allocation14 + $0x128] ss:$16 sps:$4 sm:$0xff]  }
 0xb34   :  { %8072 = vmatprep.subr.bf16.mxu0 %v14125_v17  ;;  %8113 = vmatprep.subr.bf16.mxu1 %v14128_v23  ;;  %v14185_v17 = vld [vmem:[#allocation14 + $0x104] ss:$16 sps:$4 sm:$0xff]   ;;  %v14188_v23 = vld [vmem:[#allocation14 + $0x10c] ss:$16 sps:$4 sm:$0xff]  }
 0xb37   :  { %8073 = vmatpush1.bf16.msra.mxu0 %v14123_v31  ;;  %8114 = vmatpush1.bf16.msra.mxu1 %v14126_v27  ;;  %v14183_v31 = vld [vmem:[#allocation14 + $0x100] ss:$16 sps:$4 sm:$0xff]   ;;  %v14186_v27 = vld [vmem:[#allocation14 + $0x108] ss:$16 sps:$4 sm:$0xff]  }
 0xb38   :  { %8074 = vmatprep.subr.bf16.mxu0 %v14131_v2  ;;  %8115 = vmatprep.subr.bf16.mxu1 %v14134_v7  ;;  %v14191_v2 = vld [vmem:[#allocation14 + $0x2e4] ss:$16 sps:$4 sm:$0xff]   ;;  %v14194_v7 = vld [vmem:[#allocation14 + $0x2ec] ss:$16 sps:$4 sm:$0xff]  }
 0xb3b   :  { %8075 = vmatpush1.bf16.msra.mxu0 %v14129_v13  ;;  %8116 = vmatpush1.bf16.msra.mxu1 %v14132_v40  ;;  %v12249_v13 = vld [vmem:[%s16165_s8 + $0x4] sm:$0xf] }
 0xb3c   :  { %8076 = vmatprep.subr.bf16.mxu0 %v14137_v36  ;;  %8117 = vmatprep.subr.bf16.mxu1 %v14140_v46  ;;  %v6888_v40 = vrot.slane %v12249_v13, %v15477_v4  ;;  %v6892_v36 = vrot.slane %v12249_v13, %v15485_v8 }
 0xb3f   :  { %8077 = vmatpush1.bf16.msra.mxu0 %v14135_v11  ;;  %8118 = vmatpush1.bf16.msra.mxu1 %v14138_v12 }
 0xb40   :  { %8078 = vmatprep.subr.bf16.mxu0 %v14143_v41  ;;  %8119 = vmatprep.subr.bf16.mxu1 %v14146_v61 }
 0xb43   :  { %8079 = vmatpush2.bf16.msra.mxu0 %v14141_v26  ;;  %8120 = vmatpush2.bf16.msra.mxu1 %v14144_v53 }
 0xb44   :  { %8080 = vmatprep.subr.bf16.mxu0 %v14149_v39  ;;  %8121 = vmatprep.subr.bf16.mxu1 %v14152_v37 }
 0xb47   :  { %8081 = vmatpush2.bf16.msra.mxu0 %v14147_v15  ;;  %8122 = vmatpush2.bf16.msra.mxu1 %v14150_v47 }
 0xb48   :  { %8082 = vmatprep.subr.bf16.mxu0 %v14155_v54  ;;  %8123 = vmatprep.subr.bf16.mxu1 %v14158_v38  ;;  %v6900_v38 = vrot.slane %v12249_v13, %v15487_v9 }
 0xb4b   :  { %8083 = vmatpush2.bf16.msra.mxu0 %v14153_v33  ;;  %8124 = vmatpush2.bf16.msra.mxu1 %v14156_v25  ;;  %v6896_v25 = vrot.slane %v12249_v13, %v15479_v5 }
 0xb4c   :  { %8084 = vmatprep.subr.bf16.mxu0 %v14161_v29  ;;  %8125 = vmatprep.subr.bf16.mxu1 %v14164_v44 }
 0xb4f   :  { %8085 = vmatpush2.bf16.msra.mxu0 %v14159_v16  ;;  %8126 = vmatpush2.bf16.msra.mxu1 %v14162_v10 }
 0xb50   :  { %8086 = vmatprep.subr.bf16.mxu0 %v14167_v49  ;;  %8127 = vmatprep.subr.bf16.mxu1 %v14170_v20 }
 0xb53   :  { %8087 = vmatpush2.bf16.msra.mxu0 %v14165_v32  ;;  %8128 = vmatpush2.bf16.msra.mxu1 %v14168_v34 }
 0xb54   :  { %8088 = vmatprep.subr.bf16.mxu0 %v14173_v57  ;;  %8129 = vmatprep.subr.bf16.mxu1 %v14176_v48 }
 0xb57   :  { %8089 = vmatpush2.bf16.msra.mxu0 %v14171_v35  ;;  %8130 = vmatpush2.bf16.msra.mxu1 %v14174_v62 }
 0xb58   :  { %8090 = vmatprep.subr.bf16.mxu0 %v14179_v43  ;;  %8131 = vmatprep.subr.bf16.mxu1 %v14182_v58 }
 0xb5b   :  { %8091 = vmatpush2.bf16.msra.mxu0 %v14177_v28  ;;  %8132 = vmatpush2.bf16.msra.mxu1 %v14180_v50 }
 0xb5c   :  { %8092 = vmatprep.subr.bf16.mxu0 %v14185_v17  ;;  %8133 = vmatprep.subr.bf16.mxu1 %v14188_v23 }
 0xb5f   :  { %8093 = vmatpush2.bf16.msra.mxu0 %v14183_v31  ;;  %8134 = vmatpush2.bf16.msra.mxu1 %v14186_v27 }
 0xb60   :  { %8578 = vmatprep.subr.bf16.mxu0 %v14191_v2  ;;  %8619 = vmatprep.subr.bf16.mxu1 %v14194_v7 }
 0xbc1   :  { %v7259_v46 = vpop.f32.mrf.mxu0  ;;  %v7300_v11 = vpop.f32.mrf.mxu1 }
 0xbc2   :  { %v7260_v12 = vadd.f32 %v7259_v46, %v6888_v40  ;;  %v7301_v16 = vadd.f32 %v7300_v11, %v6896_v25 }
 0xbc3   :  { %v7261_v41 = vpop.f32.mrf.mxu0  ;;  %v7302_v61 = vpop.f32.mrf.mxu1 }
 0xbc4   :  { %v12314_v26 = vmul.f32 -1.442695, %v7260_v12  ;;  %v7262_v53 = vadd.f32 %v7261_v41, %v6892_v36  ;;  %v7303_v33 = vadd.f32 %v7302_v61, %v6900_v38 }
 0xbc5   :  { %v7263_v39 = vpop.f32.mrf.mxu0  ;;  %v7304_v37 = vpop.f32.mrf.mxu1 }
 0xbc6   :  { %14989 = vpow2.f32 %v12314_v26  ;;  %v12315_v15 = vmul.f32 -1.442695, %v7262_v53  ;;  %v12316_v29 = vmul.f32 -1.442695, %v7303_v33 }
 0xbc7   :  { %v7264_v47 = vpop.f32.mrf.mxu0  ;;  %v7305_v54 = vpop.f32.mrf.mxu1 }
 0xbc8   :  { %14991 = vpow2.f32 %v12315_v15 }
 0xbc9   :  { %14993 = vpow2.f32 %v12316_v29  ;;  %v15945_v29 = vpop.permute.xlu1 %7649 }
 0xbca   :  { %vm7651_vm13 = vcmp.eq.s32.totalorder %v15945_v29, 1  ;;  %v14438_v29 = vld [vmem:[#allocation14 + $0x2c8] ss:$16 sps:$4 sm:$0xff]  }
 0xbd3   :  { %v14990_v44 = vpop.eup %14989 }
 0xbd4   :  { %v7310_v10 = vadd.f32 1.0, %v14990_v44 }
 0xbd5   :  { %v14992_v49 = vpop.eup %14991 }
 0xbd6   :  { %14995 = vrcp.f32 %v7310_v10  ;;  %v7316_v20 = vadd.f32 1.0, %v14992_v49  ;;  %v14994_v57 = vpop.eup %14993 }
 0xbd7   :  { %14997 = vtanh.f32 %v7301_v16  ;;  %v7323_v23 = vadd.f32 1.0, %v14994_v57  ;;  %v14189_v57 = vld [vmem:[#allocation14 + $0x2e0] ss:$16 sps:$4 sm:$0xff]  }
 0xbd8   :  { %14999 = vrcp.f32 %v7316_v20 }
 0xbe1   :  { %v7571_v32 = vpop.f32.mrf.mxu0  ;;  %v7612_v34 = vpop.f32.mrf.mxu1 }
 0xbe2   :  { %v7619_v48 = vadd.f32 %v7571_v32, %v15541_v51  ;;  %v7621_v11 = vadd.f32 %v7612_v34, %v15544_v52 }
 0xbe3   :  { %v14996_v35 = vpop.eup %14995  ;;  %v7573_v62 = vpop.f32.mrf.mxu0 }
 0xbe4   :  { %v7614_v43 = vpop.f32.mrf.mxu1  ;;  %v14998_v58 = vpop.eup %14997  ;;  %v12349_v28 = vmul.f32 -1.442695, %v7619_v48  ;;  %v7620_v50 = vadd.f32 %v7573_v62, %v15546_v55  ;;  %v14192_v48 = vld [vmem:[#allocation14 + $0x2e8] ss:$16 sps:$4 sm:$0xff]   ;;  %v14197_v62 = vld [vmem:[#allocation14 + $0x2c4] ss:$16 sps:$4 sm:$0xff]  }
 0xbe5   :  { %v15000_v17 = vpop.eup %14999  ;;  %v7575_v31 = vpop.f32.mrf.mxu0  ;;  %v7327_v2 = vmul.f32 %v14998_v58, %v14996_v35  ;;  %v7622_v55 = vadd.f32 %v7614_v43, %v15549_v56  ;;  %v14195_v43 = vld [vmem:[#allocation14 + $0x2c0] ss:$16 sps:$4 sm:$0xff]   ;;  %v14206_v58 = vld [vmem:[#allocation14 + $0x2ac] ss:$16 sps:$4 sm:$0xff]  }
 0xbe6   :  { %v7616_v27 = vpop.f32.mrf.mxu1  ;;  %v7326_v7 = vmul.f32 %v15000_v17, %v15864_v42  ;;  %15001 = vpow2.f32 %v12349_v28  ;;  %v12350_v13 = vmul.f32 -1.442695, %v7620_v50  ;;  %v14201_v28 = vld [vmem:[#allocation14 + $0x2a0] ss:$16 sps:$4 sm:$0xff]   ;;  %v14204_v50 = vld [vmem:[#allocation14 + $0x2a8] ss:$16 sps:$4 sm:$0xff]  }
 0xbe7   :  { %v7576_v40 = vpop.f32.mrf.mxu0  ;;  %v12351_v12 = vmul.f32 -1.442695, %v7622_v55  ;;  %v14209_v17 = vld [vmem:[#allocation14 + $0x284] ss:$16 sps:$4 sm:$0xff]   ;;  %v14207_v31 = vld [vmem:[#allocation14 + $0x280] ss:$16 sps:$4 sm:$0xff]  }
 0xbe8   :  { %v7617_v36 = vpop.f32.mrf.mxu1  ;;  %v7328_v46 = vadd.f32 %v7327_v2, %v7326_v7  ;;  %15003 = vpow2.f32 %v12350_v13  ;;  %v14210_v27 = vld [vmem:[#allocation14 + $0x288] ss:$16 sps:$4 sm:$0xff]   ;;  %v14215_v2 = vld [vmem:[#allocation14 + $0x264] ss:$16 sps:$4 sm:$0xff]   ;;  %v14218_v7 = vld [vmem:[#allocation14 + $0x26c] ss:$16 sps:$4 sm:$0xff]  }
 0xbe9   :  { %15005 = vrcp.f32 %v7323_v23  ;;  %v14212_v23 = vld [vmem:[#allocation14 + $0x28c] ss:$16 sps:$4 sm:$0xff]   ;;  %v14213_v13 = vld [vmem:[#allocation14 + $0x260] ss:$16 sps:$4 sm:$0xff]   ;;  %v14216_v40 = vld [vmem:[#allocation14 + $0x268] ss:$16 sps:$4 sm:$0xff]  }
 0xbea   :  { %15007 = vtanh.f32 %v7328_v46  ;;  %v15938_v51 = vsel %vm6298_vm12, %v7328_v46, %v15864_v42  ;;  %v14221_v36 = vld [vmem:[#allocation14 + $0x244] ss:$16 sps:$4 sm:$0xff]   ;;  %v14224_v46 = vld [vmem:[#allocation14 + $0x24c] ss:$16 sps:$4 sm:$0xff]   ;;  %v14219_v55 = vld [vmem:[#allocation14 + $0x240] ss:$16 sps:$4 sm:$0xff]  }
 0xbeb   :  { %15009 = vtanh.f32 %v7621_v11  ;;  %v14222_v11 = vld [vmem:[#allocation14 + $0x248] ss:$16 sps:$4 sm:$0xff]  }
 0xbec   :  { %15011 = vpow2.f32 %v12351_v12  ;;  %v14227_v12 = vld [vmem:[#allocation14 + $0x224] ss:$16 sps:$4 sm:$0xff]  }
 0xbf3   :  { %v15002_v41 = vpop.eup %15001 }
 0xbf4   :  { %v7626_v61 = vadd.f32 1.0, %v15002_v41  ;;  %v14230_v41 = vld [vmem:[#allocation14 + $0x22c] ss:$16 sps:$4 sm:$0xff]  }
 0xbf5   :  { %v15004_v26 = vpop.eup %15003 }
 0xbf6   :  { %v15006_v53 = vpop.eup %15005  ;;  %15013 = vrcp.f32 %v7626_v61  ;;  %v7632_v39 = vadd.f32 1.0, %v15004_v26  ;;  %v14225_v61 = vld [vmem:[#allocation14 + $0x220] ss:$16 sps:$4 sm:$0xff]   ;;  %v14228_v26 = vld [vmem:[#allocation14 + $0x228] ss:$16 sps:$4 sm:$0xff]  }
 0xbf7   :  { %v15008_v37 = vpop.eup %15007 }
 0xbf8   :  { %15015 = vrcp.f32 %v7632_v39  ;;  %v7330_v15 = vmul.f32 %v15008_v37, %v15006_v53  ;;  %v15010_v47 = vpop.eup %15009  ;;  %v14233_v53 = vld [vmem:[#allocation14 + $0x204] ss:$16 sps:$4 sm:$0xff]   ;;  %v14236_v39 = vld [vmem:[#allocation14 + $0x20c] ss:$16 sps:$4 sm:$0xff]   ;;  %v14231_v37 = vld [vmem:[#allocation14 + $0x200] ss:$16 sps:$4 sm:$0xff]  }
 0xbf9   :  { %v15012_v56 = vpop.eup %15011 }
 0xbfa   :  { %v7333_v42 = vsel %vm6298_vm12, %v7330_v15, 0.0  ;;  %v7639_v33 = vadd.f32 1.0, %v15012_v56  ;;  %v15958_v32 = vsel %vm6298_vm12, %v7330_v15, %v15884_v19  ;;  %v14203_v19 = vld [vmem:[#allocation14 + $0x2a4] ss:$16 sps:$4 sm:$0xff]   ;;  %v14234_v15 = vld [vmem:[#allocation14 + $0x208] ss:$16 sps:$4 sm:$0xff]  }
 0xbfb   :  { %7335 = vst [vmem:[#allocation16 + $0x20] sm:$0xff] %v7333_v42  ;;  %v8171_v35 = vpack.c.bf16 %v15958_v32, %v15958_v32  ;;  %v14239_v42 = vld [vmem:[#allocation14 + $0x3e4] ss:$16 sps:$4 sm:$0xff]   ;;  %v14237_v56 = vld [vmem:[#allocation14 + $0x3e0] ss:$16 sps:$4 sm:$0xff]  }
 0xbfc   :  { %15017 = vrcp.f32 %v7639_v33  ;;  %v14243_v33 = vld [vmem:[#allocation14 + $0x3c0] ss:$16 sps:$4 sm:$0xff]  }
 0xc03   :  { %v15014_v54 = vpop.eup %15013 }
 0xc04   :  { %v7643_v52 = vmul.f32 %v15014_v54, %v15010_v47  ;;  %v14242_v47 = vld [vmem:[#allocation14 + $0x3ec] ss:$16 sps:$4 sm:$0xff]   ;;  %v14240_v54 = vld [vmem:[#allocation14 + $0x3e8] ss:$16 sps:$4 sm:$0xff]  }
 0xc05   :  { %v15016_v38 = vpop.eup %15015 }
 0xc06   :  { %v7642_v25 = vmul.f32 %v15016_v38, %v15877_v18  ;;  %v14248_v38 = vld [vmem:[#allocation14 + $0x3cc] ss:$16 sps:$4 sm:$0xff]  }
 0xc08   :  { %v7644_v44 = vadd.f32 %v7643_v52, %v7642_v25  ;;  %v14245_v52 = vld [vmem:[#allocation14 + $0x3c4] ss:$16 sps:$4 sm:$0xff]   ;;  %v14246_v25 = vld [vmem:[#allocation14 + $0x3c8] ss:$16 sps:$4 sm:$0xff]  }
 0xc09   :  { %v15018_v10 = vpop.eup %15017 }
 0xc0a   :  { %15019 = vtanh.f32 %v7644_v44  ;;  %v15951_v16 = vsel %vm7651_vm13, %v7644_v44, %v15877_v18  ;;  %v14200_v18 = vld [vmem:[#allocation14 + $0x2cc] ss:$16 sps:$4 sm:$0xff]   ;;  %v14251_v44 = vld [vmem:[#allocation14 + $0x3a4] ss:$16 sps:$4 sm:$0xff]  }
 0xc17   :  { %v15020_v49 = vpop.eup %15019 }
 0xc18   :  { %v15953_v20 = vmul.f32 %v15020_v49, %v15018_v10  ;;  %v14254_v10 = vld [vmem:[#allocation14 + $0x3ac] ss:$16 sps:$4 sm:$0xff]   ;;  %v14249_v49 = vld [vmem:[#allocation14 + $0x3a0] ss:$16 sps:$4 sm:$0xff]  }
 0xc1a   :  { %v7654_v34 = vpack.c.bf16 %v15953_v20, %v15953_v20 }
 0xc1c   :  { %8095 = vmatmul.mubr.bf16.vlgmr.msra.gmra.mxu0 %v7654_v34  ;;  %8136 = vmatmul.mubr.bf16.vlgmr.msra.gmra.mxu1 %v7654_v34  ;;  %v14252_v34 = vld [vmem:[#allocation14 + $0x3a8] ss:$16 sps:$4 sm:$0xff]  }
 0xc1d   :  { %8610 = vmatprep.mubr.bf16.mxu0 %v8171_v35  ;;  %8651 = vmatprep.mubr.bf16.mxu1 %v8171_v35  ;;  %v14255_v35 = vld [vmem:[#allocation14 + $0x380] ss:$16 sps:$4 sm:$0xff]  }
 0xc1e   :  { %8579 = vmatpush1.bf16.msra.mxu0 %v14189_v57  ;;  %8620 = vmatpush1.bf16.msra.mxu1 %v14192_v48  ;;  %v14257_v57 = vld [vmem:[#allocation14 + $0x384] ss:$16 sps:$4 sm:$0xff]   ;;  %v14260_v48 = vld [vmem:[#allocation14 + $0x38c] ss:$16 sps:$4 sm:$0xff]  }
 0xc1f   :  { %8580 = vmatprep.subr.bf16.mxu0 %v14197_v62  ;;  %8621 = vmatprep.subr.bf16.mxu1 %v14200_v18  ;;  %v14258_v62 = vld [vmem:[#allocation14 + $0x388] ss:$16 sps:$4 sm:$0xff]   ;;  %v14263_v18 = vld [vmem:[#allocation14 + $0x364] ss:$16 sps:$4 sm:$0xff]  }
 0xc22   :  { %8581 = vmatpush1.bf16.msra.mxu0 %v14195_v43  ;;  %8622 = vmatpush1.bf16.msra.mxu1 %v14198_v45  ;;  %v14261_v43 = vld [vmem:[#allocation14 + $0x360] ss:$16 sps:$4 sm:$0xff]   ;;  %v14264_v45 = vld [vmem:[#allocation14 + $0x368] ss:$16 sps:$4 sm:$0xff]  }
 0xc23   :  { %8582 = vmatprep.subr.bf16.mxu0 %v14203_v19  ;;  %8623 = vmatprep.subr.bf16.mxu1 %v14206_v58  ;;  %v14266_v19 = vld [vmem:[#allocation14 + $0x36c] ss:$16 sps:$4 sm:$0xff]   ;;  %v14269_v58 = vld [vmem:[#allocation14 + $0x344] ss:$16 sps:$4 sm:$0xff]  }
 0xc26   :  { %8583 = vmatpush1.bf16.msra.mxu0 %v14201_v28  ;;  %8624 = vmatpush1.bf16.msra.mxu1 %v14204_v50  ;;  %v14272_v28 = vld [vmem:[#allocation14 + $0x34c] ss:$16 sps:$4 sm:$0xff]   ;;  %v14267_v50 = vld [vmem:[#allocation14 + $0x340] ss:$16 sps:$4 sm:$0xff]  }
 0xc27   :  { %8584 = vmatprep.subr.bf16.mxu0 %v14209_v17  ;;  %8625 = vmatprep.subr.bf16.mxu1 %v14212_v23  ;;  %v14270_v17 = vld [vmem:[#allocation14 + $0x348] ss:$16 sps:$4 sm:$0xff]   ;;  %v14275_v23 = vld [vmem:[#allocation14 + $0x324] ss:$16 sps:$4 sm:$0xff]  }
 0xc2a   :  { %8585 = vmatpush1.bf16.msra.mxu0 %v14207_v31  ;;  %8626 = vmatpush1.bf16.msra.mxu1 %v14210_v27  ;;  %v14278_v31 = vld [vmem:[#allocation14 + $0x32c] ss:$16 sps:$4 sm:$0xff]   ;;  %v14273_v27 = vld [vmem:[#allocation14 + $0x320] ss:$16 sps:$4 sm:$0xff]  }
 0xc2b   :  { %8586 = vmatprep.subr.bf16.mxu0 %v14215_v2  ;;  %8627 = vmatprep.subr.bf16.mxu1 %v14218_v7  ;;  %v14276_v2 = vld [vmem:[#allocation14 + $0x328] ss:$16 sps:$4 sm:$0xff]   ;;  %v14281_v7 = vld [vmem:[#allocation14 + $0x304] ss:$16 sps:$4 sm:$0xff]  }
 0xc2e   :  { %8587 = vmatpush1.bf16.msra.mxu0 %v14213_v13  ;;  %8628 = vmatpush1.bf16.msra.mxu1 %v14216_v40  ;;  %v14284_v13 = vld [vmem:[#allocation14 + $0x30c] ss:$16 sps:$4 sm:$0xff]   ;;  %v14279_v40 = vld [vmem:[#allocation14 + $0x300] ss:$16 sps:$4 sm:$0xff]  }
 0xc2f   :  { %8588 = vmatprep.subr.bf16.mxu0 %v14221_v36  ;;  %8629 = vmatprep.subr.bf16.mxu1 %v14224_v46  ;;  %v14282_v36 = vld [vmem:[#allocation14 + $0x308] ss:$16 sps:$4 sm:$0xff]   ;;  %v14287_v46 = vld [vmem:[#allocation13 + $0xe4] ss:$16 sps:$4 sm:$0xff]  }
 0xc32   :  { %8589 = vmatpush1.bf16.msra.mxu0 %v14219_v55  ;;  %8630 = vmatpush1.bf16.msra.mxu1 %v14222_v11  ;;  %v14290_v55 = vld [vmem:[#allocation13 + $0xec] ss:$16 sps:$4 sm:$0xff]   ;;  %v7720_v11 = vld [vmem:[%s16165_s8] sm:$0xf] }
 0xc33   :  { %8590 = vmatprep.subr.bf16.mxu0 %v14227_v12  ;;  %8631 = vmatprep.subr.bf16.mxu1 %v14230_v41  ;;  %v7725_v12 = vrot.slane %v7720_v11, %v15477_v4  ;;  %v7729_v41 = vrot.slane %v7720_v11, %v15485_v8 }
 0xc36   :  { %8591 = vmatpush1.bf16.msra.mxu0 %v14225_v61  ;;  %8632 = vmatpush1.bf16.msra.mxu1 %v14228_v26 }
 0xc37   :  { %8592 = vmatprep.subr.bf16.mxu0 %v14233_v53  ;;  %8633 = vmatprep.subr.bf16.mxu1 %v14236_v39 }
 0xc3a   :  { %8593 = vmatpush1.bf16.msra.mxu0 %v14231_v37  ;;  %8634 = vmatpush1.bf16.msra.mxu1 %v14234_v15 }
 0xc3b   :  { %8594 = vmatprep.subr.bf16.mxu0 %v14239_v42  ;;  %8635 = vmatprep.subr.bf16.mxu1 %v14242_v47 }
 0xc3e   :  { %8595 = vmatpush2.bf16.msra.mxu0 %v14237_v56  ;;  %8636 = vmatpush2.bf16.msra.mxu1 %v14240_v54 }
 0xc3f   :  { %8596 = vmatprep.subr.bf16.mxu0 %v14245_v52  ;;  %8637 = vmatprep.subr.bf16.mxu1 %v14248_v38 }
 0xc42   :  { %8597 = vmatpush2.bf16.msra.mxu0 %v14243_v33  ;;  %8638 = vmatpush2.bf16.msra.mxu1 %v14246_v25  ;;  %v7737_v33 = vrot.slane %v7720_v11, %v15487_v9 }
 0xc43   :  { %8598 = vmatprep.subr.bf16.mxu0 %v14251_v44  ;;  %8639 = vmatprep.subr.bf16.mxu1 %v14254_v10  ;;  %v7733_v44 = vrot.slane %v7720_v11, %v15479_v5  ;;  %v14302_v11 = vld [vmem:[#allocation13 + $0xac] ss:$16 sps:$4 sm:$0xff]  }
 0xc46   :  { %8599 = vmatpush2.bf16.msra.mxu0 %v14249_v49  ;;  %8640 = vmatpush2.bf16.msra.mxu1 %v14252_v34 }
 0xc47   :  { %8600 = vmatprep.subr.bf16.mxu0 %v14257_v57  ;;  %8641 = vmatprep.subr.bf16.mxu1 %v14260_v48 }
 0xc4a   :  { %8601 = vmatpush2.bf16.msra.mxu0 %v14255_v35  ;;  %8642 = vmatpush2.bf16.msra.mxu1 %v14258_v62 }
 0xc4b   :  { %8602 = vmatprep.subr.bf16.mxu0 %v14263_v18  ;;  %8643 = vmatprep.subr.bf16.mxu1 %v14266_v19 }
 0xc4e   :  { %8603 = vmatpush2.bf16.msra.mxu0 %v14261_v43  ;;  %8644 = vmatpush2.bf16.msra.mxu1 %v14264_v45 }
 0xc4f   :  { %8604 = vmatprep.subr.bf16.mxu0 %v14269_v58  ;;  %8645 = vmatprep.subr.bf16.mxu1 %v14272_v28 }
 0xc52   :  { %8605 = vmatpush2.bf16.msra.mxu0 %v14267_v50  ;;  %8646 = vmatpush2.bf16.msra.mxu1 %v14270_v17 }
 0xc53   :  { %8606 = vmatprep.subr.bf16.mxu0 %v14275_v23  ;;  %8647 = vmatprep.subr.bf16.mxu1 %v14278_v31 }
 0xc56   :  { %8607 = vmatpush2.bf16.msra.mxu0 %v14273_v27  ;;  %8648 = vmatpush2.bf16.msra.mxu1 %v14276_v2  ;;  %v14285_v2 = vld [vmem:[#allocation13 + $0xe0] ss:$16 sps:$4 sm:$0xff]  }
 0xc57   :  { %8608 = vmatprep.subr.bf16.mxu0 %v14281_v7  ;;  %8649 = vmatprep.subr.bf16.mxu1 %v14284_v13  ;;  %v14288_v7 = vld [vmem:[#allocation13 + $0xe8] ss:$16 sps:$4 sm:$0xff]  }
 0xc5a   :  { %8609 = vmatpush2.bf16.msra.mxu0 %v14279_v40  ;;  %8650 = vmatpush2.bf16.msra.mxu1 %v14282_v36  ;;  %v14293_v40 = vld [vmem:[#allocation13 + $0xc4] ss:$16 sps:$4 sm:$0xff]   ;;  %v14296_v36 = vld [vmem:[#allocation13 + $0xcc] ss:$16 sps:$4 sm:$0xff]  }
 0xc5b   :  { %8890 = vmatprep.subr.bf16.mxu0 %v14287_v46  ;;  %8931 = vmatprep.subr.bf16.mxu1 %v14290_v55  ;;  %v14291_v46 = vld [vmem:[#allocation13 + $0xc0] ss:$16 sps:$4 sm:$0xff]   ;;  %v14294_v55 = vld [vmem:[#allocation13 + $0xc8] ss:$16 sps:$4 sm:$0xff]  }
 0xcdc   :  { %v8096_v61 = vpop.f32.mrf.mxu0  ;;  %v8137_v26 = vpop.f32.mrf.mxu1 }
 0xcdd   :  { %v8097_v53 = vadd.f32 %v8096_v61, %v7725_v12  ;;  %v8138_v34 = vadd.f32 %v8137_v26, %v7733_v44  ;;  %v14297_v12 = vld [vmem:[#allocation13 + $0xa0] ss:$16 sps:$4 sm:$0xff]   ;;  %v14305_v61 = vld [vmem:[#allocation13 + $0x84] ss:$16 sps:$4 sm:$0xff]   ;;  %v14308_v26 = vld [vmem:[#allocation13 + $0x8c] ss:$16 sps:$4 sm:$0xff]  }
 0xcde   :  { %v8098_v39 = vpop.f32.mrf.mxu0  ;;  %v8139_v37 = vpop.f32.mrf.mxu1  ;;  %v14321_v44 = vld [vmem:[#allocation13 + $0x20] ss:$16 sps:$4 sm:$0xff]  }
 0xcdf   :  { %v12416_v15 = vmul.f32 -1.442695, %v8097_v53  ;;  %v8099_v42 = vadd.f32 %v8098_v39, %v7729_v41  ;;  %v8140_v25 = vadd.f32 %v8139_v37, %v7737_v33  ;;  %v14300_v41 = vld [vmem:[#allocation13 + $0xa8] ss:$16 sps:$4 sm:$0xff]   ;;  %v14303_v53 = vld [vmem:[#allocation13 + $0x80] ss:$16 sps:$4 sm:$0xff]  }
 0xce0   :  { %v8100_v47 = vpop.f32.mrf.mxu0  ;;  %v8141_v56 = vpop.f32.mrf.mxu1  ;;  %v14306_v39 = vld [vmem:[#allocation13 + $0x88] ss:$16 sps:$4 sm:$0xff]   ;;  %v14311_v37 = vld [vmem:[#allocation13 + $0x64] ss:$16 sps:$4 sm:$0xff]  }
 0xce1   :  { %15021 = vpow2.f32 %v12416_v15  ;;  %v12417_v54 = vmul.f32 -1.442695, %v8099_v42  ;;  %v12418_v10 = vmul.f32 -1.442695, %v8140_v25  ;;  %v14314_v15 = vld [vmem:[#allocation13 + $0x6c] ss:$16 sps:$4 sm:$0xff]  }
 0xce2   :  { %v8101_v52 = vpop.f32.mrf.mxu0  ;;  %v8142_v38 = vpop.f32.mrf.mxu1  ;;  %v14309_v42 = vld [vmem:[#allocation13 + $0x60] ss:$16 sps:$4 sm:$0xff]   ;;  %v14312_v47 = vld [vmem:[#allocation13 + $0x68] ss:$16 sps:$4 sm:$0xff]   ;;  %v14317_v56 = vld [vmem:[#allocation13 + $0x44] ss:$16 sps:$4 sm:$0xff]  }
 0xce3   :  { %15023 = vpow2.f32 %v12417_v54  ;;  %v14320_v54 = vld [vmem:[#allocation13 + $0x4c] ss:$16 sps:$4 sm:$0xff]   ;;  %v14315_v52 = vld [vmem:[#allocation13 + $0x40] ss:$16 sps:$4 sm:$0xff]   ;;  %v14318_v38 = vld [vmem:[#allocation13 + $0x48] ss:$16 sps:$4 sm:$0xff]  }
 0xce4   :  { %15025 = vpow2.f32 %v12418_v10  ;;  %v14323_v33 = vld [vmem:[#allocation13 + $0x24] ss:$16 sps:$4 sm:$0xff]   ;;  %v14326_v25 = vld [vmem:[#allocation13 + $0x2c] ss:$16 sps:$4 sm:$0xff]   ;;  %v14324_v10 = vld [vmem:[#allocation13 + $0x28] ss:$16 sps:$4 sm:$0xff]  }
 0xcee   :  { %v15022_v49 = vpop.eup %15021 }
 0xcef   :  { %v8147_v57 = vadd.f32 1.0, %v15022_v49  ;;  %v14329_v49 = vld [vmem:[#allocation13 + $0x4] ss:$16 sps:$4 sm:$0xff]  }
 0xcf0   :  { %v15024_v48 = vpop.eup %15023 }
 0xcf1   :  { %15027 = vrcp.f32 %v8147_v57  ;;  %v8153_v35 = vadd.f32 1.0, %v15024_v48  ;;  %v15026_v62 = vpop.eup %15025  ;;  %v14327_v57 = vld [vmem:[#allocation13] ss:$16 sps:$4 sm:$0xff]   ;;  %v14330_v48 = vld [vmem:[#allocation13 + $0x8] ss:$16 sps:$4 sm:$0xff]  }
 0xcf2   :  { %15029 = vtanh.f32 %v8138_v34  ;;  %v8160_v19 = vadd.f32 1.0, %v15026_v62  ;;  %v14332_v34 = vld [vmem:[#allocation13 + $0xc] ss:$16 sps:$4 sm:$0xff]  }
 0xcf3   :  { %15031 = vrcp.f32 %v8153_v35  ;;  %v15987_v35 = vsel %vm7651_vm13, %v15953_v20, %v15913_v6  ;;  %v14335_v6 = vld [vmem:[#allocation14 + $0xe4] ss:$16 sps:$4 sm:$0xff]   ;;  %v14338_v20 = vld [vmem:[#allocation14 + $0xec] ss:$16 sps:$4 sm:$0xff]  }
 0xcf4   :  { %15033 = vrcp.f32 %v8160_v19  ;;  %v14336_v19 = vld [vmem:[#allocation14 + $0xe8] ss:$16 sps:$4 sm:$0xff]  }
 0xcfe   :  { %v15028_v18 = vpop.eup %15027 }
 0xcff   :  { %v15030_v43 = vpop.eup %15029 }
 0xd00   :  { %v15032_v45 = vpop.eup %15031  ;;  %v8164_v58 = vmul.f32 %v15030_v43, %v15028_v18  ;;  %v8697_v18 = vpack.c.bf16 %v15987_v35, %v15987_v35 }
 0xd01   :  { %v8163_v28 = vmul.f32 %v15032_v45, %v15901_v22  ;;  %v15034_v23 = vpop.eup %15033  ;;  %v14333_v45 = vld [vmem:[#allocation14 + $0xe0] ss:$16 sps:$4 sm:$0xff]  }
 0xd03   :  { %v8165_v50 = vadd.f32 %v8164_v58, %v8163_v28  ;;  %v14344_v58 = vld [vmem:[#allocation14 + $0xcc] ss:$16 sps:$4 sm:$0xff]   ;;  %v14339_v28 = vld [vmem:[#allocation14 + $0xc0] ss:$16 sps:$4 sm:$0xff]  }
 0xd05   :  { %15035 = vtanh.f32 %v8165_v50  ;;  %v15975_v17 = vsel %vm7651_vm13, %v8165_v50, %v15901_v22  ;;  %v14299_v22 = vld [vmem:[#allocation13 + $0xa4] ss:$16 sps:$4 sm:$0xff]   ;;  %v14342_v50 = vld [vmem:[#allocation14 + $0xc8] ss:$16 sps:$4 sm:$0xff]  }
 0xd12   :  { %v15036_v31 = vpop.eup %15035 }
 0xd13   :  { %v15977_v27 = vmul.f32 %v15036_v31, %v15034_v23  ;;  %v14347_v23 = vld [vmem:[#allocation14 + $0xa4] ss:$16 sps:$4 sm:$0xff]   ;;  %v14350_v31 = vld [vmem:[#allocation14 + $0xac] ss:$16 sps:$4 sm:$0xff]  }
 0xd15   :  { %v8170_v13 = vpack.c.bf16 %v15977_v27, %v15977_v27  ;;  %v15993_v62 = vsel %vm7651_vm13, %v15977_v27, %v15919_v30  ;;  %v14341_v30 = vld [vmem:[#allocation14 + $0xc4] ss:$16 sps:$4 sm:$0xff]   ;;  %v14345_v27 = vld [vmem:[#allocation14 + $0xa0] ss:$16 sps:$4 sm:$0xff]  }
 0xd16   :  { %v9008_v43 = vpack.c.bf16 %v15993_v62, %v15993_v62 }
 0xd17   :  { %8611 = vmatmul.mubr.bf16.vlgmr.msra.gmra.mxu0 %v8170_v13  ;;  %8652 = vmatmul.mubr.bf16.vlgmr.msra.gmra.mxu1 %v8170_v13  ;;  %v14356_v13 = vld [vmem:[#allocation14 + $0x8c] ss:$16 sps:$4 sm:$0xff]  }
 0xd18   :  { %8891 = vmatpush1.bf16.msra.mxu0 %v14285_v2  ;;  %8932 = vmatpush1.bf16.msra.mxu1 %v14288_v7  ;;  %v14348_v2 = vld [vmem:[#allocation14 + $0xa8] ss:$16 sps:$4 sm:$0xff]   ;;  %v14353_v7 = vld [vmem:[#allocation14 + $0x84] ss:$16 sps:$4 sm:$0xff]  }
 0xd19   :  { %8892 = vmatprep.subr.bf16.mxu0 %v14293_v40  ;;  %8933 = vmatprep.subr.bf16.mxu1 %v14296_v36  ;;  %v14351_v40 = vld [vmem:[#allocation14 + $0x80] ss:$16 sps:$4 sm:$0xff]   ;;  %v14354_v36 = vld [vmem:[#allocation14 + $0x88] ss:$16 sps:$4 sm:$0xff]  }
 0xd1a   :  { %8922 = vmatprep.mubr.bf16.mxu0 %v15358_v0  ;;  %8963 = vmatprep.mubr.bf16.mxu1 %v15358_v0 }
 0xd1c   :  { %8893 = vmatpush1.bf16.msra.mxu0 %v14291_v46  ;;  %8934 = vmatpush1.bf16.msra.mxu1 %v14294_v55  ;;  %v14359_v46 = vld [vmem:[#allocation14 + $0x64] ss:$16 sps:$4 sm:$0xff]   ;;  %v14362_v55 = vld [vmem:[#allocation14 + $0x6c] ss:$16 sps:$4 sm:$0xff]  }
 0xd1d   :  { %8894 = vmatprep.subr.bf16.mxu0 %v14299_v22  ;;  %8935 = vmatprep.subr.bf16.mxu1 %v14302_v11  ;;  %v14357_v22 = vld [vmem:[#allocation14 + $0x60] ss:$16 sps:$4 sm:$0xff]   ;;  %v14360_v11 = vld [vmem:[#allocation14 + $0x68] ss:$16 sps:$4 sm:$0xff]  }
 0xd20   :  { %8895 = vmatpush1.bf16.msra.mxu0 %v14297_v12  ;;  %8936 = vmatpush1.bf16.msra.mxu1 %v14300_v41  ;;  %v14365_v12 = vld [vmem:[#allocation14 + $0x44] ss:$16 sps:$4 sm:$0xff]   ;;  %v14368_v41 = vld [vmem:[#allocation14 + $0x4c] ss:$16 sps:$4 sm:$0xff]  }
 0xd21   :  { %8896 = vmatprep.subr.bf16.mxu0 %v14305_v61  ;;  %8937 = vmatprep.subr.bf16.mxu1 %v14308_v26  ;;  %v14363_v61 = vld [vmem:[#allocation14 + $0x40] ss:$16 sps:$4 sm:$0xff]   ;;  %v14366_v26 = vld [vmem:[#allocation14 + $0x48] ss:$16 sps:$4 sm:$0xff]  }
 0xd24   :  { %8897 = vmatpush1.bf16.msra.mxu0 %v14303_v53  ;;  %8938 = vmatpush1.bf16.msra.mxu1 %v14306_v39  ;;  %v14371_v53 = vld [vmem:[#allocation14 + $0x24] ss:$16 sps:$4 sm:$0xff]   ;;  %v14374_v39 = vld [vmem:[#allocation14 + $0x2c] ss:$16 sps:$4 sm:$0xff]  }
 0xd25   :  { %8898 = vmatprep.subr.bf16.mxu0 %v14311_v37  ;;  %8939 = vmatprep.subr.bf16.mxu1 %v14314_v15  ;;  %v14369_v37 = vld [vmem:[#allocation14 + $0x20] ss:$16 sps:$4 sm:$0xff]   ;;  %v14372_v15 = vld [vmem:[#allocation14 + $0x28] ss:$16 sps:$4 sm:$0xff]  }
 0xd28   :  { %8899 = vmatpush1.bf16.msra.mxu0 %v14309_v42  ;;  %8940 = vmatpush1.bf16.msra.mxu1 %v14312_v47  ;;  %v14377_v42 = vld [vmem:[#allocation14 + $0x4] ss:$16 sps:$4 sm:$0xff]   ;;  %v14380_v47 = vld [vmem:[#allocation14 + $0xc] ss:$16 sps:$4 sm:$0xff]  }
 0xd29   :  { %8900 = vmatprep.subr.bf16.mxu0 %v14317_v56  ;;  %8941 = vmatprep.subr.bf16.mxu1 %v14320_v54  ;;  %v14375_v56 = vld [vmem:[#allocation14] ss:$16 sps:$4 sm:$0xff]   ;;  %v14378_v54 = vld [vmem:[#allocation14 + $0x8] ss:$16 sps:$4 sm:$0xff]  }
 0xd2c   :  { %8901 = vmatpush1.bf16.msra.mxu0 %v14315_v52  ;;  %8942 = vmatpush1.bf16.msra.mxu1 %v14318_v38  ;;  %v14383_v52 = vld [vmem:[#allocation14 + $0x1e4] ss:$16 sps:$4 sm:$0xff]   ;;  %v14386_v38 = vld [vmem:[#allocation14 + $0x1ec] ss:$16 sps:$4 sm:$0xff]  }
 0xd2d   :  { %8902 = vmatprep.subr.bf16.mxu0 %v14323_v33  ;;  %8943 = vmatprep.subr.bf16.mxu1 %v14326_v25  ;;  %v14381_v33 = vld [vmem:[#allocation14 + $0x1e0] ss:$16 sps:$4 sm:$0xff]   ;;  %v14384_v25 = vld [vmem:[#allocation14 + $0x1e8] ss:$16 sps:$4 sm:$0xff]  }
 0xd30   :  { %8903 = vmatpush1.bf16.msra.mxu0 %v14321_v44  ;;  %8944 = vmatpush1.bf16.msra.mxu1 %v14324_v10  ;;  %v14389_v44 = vld [vmem:[#allocation14 + $0x1c4] ss:$16 sps:$4 sm:$0xff]   ;;  %v14392_v10 = vld [vmem:[#allocation14 + $0x1cc] ss:$16 sps:$4 sm:$0xff]  }
 0xd31   :  { %8904 = vmatprep.subr.bf16.mxu0 %v14329_v49  ;;  %8945 = vmatprep.subr.bf16.mxu1 %v14332_v34  ;;  %v14387_v49 = vld [vmem:[#allocation14 + $0x1c0] ss:$16 sps:$4 sm:$0xff]   ;;  %v14390_v34 = vld [vmem:[#allocation14 + $0x1c8] ss:$16 sps:$4 sm:$0xff]  }
 0xd34   :  { %8905 = vmatpush1.bf16.msra.mxu0 %v14327_v57  ;;  %8946 = vmatpush1.bf16.msra.mxu1 %v14330_v48  ;;  %v14395_v57 = vld [vmem:[#allocation14 + $0x1a4] ss:$16 sps:$4 sm:$0xff]   ;;  %v14398_v48 = vld [vmem:[#allocation14 + $0x1ac] ss:$16 sps:$4 sm:$0xff]  }
 0xd35   :  { %9415 = vmatprep.subr.bf16.mxu0 %v14335_v6  ;;  %9456 = vmatprep.subr.bf16.mxu1 %v14338_v20  ;;  %v14401_v6 = vld [vmem:[#allocation14 + $0x184] ss:$16 sps:$4 sm:$0xff]   ;;  %v14404_v20 = vld [vmem:[#allocation14 + $0x18c] ss:$16 sps:$4 sm:$0xff]  }
 0xd37   :  { %8923 = vmatmul.mubr.bf16.vlgmr.msra.gmra.mxu0 %v8697_v18  ;;  %8964 = vmatmul.mubr.bf16.vlgmr.msra.gmra.mxu1 %v8697_v18  ;;  %v14393_v18 = vld [vmem:[#allocation14 + $0x1a0] ss:$16 sps:$4 sm:$0xff]  }
 0xd38   :  { %9447 = vmatprep.mubr.bf16.mxu0 %v9008_v43  ;;  %9488 = vmatprep.mubr.bf16.mxu1 %v9008_v43  ;;  %v14396_v43 = vld [vmem:[#allocation14 + $0x1a8] ss:$16 sps:$4 sm:$0xff]  }
 0xd39   :  { %9416 = vmatpush1.bf16.msra.mxu0 %v14333_v45  ;;  %9457 = vmatpush1.bf16.msra.mxu1 %v14336_v19  ;;  %v14399_v45 = vld [vmem:[#allocation14 + $0x180] ss:$16 sps:$4 sm:$0xff]   ;;  %v14402_v19 = vld [vmem:[#allocation14 + $0x188] ss:$16 sps:$4 sm:$0xff]  }
 0xd3a   :  { %9417 = vmatprep.subr.bf16.mxu0 %v14341_v30  ;;  %9458 = vmatprep.subr.bf16.mxu1 %v14344_v58  ;;  %v14407_v30 = vld [vmem:[#allocation14 + $0x164] ss:$16 sps:$4 sm:$0xff]   ;;  %v14410_v58 = vld [vmem:[#allocation14 + $0x16c] ss:$16 sps:$4 sm:$0xff]  }
 0xd3d   :  { %9418 = vmatpush1.bf16.msra.mxu0 %v14339_v28  ;;  %9459 = vmatpush1.bf16.msra.mxu1 %v14342_v50  ;;  %v14405_v28 = vld [vmem:[#allocation14 + $0x160] ss:$16 sps:$4 sm:$0xff]   ;;  %v14408_v50 = vld [vmem:[#allocation14 + $0x168] ss:$16 sps:$4 sm:$0xff]  }
 0xd3e   :  { %9419 = vmatprep.subr.bf16.mxu0 %v14347_v23  ;;  %9460 = vmatprep.subr.bf16.mxu1 %v14350_v31  ;;  %v14413_v23 = vld [vmem:[#allocation14 + $0x144] ss:$16 sps:$4 sm:$0xff]   ;;  %v14416_v31 = vld [vmem:[#allocation14 + $0x14c] ss:$16 sps:$4 sm:$0xff]  }
 0xd41   :  { %9420 = vmatpush1.bf16.msra.mxu0 %v14345_v27  ;;  %9461 = vmatpush1.bf16.msra.mxu1 %v14348_v2  ;;  %v14411_v27 = vld [vmem:[#allocation14 + $0x140] ss:$16 sps:$4 sm:$0xff]   ;;  %v14414_v2 = vld [vmem:[#allocation14 + $0x148] ss:$16 sps:$4 sm:$0xff]  }
 0xd42   :  { %9421 = vmatprep.subr.bf16.mxu0 %v14353_v7  ;;  %9462 = vmatprep.subr.bf16.mxu1 %v14356_v13  ;;  %v14419_v7 = vld [vmem:[#allocation14 + $0x124] ss:$16 sps:$4 sm:$0xff]   ;;  %v14422_v13 = vld [vmem:[#allocation14 + $0x12c] ss:$16 sps:$4 sm:$0xff]  }
 0xd45   :  { %9422 = vmatpush1.bf16.msra.mxu0 %v14351_v40  ;;  %9463 = vmatpush1.bf16.msra.mxu1 %v14354_v36  ;;  %v14417_v40 = vld [vmem:[#allocation14 + $0x120] ss:$16 sps:$4 sm:$0xff]   ;;  %v14420_v36 = vld [vmem:[#allocation14 + $0x128] ss:$16 sps:$4 sm:$0xff]  }
 0xd46   :  { %9423 = vmatprep.subr.bf16.mxu0 %v14359_v46  ;;  %9464 = vmatprep.subr.bf16.mxu1 %v14362_v55  ;;  %v14425_v46 = vld [vmem:[#allocation14 + $0x104] ss:$16 sps:$4 sm:$0xff]   ;;  %v14428_v55 = vld [vmem:[#allocation14 + $0x10c] ss:$16 sps:$4 sm:$0xff]  }
 0xd49   :  { %9424 = vmatpush1.bf16.msra.mxu0 %v14357_v22  ;;  %9465 = vmatpush1.bf16.msra.mxu1 %v14360_v11  ;;  %v14423_v22 = vld [vmem:[#allocation14 + $0x100] ss:$16 sps:$4 sm:$0xff]   ;;  %v14426_v11 = vld [vmem:[#allocation14 + $0x108] ss:$16 sps:$4 sm:$0xff]  }
 0xd4a   :  { %9425 = vmatprep.subr.bf16.mxu0 %v14365_v12  ;;  %9466 = vmatprep.subr.bf16.mxu1 %v14368_v41  ;;  %v14431_v12 = vld [vmem:[#allocation14 + $0x2e4] ss:$16 sps:$4 sm:$0xff]   ;;  %v14434_v41 = vld [vmem:[#allocation14 + $0x2ec] ss:$16 sps:$4 sm:$0xff]  }
 0xd4d   :  { %9426 = vmatpush1.bf16.msra.mxu0 %v14363_v61  ;;  %9467 = vmatpush1.bf16.msra.mxu1 %v14366_v26  ;;  %v12419_v61 = vld [vmem:[%s16165_s8 + $0x4] sm:$0xf] }
 0xd4e   :  { %9427 = vmatprep.subr.bf16.mxu0 %v14371_v53  ;;  %9468 = vmatprep.subr.bf16.mxu1 %v14374_v39  ;;  %v8241_v26 = vrot.slane %v12419_v61, %v15477_v4  ;;  %v8245_v53 = vrot.slane %v12419_v61, %v15485_v8 }
 0xd51   :  { %9428 = vmatpush1.bf16.msra.mxu0 %v14369_v37  ;;  %9469 = vmatpush1.bf16.msra.mxu1 %v14372_v15 }
 0xd52   :  { %9429 = vmatprep.subr.bf16.mxu0 %v14377_v42  ;;  %9470 = vmatprep.subr.bf16.mxu1 %v14380_v47 }
 0xd55   :  { %9430 = vmatpush1.bf16.msra.mxu0 %v14375_v56  ;;  %9471 = vmatpush1.bf16.msra.mxu1 %v14378_v54 }
 0xd56   :  { %9431 = vmatprep.subr.bf16.mxu0 %v14383_v52  ;;  %9472 = vmatprep.subr.bf16.mxu1 %v14386_v38 }
 0xd59   :  { %9432 = vmatpush2.bf16.msra.mxu0 %v14381_v33  ;;  %9473 = vmatpush2.bf16.msra.mxu1 %v14384_v25 }
 0xd5a   :  { %9433 = vmatprep.subr.bf16.mxu0 %v14389_v44  ;;  %9474 = vmatprep.subr.bf16.mxu1 %v14392_v10  ;;  %v8253_v10 = vrot.slane %v12419_v61, %v15487_v9 }
 0xd5d   :  { %9434 = vmatpush2.bf16.msra.mxu0 %v14387_v49  ;;  %9475 = vmatpush2.bf16.msra.mxu1 %v14390_v34  ;;  %v8249_v34 = vrot.slane %v12419_v61, %v15479_v5 }
 0xd5e   :  { %9435 = vmatprep.subr.bf16.mxu0 %v14395_v57  ;;  %9476 = vmatprep.subr.bf16.mxu1 %v14398_v48 }
 0xd61   :  { %9436 = vmatpush2.bf16.msra.mxu0 %v14393_v18  ;;  %9477 = vmatpush2.bf16.msra.mxu1 %v14396_v43 }
 0xd62   :  { %9437 = vmatprep.subr.bf16.mxu0 %v14401_v6  ;;  %9478 = vmatprep.subr.bf16.mxu1 %v14404_v20 }
 0xd65   :  { %9438 = vmatpush2.bf16.msra.mxu0 %v14399_v45  ;;  %9479 = vmatpush2.bf16.msra.mxu1 %v14402_v19 }
 0xd66   :  { %9439 = vmatprep.subr.bf16.mxu0 %v14407_v30  ;;  %9480 = vmatprep.subr.bf16.mxu1 %v14410_v58 }
 0xd69   :  { %9440 = vmatpush2.bf16.msra.mxu0 %v14405_v28  ;;  %9481 = vmatpush2.bf16.msra.mxu1 %v14408_v50 }
 0xd6a   :  { %9441 = vmatprep.subr.bf16.mxu0 %v14413_v23  ;;  %9482 = vmatprep.subr.bf16.mxu1 %v14416_v31 }
 0xd6d   :  { %9442 = vmatpush2.bf16.msra.mxu0 %v14411_v27  ;;  %9483 = vmatpush2.bf16.msra.mxu1 %v14414_v2 }
 0xd6e   :  { %9443 = vmatprep.subr.bf16.mxu0 %v14419_v7  ;;  %9484 = vmatprep.subr.bf16.mxu1 %v14422_v13 }
 0xd71   :  { %9444 = vmatpush2.bf16.msra.mxu0 %v14417_v40  ;;  %9485 = vmatpush2.bf16.msra.mxu1 %v14420_v36 }
 0xd72   :  { %9445 = vmatprep.subr.bf16.mxu0 %v14425_v46  ;;  %9486 = vmatprep.subr.bf16.mxu1 %v14428_v55 }
 0xd75   :  { %9446 = vmatpush2.bf16.msra.mxu0 %v14423_v22  ;;  %9487 = vmatpush2.bf16.msra.mxu1 %v14426_v11 }
 0xd76   :  { %9931 = vmatprep.subr.bf16.mxu0 %v14431_v12  ;;  %9972 = vmatprep.subr.bf16.mxu1 %v14434_v41 }
 0xdd7   :  { %v8612_v39 = vpop.f32.mrf.mxu0  ;;  %v8653_v37 = vpop.f32.mrf.mxu1 }
 0xdd8   :  { %v8613_v15 = vadd.f32 %v8612_v39, %v8241_v26  ;;  %v8654_v18 = vadd.f32 %v8653_v37, %v8249_v34 }
 0xdd9   :  { %v8614_v42 = vpop.f32.mrf.mxu0  ;;  %v8655_v47 = vpop.f32.mrf.mxu1 }
 0xdda   :  { %v12484_v56 = vmul.f32 -1.442695, %v8613_v15  ;;  %v8615_v54 = vadd.f32 %v8614_v42, %v8245_v53  ;;  %v8656_v49 = vadd.f32 %v8655_v47, %v8253_v10 }
 0xddb   :  { %v8616_v52 = vpop.f32.mrf.mxu0  ;;  %v8657_v38 = vpop.f32.mrf.mxu1 }
 0xddc   :  { %15037 = vpow2.f32 %v12484_v56  ;;  %v12485_v33 = vmul.f32 -1.442695, %v8615_v54  ;;  %v12486_v57 = vmul.f32 -1.442695, %v8656_v49 }
 0xddd   :  { %v8617_v25 = vpop.f32.mrf.mxu0  ;;  %v8658_v44 = vpop.f32.mrf.mxu1 }
 0xdde   :  { %15039 = vpow2.f32 %v12485_v33  ;;  %v16018_v25 = vpop.permute.xlu0 %9002 }
 0xddf   :  { %15041 = vpow2.f32 %v12486_v57  ;;  %vm9004_vm14 = vcmp.eq.s32.totalorder %v16018_v25, 1  ;;  %v14675_v25 = vld [vmem:[#allocation14 + $0x2c0] ss:$16 sps:$4 sm:$0xff]  }
 0xde9   :  { %v15038_v48 = vpop.eup %15037 }
 0xdea   :  { %v8663_v43 = vadd.f32 1.0, %v15038_v48 }
 0xdeb   :  { %v15040_v6 = vpop.eup %15039 }
 0xdec   :  { %15043 = vrcp.f32 %v8663_v43  ;;  %v8669_v20 = vadd.f32 1.0, %v15040_v6  ;;  %v15042_v30 = vpop.eup %15041  ;;  %v14429_v6 = vld [vmem:[#allocation14 + $0x2e0] ss:$16 sps:$4 sm:$0xff]  }
 0xded   :  { %15045 = vtanh.f32 %v8654_v18  ;;  %v8676_v13 = vadd.f32 1.0, %v15042_v30  ;;  %v14435_v30 = vld [vmem:[#allocation14 + $0x2c0] ss:$16 sps:$4 sm:$0xff]  }
 0xdee   :  { %15047 = vrcp.f32 %v8669_v20  ;;  %v14432_v20 = vld [vmem:[#allocation14 + $0x2e8] ss:$16 sps:$4 sm:$0xff]  }
 0xdf7   :  { %v8924_v45 = vpop.f32.mrf.mxu0  ;;  %v8965_v19 = vpop.f32.mrf.mxu1 }
 0xdf8   :  { %v8972_v58 = vadd.f32 %v8924_v45, %v15551_v59  ;;  %v8974_v61 = vadd.f32 %v8965_v19, %v15554_v60  ;;  %v14437_v19 = vld [vmem:[#allocation14 + $0x2c4] ss:$16 sps:$4 sm:$0xff]  }
 0xdf9   :  { %v15044_v28 = vpop.eup %15043  ;;  %v8926_v50 = vpop.f32.mrf.mxu0 }
 0xdfa   :  { %v8967_v23 = vpop.f32.mrf.mxu1  ;;  %v15046_v31 = vpop.eup %15045  ;;  %v12519_v27 = vmul.f32 -1.442695, %v8972_v58  ;;  %v8973_v2 = vadd.f32 %v8926_v50, %v15556_v63  ;;  %v14446_v58 = vld [vmem:[#allocation14 + $0x2ac] ss:$16 sps:$4 sm:$0xff]   ;;  %v14444_v50 = vld [vmem:[#allocation14 + $0x2a8] ss:$16 sps:$4 sm:$0xff]  }
 0xdfb   :  { %v15048_v7 = vpop.eup %15047  ;;  %v8928_v40 = vpop.f32.mrf.mxu0  ;;  %v8680_v46 = vmul.f32 %v15046_v31, %v15044_v28  ;;  %v8975_v63 = vadd.f32 %v8967_v23, %v15559_v1  ;;  %v14441_v28 = vld [vmem:[#allocation14 + $0x2a0] ss:$16 sps:$4 sm:$0xff]   ;;  %v14449_v23 = vld [vmem:[#allocation14 + $0x284] ss:$16 sps:$4 sm:$0xff]   ;;  %v14452_v31 = vld [vmem:[#allocation14 + $0x28c] ss:$16 sps:$4 sm:$0xff]  }
 0xdfc   :  { %v8969_v36 = vpop.f32.mrf.mxu1  ;;  %v8679_v55 = vmul.f32 %v15048_v7, %v15938_v51  ;;  %15049 = vpow2.f32 %v12519_v27  ;;  %v12520_v22 = vmul.f32 -1.442695, %v8973_v2  ;;  %v14447_v27 = vld [vmem:[#allocation14 + $0x280] ss:$16 sps:$4 sm:$0xff]   ;;  %v14450_v2 = vld [vmem:[#allocation14 + $0x288] ss:$16 sps:$4 sm:$0xff]  }
 0xdfd   :  { %v8929_v11 = vpop.f32.mrf.mxu0  ;;  %v12521_v26 = vmul.f32 -1.442695, %v8975_v63  ;;  %v14455_v7 = vld [vmem:[#allocation14 + $0x264] ss:$16 sps:$4 sm:$0xff]   ;;  %v14453_v40 = vld [vmem:[#allocation14 + $0x260] ss:$16 sps:$4 sm:$0xff]  }
 0xdfe   :  { %v8970_v12 = vpop.f32.mrf.mxu1  ;;  %v8681_v41 = vadd.f32 %v8680_v46, %v8679_v55  ;;  %15051 = vpow2.f32 %v12520_v22  ;;  %v14456_v36 = vld [vmem:[#allocation14 + $0x268] ss:$16 sps:$4 sm:$0xff]   ;;  %v14461_v46 = vld [vmem:[#allocation14 + $0x244] ss:$16 sps:$4 sm:$0xff]   ;;  %v14464_v55 = vld [vmem:[#allocation14 + $0x24c] ss:$16 sps:$4 sm:$0xff]  }
 0xdff   :  { %15053 = vrcp.f32 %v8676_v13  ;;  %v14458_v13 = vld [vmem:[#allocation14 + $0x26c] ss:$16 sps:$4 sm:$0xff]   ;;  %v14459_v22 = vld [vmem:[#allocation14 + $0x240] ss:$16 sps:$4 sm:$0xff]   ;;  %v14462_v11 = vld [vmem:[#allocation14 + $0x248] ss:$16 sps:$4 sm:$0xff]  }
 0xe00   :  { %15055 = vtanh.f32 %v8681_v41  ;;  %v16012_v59 = vsel %vm7651_vm13, %v8681_v41, %v15938_v51  ;;  %v14467_v12 = vld [vmem:[#allocation14 + $0x224] ss:$16 sps:$4 sm:$0xff]   ;;  %v14470_v41 = vld [vmem:[#allocation14 + $0x22c] ss:$16 sps:$4 sm:$0xff]   ;;  %v14465_v63 = vld [vmem:[#allocation14 + $0x220] ss:$16 sps:$4 sm:$0xff]  }
 0xe01   :  { %15057 = vtanh.f32 %v8974_v61  ;;  %v14468_v61 = vld [vmem:[#allocation14 + $0x228] ss:$16 sps:$4 sm:$0xff]  }
 0xe02   :  { %15059 = vpow2.f32 %v12521_v26  ;;  %v14473_v26 = vld [vmem:[#allocation14 + $0x204] ss:$16 sps:$4 sm:$0xff]  }
 0xe09   :  { %v15050_v53 = vpop.eup %15049 }
 0xe0a   :  { %v8979_v39 = vadd.f32 1.0, %v15050_v53  ;;  %v14476_v53 = vld [vmem:[#allocation14 + $0x20c] ss:$16 sps:$4 sm:$0xff]  }
 0xe0b   :  { %v15052_v37 = vpop.eup %15051 }
 0xe0c   :  { %v15054_v15 = vpop.eup %15053  ;;  %15061 = vrcp.f32 %v8979_v39  ;;  %v8985_v42 = vadd.f32 1.0, %v15052_v37  ;;  %v14471_v39 = vld [vmem:[#allocation14 + $0x200] ss:$16 sps:$4 sm:$0xff]   ;;  %v14474_v37 = vld [vmem:[#allocation14 + $0x208] ss:$16 sps:$4 sm:$0xff]  }
 0xe0d   :  { %v15056_v47 = vpop.eup %15055 }
 0xe0e   :  { %15063 = vrcp.f32 %v8985_v42  ;;  %v8683_v56 = vmul.f32 %v15056_v47, %v15054_v15  ;;  %v15058_v54 = vpop.eup %15057  ;;  %v14479_v15 = vld [vmem:[#allocation14 + $0x3e4] ss:$16 sps:$4 sm:$0xff]   ;;  %v14482_v42 = vld [vmem:[#allocation14 + $0x3ec] ss:$16 sps:$4 sm:$0xff]   ;;  %v14477_v47 = vld [vmem:[#allocation14 + $0x3e0] ss:$16 sps:$4 sm:$0xff]  }
 0xe0f   :  { %v15060_v1 = vpop.eup %15059 }
 0xe10   :  { %v8686_v51 = vsel %vm7651_vm13, %v8683_v56, 0.0  ;;  %v8992_v33 = vadd.f32 1.0, %v15060_v1  ;;  %v16032_v18 = vsel %vm7651_vm13, %v8683_v56, %v15958_v32  ;;  %v14443_v32 = vld [vmem:[#allocation14 + $0x2a4] ss:$16 sps:$4 sm:$0xff]   ;;  %v14480_v56 = vld [vmem:[#allocation14 + $0x3e8] ss:$16 sps:$4 sm:$0xff]  }
 0xe11   :  { %8688 = vst [vmem:[#allocation16 + $0x28] sm:$0xff] %v8686_v51  ;;  %v9524_v45 = vpack.c.bf16 %v16032_v18, %v16032_v18  ;;  %v14485_v51 = vld [vmem:[#allocation14 + $0x3c4] ss:$16 sps:$4 sm:$0xff]   ;;  %v14483_v1 = vld [vmem:[#allocation14 + $0x3c0] ss:$16 sps:$4 sm:$0xff]  }
 0xe12   :  { %15065 = vrcp.f32 %v8992_v33  ;;  %v14489_v33 = vld [vmem:[#allocation14 + $0x3a0] ss:$16 sps:$4 sm:$0xff]  }
 0xe19   :  { %v15062_v52 = vpop.eup %15061 }
 0xe1a   :  { %v8996_v60 = vmul.f32 %v15062_v52, %v15058_v54  ;;  %v14488_v54 = vld [vmem:[#allocation14 + $0x3cc] ss:$16 sps:$4 sm:$0xff]   ;;  %v14486_v52 = vld [vmem:[#allocation14 + $0x3c8] ss:$16 sps:$4 sm:$0xff]  }
 0xe1b   :  { %v15064_v38 = vpop.eup %15063 }
 0xe1c   :  { %v8995_v44 = vmul.f32 %v15064_v38, %v15951_v16  ;;  %v14494_v38 = vld [vmem:[#allocation14 + $0x3ac] ss:$16 sps:$4 sm:$0xff]  }
 0xe1e   :  { %v8997_v10 = vadd.f32 %v8996_v60, %v8995_v44  ;;  %v14491_v60 = vld [vmem:[#allocation14 + $0x3a4] ss:$16 sps:$4 sm:$0xff]   ;;  %v14492_v44 = vld [vmem:[#allocation14 + $0x3a8] ss:$16 sps:$4 sm:$0xff]  }
 0xe1f   :  { %v15066_v34 = vpop.eup %15065 }
 0xe20   :  { %15067 = vtanh.f32 %v8997_v10  ;;  %v16025_v49 = vsel %vm9004_vm14, %v8997_v10, %v15951_v16  ;;  %v14440_v16 = vld [vmem:[#allocation14 + $0x2cc] ss:$16 sps:$4 sm:$0xff]   ;;  %v14497_v10 = vld [vmem:[#allocation14 + $0x384] ss:$16 sps:$4 sm:$0xff]  }
 0xe2d   :  { %v15068_v57 = vpop.eup %15067 }
 0xe2e   :  { %v16027_v48 = vmul.f32 %v15068_v57, %v15066_v34  ;;  %v14500_v34 = vld [vmem:[#allocation14 + $0x38c] ss:$16 sps:$4 sm:$0xff]   ;;  %v14495_v57 = vld [vmem:[#allocation14 + $0x380] ss:$16 sps:$4 sm:$0xff]  }
 0xe30   :  { %v9007_v43 = vpack.c.bf16 %v16027_v48, %v16027_v48 }
 0xe32   :  { %9448 = vmatmul.mubr.bf16.vlgmr.msra.gmra.mxu0 %v9007_v43  ;;  %9489 = vmatmul.mubr.bf16.vlgmr.msra.gmra.mxu1 %v9007_v43  ;;  %v14498_v43 = vld [vmem:[#allocation14 + $0x388] ss:$16 sps:$4 sm:$0xff]  }
 0xe33   :  { %9963 = vmatprep.mubr.bf16.mxu0 %v9524_v45  ;;  %10004 = vmatprep.mubr.bf16.mxu1 %v9524_v45  ;;  %v14504_v45 = vld [vmem:[#allocation14 + $0x368] ss:$16 sps:$4 sm:$0xff]  }
 0xe34   :  { %9932 = vmatpush1.bf16.msra.mxu0 %v14429_v6  ;;  %9973 = vmatpush1.bf16.msra.mxu1 %v14432_v20  ;;  %v14503_v6 = vld [vmem:[#allocation14 + $0x364] ss:$16 sps:$4 sm:$0xff]   ;;  %v14501_v20 = vld [vmem:[#allocation14 + $0x360] ss:$16 sps:$4 sm:$0xff]  }
 0xe35   :  { %9933 = vmatprep.subr.bf16.mxu0 %v14437_v19  ;;  %9974 = vmatprep.subr.bf16.mxu1 %v14440_v16  ;;  %v14506_v19 = vld [vmem:[#allocation14 + $0x36c] ss:$16 sps:$4 sm:$0xff]   ;;  %v14509_v16 = vld [vmem:[#allocation14 + $0x344] ss:$16 sps:$4 sm:$0xff]  }
 0xe38   :  { %9934 = vmatpush1.bf16.msra.mxu0 %v14435_v30  ;;  %9975 = vmatpush1.bf16.msra.mxu1 %v14438_v29  ;;  %v14512_v30 = vld [vmem:[#allocation14 + $0x34c] ss:$16 sps:$4 sm:$0xff]   ;;  %v14507_v29 = vld [vmem:[#allocation14 + $0x340] ss:$16 sps:$4 sm:$0xff]  }
 0xe39   :  { %9935 = vmatprep.subr.bf16.mxu0 %v14443_v32  ;;  %9976 = vmatprep.subr.bf16.mxu1 %v14446_v58  ;;  %v14510_v32 = vld [vmem:[#allocation14 + $0x348] ss:$16 sps:$4 sm:$0xff]   ;;  %v14515_v58 = vld [vmem:[#allocation14 + $0x324] ss:$16 sps:$4 sm:$0xff]  }
 0xe3c   :  { %9936 = vmatpush1.bf16.msra.mxu0 %v14441_v28  ;;  %9977 = vmatpush1.bf16.msra.mxu1 %v14444_v50  ;;  %v14518_v28 = vld [vmem:[#allocation14 + $0x32c] ss:$16 sps:$4 sm:$0xff]   ;;  %v14513_v50 = vld [vmem:[#allocation14 + $0x320] ss:$16 sps:$4 sm:$0xff]  }
 0xe3d   :  { %9937 = vmatprep.subr.bf16.mxu0 %v14449_v23  ;;  %9978 = vmatprep.subr.bf16.mxu1 %v14452_v31  ;;  %v14516_v23 = vld [vmem:[#allocation14 + $0x328] ss:$16 sps:$4 sm:$0xff]   ;;  %v14521_v31 = vld [vmem:[#allocation14 + $0x304] ss:$16 sps:$4 sm:$0xff]  }
 0xe40   :  { %9938 = vmatpush1.bf16.msra.mxu0 %v14447_v27  ;;  %9979 = vmatpush1.bf16.msra.mxu1 %v14450_v2  ;;  %v14524_v27 = vld [vmem:[#allocation14 + $0x30c] ss:$16 sps:$4 sm:$0xff]   ;;  %v14519_v2 = vld [vmem:[#allocation14 + $0x300] ss:$16 sps:$4 sm:$0xff]  }
 0xe41   :  { %9939 = vmatprep.subr.bf16.mxu0 %v14455_v7  ;;  %9980 = vmatprep.subr.bf16.mxu1 %v14458_v13  ;;  %v14522_v7 = vld [vmem:[#allocation14 + $0x308] ss:$16 sps:$4 sm:$0xff]   ;;  %v14527_v13 = vld [vmem:[#allocation13 + $0xe4] ss:$16 sps:$4 sm:$0xff]  }
 0xe44   :  { %9940 = vmatpush1.bf16.msra.mxu0 %v14453_v40  ;;  %9981 = vmatpush1.bf16.msra.mxu1 %v14456_v36  ;;  %v14530_v40 = vld [vmem:[#allocation13 + $0xec] ss:$16 sps:$4 sm:$0xff]   ;;  %v9073_v36 = vld [vmem:[%s16165_s8] sm:$0xf] }
 0xe45   :  { %9941 = vmatprep.subr.bf16.mxu0 %v14461_v46  ;;  %9982 = vmatprep.subr.bf16.mxu1 %v14464_v55  ;;  %v9078_v46 = vrot.slane %v9073_v36, %v15477_v4  ;;  %v9082_v55 = vrot.slane %v9073_v36, %v15485_v8 }
 0xe48   :  { %9942 = vmatpush1.bf16.msra.mxu0 %v14459_v22  ;;  %9983 = vmatpush1.bf16.msra.mxu1 %v14462_v11 }
 0xe49   :  { %9943 = vmatprep.subr.bf16.mxu0 %v14467_v12  ;;  %9984 = vmatprep.subr.bf16.mxu1 %v14470_v41 }
 0xe4c   :  { %9944 = vmatpush1.bf16.msra.mxu0 %v14465_v63  ;;  %9985 = vmatpush1.bf16.msra.mxu1 %v14468_v61 }
 0xe4d   :  { %9945 = vmatprep.subr.bf16.mxu0 %v14473_v26  ;;  %9986 = vmatprep.subr.bf16.mxu1 %v14476_v53 }
 0xe50   :  { %9946 = vmatpush1.bf16.msra.mxu0 %v14471_v39  ;;  %9987 = vmatpush1.bf16.msra.mxu1 %v14474_v37 }
 0xe51   :  { %9947 = vmatprep.subr.bf16.mxu0 %v14479_v15  ;;  %9988 = vmatprep.subr.bf16.mxu1 %v14482_v42 }
 0xe54   :  { %9948 = vmatpush2.bf16.msra.mxu0 %v14477_v47  ;;  %9989 = vmatpush2.bf16.msra.mxu1 %v14480_v56  ;;  %v9090_v47 = vrot.slane %v9073_v36, %v15487_v9 }
 0xe55   :  { %9949 = vmatprep.subr.bf16.mxu0 %v14485_v51  ;;  %9990 = vmatprep.subr.bf16.mxu1 %v14488_v54  ;;  %v9086_v51 = vrot.slane %v9073_v36, %v15479_v5  ;;  %v14548_v36 = vld [vmem:[#allocation13 + $0x8c] ss:$16 sps:$4 sm:$0xff]  }
 0xe58   :  { %9950 = vmatpush2.bf16.msra.mxu0 %v14483_v1  ;;  %9991 = vmatpush2.bf16.msra.mxu1 %v14486_v52 }
 0xe59   :  { %9951 = vmatprep.subr.bf16.mxu0 %v14491_v60  ;;  %9992 = vmatprep.subr.bf16.mxu1 %v14494_v38 }
 0xe5c   :  { %9952 = vmatpush2.bf16.msra.mxu0 %v14489_v33  ;;  %9993 = vmatpush2.bf16.msra.mxu1 %v14492_v44 }
 0xe5d   :  { %9953 = vmatprep.subr.bf16.mxu0 %v14497_v10  ;;  %9994 = vmatprep.subr.bf16.mxu1 %v14500_v34 }
 0xe60   :  { %9954 = vmatpush2.bf16.msra.mxu0 %v14495_v57  ;;  %9995 = vmatpush2.bf16.msra.mxu1 %v14498_v43 }
 0xe61   :  { %9955 = vmatprep.subr.bf16.mxu0 %v14503_v6  ;;  %9996 = vmatprep.subr.bf16.mxu1 %v14506_v19 }
 0xe64   :  { %9956 = vmatpush2.bf16.msra.mxu0 %v14501_v20  ;;  %9997 = vmatpush2.bf16.msra.mxu1 %v14504_v45 }
 0xe65   :  { %9957 = vmatprep.subr.bf16.mxu0 %v14509_v16  ;;  %9998 = vmatprep.subr.bf16.mxu1 %v14512_v30 }
 0xe68   :  { %9958 = vmatpush2.bf16.msra.mxu0 %v14507_v29  ;;  %9999 = vmatpush2.bf16.msra.mxu1 %v14510_v32  ;;  %v14525_v32 = vld [vmem:[#allocation13 + $0xe0] ss:$16 sps:$4 sm:$0xff]  }
 0xe69   :  { %9959 = vmatprep.subr.bf16.mxu0 %v14515_v58  ;;  %10000 = vmatprep.subr.bf16.mxu1 %v14518_v28  ;;  %v14528_v58 = vld [vmem:[#allocation13 + $0xe8] ss:$16 sps:$4 sm:$0xff]  }
 0xe6c   :  { %9960 = vmatpush2.bf16.msra.mxu0 %v14513_v50  ;;  %10001 = vmatpush2.bf16.msra.mxu1 %v14516_v23  ;;  %v14533_v50 = vld [vmem:[#allocation13 + $0xc4] ss:$16 sps:$4 sm:$0xff]   ;;  %v14536_v23 = vld [vmem:[#allocation13 + $0xcc] ss:$16 sps:$4 sm:$0xff]  }
 0xe6d   :  { %9961 = vmatprep.subr.bf16.mxu0 %v14521_v31  ;;  %10002 = vmatprep.subr.bf16.mxu1 %v14524_v27  ;;  %v14531_v31 = vld [vmem:[#allocation13 + $0xc0] ss:$16 sps:$4 sm:$0xff]   ;;  %v14534_v27 = vld [vmem:[#allocation13 + $0xc8] ss:$16 sps:$4 sm:$0xff]  }
 0xe70   :  { %9962 = vmatpush2.bf16.msra.mxu0 %v14519_v2  ;;  %10003 = vmatpush2.bf16.msra.mxu1 %v14522_v7  ;;  %v14542_v2 = vld [vmem:[#allocation13 + $0xac] ss:$16 sps:$4 sm:$0xff]   ;;  %v14537_v7 = vld [vmem:[#allocation13 + $0xa0] ss:$16 sps:$4 sm:$0xff]  }
 0xe71   :  { %10243 = vmatprep.subr.bf16.mxu0 %v14527_v13  ;;  %10284 = vmatprep.subr.bf16.mxu1 %v14530_v40  ;;  %v14540_v13 = vld [vmem:[#allocation13 + $0xa8] ss:$16 sps:$4 sm:$0xff]   ;;  %v14545_v40 = vld [vmem:[#allocation13 + $0x84] ss:$16 sps:$4 sm:$0xff]  }
 0xef2   :  { %v9449_v22 = vpop.f32.mrf.mxu0  ;;  %v9490_v11 = vpop.f32.mrf.mxu1 }
 0xef3   :  { %v9450_v12 = vadd.f32 %v9449_v22, %v9078_v46  ;;  %v9491_v52 = vadd.f32 %v9490_v11, %v9086_v51  ;;  %v14543_v46 = vld [vmem:[#allocation13 + $0x80] ss:$16 sps:$4 sm:$0xff]   ;;  %v14551_v22 = vld [vmem:[#allocation13 + $0x64] ss:$16 sps:$4 sm:$0xff]   ;;  %v14554_v11 = vld [vmem:[#allocation13 + $0x6c] ss:$16 sps:$4 sm:$0xff]  }
 0xef4   :  { %v9451_v41 = vpop.f32.mrf.mxu0  ;;  %v9492_v63 = vpop.f32.mrf.mxu1  ;;  %v14570_v51 = vld [vmem:[#allocation13 + $0x8] ss:$16 sps:$4 sm:$0xff]  }
 0xef5   :  { %v12586_v61 = vmul.f32 -1.442695, %v9450_v12  ;;  %v9452_v26 = vadd.f32 %v9451_v41, %v9082_v55  ;;  %v9493_v56 = vadd.f32 %v9492_v63, %v9090_v47  ;;  %v14546_v55 = vld [vmem:[#allocation13 + $0x88] ss:$16 sps:$4 sm:$0xff]   ;;  %v14549_v12 = vld [vmem:[#allocation13 + $0x60] ss:$16 sps:$4 sm:$0xff]  }
 0xef6   :  { %v9453_v53 = vpop.f32.mrf.mxu0  ;;  %v9494_v39 = vpop.f32.mrf.mxu1  ;;  %v14557_v41 = vld [vmem:[#allocation13 + $0x44] ss:$16 sps:$4 sm:$0xff]   ;;  %v14560_v63 = vld [vmem:[#allocation13 + $0x4c] ss:$16 sps:$4 sm:$0xff]  }
 0xef7   :  { %15069 = vpow2.f32 %v12586_v61  ;;  %v12587_v37 = vmul.f32 -1.442695, %v9452_v26  ;;  %v12588_v54 = vmul.f32 -1.442695, %v9493_v56  ;;  %v14555_v61 = vld [vmem:[#allocation13 + $0x40] ss:$16 sps:$4 sm:$0xff]  }
 0xef8   :  { %v9454_v15 = vpop.f32.mrf.mxu0  ;;  %v9495_v42 = vpop.f32.mrf.mxu1  ;;  %v14558_v26 = vld [vmem:[#allocation13 + $0x48] ss:$16 sps:$4 sm:$0xff]   ;;  %v14563_v53 = vld [vmem:[#allocation13 + $0x24] ss:$16 sps:$4 sm:$0xff]   ;;  %v14566_v39 = vld [vmem:[#allocation13 + $0x2c] ss:$16 sps:$4 sm:$0xff]  }
 0xef9   :  { %15071 = vpow2.f32 %v12587_v37  ;;  %v14561_v37 = vld [vmem:[#allocation13 + $0x20] ss:$16 sps:$4 sm:$0xff]   ;;  %v14564_v15 = vld [vmem:[#allocation13 + $0x28] ss:$16 sps:$4 sm:$0xff]   ;;  %v14569_v42 = vld [vmem:[#allocation13 + $0x4] ss:$16 sps:$4 sm:$0xff]  }
 0xefa   :  { %15073 = vpow2.f32 %v12588_v54  ;;  %v14572_v47 = vld [vmem:[#allocation13 + $0xc] ss:$16 sps:$4 sm:$0xff]   ;;  %v14567_v56 = vld [vmem:[#allocation13] ss:$16 sps:$4 sm:$0xff]   ;;  %v16061_v54 = vsel %vm9004_vm14, %v16027_v48, %v15987_v35  ;;  %v14575_v35 = vld [vmem:[#allocation14 + $0xe4] ss:$16 sps:$4 sm:$0xff]  }
 0xefb   :  { %v14578_v48 = vld [vmem:[#allocation14 + $0xec] ss:$16 sps:$4 sm:$0xff]  }
 0xf04   :  { %v15070_v1 = vpop.eup %15069 }
 0xf05   :  { %v9500_v60 = vadd.f32 1.0, %v15070_v1 }
 0xf06   :  { %v15072_v38 = vpop.eup %15071 }
 0xf07   :  { %15075 = vrcp.f32 %v9500_v60  ;;  %v9506_v33 = vadd.f32 1.0, %v15072_v38  ;;  %v15074_v44 = vpop.eup %15073  ;;  %v14573_v38 = vld [vmem:[#allocation14 + $0xe0] ss:$16 sps:$4 sm:$0xff]  }
 0xf08   :  { %15077 = vtanh.f32 %v9491_v52  ;;  %v9513_v43 = vadd.f32 1.0, %v15074_v44  ;;  %v10050_v52 = vpack.c.bf16 %v16061_v54, %v16061_v54  ;;  %v14584_v44 = vld [vmem:[#allocation14 + $0xcc] ss:$16 sps:$4 sm:$0xff]  }
 0xf09   :  { %15079 = vrcp.f32 %v9506_v33  ;;  %v14576_v33 = vld [vmem:[#allocation14 + $0xe8] ss:$16 sps:$4 sm:$0xff]  }
 0xf0a   :  { %15081 = vrcp.f32 %v9513_v43  ;;  %v14590_v43 = vld [vmem:[#allocation14 + $0xac] ss:$16 sps:$4 sm:$0xff]  }
 0xf14   :  { %v15076_v10 = vpop.eup %15075 }
 0xf15   :  { %v15078_v34 = vpop.eup %15077 }
 0xf16   :  { %v15080_v57 = vpop.eup %15079  ;;  %v9517_v6 = vmul.f32 %v15078_v34, %v15076_v10  ;;  %v14579_v10 = vld [vmem:[#allocation14 + $0xc0] ss:$16 sps:$4 sm:$0xff]   ;;  %v14582_v34 = vld [vmem:[#allocation14 + $0xc8] ss:$16 sps:$4 sm:$0xff]  }
 0xf17   :  { %v9516_v20 = vmul.f32 %v15080_v57, %v15975_v17  ;;  %v15082_v16 = vpop.eup %15081  ;;  %v14587_v57 = vld [vmem:[#allocation14 + $0xa4] ss:$16 sps:$4 sm:$0xff]  }
 0xf19   :  { %v9518_v45 = vadd.f32 %v9517_v6, %v9516_v20  ;;  %v14585_v6 = vld [vmem:[#allocation14 + $0xa0] ss:$16 sps:$4 sm:$0xff]   ;;  %v14588_v20 = vld [vmem:[#allocation14 + $0xa8] ss:$16 sps:$4 sm:$0xff]  }
 0xf1b   :  { %15083 = vtanh.f32 %v9518_v45  ;;  %v16049_v19 = vsel %vm9004_vm14, %v9518_v45, %v15975_v17  ;;  %v14539_v17 = vld [vmem:[#allocation13 + $0xa4] ss:$16 sps:$4 sm:$0xff]  }
 0xf1c   :  { %v14593_v45 = vld [vmem:[#allocation14 + $0x84] ss:$16 sps:$4 sm:$0xff]  }
 0xf28   :  { %v15084_v30 = vpop.eup %15083 }
 0xf29   :  { %v16051_v29 = vmul.f32 %v15084_v30, %v15082_v16  ;;  %v14596_v16 = vld [vmem:[#allocation14 + $0x8c] ss:$16 sps:$4 sm:$0xff]   ;;  %v14591_v30 = vld [vmem:[#allocation14 + $0x80] ss:$16 sps:$4 sm:$0xff]  }
 0xf2b   :  { %v9523_v28 = vpack.c.bf16 %v16051_v29, %v16051_v29  ;;  %v16067_v1 = vsel %vm9004_vm14, %v16051_v29, %v15993_v62  ;;  %v14581_v62 = vld [vmem:[#allocation14 + $0xc4] ss:$16 sps:$4 sm:$0xff]   ;;  %v14594_v29 = vld [vmem:[#allocation14 + $0x88] ss:$16 sps:$4 sm:$0xff]  }
 0xf2c   :  { %v10361_v60 = vpack.c.bf16 %v16067_v1, %v16067_v1 }
 0xf2d   :  { %9964 = vmatmul.mubr.bf16.vlgmr.msra.gmra.mxu0 %v9523_v28  ;;  %10005 = vmatmul.mubr.bf16.vlgmr.msra.gmra.mxu1 %v9523_v28  ;;  %v14597_v28 = vld [vmem:[#allocation14 + $0x60] ss:$16 sps:$4 sm:$0xff]  }
 0xf2e   :  { %10244 = vmatpush1.bf16.msra.mxu0 %v14525_v32  ;;  %10285 = vmatpush1.bf16.msra.mxu1 %v14528_v58  ;;  %v14599_v32 = vld [vmem:[#allocation14 + $0x64] ss:$16 sps:$4 sm:$0xff]   ;;  %v14602_v58 = vld [vmem:[#allocation14 + $0x6c] ss:$16 sps:$4 sm:$0xff]  }
 0xf2f   :  { %10245 = vmatprep.subr.bf16.mxu0 %v14533_v50  ;;  %10286 = vmatprep.subr.bf16.mxu1 %v14536_v23  ;;  %v14600_v50 = vld [vmem:[#allocation14 + $0x68] ss:$16 sps:$4 sm:$0xff]   ;;  %v14605_v23 = vld [vmem:[#allocation14 + $0x44] ss:$16 sps:$4 sm:$0xff]  }
 0xf30   :  { %10275 = vmatprep.mubr.bf16.mxu0 %v15358_v0  ;;  %10316 = vmatprep.mubr.bf16.mxu1 %v15358_v0  ;;  %v14552_v0 = vld [vmem:[#allocation13 + $0x68] ss:$16 sps:$4 sm:$0xff]  }
 0xf32   :  { %10246 = vmatpush1.bf16.msra.mxu0 %v14531_v31  ;;  %10287 = vmatpush1.bf16.msra.mxu1 %v14534_v27  ;;  %v14608_v31 = vld [vmem:[#allocation14 + $0x4c] ss:$16 sps:$4 sm:$0xff]   ;;  %v14603_v27 = vld [vmem:[#allocation14 + $0x40] ss:$16 sps:$4 sm:$0xff]  }
 0xf33   :  { %10247 = vmatprep.subr.bf16.mxu0 %v14539_v17  ;;  %10288 = vmatprep.subr.bf16.mxu1 %v14542_v2  ;;  %v14606_v17 = vld [vmem:[#allocation14 + $0x48] ss:$16 sps:$4 sm:$0xff]   ;;  %v14611_v2 = vld [vmem:[#allocation14 + $0x24] ss:$16 sps:$4 sm:$0xff]  }
 0xf36   :  { %10248 = vmatpush1.bf16.msra.mxu0 %v14537_v7  ;;  %10289 = vmatpush1.bf16.msra.mxu1 %v14540_v13  ;;  %v14614_v7 = vld [vmem:[#allocation14 + $0x2c] ss:$16 sps:$4 sm:$0xff]   ;;  %v14609_v13 = vld [vmem:[#allocation14 + $0x20] ss:$16 sps:$4 sm:$0xff]  }
 0xf37   :  { %10249 = vmatprep.subr.bf16.mxu0 %v14545_v40  ;;  %10290 = vmatprep.subr.bf16.mxu1 %v14548_v36  ;;  %v14612_v40 = vld [vmem:[#allocation14 + $0x28] ss:$16 sps:$4 sm:$0xff]   ;;  %v14617_v36 = vld [vmem:[#allocation14 + $0x4] ss:$16 sps:$4 sm:$0xff]  }
 0xf3a   :  { %10250 = vmatpush1.bf16.msra.mxu0 %v14543_v46  ;;  %10291 = vmatpush1.bf16.msra.mxu1 %v14546_v55  ;;  %v14620_v46 = vld [vmem:[#allocation14 + $0xc] ss:$16 sps:$4 sm:$0xff]   ;;  %v14615_v55 = vld [vmem:[#allocation14] ss:$16 sps:$4 sm:$0xff]  }
 0xf3b   :  { %10251 = vmatprep.subr.bf16.mxu0 %v14551_v22  ;;  %10292 = vmatprep.subr.bf16.mxu1 %v14554_v11  ;;  %v14618_v22 = vld [vmem:[#allocation14 + $0x8] ss:$16 sps:$4 sm:$0xff]   ;;  %v14623_v11 = vld [vmem:[#allocation14 + $0x1e4] ss:$16 sps:$4 sm:$0xff]  }
 0xf3e   :  { %10252 = vmatpush1.bf16.msra.mxu0 %v14549_v12  ;;  %10293 = vmatpush1.bf16.msra.mxu1 %v14552_v0  ;;  %v14626_v12 = vld [vmem:[#allocation14 + $0x1ec] ss:$16 sps:$4 sm:$0xff]   ;;  %v14621_v0 = vld [vmem:[#allocation14 + $0x1e0] ss:$16 sps:$4 sm:$0xff]  }
 0xf3f   :  { %10253 = vmatprep.subr.bf16.mxu0 %v14557_v41  ;;  %10294 = vmatprep.subr.bf16.mxu1 %v14560_v63  ;;  %v14624_v41 = vld [vmem:[#allocation14 + $0x1e8] ss:$16 sps:$4 sm:$0xff]   ;;  %v14629_v63 = vld [vmem:[#allocation14 + $0x1c4] ss:$16 sps:$4 sm:$0xff]  }
 0xf42   :  { %10254 = vmatpush1.bf16.msra.mxu0 %v14555_v61  ;;  %10295 = vmatpush1.bf16.msra.mxu1 %v14558_v26  ;;  %v14632_v61 = vld [vmem:[#allocation14 + $0x1cc] ss:$16 sps:$4 sm:$0xff]   ;;  %v14627_v26 = vld [vmem:[#allocation14 + $0x1c0] ss:$16 sps:$4 sm:$0xff]  }
 0xf43   :  { %10255 = vmatprep.subr.bf16.mxu0 %v14563_v53  ;;  %10296 = vmatprep.subr.bf16.mxu1 %v14566_v39  ;;  %v14630_v53 = vld [vmem:[#allocation14 + $0x1c8] ss:$16 sps:$4 sm:$0xff]   ;;  %v14635_v39 = vld [vmem:[#allocation14 + $0x1a4] ss:$16 sps:$4 sm:$0xff]  }
 0xf46   :  { %10256 = vmatpush1.bf16.msra.mxu0 %v14561_v37  ;;  %10297 = vmatpush1.bf16.msra.mxu1 %v14564_v15  ;;  %v14638_v37 = vld [vmem:[#allocation14 + $0x1ac] ss:$16 sps:$4 sm:$0xff]   ;;  %v14633_v15 = vld [vmem:[#allocation14 + $0x1a0] ss:$16 sps:$4 sm:$0xff]  }
 0xf47   :  { %10257 = vmatprep.subr.bf16.mxu0 %v14569_v42  ;;  %10298 = vmatprep.subr.bf16.mxu1 %v14572_v47  ;;  %v14636_v42 = vld [vmem:[#allocation14 + $0x1a8] ss:$16 sps:$4 sm:$0xff]   ;;  %v14641_v47 = vld [vmem:[#allocation14 + $0x184] ss:$16 sps:$4 sm:$0xff]  }
 0xf4a   :  { %10258 = vmatpush1.bf16.msra.mxu0 %v14567_v56  ;;  %10299 = vmatpush1.bf16.msra.mxu1 %v14570_v51  ;;  %v14644_v56 = vld [vmem:[#allocation14 + $0x18c] ss:$16 sps:$4 sm:$0xff]   ;;  %v14639_v51 = vld [vmem:[#allocation14 + $0x180] ss:$16 sps:$4 sm:$0xff]  }
 0xf4b   :  { %10768 = vmatprep.subr.bf16.mxu0 %v14575_v35  ;;  %10809 = vmatprep.subr.bf16.mxu1 %v14578_v48  ;;  %v14650_v35 = vld [vmem:[#allocation14 + $0x16c] ss:$16 sps:$4 sm:$0xff]   ;;  %v14645_v48 = vld [vmem:[#allocation14 + $0x160] ss:$16 sps:$4 sm:$0xff]  }
 0xf4d   :  { %10276 = vmatmul.mubr.bf16.vlgmr.msra.gmra.mxu0 %v10050_v52  ;;  %10317 = vmatmul.mubr.bf16.vlgmr.msra.gmra.mxu1 %v10050_v52  ;;  %v14642_v52 = vld [vmem:[#allocation14 + $0x188] ss:$16 sps:$4 sm:$0xff]  }
 0xf4e   :  { %10800 = vmatprep.mubr.bf16.mxu0 %v10361_v60  ;;  %10841 = vmatprep.mubr.bf16.mxu1 %v10361_v60  ;;  %v14647_v60 = vld [vmem:[#allocation14 + $0x164] ss:$16 sps:$4 sm:$0xff]  }
 0xf4f   :  { %10769 = vmatpush1.bf16.msra.mxu0 %v14573_v38  ;;  %10810 = vmatpush1.bf16.msra.mxu1 %v14576_v33  ;;  %v14648_v38 = vld [vmem:[#allocation14 + $0x168] ss:$16 sps:$4 sm:$0xff]   ;;  %v14653_v33 = vld [vmem:[#allocation14 + $0x144] ss:$16 sps:$4 sm:$0xff]  }
 0xf50   :  { %10770 = vmatprep.subr.bf16.mxu0 %v14581_v62  ;;  %10811 = vmatprep.subr.bf16.mxu1 %v14584_v44  ;;  %v14656_v62 = vld [vmem:[#allocation14 + $0x14c] ss:$16 sps:$4 sm:$0xff]   ;;  %v14651_v44 = vld [vmem:[#allocation14 + $0x140] ss:$16 sps:$4 sm:$0xff]  }
 0xf53   :  { %10771 = vmatpush1.bf16.msra.mxu0 %v14579_v10  ;;  %10812 = vmatpush1.bf16.msra.mxu1 %v14582_v34  ;;  %v14654_v10 = vld [vmem:[#allocation14 + $0x148] ss:$16 sps:$4 sm:$0xff]   ;;  %v14659_v34 = vld [vmem:[#allocation14 + $0x124] ss:$16 sps:$4 sm:$0xff]  }
 0xf54   :  { %10772 = vmatprep.subr.bf16.mxu0 %v14587_v57  ;;  %10813 = vmatprep.subr.bf16.mxu1 %v14590_v43  ;;  %v14662_v57 = vld [vmem:[#allocation14 + $0x12c] ss:$16 sps:$4 sm:$0xff]   ;;  %v14657_v43 = vld [vmem:[#allocation14 + $0x120] ss:$16 sps:$4 sm:$0xff]  }
 0xf57   :  { %10773 = vmatpush1.bf16.msra.mxu0 %v14585_v6  ;;  %10814 = vmatpush1.bf16.msra.mxu1 %v14588_v20  ;;  %v14660_v6 = vld [vmem:[#allocation14 + $0x128] ss:$16 sps:$4 sm:$0xff]   ;;  %v14665_v20 = vld [vmem:[#allocation14 + $0x104] ss:$16 sps:$4 sm:$0xff]  }
 0xf58   :  { %10774 = vmatprep.subr.bf16.mxu0 %v14593_v45  ;;  %10815 = vmatprep.subr.bf16.mxu1 %v14596_v16  ;;  %v14668_v45 = vld [vmem:[#allocation14 + $0x10c] ss:$16 sps:$4 sm:$0xff]   ;;  %v14663_v16 = vld [vmem:[#allocation14 + $0x100] ss:$16 sps:$4 sm:$0xff]  }
 0xf5b   :  { %10775 = vmatpush1.bf16.msra.mxu0 %v14591_v30  ;;  %10816 = vmatpush1.bf16.msra.mxu1 %v14594_v29  ;;  %v14666_v30 = vld [vmem:[#allocation14 + $0x108] ss:$16 sps:$4 sm:$0xff]   ;;  %v14671_v29 = vld [vmem:[#allocation14 + $0x2e4] ss:$16 sps:$4 sm:$0xff]  }
 0xf5c   :  { %10776 = vmatprep.subr.bf16.mxu0 %v14599_v32  ;;  %10817 = vmatprep.subr.bf16.mxu1 %v14602_v58  ;;  %v14674_v32 = vld [vmem:[#allocation14 + $0x2ec] ss:$16 sps:$4 sm:$0xff]   ;;  %v12589_v58 = vld [vmem:[%s16165_s8 + $0x4] sm:$0xf] }
 0xf5f   :  { %10777 = vmatpush1.bf16.msra.mxu0 %v14597_v28  ;;  %10818 = vmatpush1.bf16.msra.mxu1 %v14600_v50  ;;  %v9594_v28 = vrot.slane %v12589_v58, %v15477_v4  ;;  %v9598_v50 = vrot.slane %v12589_v58, %v15485_v8 }
 0xf60   :  { %10778 = vmatprep.subr.bf16.mxu0 %v14605_v23  ;;  %10819 = vmatprep.subr.bf16.mxu1 %v14608_v31 }
 0xf63   :  { %10779 = vmatpush1.bf16.msra.mxu0 %v14603_v27  ;;  %10820 = vmatpush1.bf16.msra.mxu1 %v14606_v17 }
 0xf64   :  { %10780 = vmatprep.subr.bf16.mxu0 %v14611_v2  ;;  %10821 = vmatprep.subr.bf16.mxu1 %v14614_v7 }
 0xf67   :  { %10781 = vmatpush1.bf16.msra.mxu0 %v14609_v13  ;;  %10822 = vmatpush1.bf16.msra.mxu1 %v14612_v40 }
 0xf68   :  { %10782 = vmatprep.subr.bf16.mxu0 %v14617_v36  ;;  %10823 = vmatprep.subr.bf16.mxu1 %v14620_v46 }
 0xf6b   :  { %10783 = vmatpush1.bf16.msra.mxu0 %v14615_v55  ;;  %10824 = vmatpush1.bf16.msra.mxu1 %v14618_v22 }
 0xf6c   :  { %10784 = vmatprep.subr.bf16.mxu0 %v14623_v11  ;;  %10825 = vmatprep.subr.bf16.mxu1 %v14626_v12  ;;  %v9606_v11 = vrot.slane %v12589_v58, %v15487_v9 }
 0xf6f   :  { %10785 = vmatpush2.bf16.msra.mxu0 %v14621_v0  ;;  %10826 = vmatpush2.bf16.msra.mxu1 %v14624_v41  ;;  %v9602_v0 = vrot.slane %v12589_v58, %v15479_v5 }
 0xf70   :  { %10786 = vmatprep.subr.bf16.mxu0 %v14629_v63  ;;  %10827 = vmatprep.subr.bf16.mxu1 %v14632_v61 }
 0xf73   :  { %10787 = vmatpush2.bf16.msra.mxu0 %v14627_v26  ;;  %10828 = vmatpush2.bf16.msra.mxu1 %v14630_v53 }
 0xf74   :  { %10788 = vmatprep.subr.bf16.mxu0 %v14635_v39  ;;  %10829 = vmatprep.subr.bf16.mxu1 %v14638_v37 }
 0xf77   :  { %10789 = vmatpush2.bf16.msra.mxu0 %v14633_v15  ;;  %10830 = vmatpush2.bf16.msra.mxu1 %v14636_v42 }
 0xf78   :  { %10790 = vmatprep.subr.bf16.mxu0 %v14641_v47  ;;  %10831 = vmatprep.subr.bf16.mxu1 %v14644_v56 }
 0xf7b   :  { %10791 = vmatpush2.bf16.msra.mxu0 %v14639_v51  ;;  %10832 = vmatpush2.bf16.msra.mxu1 %v14642_v52 }
 0xf7c   :  { %10792 = vmatprep.subr.bf16.mxu0 %v14647_v60  ;;  %10833 = vmatprep.subr.bf16.mxu1 %v14650_v35 }
 0xf7f   :  { %10793 = vmatpush2.bf16.msra.mxu0 %v14645_v48  ;;  %10834 = vmatpush2.bf16.msra.mxu1 %v14648_v38 }
 0xf80   :  { %10794 = vmatprep.subr.bf16.mxu0 %v14653_v33  ;;  %10835 = vmatprep.subr.bf16.mxu1 %v14656_v62 }
 0xf83   :  { %10795 = vmatpush2.bf16.msra.mxu0 %v14651_v44  ;;  %10836 = vmatpush2.bf16.msra.mxu1 %v14654_v10 }
 0xf84   :  { %10796 = vmatprep.subr.bf16.mxu0 %v14659_v34  ;;  %10837 = vmatprep.subr.bf16.mxu1 %v14662_v57 }
 0xf87   :  { %10797 = vmatpush2.bf16.msra.mxu0 %v14657_v43  ;;  %10838 = vmatpush2.bf16.msra.mxu1 %v14660_v6 }
 0xf88   :  { %10798 = vmatprep.subr.bf16.mxu0 %v14665_v20  ;;  %10839 = vmatprep.subr.bf16.mxu1 %v14668_v45 }
 0xf8b   :  { %10799 = vmatpush2.bf16.msra.mxu0 %v14663_v16  ;;  %10840 = vmatpush2.bf16.msra.mxu1 %v14666_v30 }
 0xf8c   :  { %11284 = vmatprep.subr.bf16.mxu0 %v14671_v29  ;;  %11325 = vmatprep.subr.bf16.mxu1 %v14674_v32 }
 0xfed   :  { %v9965_v23 = vpop.f32.mrf.mxu0  ;;  %v10006_v31 = vpop.f32.mrf.mxu1 }
 0xfee   :  { %v9966_v27 = vadd.f32 %v9965_v23, %v9594_v28  ;;  %v10007_v61 = vadd.f32 %v10006_v31, %v9602_v0  ;;  %v14669_v0 = vld [vmem:[#allocation14 + $0x2e0] ss:$16 sps:$4 sm:$0xff]  }
 0xfef   :  { %v9967_v17 = vpop.f32.mrf.mxu0  ;;  %v10008_v2 = vpop.f32.mrf.mxu1 }
 0xff0   :  { %v12654_v7 = vmul.f32 -1.442695, %v9966_v27  ;;  %v9968_v13 = vadd.f32 %v9967_v17, %v9598_v50  ;;  %v10009_v12 = vadd.f32 %v10008_v2, %v9606_v11 }
 0xff1   :  { %v9969_v40 = vpop.f32.mrf.mxu0  ;;  %v10010_v36 = vpop.f32.mrf.mxu1 }
 0xff2   :  { %15085 = vpow2.f32 %v12654_v7  ;;  %v12655_v46 = vmul.f32 -1.442695, %v9968_v13  ;;  %v12656_v41 = vmul.f32 -1.442695, %v10009_v12  ;;  %v16092_v7 = vpop.permute.xlu1 %10355 }
 0xff3   :  { %v9970_v55 = vpop.f32.mrf.mxu0  ;;  %v10011_v22 = vpop.f32.mrf.mxu1  ;;  %vm10357_vm15 = vcmp.eq.s32.totalorder %v16092_v7, 1 }
 0xff4   :  { %15087 = vpow2.f32 %v12655_v46 }
 0xff5   :  { %15089 = vpow2.f32 %v12656_v41  ;;  %v14672_v41 = vld [vmem:[#allocation14 + $0x2e8] ss:$16 sps:$4 sm:$0xff]  }
 0xfff   :  { %v15086_v63 = vpop.eup %15085 }
0x1000   :  { %v10016_v26 = vadd.f32 1.0, %v15086_v63 }
0x1001   :  { %v15088_v53 = vpop.eup %15087 }
0x1002   :  { %15091 = vrcp.f32 %v10016_v26  ;;  %v10022_v39 = vadd.f32 1.0, %v15088_v53  ;;  %v15090_v42 = vpop.eup %15089  ;;  %v14680_v26 = vld [vmem:[#allocation14 + $0x2cc] ss:$16 sps:$4 sm:$0xff]   ;;  %v14683_v53 = vld [vmem:[#allocation14 + $0x2a4] ss:$16 sps:$4 sm:$0xff]  }
0x1003   :  { %15093 = vtanh.f32 %v10007_v61  ;;  %v10029_v33 = vadd.f32 1.0, %v15090_v42  ;;  %v14692_v42 = vld [vmem:[#allocation14 + $0x28c] ss:$16 sps:$4 sm:$0xff]  }
0x1004   :  { %15095 = vrcp.f32 %v10022_v39  ;;  %v14681_v39 = vld [vmem:[#allocation14 + $0x2a0] ss:$16 sps:$4 sm:$0xff]  }
0x100d   :  { %v10277_v37 = vpop.f32.mrf.mxu0  ;;  %v10318_v15 = vpop.f32.mrf.mxu1 }
0x100e   :  { %v10325_v47 = vadd.f32 %v10277_v37, %v15561_v3  ;;  %v10327_v45 = vadd.f32 %v10318_v15, %v15564_v14  ;;  %v14684_v37 = vld [vmem:[#allocation14 + $0x2a8] ss:$16 sps:$4 sm:$0xff]   ;;  %v14689_v15 = vld [vmem:[#allocation14 + $0x284] ss:$16 sps:$4 sm:$0xff]  }
0x100f   :  { %v15092_v56 = vpop.eup %15091  ;;  %v10279_v51 = vpop.f32.mrf.mxu0 }
0x1010   :  { %v10320_v52 = vpop.f32.mrf.mxu1  ;;  %v15094_v60 = vpop.eup %15093  ;;  %v12689_v35 = vmul.f32 -1.442695, %v10325_v47  ;;  %v10326_v48 = vadd.f32 %v10279_v51, %v15566_v21  ;;  %v14687_v47 = vld [vmem:[#allocation14 + $0x280] ss:$16 sps:$4 sm:$0xff]   ;;  %v14695_v51 = vld [vmem:[#allocation14 + $0x264] ss:$16 sps:$4 sm:$0xff]  }
0x1011   :  { %v15096_v38 = vpop.eup %15095  ;;  %v10281_v62 = vpop.f32.mrf.mxu0  ;;  %v10033_v10 = vmul.f32 %v15094_v60, %v15092_v56  ;;  %v10328_v21 = vadd.f32 %v10320_v52, %v15569_v24  ;;  %v14690_v56 = vld [vmem:[#allocation14 + $0x288] ss:$16 sps:$4 sm:$0xff]   ;;  %v14698_v52 = vld [vmem:[#allocation14 + $0x26c] ss:$16 sps:$4 sm:$0xff]   ;;  %v14693_v60 = vld [vmem:[#allocation14 + $0x260] ss:$16 sps:$4 sm:$0xff]  }
0x1012   :  { %v10322_v44 = vpop.f32.mrf.mxu1  ;;  %v10032_v34 = vmul.f32 %v15096_v38, %v16012_v59  ;;  %15097 = vpow2.f32 %v12689_v35  ;;  %v12690_v57 = vmul.f32 -1.442695, %v10326_v48  ;;  %v14696_v35 = vld [vmem:[#allocation14 + $0x268] ss:$16 sps:$4 sm:$0xff]   ;;  %v14701_v48 = vld [vmem:[#allocation14 + $0x244] ss:$16 sps:$4 sm:$0xff]  }
0x1013   :  { %v10282_v43 = vpop.f32.mrf.mxu0  ;;  %v12691_v16 = vmul.f32 -1.442695, %v10328_v21  ;;  %v14704_v38 = vld [vmem:[#allocation14 + $0x24c] ss:$16 sps:$4 sm:$0xff]   ;;  %v14702_v62 = vld [vmem:[#allocation14 + $0x248] ss:$16 sps:$4 sm:$0xff]  }
0x1014   :  { %v10323_v6 = vpop.f32.mrf.mxu1  ;;  %v10034_v20 = vadd.f32 %v10033_v10, %v10032_v34  ;;  %15099 = vpow2.f32 %v12690_v57  ;;  %v14707_v44 = vld [vmem:[#allocation14 + $0x224] ss:$16 sps:$4 sm:$0xff]   ;;  %v14710_v10 = vld [vmem:[#allocation14 + $0x22c] ss:$16 sps:$4 sm:$0xff]   ;;  %v14705_v34 = vld [vmem:[#allocation14 + $0x220] ss:$16 sps:$4 sm:$0xff]  }
0x1015   :  { %15101 = vrcp.f32 %v10029_v33  ;;  %v14699_v33 = vld [vmem:[#allocation14 + $0x240] ss:$16 sps:$4 sm:$0xff]   ;;  %v14708_v57 = vld [vmem:[#allocation14 + $0x228] ss:$16 sps:$4 sm:$0xff]   ;;  %v14713_v43 = vld [vmem:[#allocation14 + $0x204] ss:$16 sps:$4 sm:$0xff]  }
0x1016   :  { %15103 = vtanh.f32 %v10034_v20  ;;  %v16086_v3 = vsel %vm9004_vm14, %v10034_v20, %v16012_v59  ;;  %v14716_v6 = vld [vmem:[#allocation14 + $0x20c] ss:$16 sps:$4 sm:$0xff]   ;;  %v14711_v20 = vld [vmem:[#allocation14 + $0x200] ss:$16 sps:$4 sm:$0xff]   ;;  %v14714_v21 = vld [vmem:[#allocation14 + $0x208] ss:$16 sps:$4 sm:$0xff]  }
0x1017   :  { %15105 = vtanh.f32 %v10327_v45  ;;  %v14719_v45 = vld [vmem:[#allocation14 + $0x3e4] ss:$16 sps:$4 sm:$0xff]  }
0x1018   :  { %15107 = vpow2.f32 %v12691_v16  ;;  %v14722_v16 = vld [vmem:[#allocation14 + $0x3ec] ss:$16 sps:$4 sm:$0xff]  }
0x101f   :  { %v15098_v30 = vpop.eup %15097 }
0x1020   :  { %v10332_v29 = vadd.f32 1.0, %v15098_v30  ;;  %v14717_v30 = vld [vmem:[#allocation14 + $0x3e0] ss:$16 sps:$4 sm:$0xff]  }
0x1021   :  { %v15100_v32 = vpop.eup %15099 }
0x1022   :  { %v15102_v58 = vpop.eup %15101  ;;  %15109 = vrcp.f32 %v10332_v29  ;;  %v10338_v28 = vadd.f32 1.0, %v15100_v32  ;;  %v14720_v29 = vld [vmem:[#allocation14 + $0x3e8] ss:$16 sps:$4 sm:$0xff]   ;;  %v14725_v32 = vld [vmem:[#allocation14 + $0x3c4] ss:$16 sps:$4 sm:$0xff]  }
0x1023   :  { %v15104_v50 = vpop.eup %15103 }
0x1024   :  { %15111 = vrcp.f32 %v10338_v28  ;;  %v10036_v23 = vmul.f32 %v15104_v50, %v15102_v58  ;;  %v15106_v31 = vpop.eup %15105  ;;  %v14728_v58 = vld [vmem:[#allocation14 + $0x3cc] ss:$16 sps:$4 sm:$0xff]   ;;  %v14723_v28 = vld [vmem:[#allocation14 + $0x3c0] ss:$16 sps:$4 sm:$0xff]   ;;  %v14726_v50 = vld [vmem:[#allocation14 + $0x3c8] ss:$16 sps:$4 sm:$0xff]  }
0x1025   :  { %v15108_v24 = vpop.eup %15107 }
0x1026   :  { %v10039_v59 = vsel %vm9004_vm14, %v10036_v23, 0.0  ;;  %v10345_v2 = vadd.f32 1.0, %v15108_v24  ;;  %v16102_v11 = vsel %vm9004_vm14, %v10036_v23, %v16032_v18  ;;  %v14678_v18 = vld [vmem:[#allocation14 + $0x2c8] ss:$16 sps:$4 sm:$0xff]   ;;  %v14731_v23 = vld [vmem:[#allocation14 + $0x3a4] ss:$16 sps:$4 sm:$0xff]  }
0x1027   :  { %10041 = vst [vmem:[#allocation16 + $0x30] sm:$0xff] %v10039_v59  ;;  %v10877_v61 = vpack.c.bf16 %v16102_v11, %v16102_v11  ;;  %v14734_v59 = vld [vmem:[#allocation14 + $0x3ac] ss:$16 sps:$4 sm:$0xff]   ;;  %v14732_v24 = vld [vmem:[#allocation14 + $0x3a8] ss:$16 sps:$4 sm:$0xff]  }
0x1028   :  { %15113 = vrcp.f32 %v10345_v2  ;;  %v14738_v2 = vld [vmem:[#allocation14 + $0x388] ss:$16 sps:$4 sm:$0xff]  }
0x102f   :  { %v15110_v27 = vpop.eup %15109 }
0x1030   :  { %v10349_v14 = vmul.f32 %v15110_v27, %v15106_v31  ;;  %v14729_v31 = vld [vmem:[#allocation14 + $0x3a0] ss:$16 sps:$4 sm:$0xff]   ;;  %v14737_v27 = vld [vmem:[#allocation14 + $0x384] ss:$16 sps:$4 sm:$0xff]  }
0x1031   :  { %v15112_v17 = vpop.eup %15111 }
0x1032   :  { %v10348_v13 = vmul.f32 %v15112_v17, %v16025_v49  ;;  %v14735_v17 = vld [vmem:[#allocation14 + $0x380] ss:$16 sps:$4 sm:$0xff]  }
0x1034   :  { %v10350_v40 = vadd.f32 %v10349_v14, %v10348_v13  ;;  %v14740_v14 = vld [vmem:[#allocation14 + $0x38c] ss:$16 sps:$4 sm:$0xff]   ;;  %v14743_v13 = vld [vmem:[#allocation14 + $0x364] ss:$16 sps:$4 sm:$0xff]  }
0x1035   :  { %v15114_v46 = vpop.eup %15113 }
0x1036   :  { %15115 = vtanh.f32 %v10350_v40  ;;  %v10359_v36 = vsel %vm10357_vm15, %v10350_v40, %v16025_v49  ;;  %v14677_v49 = vld [vmem:[#allocation14 + $0x2c4] ss:$16 sps:$4 sm:$0xff]   ;;  %v14746_v40 = vld [vmem:[#allocation14 + $0x36c] ss:$16 sps:$4 sm:$0xff]  }
0x1037   :  { %11413 = vst [vmem:[#allocation19] sm:$0xff] %v10359_v36  ;;  %v14741_v36 = vld [vmem:[#allocation14 + $0x360] ss:$16 sps:$4 sm:$0xff]  }
0x1043   :  { %v15116_v55 = vpop.eup %15115 }
0x1044   :  { %v10352_v22 = vmul.f32 %v15116_v55, %v15114_v46  ;;  %v14744_v46 = vld [vmem:[#allocation14 + $0x368] ss:$16 sps:$4 sm:$0xff]   ;;  %v14749_v55 = vld [vmem:[#allocation14 + $0x344] ss:$16 sps:$4 sm:$0xff]  }
0x1046   :  { %v10360_v12 = vpack.c.bf16 %v10352_v22, %v10352_v22  ;;  %v10358_v63 = vsel %vm10357_vm15, %v10352_v22, %v16061_v54  ;;  %v14686_v54 = vld [vmem:[#allocation14 + $0x2ac] ss:$16 sps:$4 sm:$0xff]  }
0x1047   :  { %11407 = vst [vmem:[#allocation17] sm:$0xff] %v10358_v63  ;;  %v14752_v22 = vld [vmem:[#allocation14 + $0x34c] ss:$16 sps:$4 sm:$0xff]  }
0x1048   :  { %10801 = vmatmul.mubr.bf16.vlgmr.msra.gmra.mxu0 %v10360_v12  ;;  %10842 = vmatmul.mubr.bf16.vlgmr.msra.gmra.mxu1 %v10360_v12  ;;  %v14747_v12 = vld [vmem:[#allocation14 + $0x340] ss:$16 sps:$4 sm:$0xff]   ;;  %v14758_v63 = vld [vmem:[#allocation14 + $0x32c] ss:$16 sps:$4 sm:$0xff]  }
0x1049   :  { %11316 = vmatprep.mubr.bf16.mxu0 %v10877_v61  ;;  %11357 = vmatprep.mubr.bf16.mxu1 %v10877_v61  ;;  %v14753_v61 = vld [vmem:[#allocation14 + $0x320] ss:$16 sps:$4 sm:$0xff]  }
0x104a   :  { %11285 = vmatpush1.bf16.msra.mxu0 %v14669_v0  ;;  %11326 = vmatpush1.bf16.msra.mxu1 %v14672_v41  ;;  %v14750_v0 = vld [vmem:[#allocation14 + $0x348] ss:$16 sps:$4 sm:$0xff]   ;;  %v14755_v41 = vld [vmem:[#allocation14 + $0x324] ss:$16 sps:$4 sm:$0xff]  }
0x104b   :  { %11286 = vmatprep.subr.bf16.mxu0 %v14677_v49  ;;  %11327 = vmatprep.subr.bf16.mxu1 %v14680_v26  ;;  %v14756_v49 = vld [vmem:[#allocation14 + $0x328] ss:$16 sps:$4 sm:$0xff]   ;;  %v14761_v26 = vld [vmem:[#allocation14 + $0x304] ss:$16 sps:$4 sm:$0xff]  }
0x104e   :  { %11287 = vmatpush1.bf16.msra.mxu0 %v14675_v25  ;;  %11328 = vmatpush1.bf16.msra.mxu1 %v14678_v18  ;;  %v14764_v25 = vld [vmem:[#allocation14 + $0x30c] ss:$16 sps:$4 sm:$0xff]   ;;  %v14759_v18 = vld [vmem:[#allocation14 + $0x300] ss:$16 sps:$4 sm:$0xff]  }
0x104f   :  { %11288 = vmatprep.subr.bf16.mxu0 %v14683_v53  ;;  %11329 = vmatprep.subr.bf16.mxu1 %v14686_v54  ;;  %v14762_v53 = vld [vmem:[#allocation14 + $0x308] ss:$16 sps:$4 sm:$0xff]   ;;  %v10426_v54 = vld [vmem:[%s16165_s8] sm:$0xf] }
0x1052   :  { %11289 = vmatpush1.bf16.msra.mxu0 %v14681_v39  ;;  %11330 = vmatpush1.bf16.msra.mxu1 %v14684_v37  ;;  %v10431_v39 = vrot.slane %v10426_v54, %v15477_v4  ;;  %v10435_v37 = vrot.slane %v10426_v54, %v15485_v8 }
0x1053   :  { %11290 = vmatprep.subr.bf16.mxu0 %v14689_v15  ;;  %11331 = vmatprep.subr.bf16.mxu1 %v14692_v42 }
0x1056   :  { %11291 = vmatpush1.bf16.msra.mxu0 %v14687_v47  ;;  %11332 = vmatpush1.bf16.msra.mxu1 %v14690_v56 }
0x1057   :  { %11292 = vmatprep.subr.bf16.mxu0 %v14695_v51  ;;  %11333 = vmatprep.subr.bf16.mxu1 %v14698_v52 }
0x105a   :  { %11293 = vmatpush1.bf16.msra.mxu0 %v14693_v60  ;;  %11334 = vmatpush1.bf16.msra.mxu1 %v14696_v35 }
0x105b   :  { %11294 = vmatprep.subr.bf16.mxu0 %v14701_v48  ;;  %11335 = vmatprep.subr.bf16.mxu1 %v14704_v38 }
0x105e   :  { %11295 = vmatpush1.bf16.msra.mxu0 %v14699_v33  ;;  %11336 = vmatpush1.bf16.msra.mxu1 %v14702_v62 }
0x105f   :  { %11296 = vmatprep.subr.bf16.mxu0 %v14707_v44  ;;  %11337 = vmatprep.subr.bf16.mxu1 %v14710_v10  ;;  %v10443_v44 = vrot.slane %v10426_v54, %v15487_v9 }
0x1062   :  { %11297 = vmatpush1.bf16.msra.mxu0 %v14705_v34  ;;  %11338 = vmatpush1.bf16.msra.mxu1 %v14708_v57  ;;  %v10439_v34 = vrot.slane %v10426_v54, %v15479_v5 }
0x1063   :  { %11298 = vmatprep.subr.bf16.mxu0 %v14713_v43  ;;  %11339 = vmatprep.subr.bf16.mxu1 %v14716_v6 }
0x1066   :  { %11299 = vmatpush1.bf16.msra.mxu0 %v14711_v20  ;;  %11340 = vmatpush1.bf16.msra.mxu1 %v14714_v21 }
0x1067   :  { %11300 = vmatprep.subr.bf16.mxu0 %v14719_v45  ;;  %11341 = vmatprep.subr.bf16.mxu1 %v14722_v16 }
0x106a   :  { %11301 = vmatpush2.bf16.msra.mxu0 %v14717_v30  ;;  %11342 = vmatpush2.bf16.msra.mxu1 %v14720_v29 }
0x106b   :  { %11302 = vmatprep.subr.bf16.mxu0 %v14725_v32  ;;  %11343 = vmatprep.subr.bf16.mxu1 %v14728_v58 }
0x106e   :  { %11303 = vmatpush2.bf16.msra.mxu0 %v14723_v28  ;;  %11344 = vmatpush2.bf16.msra.mxu1 %v14726_v50 }
0x106f   :  { %11304 = vmatprep.subr.bf16.mxu0 %v14731_v23  ;;  %11345 = vmatprep.subr.bf16.mxu1 %v14734_v59 }
0x1072   :  { %11305 = vmatpush2.bf16.msra.mxu0 %v14729_v31  ;;  %11346 = vmatpush2.bf16.msra.mxu1 %v14732_v24 }
0x1073   :  { %11306 = vmatprep.subr.bf16.mxu0 %v14737_v27  ;;  %11347 = vmatprep.subr.bf16.mxu1 %v14740_v14 }
0x1076   :  { %11307 = vmatpush2.bf16.msra.mxu0 %v14735_v17  ;;  %11348 = vmatpush2.bf16.msra.mxu1 %v14738_v2  ;;  %v12759_v2 = vld [vmem:[%s16165_s8 + $0x4] sm:$0xf]  ;;  %s15359_s8 = smov [#allocation17]  }
0x1077   :  { %11308 = vmatprep.subr.bf16.mxu0 %v14743_v13  ;;  %11349 = vmatprep.subr.bf16.mxu1 %v14746_v40  ;;  %v10947_v13 = vrot.slane %v12759_v2, %v15477_v4  ;;  %v10955_v4 = vrot.slane %v12759_v2, %v15479_v5  ;;  %s11433_s24 = sshll.u32 %s15359_s8, 4  ;;  %s11434_s24 = int_to_ptr.vmem [resolvable:$true] %s11433_s24 }
0x1078   :  { %s15274_s28 = scalar_lea.vmem %s11434_s24, 384  ;;  %p15279_p3 = scmp.lt.s32.totalorder %s11434_s24, %s11434_s24 }
0x1079   :  { %p15275_p2 = scmp.ne.s32.totalorder %s11434_s24, %s15274_s28  ;;  %p15280_p4 = scmp.lt.s32.totalorder %s15274_s28, %s15274_s28 }
0x107a   :  { %11309 = vmatpush2.bf16.msra.mxu0 %v14741_v36  ;;  %11350 = vmatpush2.bf16.msra.mxu1 %v14744_v46 }
0x107b   :  { %11310 = vmatprep.subr.bf16.mxu0 %v14749_v55  ;;  %11351 = vmatprep.subr.bf16.mxu1 %v14752_v22  ;;  %p15281_p5 = por %p15280_p4, %p15279_p3 }
0x107d   :  { %p15282_p6 = pnand %p15281_p5, %p15275_p2 }
0x107e   :  { %11311 = vmatpush2.bf16.msra.mxu0 %v14747_v12  ;;  %11352 = vmatpush2.bf16.msra.mxu1 %v14750_v0 }
0x107f   :  { %11312 = vmatprep.subr.bf16.mxu0 %v14755_v41  ;;  %11353 = vmatprep.subr.bf16.mxu1 %v14758_v63 }
0x1082   :  { %11313 = vmatpush2.bf16.msra.mxu0 %v14753_v61  ;;  %11354 = vmatpush2.bf16.msra.mxu1 %v14756_v49 }
0x1083   :  { %11314 = vmatprep.subr.bf16.mxu0 %v14761_v26  ;;  %11355 = vmatprep.subr.bf16.mxu1 %v14764_v25  ;;  %v10959_v26 = vrot.slane %v12759_v2, %v15487_v9 }
0x1086   :  { %11315 = vmatpush2.bf16.msra.mxu0 %v14759_v18  ;;  %11356 = vmatpush2.bf16.msra.mxu1 %v14762_v53 }
0x1108   :  { %v10802_v15 = vpop.f32.mrf.mxu0  ;;  %v10843_v42 = vpop.f32.mrf.mxu1 }
0x1109   :  { %v10803_v47 = vadd.f32 %v10802_v15, %v10431_v39  ;;  %v10844_v6 = vadd.f32 %v10843_v42, %v10439_v34 }
0x110a   :  { %v10804_v56 = vpop.f32.mrf.mxu0  ;;  %v10845_v51 = vpop.f32.mrf.mxu1 }
0x110b   :  { %v12756_v52 = vmul.f32 -1.442695, %v10803_v47  ;;  %v10805_v60 = vadd.f32 %v10804_v56, %v10435_v37  ;;  %v10846_v10 = vadd.f32 %v10845_v51, %v10443_v44 }
0x110c   :  { %v10806_v35 = vpop.f32.mrf.mxu0  ;;  %v10847_v48 = vpop.f32.mrf.mxu1 }
0x110d   :  { %15117 = vpow2.f32 %v12756_v52  ;;  %v12757_v38 = vmul.f32 -1.442695, %v10805_v60  ;;  %v12758_v57 = vmul.f32 -1.442695, %v10846_v10 }
0x110e   :  { %v10807_v33 = vpop.f32.mrf.mxu0  ;;  %v10848_v62 = vpop.f32.mrf.mxu1 }
0x110f   :  { %15119 = vpow2.f32 %v12757_v38 }
0x1110   :  { %15121 = vpow2.f32 %v12758_v57 }
0x111a   :  { %v15118_v43 = vpop.eup %15117 }
0x111b   :  { %v10853_v20 = vadd.f32 1.0, %v15118_v43 }
0x111c   :  { %v15120_v21 = vpop.eup %15119 }
0x111d   :  { %15123 = vrcp.f32 %v10853_v20  ;;  %v10859_v45 = vadd.f32 1.0, %v15120_v21  ;;  %v15122_v16 = vpop.eup %15121 }
0x111e   :  { %15125 = vtanh.f32 %v10844_v6  ;;  %v10866_v58 = vadd.f32 1.0, %v15122_v16 }
0x111f   :  { %15127 = vrcp.f32 %v10859_v45 }
0x1120   :  { %15129 = vrcp.f32 %v10866_v58 }
0x112a   :  { %v15124_v30 = vpop.eup %15123 }
0x112b   :  { %v15126_v29 = vpop.eup %15125 }
0x112c   :  { %v15128_v32 = vpop.eup %15127  ;;  %v10870_v28 = vmul.f32 %v15126_v29, %v15124_v30 }
0x112d   :  { %v10869_v50 = vmul.f32 %v15128_v32, %v16049_v19  ;;  %v15130_v31 = vpop.eup %15129 }
0x112f   :  { %v10871_v23 = vadd.f32 %v10870_v28, %v10869_v50 }
0x1131   :  { %15131 = vtanh.f32 %v10871_v23  ;;  %v10875_v59 = vsel %vm10357_vm15, %v10871_v23, %v16049_v19  ;;  %v10951_v19 = vrot.slane %v12759_v2, %v15485_v8 }
0x1132   :  { %11414 = vst [vmem:[#allocation19 + $0x8] sm:$0xff] %v10875_v59 }
0x113e   :  { %v15132_v24 = vpop.eup %15131 }
0x113f   :  { %v10873_v27 = vmul.f32 %v15132_v24, %v15130_v31 }
0x1141   :  { %v10876_v14 = vpack.c.bf16 %v10873_v27, %v10873_v27  ;;  %v10874_v17 = vsel %vm10357_vm15, %v10873_v27, %v16067_v1 }
0x1142   :  { %11408 = vst [vmem:[#allocation17 + $0x8] sm:$0xff] %v10874_v17 }
0x1143   :  { %11317 = vmatmul.mubr.bf16.vlgmr.msra.gmra.mxu0 %v10876_v14  ;;  %11358 = vmatmul.mubr.bf16.vlgmr.msra.gmra.mxu1 %v10876_v14 }
0x1203   :  { %v11318_v40 = vpop.f32.mrf.mxu0  ;;  %v11359_v36 = vpop.f32.mrf.mxu1 }
0x1204   :  { %v11319_v46 = vadd.f32 %v11318_v40, %v10947_v13  ;;  %v11360_v53 = vadd.f32 %v11359_v36, %v10955_v4 }
0x1205   :  { %v11320_v55 = vpop.f32.mrf.mxu0  ;;  %v11361_v22 = vpop.f32.mrf.mxu1 }
0x1206   :  { %v12824_v12 = vmul.f32 -1.442695, %v11319_v46  ;;  %v11321_v0 = vadd.f32 %v11320_v55, %v10951_v19  ;;  %v11362_v25 = vadd.f32 %v11361_v22, %v10959_v26 }
0x1207   :  { %v11322_v41 = vpop.f32.mrf.mxu0  ;;  %v11363_v1 = vpop.f32.mrf.mxu1 }
0x1208   :  { %15133 = vpow2.f32 %v12824_v12  ;;  %v12825_v63 = vmul.f32 -1.442695, %v11321_v0  ;;  %v12826_v8 = vmul.f32 -1.442695, %v11362_v25 }
0x1209   :  { %v11323_v61 = vpop.f32.mrf.mxu0  ;;  %v11364_v49 = vpop.f32.mrf.mxu1 }
0x120a   :  { %15135 = vpow2.f32 %v12825_v63 }
0x120b   :  { %15137 = vpow2.f32 %v12826_v8 }
0x1215   :  { %v15134_v18 = vpop.eup %15133 }
0x1216   :  { %v11369_v54 = vadd.f32 1.0, %v15134_v18 }
0x1217   :  { %v15136_v39 = vpop.eup %15135 }
0x1218   :  { %15139 = vrcp.f32 %v11369_v54  ;;  %v11375_v37 = vadd.f32 1.0, %v15136_v39  ;;  %v15138_v15 = vpop.eup %15137 }
0x1219   :  { %15141 = vtanh.f32 %v11360_v53  ;;  %v11382_v51 = vadd.f32 1.0, %v15138_v15 }
0x121a   :  { %15143 = vrcp.f32 %v11375_v37 }
0x121b   :  { %15145 = vrcp.f32 %v11382_v51 }
0x1225   :  { %v15140_v42 = vpop.eup %15139 }
0x1226   :  { %v15142_v47 = vpop.eup %15141 }
0x1227   :  { %v15144_v56 = vpop.eup %15143  ;;  %v11386_v52 = vmul.f32 %v15142_v47, %v15140_v42 }
0x1228   :  { %v11385_v9 = vmul.f32 %v15144_v56, %v16086_v3  ;;  %v15146_v35 = vpop.eup %15145 }
0x122a   :  { %v11387_v60 = vadd.f32 %v11386_v52, %v11385_v9 }
0x122c   :  { %15147 = vtanh.f32 %v11387_v60  ;;  %v11391_v5 = vsel %vm10357_vm15, %v11387_v60, %v16086_v3 }
0x122d   :  { %11415 = vst [vmem:[#allocation19 + $0x10] sm:$0xff] %v11391_v5 }
0x1239   :  { %v15148_v48 = vpop.eup %15147 }
0x123a   :  { %v11389_v38 = vmul.f32 %v15148_v48, %v15146_v35 }
0x123c   :  { %v11390_v33 = vsel %vm10357_vm15, %v11389_v38, %v16102_v11  ;;  %v11392_v62 = vsel %vm10357_vm15, %v11389_v38, 0.0 }
0x123d   :  { %11394 = vst [vmem:[#allocation16 + $0x38] sm:$0xff] %v11392_v62  ;;  %11409 = vst [vmem:[#allocation17 + $0x10] sm:$0xff] %v11390_v33 }
0x123e   :  { %15285 = shalt.err (!%p15282_p6)
}
0x123f   :  { %11439 = dma.vmem_to_hbm [thread:$0]  %s11434_s24, 384, %s16167_s10, [#allocation18], %s15347_s20, %s15347_s20, %s15348_s21  }
0x1240   :  { %s15294_s3 = scalar_lea.vmem %s11422_s1, 1024  ;;  %p15299_p8 = scmp.lt.s32.totalorder %s11422_s1, %s11422_s1 }
0x1241   :  { %p15295_p7 = scmp.ne.s32.totalorder %s11422_s1, %s15294_s3  ;;  %p15300_p9 = scmp.lt.s32.totalorder %s15294_s3, %s15294_s3 }
0x1243   :  { %p15301_p10 = por %p15300_p9, %p15299_p8 }
0x1245   :  { %p15302_p11 = pnand %p15301_p10, %p15295_p7 }
0x1247   :  { %15305 = shalt.err (!%p15302_p11)
}
0x1248   :  { %11427 = dma.vmem_to_hbm [thread:$0]  %s11422_s1, 1024, %s16166_s9, [#allocation7], %s15347_s20, %s15347_s20, %s15348_s21  }
0x1249   :  { %s15314_s7 = scalar_lea.vmem %s11446_s27, 384  ;;  %p15319_p13 = scmp.lt.s32.totalorder %s11446_s27, %s11446_s27 }
0x124a   :  { %p15315_p12 = scmp.ne.s32.totalorder %s11446_s27, %s15314_s7  ;;  %p15320_p0 = scmp.lt.s32.totalorder %s15314_s7, %s15314_s7 }
0x124c   :  { %p15321_p1 = por %p15320_p0, %p15319_p13 }
0x124e   :  { %p15322_p2 = pnand %p15321_p1, %p15315_p12 }
0x1250   :  { %15325 = shalt.err (!%p15322_p2)
}
0x1251   :  { %11451 = dma.vmem_to_hbm [thread:$0]  %s11446_s27, 384, %s16168_s11, [#allocation18], %s15347_s20, %s15347_s20, %s15348_s21  }
0x1252   :  { %15342 = dma.done.wait [#allocation7], 1024  }
0x1253   :  { %15343 = vsyncadd [#allocation7], 4294966272 }
0x1254   :  { %15344 = dma.done.wait [#allocation18], 768  }
0x1255   :  { %15345 = vsyncadd [#allocation18], 4294966528 }
0x1256   :  { %11461 = vsyncpa [#allocation6], 1 }
0x1257   :  { %11462 = vsyncpa [#allocation9], 1 }
0x1258   :  { %11463 = vsyncpa [#allocation12], 1 }
0x1259   :  { %11464 = vsyncpa [#allocation15], 1 }
0x125a   :  { %11465 = vsyncpa [#allocation7], 1 }
0x125b   :  { %11466 = vsyncpa [#allocation18], 1 }

</bundles_post_ra>
